<compile_context>
chip_gen: v7x
topology: tpu7x:2x2x1
jax: 0.10.0
libtpu: 0.0.40
codegen_flags: <defaults>
</compile_context>

<pallas_src>
import jax
import jax.numpy as jnp
import numpy as np
from jax.experimental import pallas as pl
from jax.experimental.pallas import tpu as pltpu

BN_EPS = 1e-5  # PyTorch BatchNorm2d default


def _gcn_layer(x, g, w_cat, gamma, beta):
    """One fused gcn_spa layer on values already resident in VMEM/vregs.

    x     : (NT, V, Cin)   channels-last activations
    g     : (NT, V, V)     adjacency per (n, t)
    w_cat : (2*Cin, Cout)  stacked [w; w1]   (conv biases cancel under BN)
    gamma, beta : (1, Cout)
    returns (NT, V, Cout)
    """
    NT, V, Cin = x.shape
    Cout = w_cat.shape[-1]

    # --- graph aggregation on the VPU: gx[b,i,c] = sum_j g[b,i,j] * x[b,j,c].
    # V == 8, so fully unroll: lane-broadcast of g columns * sublane-broadcast
    # of x rows, accumulated with fused mul-adds.
    gx = g[:, :, 0:1] * x[:, 0:1, :]
    for j in range(1, V):
        gx = gx + g[:, :, j:j + 1] * x[:, j:j + 1, :]

    # --- merged 1x1 convs: [gx, x] @ [w; w1]  (one MXU matmul, K = 2*Cin) ---
    flat = jnp.concatenate(
        [gx.reshape(NT * V, Cin), x.reshape(NT * V, Cin)], axis=-1)
    h = jnp.dot(flat, w_cat, preferred_element_type=jnp.float32)

    # --- BatchNorm2d (training-mode biased batch stats) + ReLU, single pass ---
    mean = jnp.mean(h, axis=0, keepdims=True)
    var = jnp.maximum(jnp.mean(h * h, axis=0, keepdims=True) - mean * mean, 0.0)
    hn = (h - mean) * jax.lax.rsqrt(var + BN_EPS)
    out = jnp.maximum(gamma * hn + beta, 0.0)
    return out.reshape(NT, V, Cout)


def gcn_big_kernel(x_ref, g_ref,
                   w1_ref, gamma1_ref, beta1_ref,
                   w2_ref, gamma2_ref, beta2_ref,
                   w3_ref, gamma3_ref, beta3_ref,
                   o_ref):
    g = g_ref[...]
    x = x_ref[...]
    x = _gcn_layer(x, g, w1_ref[...], gamma1_ref[...], beta1_ref[...])
    x = _gcn_layer(x, g, w2_ref[...], gamma2_ref[...], beta2_ref[...])
    x = _gcn_layer(x, g, w3_ref[...], gamma3_ref[...], beta3_ref[...])
    o_ref[...] = x


def prepare_gcn_big_params(params):
    """Stack [w; w1] once per layer; drop b1 (it cancels under batch-stat BN)."""
    fused = []
    for p in params:
        fused += [jnp.concatenate([p["w"], p["w1"]], axis=0),
                  p["gamma"], p["beta"]]
    return tuple(fused)


@jax.jit
def gcn_big_forward(fused_params, x_nchw, g):
    """GCNBig.forward: x_nchw (N, C=dim//2, V, T), g (N, T, V, V) -> (N, dim, V, T)."""
    N, _, V, T = x_nchw.shape
    Cout = fused_params[-3].shape[-1]
    x = jnp.transpose(x_nchw, (0, 3, 2, 1)).reshape(N * T, V, -1)  # (NT, V, C)
    g3 = g.reshape(N * T, V, V)
    args = (x, g3) + tuple(fused_params)
    out = pl.pallas_call(
        gcn_big_kernel,
        out_shape=jax.ShapeDtypeStruct((N * T, V, Cout), jnp.float32),
        in_specs=[pl.BlockSpec(memory_space=pltpu.MemorySpace.VMEM)] * len(args),
        out_specs=pl.BlockSpec(memory_space=pltpu.MemorySpace.VMEM),
    )(*args)
    # TODO(synk): for production shapes (T~300, V~25, batch 32+) add a grid over
    # N*T marked "parallel" (two-pass BN accumulation) instead of the
    # whole-array-in-VMEM design; at these toy shapes the grid overhead loses.
    return jnp.transpose(out.reshape(N, T, V, Cout), (0, 3, 2, 1))


def init_gcn_spa_params(key, c_in, c_out, bias):
    """Deterministic synthetic parameters (shapes match the PyTorch module)."""
    k0, k1, k2 = jax.random.split(key, 3)
    # conv1x1 weights stored as (Cin, Cout) == Conv2d weight (Cout, Cin, 1, 1).T
    w = 0.1 * jax.random.normal(k0, (c_in, c_out), jnp.float32)
    w1 = 0.1 * jax.random.normal(k1, (c_in, c_out), jnp.float32)
    if bias:
        b1 = 0.1 * jax.random.normal(k2, (1, c_out), jnp.float32)
    else:
        b1 = jnp.zeros((1, c_out), jnp.float32)
    gamma = jnp.ones((1, c_out), jnp.float32)   # BN default init
    beta = jnp.zeros((1, c_out), jnp.float32)
    return dict(w=w, w1=w1, b1=b1, gamma=gamma, beta=beta)


# ----------------------- pure-JAX reference (for checking) -----------------------
def gcn_spa_ref(x_ntvc, g, p):
    gx = jnp.einsum("ntuv,ntvc->ntuc", g, x_ntvc)
    h = gx @ p["w"] + x_ntvc @ p["w1"] + p["b1"]   # keeps b1: cancels under BN
    mean = jnp.mean(h, axis=(0, 1, 2), keepdims=True)
    var = jnp.mean((h - mean) ** 2, axis=(0, 1, 2), keepdims=True)
    hn = (h - mean) * jax.lax.rsqrt(var + BN_EPS)
    return jnp.maximum(p["gamma"] * hn + p["beta"], 0.0)


if __name__ == "__main__":
    dim = 32          # GCNBig(dim=32, bias=True): channels dim//2 -> dim//2 -> dim -> dim
    N, V, T = 2, 8, 16

    key = jax.random.PRNGKey(0)
    kx, kg, k1, k2, k3 = jax.random.split(key, 5)

    # PyTorch-layout inputs: x (N, C=dim//2, V, T), g (N, T, V, V) row-stochastic
    x = jax.random.normal(kx, (N, dim // 2, V, T), jnp.float32)
    g = jax.nn.softmax(jax.random.normal(kg, (N, T, V, V), jnp.float32), axis=-1)

    params = [
        init_gcn_spa_params(k1, dim // 2, dim // 2, bias=True),  # gcn1
        init_gcn_spa_params(k2, dim // 2, dim, bias=True),       # gcn2
        init_gcn_spa_params(k3, dim, dim, bias=True),            # gcn3
    ]
    fused = prepare_gcn_big_params(params)

    out = gcn_big_forward(fused, x, g)
    out = jax.block_until_ready(out)
    assert out.shape == (N, dim, V, T)

    # compare against pure-JAX reference
    xr = jnp.transpose(x, (0, 3, 2, 1))
    for p in params:
        xr = gcn_spa_ref(xr, g, p)
    ref = jnp.transpose(xr, (0, 3, 2, 1))
    np.testing.assert_allclose(np.asarray(out), np.asarray(ref), rtol=1e-4, atol=1e-4)

    print("KERNEL_OK")
</pallas_src>

<mosaic_0001>
module attributes {stable_mosaic.version = 11 : i64} {
  func.func @gcn_big_kernel(%arg0: memref<32x8x16xf32, #tpu.memory_space<vmem>>, %arg1: memref<32x8x8xf32, #tpu.memory_space<vmem>>, %arg2: memref<32x16xf32, #tpu.memory_space<vmem>>, %arg3: memref<1x16xf32, #tpu.memory_space<vmem>>, %arg4: memref<1x16xf32, #tpu.memory_space<vmem>>, %arg5: memref<32x32xf32, #tpu.memory_space<vmem>>, %arg6: memref<1x32xf32, #tpu.memory_space<vmem>>, %arg7: memref<1x32xf32, #tpu.memory_space<vmem>>, %arg8: memref<64x32xf32, #tpu.memory_space<vmem>>, %arg9: memref<1x32xf32, #tpu.memory_space<vmem>>, %arg10: memref<1x32xf32, #tpu.memory_space<vmem>>, %arg11: memref<32x8x32xf32, #tpu.memory_space<vmem>>) attributes {dimension_semantics = [], scalar_prefetch = 0 : i64, scratch_operands = 0 : i64, tpu.core_type = #tpu.core_type<tc>} {
    %c0 = arith.constant 0 : index
    %c0_0 = arith.constant 0 : index
    %c0_1 = arith.constant 0 : index
    %0 = vector.load %arg1[%c0, %c0_0, %c0_1] : memref<32x8x8xf32, #tpu.memory_space<vmem>>, vector<32x8x8xf32>
    %c0_2 = arith.constant 0 : index
    %c0_3 = arith.constant 0 : index
    %c0_4 = arith.constant 0 : index
    %1 = vector.load %arg0[%c0_2, %c0_3, %c0_4] : memref<32x8x16xf32, #tpu.memory_space<vmem>>, vector<32x8x16xf32>
    %c0_5 = arith.constant 0 : index
    %c0_6 = arith.constant 0 : index
    %2 = vector.load %arg2[%c0_5, %c0_6] : memref<32x16xf32, #tpu.memory_space<vmem>>, vector<32x16xf32>
    %c0_7 = arith.constant 0 : index
    %c0_8 = arith.constant 0 : index
    %3 = vector.load %arg3[%c0_7, %c0_8] : memref<1x16xf32, #tpu.memory_space<vmem>>, vector<1x16xf32>
    %c0_9 = arith.constant 0 : index
    %c0_10 = arith.constant 0 : index
    %4 = vector.load %arg4[%c0_9, %c0_10] : memref<1x16xf32, #tpu.memory_space<vmem>>, vector<1x16xf32>
    %5 = vector.extract_strided_slice %0 {offsets = [0, 0, 0], sizes = [32, 8, 1], strides = [1, 1, 1]} : vector<32x8x8xf32> to vector<32x8x1xf32>
    %6 = vector.extract_strided_slice %1 {offsets = [0, 0, 0], sizes = [32, 1, 16], strides = [1, 1, 1]} : vector<32x8x16xf32> to vector<32x1x16xf32>
    %7 = vector.broadcast %5 : vector<32x8x1xf32> to vector<32x8x16xf32>
    %8 = vector.broadcast %6 : vector<32x1x16xf32> to vector<32x8x16xf32>
    %9 = arith.mulf %7, %8 : vector<32x8x16xf32>
    %10 = vector.extract_strided_slice %0 {offsets = [0, 0, 1], sizes = [32, 8, 1], strides = [1, 1, 1]} : vector<32x8x8xf32> to vector<32x8x1xf32>
    %11 = vector.extract_strided_slice %1 {offsets = [0, 1, 0], sizes = [32, 1, 16], strides = [1, 1, 1]} : vector<32x8x16xf32> to vector<32x1x16xf32>
    %12 = vector.broadcast %10 : vector<32x8x1xf32> to vector<32x8x16xf32>
    %13 = vector.broadcast %11 : vector<32x1x16xf32> to vector<32x8x16xf32>
    %14 = arith.mulf %12, %13 : vector<32x8x16xf32>
    %15 = arith.addf %9, %14 : vector<32x8x16xf32>
    %16 = vector.extract_strided_slice %0 {offsets = [0, 0, 2], sizes = [32, 8, 1], strides = [1, 1, 1]} : vector<32x8x8xf32> to vector<32x8x1xf32>
    %17 = vector.extract_strided_slice %1 {offsets = [0, 2, 0], sizes = [32, 1, 16], strides = [1, 1, 1]} : vector<32x8x16xf32> to vector<32x1x16xf32>
    %18 = vector.broadcast %16 : vector<32x8x1xf32> to vector<32x8x16xf32>
    %19 = vector.broadcast %17 : vector<32x1x16xf32> to vector<32x8x16xf32>
    %20 = arith.mulf %18, %19 : vector<32x8x16xf32>
    %21 = arith.addf %15, %20 : vector<32x8x16xf32>
    %22 = vector.extract_strided_slice %0 {offsets = [0, 0, 3], sizes = [32, 8, 1], strides = [1, 1, 1]} : vector<32x8x8xf32> to vector<32x8x1xf32>
    %23 = vector.extract_strided_slice %1 {offsets = [0, 3, 0], sizes = [32, 1, 16], strides = [1, 1, 1]} : vector<32x8x16xf32> to vector<32x1x16xf32>
    %24 = vector.broadcast %22 : vector<32x8x1xf32> to vector<32x8x16xf32>
    %25 = vector.broadcast %23 : vector<32x1x16xf32> to vector<32x8x16xf32>
    %26 = arith.mulf %24, %25 : vector<32x8x16xf32>
    %27 = arith.addf %21, %26 : vector<32x8x16xf32>
    %28 = vector.extract_strided_slice %0 {offsets = [0, 0, 4], sizes = [32, 8, 1], strides = [1, 1, 1]} : vector<32x8x8xf32> to vector<32x8x1xf32>
    %29 = vector.extract_strided_slice %1 {offsets = [0, 4, 0], sizes = [32, 1, 16], strides = [1, 1, 1]} : vector<32x8x16xf32> to vector<32x1x16xf32>
    %30 = vector.broadcast %28 : vector<32x8x1xf32> to vector<32x8x16xf32>
    %31 = vector.broadcast %29 : vector<32x1x16xf32> to vector<32x8x16xf32>
    %32 = arith.mulf %30, %31 : vector<32x8x16xf32>
    %33 = arith.addf %27, %32 : vector<32x8x16xf32>
    %34 = vector.extract_strided_slice %0 {offsets = [0, 0, 5], sizes = [32, 8, 1], strides = [1, 1, 1]} : vector<32x8x8xf32> to vector<32x8x1xf32>
    %35 = vector.extract_strided_slice %1 {offsets = [0, 5, 0], sizes = [32, 1, 16], strides = [1, 1, 1]} : vector<32x8x16xf32> to vector<32x1x16xf32>
    %36 = vector.broadcast %34 : vector<32x8x1xf32> to vector<32x8x16xf32>
    %37 = vector.broadcast %35 : vector<32x1x16xf32> to vector<32x8x16xf32>
    %38 = arith.mulf %36, %37 : vector<32x8x16xf32>
    %39 = arith.addf %33, %38 : vector<32x8x16xf32>
    %40 = vector.extract_strided_slice %0 {offsets = [0, 0, 6], sizes = [32, 8, 1], strides = [1, 1, 1]} : vector<32x8x8xf32> to vector<32x8x1xf32>
    %41 = vector.extract_strided_slice %1 {offsets = [0, 6, 0], sizes = [32, 1, 16], strides = [1, 1, 1]} : vector<32x8x16xf32> to vector<32x1x16xf32>
    %42 = vector.broadcast %40 : vector<32x8x1xf32> to vector<32x8x16xf32>
    %43 = vector.broadcast %41 : vector<32x1x16xf32> to vector<32x8x16xf32>
    %44 = arith.mulf %42, %43 : vector<32x8x16xf32>
    %45 = arith.addf %39, %44 : vector<32x8x16xf32>
    %46 = vector.extract_strided_slice %0 {offsets = [0, 0, 7], sizes = [32, 8, 1], strides = [1, 1, 1]} : vector<32x8x8xf32> to vector<32x8x1xf32>
    %47 = vector.extract_strided_slice %1 {offsets = [0, 7, 0], sizes = [32, 1, 16], strides = [1, 1, 1]} : vector<32x8x16xf32> to vector<32x1x16xf32>
    %48 = vector.broadcast %46 : vector<32x8x1xf32> to vector<32x8x16xf32>
    %49 = vector.broadcast %47 : vector<32x1x16xf32> to vector<32x8x16xf32>
    %50 = arith.mulf %48, %49 : vector<32x8x16xf32>
    %51 = arith.addf %45, %50 : vector<32x8x16xf32>
    %52 = vector.shape_cast %51 : vector<32x8x16xf32> to vector<256x16xf32>
    %53 = vector.shape_cast %1 : vector<32x8x16xf32> to vector<256x16xf32>
    %54 = tpu.concatenate %52, %53 in 1 : vector<256x16xf32>, vector<256x16xf32> -> vector<256x32xf32>
    %cst = arith.constant dense<0.000000e+00> : vector<256x16xf32>
    %55 = tpu.matmul %54, %2, %cst {dimension_numbers = #tpu.dot_dimension_numbers<[1], [0], [0], [1], [0, 0, 1, 1], [], []>} : vector<256x32xf32>, vector<32x16xf32>, vector<256x16xf32> -> vector<256x16xf32>
    %cst_11 = arith.constant dense<0.000000e+00> : vector<16xf32>
    %56 = vector.multi_reduction <add>, %55, %cst_11 [0] : vector<256x16xf32> to vector<16xf32>
    %57 = vector.shape_cast %56 : vector<16xf32> to vector<1x16xf32>
    %cst_12 = arith.constant 2.560000e+02 : f32
    %58 = vector.broadcast %cst_12 : f32 to vector<1x16xf32>
    %59 = arith.divf %57, %58 : vector<1x16xf32>
    %60 = arith.mulf %55, %55 : vector<256x16xf32>
    %cst_13 = arith.constant dense<0.000000e+00> : vector<16xf32>
    %61 = vector.multi_reduction <add>, %60, %cst_13 [0] : vector<256x16xf32> to vector<16xf32>
    %62 = vector.shape_cast %61 : vector<16xf32> to vector<1x16xf32>
    %cst_14 = arith.constant 2.560000e+02 : f32
    %63 = vector.broadcast %cst_14 : f32 to vector<1x16xf32>
    %64 = arith.divf %62, %63 : vector<1x16xf32>
    %65 = arith.mulf %59, %59 : vector<1x16xf32>
    %66 = arith.subf %64, %65 : vector<1x16xf32>
    %cst_15 = arith.constant 0.000000e+00 : f32
    %67 = vector.broadcast %cst_15 : f32 to vector<1x16xf32>
    %68 = arith.maximumf %66, %67 : vector<1x16xf32>
    %69 = vector.broadcast %59 : vector<1x16xf32> to vector<256x16xf32>
    %70 = arith.subf %55, %69 : vector<256x16xf32>
    %cst_16 = arith.constant 9.99999974E-6 : f32
    %71 = vector.broadcast %cst_16 : f32 to vector<1x16xf32>
    %72 = arith.addf %68, %71 : vector<1x16xf32>
    %73 = math.rsqrt %72 : vector<1x16xf32>
    %74 = vector.broadcast %73 : vector<1x16xf32> to vector<256x16xf32>
    %75 = arith.mulf %70, %74 : vector<256x16xf32>
    %76 = vector.broadcast %3 : vector<1x16xf32> to vector<256x16xf32>
    %77 = arith.mulf %76, %75 : vector<256x16xf32>
    %78 = vector.broadcast %4 : vector<1x16xf32> to vector<256x16xf32>
    %79 = arith.addf %77, %78 : vector<256x16xf32>
    %cst_17 = arith.constant 0.000000e+00 : f32
    %80 = vector.broadcast %cst_17 : f32 to vector<256x16xf32>
    %81 = arith.maximumf %79, %80 : vector<256x16xf32>
    %82 = vector.shape_cast %81 : vector<256x16xf32> to vector<32x8x16xf32>
    %c0_18 = arith.constant 0 : index
    %c0_19 = arith.constant 0 : index
    %83 = vector.load %arg5[%c0_18, %c0_19] : memref<32x32xf32, #tpu.memory_space<vmem>>, vector<32x32xf32>
    %c0_20 = arith.constant 0 : index
    %c0_21 = arith.constant 0 : index
    %84 = vector.load %arg6[%c0_20, %c0_21] : memref<1x32xf32, #tpu.memory_space<vmem>>, vector<1x32xf32>
    %c0_22 = arith.constant 0 : index
    %c0_23 = arith.constant 0 : index
    %85 = vector.load %arg7[%c0_22, %c0_23] : memref<1x32xf32, #tpu.memory_space<vmem>>, vector<1x32xf32>
    %86 = vector.extract_strided_slice %0 {offsets = [0, 0, 0], sizes = [32, 8, 1], strides = [1, 1, 1]} : vector<32x8x8xf32> to vector<32x8x1xf32>
    %87 = vector.extract_strided_slice %82 {offsets = [0, 0, 0], sizes = [32, 1, 16], strides = [1, 1, 1]} : vector<32x8x16xf32> to vector<32x1x16xf32>
    %88 = vector.broadcast %86 : vector<32x8x1xf32> to vector<32x8x16xf32>
    %89 = vector.broadcast %87 : vector<32x1x16xf32> to vector<32x8x16xf32>
    %90 = arith.mulf %88, %89 : vector<32x8x16xf32>
    %91 = vector.extract_strided_slice %0 {offsets = [0, 0, 1], sizes = [32, 8, 1], strides = [1, 1, 1]} : vector<32x8x8xf32> to vector<32x8x1xf32>
    %92 = vector.extract_strided_slice %82 {offsets = [0, 1, 0], sizes = [32, 1, 16], strides = [1, 1, 1]} : vector<32x8x16xf32> to vector<32x1x16xf32>
    %93 = vector.broadcast %91 : vector<32x8x1xf32> to vector<32x8x16xf32>
    %94 = vector.broadcast %92 : vector<32x1x16xf32> to vector<32x8x16xf32>
    %95 = arith.mulf %93, %94 : vector<32x8x16xf32>
    %96 = arith.addf %90, %95 : vector<32x8x16xf32>
    %97 = vector.extract_strided_slice %0 {offsets = [0, 0, 2], sizes = [32, 8, 1], strides = [1, 1, 1]} : vector<32x8x8xf32> to vector<32x8x1xf32>
    %98 = vector.extract_strided_slice %82 {offsets = [0, 2, 0], sizes = [32, 1, 16], strides = [1, 1, 1]} : vector<32x8x16xf32> to vector<32x1x16xf32>
    %99 = vector.broadcast %97 : vector<32x8x1xf32> to vector<32x8x16xf32>
    %100 = vector.broadcast %98 : vector<32x1x16xf32> to vector<32x8x16xf32>
    %101 = arith.mulf %99, %100 : vector<32x8x16xf32>
    %102 = arith.addf %96, %101 : vector<32x8x16xf32>
    %103 = vector.extract_strided_slice %0 {offsets = [0, 0, 3], sizes = [32, 8, 1], strides = [1, 1, 1]} : vector<32x8x8xf32> to vector<32x8x1xf32>
    %104 = vector.extract_strided_slice %82 {offsets = [0, 3, 0], sizes = [32, 1, 16], strides = [1, 1, 1]} : vector<32x8x16xf32> to vector<32x1x16xf32>
    %105 = vector.broadcast %103 : vector<32x8x1xf32> to vector<32x8x16xf32>
    %106 = vector.broadcast %104 : vector<32x1x16xf32> to vector<32x8x16xf32>
    %107 = arith.mulf %105, %106 : vector<32x8x16xf32>
    %108 = arith.addf %102, %107 : vector<32x8x16xf32>
    %109 = vector.extract_strided_slice %0 {offsets = [0, 0, 4], sizes = [32, 8, 1], strides = [1, 1, 1]} : vector<32x8x8xf32> to vector<32x8x1xf32>
    %110 = vector.extract_strided_slice %82 {offsets = [0, 4, 0], sizes = [32, 1, 16], strides = [1, 1, 1]} : vector<32x8x16xf32> to vector<32x1x16xf32>
    %111 = vector.broadcast %109 : vector<32x8x1xf32> to vector<32x8x16xf32>
    %112 = vector.broadcast %110 : vector<32x1x16xf32> to vector<32x8x16xf32>
    %113 = arith.mulf %111, %112 : vector<32x8x16xf32>
    %114 = arith.addf %108, %113 : vector<32x8x16xf32>
    %115 = vector.extract_strided_slice %0 {offsets = [0, 0, 5], sizes = [32, 8, 1], strides = [1, 1, 1]} : vector<32x8x8xf32> to vector<32x8x1xf32>
    %116 = vector.extract_strided_slice %82 {offsets = [0, 5, 0], sizes = [32, 1, 16], strides = [1, 1, 1]} : vector<32x8x16xf32> to vector<32x1x16xf32>
    %117 = vector.broadcast %115 : vector<32x8x1xf32> to vector<32x8x16xf32>
    %118 = vector.broadcast %116 : vector<32x1x16xf32> to vector<32x8x16xf32>
    %119 = arith.mulf %117, %118 : vector<32x8x16xf32>
    %120 = arith.addf %114, %119 : vector<32x8x16xf32>
    %121 = vector.extract_strided_slice %0 {offsets = [0, 0, 6], sizes = [32, 8, 1], strides = [1, 1, 1]} : vector<32x8x8xf32> to vector<32x8x1xf32>
    %122 = vector.extract_strided_slice %82 {offsets = [0, 6, 0], sizes = [32, 1, 16], strides = [1, 1, 1]} : vector<32x8x16xf32> to vector<32x1x16xf32>
    %123 = vector.broadcast %121 : vector<32x8x1xf32> to vector<32x8x16xf32>
    %124 = vector.broadcast %122 : vector<32x1x16xf32> to vector<32x8x16xf32>
    %125 = arith.mulf %123, %124 : vector<32x8x16xf32>
    %126 = arith.addf %120, %125 : vector<32x8x16xf32>
    %127 = vector.extract_strided_slice %0 {offsets = [0, 0, 7], sizes = [32, 8, 1], strides = [1, 1, 1]} : vector<32x8x8xf32> to vector<32x8x1xf32>
    %128 = vector.extract_strided_slice %82 {offsets = [0, 7, 0], sizes = [32, 1, 16], strides = [1, 1, 1]} : vector<32x8x16xf32> to vector<32x1x16xf32>
    %129 = vector.broadcast %127 : vector<32x8x1xf32> to vector<32x8x16xf32>
    %130 = vector.broadcast %128 : vector<32x1x16xf32> to vector<32x8x16xf32>
    %131 = arith.mulf %129, %130 : vector<32x8x16xf32>
    %132 = arith.addf %126, %131 : vector<32x8x16xf32>
    %133 = vector.shape_cast %132 : vector<32x8x16xf32> to vector<256x16xf32>
    %134 = vector.shape_cast %82 : vector<32x8x16xf32> to vector<256x16xf32>
    %135 = tpu.concatenate %133, %134 in 1 : vector<256x16xf32>, vector<256x16xf32> -> vector<256x32xf32>
    %cst_24 = arith.constant dense<0.000000e+00> : vector<256x32xf32>
    %136 = tpu.matmul %135, %83, %cst_24 {dimension_numbers = #tpu.dot_dimension_numbers<[1], [0], [0], [1], [0, 0, 1, 1], [], []>} : vector<256x32xf32>, vector<32x32xf32>, vector<256x32xf32> -> vector<256x32xf32>
    %cst_25 = arith.constant dense<0.000000e+00> : vector<32xf32>
    %137 = vector.multi_reduction <add>, %136, %cst_25 [0] : vector<256x32xf32> to vector<32xf32>
    %138 = vector.shape_cast %137 : vector<32xf32> to vector<1x32xf32>
    %cst_26 = arith.constant 2.560000e+02 : f32
    %139 = vector.broadcast %cst_26 : f32 to vector<1x32xf32>
    %140 = arith.divf %138, %139 : vector<1x32xf32>
    %141 = arith.mulf %136, %136 : vector<256x32xf32>
    %cst_27 = arith.constant dense<0.000000e+00> : vector<32xf32>
    %142 = vector.multi_reduction <add>, %141, %cst_27 [0] : vector<256x32xf32> to vector<32xf32>
    %143 = vector.shape_cast %142 : vector<32xf32> to vector<1x32xf32>
    %cst_28 = arith.constant 2.560000e+02 : f32
    %144 = vector.broadcast %cst_28 : f32 to vector<1x32xf32>
    %145 = arith.divf %143, %144 : vector<1x32xf32>
    %146 = arith.mulf %140, %140 : vector<1x32xf32>
    %147 = arith.subf %145, %146 : vector<1x32xf32>
    %cst_29 = arith.constant 0.000000e+00 : f32
    %148 = vector.broadcast %cst_29 : f32 to vector<1x32xf32>
    %149 = arith.maximumf %147, %148 : vector<1x32xf32>
    %150 = vector.broadcast %140 : vector<1x32xf32> to vector<256x32xf32>
    %151 = arith.subf %136, %150 : vector<256x32xf32>
    %cst_30 = arith.constant 9.99999974E-6 : f32
    %152 = vector.broadcast %cst_30 : f32 to vector<1x32xf32>
    %153 = arith.addf %149, %152 : vector<1x32xf32>
    %154 = math.rsqrt %153 : vector<1x32xf32>
    %155 = vector.broadcast %154 : vector<1x32xf32> to vector<256x32xf32>
    %156 = arith.mulf %151, %155 : vector<256x32xf32>
    %157 = vector.broadcast %84 : vector<1x32xf32> to vector<256x32xf32>
    %158 = arith.mulf %157, %156 : vector<256x32xf32>
    %159 = vector.broadcast %85 : vector<1x32xf32> to vector<256x32xf32>
    %160 = arith.addf %158, %159 : vector<256x32xf32>
    %cst_31 = arith.constant 0.000000e+00 : f32
    %161 = vector.broadcast %cst_31 : f32 to vector<256x32xf32>
    %162 = arith.maximumf %160, %161 : vector<256x32xf32>
    %163 = vector.shape_cast %162 : vector<256x32xf32> to vector<32x8x32xf32>
    %c0_32 = arith.constant 0 : index
    %c0_33 = arith.constant 0 : index
    %164 = vector.load %arg8[%c0_32, %c0_33] : memref<64x32xf32, #tpu.memory_space<vmem>>, vector<64x32xf32>
    %c0_34 = arith.constant 0 : index
    %c0_35 = arith.constant 0 : index
    %165 = vector.load %arg9[%c0_34, %c0_35] : memref<1x32xf32, #tpu.memory_space<vmem>>, vector<1x32xf32>
    %c0_36 = arith.constant 0 : index
    %c0_37 = arith.constant 0 : index
    %166 = vector.load %arg10[%c0_36, %c0_37] : memref<1x32xf32, #tpu.memory_space<vmem>>, vector<1x32xf32>
    %167 = vector.extract_strided_slice %0 {offsets = [0, 0, 0], sizes = [32, 8, 1], strides = [1, 1, 1]} : vector<32x8x8xf32> to vector<32x8x1xf32>
    %168 = vector.extract_strided_slice %163 {offsets = [0, 0, 0], sizes = [32, 1, 32], strides = [1, 1, 1]} : vector<32x8x32xf32> to vector<32x1x32xf32>
    %169 = vector.broadcast %167 : vector<32x8x1xf32> to vector<32x8x32xf32>
    %170 = vector.broadcast %168 : vector<32x1x32xf32> to vector<32x8x32xf32>
    %171 = arith.mulf %169, %170 : vector<32x8x32xf32>
    %172 = vector.extract_strided_slice %0 {offsets = [0, 0, 1], sizes = [32, 8, 1], strides = [1, 1, 1]} : vector<32x8x8xf32> to vector<32x8x1xf32>
    %173 = vector.extract_strided_slice %163 {offsets = [0, 1, 0], sizes = [32, 1, 32], strides = [1, 1, 1]} : vector<32x8x32xf32> to vector<32x1x32xf32>
    %174 = vector.broadcast %172 : vector<32x8x1xf32> to vector<32x8x32xf32>
    %175 = vector.broadcast %173 : vector<32x1x32xf32> to vector<32x8x32xf32>
    %176 = arith.mulf %174, %175 : vector<32x8x32xf32>
    %177 = arith.addf %171, %176 : vector<32x8x32xf32>
    %178 = vector.extract_strided_slice %0 {offsets = [0, 0, 2], sizes = [32, 8, 1], strides = [1, 1, 1]} : vector<32x8x8xf32> to vector<32x8x1xf32>
    %179 = vector.extract_strided_slice %163 {offsets = [0, 2, 0], sizes = [32, 1, 32], strides = [1, 1, 1]} : vector<32x8x32xf32> to vector<32x1x32xf32>
    %180 = vector.broadcast %178 : vector<32x8x1xf32> to vector<32x8x32xf32>
    %181 = vector.broadcast %179 : vector<32x1x32xf32> to vector<32x8x32xf32>
    %182 = arith.mulf %180, %181 : vector<32x8x32xf32>
    %183 = arith.addf %177, %182 : vector<32x8x32xf32>
    %184 = vector.extract_strided_slice %0 {offsets = [0, 0, 3], sizes = [32, 8, 1], strides = [1, 1, 1]} : vector<32x8x8xf32> to vector<32x8x1xf32>
    %185 = vector.extract_strided_slice %163 {offsets = [0, 3, 0], sizes = [32, 1, 32], strides = [1, 1, 1]} : vector<32x8x32xf32> to vector<32x1x32xf32>
    %186 = vector.broadcast %184 : vector<32x8x1xf32> to vector<32x8x32xf32>
    %187 = vector.broadcast %185 : vector<32x1x32xf32> to vector<32x8x32xf32>
    %188 = arith.mulf %186, %187 : vector<32x8x32xf32>
    %189 = arith.addf %183, %188 : vector<32x8x32xf32>
    %190 = vector.extract_strided_slice %0 {offsets = [0, 0, 4], sizes = [32, 8, 1], strides = [1, 1, 1]} : vector<32x8x8xf32> to vector<32x8x1xf32>
    %191 = vector.extract_strided_slice %163 {offsets = [0, 4, 0], sizes = [32, 1, 32], strides = [1, 1, 1]} : vector<32x8x32xf32> to vector<32x1x32xf32>
    %192 = vector.broadcast %190 : vector<32x8x1xf32> to vector<32x8x32xf32>
    %193 = vector.broadcast %191 : vector<32x1x32xf32> to vector<32x8x32xf32>
    %194 = arith.mulf %192, %193 : vector<32x8x32xf32>
    %195 = arith.addf %189, %194 : vector<32x8x32xf32>
    %196 = vector.extract_strided_slice %0 {offsets = [0, 0, 5], sizes = [32, 8, 1], strides = [1, 1, 1]} : vector<32x8x8xf32> to vector<32x8x1xf32>
    %197 = vector.extract_strided_slice %163 {offsets = [0, 5, 0], sizes = [32, 1, 32], strides = [1, 1, 1]} : vector<32x8x32xf32> to vector<32x1x32xf32>
    %198 = vector.broadcast %196 : vector<32x8x1xf32> to vector<32x8x32xf32>
    %199 = vector.broadcast %197 : vector<32x1x32xf32> to vector<32x8x32xf32>
    %200 = arith.mulf %198, %199 : vector<32x8x32xf32>
    %201 = arith.addf %195, %200 : vector<32x8x32xf32>
    %202 = vector.extract_strided_slice %0 {offsets = [0, 0, 6], sizes = [32, 8, 1], strides = [1, 1, 1]} : vector<32x8x8xf32> to vector<32x8x1xf32>
    %203 = vector.extract_strided_slice %163 {offsets = [0, 6, 0], sizes = [32, 1, 32], strides = [1, 1, 1]} : vector<32x8x32xf32> to vector<32x1x32xf32>
    %204 = vector.broadcast %202 : vector<32x8x1xf32> to vector<32x8x32xf32>
    %205 = vector.broadcast %203 : vector<32x1x32xf32> to vector<32x8x32xf32>
    %206 = arith.mulf %204, %205 : vector<32x8x32xf32>
    %207 = arith.addf %201, %206 : vector<32x8x32xf32>
    %208 = vector.extract_strided_slice %0 {offsets = [0, 0, 7], sizes = [32, 8, 1], strides = [1, 1, 1]} : vector<32x8x8xf32> to vector<32x8x1xf32>
    %209 = vector.extract_strided_slice %163 {offsets = [0, 7, 0], sizes = [32, 1, 32], strides = [1, 1, 1]} : vector<32x8x32xf32> to vector<32x1x32xf32>
    %210 = vector.broadcast %208 : vector<32x8x1xf32> to vector<32x8x32xf32>
    %211 = vector.broadcast %209 : vector<32x1x32xf32> to vector<32x8x32xf32>
    %212 = arith.mulf %210, %211 : vector<32x8x32xf32>
    %213 = arith.addf %207, %212 : vector<32x8x32xf32>
    %214 = vector.shape_cast %213 : vector<32x8x32xf32> to vector<256x32xf32>
    %215 = vector.shape_cast %163 : vector<32x8x32xf32> to vector<256x32xf32>
    %216 = tpu.concatenate %214, %215 in 1 : vector<256x32xf32>, vector<256x32xf32> -> vector<256x64xf32>
    %cst_38 = arith.constant dense<0.000000e+00> : vector<256x32xf32>
    %217 = tpu.matmul %216, %164, %cst_38 {dimension_numbers = #tpu.dot_dimension_numbers<[1], [0], [0], [1], [0, 0, 1, 1], [], []>} : vector<256x64xf32>, vector<64x32xf32>, vector<256x32xf32> -> vector<256x32xf32>
    %cst_39 = arith.constant dense<0.000000e+00> : vector<32xf32>
    %218 = vector.multi_reduction <add>, %217, %cst_39 [0] : vector<256x32xf32> to vector<32xf32>
    %219 = vector.shape_cast %218 : vector<32xf32> to vector<1x32xf32>
    %cst_40 = arith.constant 2.560000e+02 : f32
    %220 = vector.broadcast %cst_40 : f32 to vector<1x32xf32>
    %221 = arith.divf %219, %220 : vector<1x32xf32>
    %222 = arith.mulf %217, %217 : vector<256x32xf32>
    %cst_41 = arith.constant dense<0.000000e+00> : vector<32xf32>
    %223 = vector.multi_reduction <add>, %222, %cst_41 [0] : vector<256x32xf32> to vector<32xf32>
    %224 = vector.shape_cast %223 : vector<32xf32> to vector<1x32xf32>
    %cst_42 = arith.constant 2.560000e+02 : f32
    %225 = vector.broadcast %cst_42 : f32 to vector<1x32xf32>
    %226 = arith.divf %224, %225 : vector<1x32xf32>
    %227 = arith.mulf %221, %221 : vector<1x32xf32>
    %228 = arith.subf %226, %227 : vector<1x32xf32>
    %cst_43 = arith.constant 0.000000e+00 : f32
    %229 = vector.broadcast %cst_43 : f32 to vector<1x32xf32>
    %230 = arith.maximumf %228, %229 : vector<1x32xf32>
    %231 = vector.broadcast %221 : vector<1x32xf32> to vector<256x32xf32>
    %232 = arith.subf %217, %231 : vector<256x32xf32>
    %cst_44 = arith.constant 9.99999974E-6 : f32
    %233 = vector.broadcast %cst_44 : f32 to vector<1x32xf32>
    %234 = arith.addf %230, %233 : vector<1x32xf32>
    %235 = math.rsqrt %234 : vector<1x32xf32>
    %236 = vector.broadcast %235 : vector<1x32xf32> to vector<256x32xf32>
    %237 = arith.mulf %232, %236 : vector<256x32xf32>
    %238 = vector.broadcast %165 : vector<1x32xf32> to vector<256x32xf32>
    %239 = arith.mulf %238, %237 : vector<256x32xf32>
    %240 = vector.broadcast %166 : vector<1x32xf32> to vector<256x32xf32>
    %241 = arith.addf %239, %240 : vector<256x32xf32>
    %cst_45 = arith.constant 0.000000e+00 : f32
    %242 = vector.broadcast %cst_45 : f32 to vector<256x32xf32>
    %243 = arith.maximumf %241, %242 : vector<256x32xf32>
    %244 = vector.shape_cast %243 : vector<256x32xf32> to vector<32x8x32xf32>
    %c0_46 = arith.constant 0 : index
    %c0_47 = arith.constant 0 : index
    %c0_48 = arith.constant 0 : index
    %245 = vector.load %arg11[%c0_46, %c0_47, %c0_48] : memref<32x8x32xf32, #tpu.memory_space<vmem>>, vector<32x8x32xf32>
    tpu.vector_store %arg11[%c0_46, %c0_47, %c0_48], %244 {strides = array<i32>} : memref<32x8x32xf32, #tpu.memory_space<vmem>>, vector<32x8x32xf32>,
    return
  }
}

</mosaic_0001>

<bundles_post_ra>
// kernel: gcn_big_forward.1
= control target key start
LH: loop header
LB: loop body
LE: loop exit
PB: predicated region body
PF: predicated region fallthrough
CT: control target
= control target key end

     0   :  { %v14714_v0 = vmov 2   ;;  %v14704_v1 = vmov 0   ;;  %v14712_v15 = vmov 1   ;;  %v14708_v19 = vmov 3   ;;  %s8853_s13 = smov 16   ;;  %s14692_s1 = inlined_call_operand.vmem [shape: f32[32,8,8], index: 1, kind: input, shape index: {}]   ;;  %s14693_s0 = inlined_call_operand.vmem [shape: f32[32,8,16], index: 0, kind: input, shape index: {}]   ;;  %s14694_s2 = inlined_call_operand.vmem [shape: f32[32,16], index: 2, kind: input, shape index: {}]   ;;  %s14695_s5 = inlined_call_operand.vmem [shape: f32[32,32], index: 5, kind: input, shape index: {}]   ;;  %s14696_s3 = inlined_call_operand.vmem [shape: f32[1,16], index: 3, kind: input, shape index: {}]   ;;  %s14697_s4 = inlined_call_operand.vmem [shape: f32[1,16], index: 4, kind: input, shape index: {}]   ;;  %s14698_s8 = inlined_call_operand.vmem [shape: f32[64,32], index: 8, kind: input, shape index: {}]   ;;  %s14699_s6 = inlined_call_operand.vmem [shape: f32[1,32], index: 6, kind: input, shape index: {}]   ;;  %s14700_s7 = inlined_call_operand.vmem [shape: f32[1,32], index: 7, kind: input, shape index: {}]   ;;  %s14701_s9 = inlined_call_operand.vmem [shape: f32[1,32], index: 9, kind: input, shape index: {}]   ;;  %s14702_s10 = inlined_call_operand.vmem [shape: f32[1,32], index: 10, kind: input, shape index: {}]   ;;  %s14703_s11 = inlined_call_operand.vmem [shape: f32[32,8,32], index: 11, kind: output, shape index: {}]  }
   0x1   :  { %8661 = vset.pattern.permute.xlu0 %v14714_v0  ;;  %8658 = vset.pattern.permute.xlu1 %v14704_v1  ;;  %v8924_v2 = vld [vmem:[%s14692_s1 + $0x10] sm:$0xff]  ;;  %v8929_v3 = vld [vmem:[%s14692_s1 + $0x8] sm:$0xff]  ;;  %v8936_v4 = vld [vmem:[%s14692_s1 + $0x18] sm:$0xff]  ;;  %v14719_v24 = vmov 4   ;;  %v14710_v28 = vmov 5   ;;  %v14706_v37 = vmov 7  }
   0x2   :  { %120 = vperm.xlu1 %8658, %v8924_v2   ;;  %753 = vperm.xlu0 %8661, %v8929_v3   ;;  %v8941_v5 = vld [vmem:[%s14692_s1 + $0x60] sm:$0xff]  ;;  %v8948_v6 = vld [vmem:[%s14692_s1 + $0x28] sm:$0xff]  ;;  %v8960_v8 = vld [vmem:[%s14692_s1 + $0x38] sm:$0xff]  ;;  %vm2796_vm0 = vcmask 130048   ;;  %vm2829_vm1 = vcmask 261120   ;;  %vm7515_vm2 = vcmask 523264  }
   0x3   :  { %v8953_v7 = vld [vmem:[%s14692_s1 + $0x68] sm:$0xff]  ;;  %v8965_v9 = vld [vmem:[%s14692_s1] sm:$0xff]  ;;  %v8980_v11 = vld [vmem:[%s14692_s1 + $0x58] sm:$0xff] }
   0x4   :  { %v8973_v10 = vld [vmem:[%s14692_s1 + $0x48] sm:$0xff]  ;;  %v8985_v12 = vld [vmem:[%s14692_s1 + $0x20] sm:$0xff]  ;;  %v8992_v13 = vld [vmem:[%s14692_s1 + $0x30] sm:$0xff] }
   0x5   :  { %v8999_v14 = vld [vmem:[%s14692_s1 + $0x40] sm:$0xff]  ;;  %v9007_v16 = vld [vmem:[%s14692_s1 + $0x50] sm:$0xff]  ;;  %v9024_v18 = vld [vmem:[%s14692_s1 + $0x88] sm:$0xff] }
   0x6   :  { %125 = vperm.xlu1 %8658, %v8936_v4   ;;  %797 = vperm.xlu0 %8661, %v8941_v5   ;;  %v9017_v17 = vld [vmem:[%s14692_s1 + $0x80] sm:$0xff]  ;;  %v9032_v20 = vld [vmem:[%s14693_s0 + $0x30] sm:$0xff]  ;;  %v9048_v22 = vld [vmem:[%s14692_s1 + $0xa8] sm:$0xff] }
   0x7   :  { %v9040_v21 = vld [vmem:[%s14692_s1 + $0xa0] sm:$0xff]  ;;  %v80_v23 = vld [vmem:[%s14693_s0 + $0x50] sm:$0xff]  ;;  %v9068_v26 = vld [vmem:[%s14692_s1 + $0xc8] sm:$0xff] }
   0x8   :  { %v9061_v25 = vld [vmem:[%s14692_s1 + $0xc0] sm:$0xff]  ;;  %v84_v27 = vld [vmem:[%s14693_s0 + $0x70] sm:$0xff]  ;;  %v9089_v30 = vld [vmem:[%s14692_s1 + $0xe8] sm:$0xff] }
   0x9   :  { %v9081_v29 = vld [vmem:[%s14692_s1 + $0xe0] sm:$0xff]  ;;  %v9101_v31 = vld [vmem:[%s14692_s1 + $0x70] sm:$0xff]  ;;  %v9108_v32 = vld [vmem:[%s14692_s1 + $0x78] sm:$0xff] }
   0xa   :  { %135 = vperm.xlu1 %8658, %v8948_v6   ;;  %801 = vperm.xlu0 %8661, %v8953_v7   ;;  %v9115_v33 = vld [vmem:[%s14692_s1 + $0x90] sm:$0xff]  ;;  %v9123_v34 = vld [vmem:[%s14692_s1 + $0x98] sm:$0xff] }
   0xb   :  { %v9131_v35 = vld [vmem:[%s14692_s1 + $0xb0] sm:$0xff]  ;;  %v9139_v36 = vld [vmem:[%s14692_s1 + $0xb8] sm:$0xff] }
   0xc   :  { %v9146_v38 = vld [vmem:[%s14692_s1 + $0xd0] sm:$0xff]  ;;  %v9153_v39 = vld [vmem:[%s14692_s1 + $0xd8] sm:$0xff] }
   0xe   :  { %145 = vperm.xlu1 %8658, %v8960_v8   ;;  %8707 = vset.pattern.permute.xlu0 %v14704_v1 }
   0xf   :  { %110 = vperm.xlu0 %8707, %v8965_v9  }
  0x12   :  { %155 = vperm.xlu1 %8658, %v8973_v10  }
  0x13   :  { %115 = vperm.xlu0 %8707, %v8929_v3  }
  0x16   :  { %165 = vperm.xlu1 %8658, %v8980_v11  }
  0x17   :  { %130 = vperm.xlu0 %8707, %v8985_v12  }
  0x1a   :  { %175 = vperm.xlu1 %8658, %v8953_v7  }
  0x1b   :  { %140 = vperm.xlu0 %8707, %v8992_v13  }
  0x1e   :  { %8659 = vset.pattern.permute.xlu1 %v14712_v15 }
  0x1f   :  { %433 = vperm.xlu1 %8659, %v8929_v3   ;;  %150 = vperm.xlu0 %8707, %v8999_v14  }
  0x23   :  { %8660 = vset.pattern.permute.xlu1 %v14714_v0  ;;  %160 = vperm.xlu0 %8707, %v9007_v16  }
  0x24   :  { %749 = vperm.xlu1 %8660, %v8965_v9  }
  0x27   :  { %170 = vperm.xlu0 %8707, %v8941_v5  }
  0x28   :  { %8662 = vset.pattern.permute.xlu1 %v14712_v15 }
  0x29   :  { %437 = vperm.xlu1 %8662, %v8924_v2  }
  0x2b   :  { %190 = vperm.xlu0 %8707, %v9017_v17  }
  0x2d   :  { %8663 = vset.pattern.permute.xlu1 %v14708_v19 }
  0x2e   :  { %1069 = vperm.xlu1 %8663, %v8965_v9  }
  0x2f   :  { %195 = vperm.xlu0 %8707, %v9024_v18  }
  0x32   :  { %1073 = vperm.xlu1 %8663, %v8929_v3  }
  0x33   :  { %2712 = vrot.lane.b32.xlu0 %v9032_v20, %s8853_s13 }
  0x36   :  { %8664 = vset.pattern.permute.xlu1 %v14714_v0 }
  0x37   :  { %757 = vperm.xlu1 %8664, %v8924_v2   ;;  %210 = vperm.xlu0 %8707, %v9040_v21  }
  0x3b   :  { %761 = vperm.xlu1 %8664, %v8936_v4   ;;  %215 = vperm.xlu0 %8707, %v9048_v22  }
  0x3f   :  { %8665 = vset.pattern.permute.xlu1 %v14719_v24  ;;  %2720 = vrot.lane.b32.xlu0 %v80_v23, %s8853_s13 }
  0x40   :  { %1393 = vperm.xlu1 %8665, %v8929_v3  }
  0x43   :  { %230 = vperm.xlu0 %8707, %v9061_v25  }
  0x44   :  { %8666 = vset.pattern.permute.xlu1 %v14708_v19 }
  0x45   :  { %1077 = vperm.xlu1 %8666, %v8924_v2  }
  0x47   :  { %235 = vperm.xlu0 %8707, %v9068_v26  }
  0x49   :  { %8667 = vset.pattern.permute.xlu1 %v14710_v28 }
  0x4a   :  { %1709 = vperm.xlu1 %8667, %v8965_v9  }
  0x4b   :  { %2728 = vrot.lane.b32.xlu0 %v84_v27, %s8853_s13 }
  0x4e   :  { %8668 = vset.pattern.permute.xlu1 %v14708_v19 }
  0x4f   :  { %1081 = vperm.xlu1 %8668, %v8936_v4   ;;  %250 = vperm.xlu0 %8707, %v9081_v29  }
  0x53   :  { %8669 = vset.pattern.permute.xlu1 %v14714_v0  ;;  %255 = vperm.xlu0 %8707, %v9089_v30  }
  0x54   :  { %765 = vperm.xlu1 %8669, %v8985_v12  }
  0x57   :  { %8782 = vset.pattern.permute.xlu0 %v14719_v24 }
  0x58   :  { %8670 = vset.pattern.permute.xlu1 %v14719_v24  ;;  %1389 = vperm.xlu0 %8782, %v8965_v9  }
  0x59   :  { %1397 = vperm.xlu1 %8670, %v8924_v2  }
  0x5c   :  { %1445 = vperm.xlu0 %8782, %v9101_v31  }
  0x5d   :  { %8671 = vset.pattern.permute.xlu1 %v14714_v0 }
  0x5e   :  { %769 = vperm.xlu1 %8671, %v8948_v6  }
  0x60   :  { %1449 = vperm.xlu0 %8782, %v9108_v32  }
  0x62   :  { %8672 = vset.pattern.permute.xlu1 %v14719_v24 }
  0x63   :  { %1401 = vperm.xlu1 %8672, %v8936_v4  }
  0x64   :  { %1461 = vperm.xlu0 %8782, %v9115_v33  }
  0x67   :  { %8673 = vset.pattern.permute.xlu1 %v14712_v15 }
  0x68   :  { %453 = vperm.xlu1 %8673, %v8992_v13   ;;  %1465 = vperm.xlu0 %8782, %v9123_v34  }
  0x6c   :  { %8674 = vset.pattern.permute.xlu1 %v14710_v28  ;;  %1477 = vperm.xlu0 %8782, %v9131_v35  }
  0x6d   :  { %1717 = vperm.xlu1 %8674, %v8924_v2  }
  0x70   :  { %1481 = vperm.xlu0 %8782, %v9139_v36  }
  0x71   :  { %8675 = vset.pattern.permute.xlu1 %v14706_v37 }
  0x72   :  { %2349 = vperm.xlu1 %8675, %v8965_v9  }
  0x74   :  { %1493 = vperm.xlu0 %8782, %v9146_v38  }
  0x76   :  { %8676 = vset.pattern.permute.xlu1 %v14708_v19 }
  0x77   :  { %1089 = vperm.xlu1 %8676, %v8948_v6  }
  0x78   :  { %1497 = vperm.xlu0 %8782, %v9153_v39  }
  0x7b   :  { %8677 = vset.pattern.permute.xlu1 %v14710_v28 }
  0x7c   :  { %1721 = vperm.xlu1 %8677, %v8936_v4   ;;  %8789 = vset.pattern.permute.xlu0 %v14712_v15 }
  0x7d   :  { %429 = vperm.xlu0 %8789, %v8965_v9  }
  0x80   :  { %8678 = vset.pattern.permute.xlu1 %v14714_v0 }
  0x81   :  { %v9163_v40 = vpop.permute.xlu1 %120  ;;  %773 = vperm.xlu1 %8678, %v8992_v13   ;;  %441 = vperm.xlu0 %8789, %v8936_v4   ;;  %v9167_v41 = vpop.permute.xlu0 %753 }
  0x82   :  { %15125 = vst [vmem:[#allocation2_spill] sm:$0xff] %v9163_v40  ;;  %15126 = vst [vmem:[#allocation3_spill] sm:$0xff] %v9167_v41 }
  0x85   :  { %v9169_v42 = vpop.permute.xlu1 %125  ;;  %8679 = vset.pattern.permute.xlu1 %v14719_v24  ;;  %445 = vperm.xlu0 %8789, %v8985_v12   ;;  %v9173_v43 = vpop.permute.xlu0 %797 }
  0x86   :  { %15127 = vst [vmem:[#allocation4_spill] sm:$0xff] %v9169_v42  ;;  %15128 = vst [vmem:[#allocation5_spill] sm:$0xff] %v9173_v43  ;;  %1405 = vperm.xlu1 %8679, %v8985_v12   ;;  %v15162_v43 = vmov 3  }
  0x89   :  { %v9176_v44 = vpop.permute.xlu1 %135  ;;  %449 = vperm.xlu0 %8789, %v8948_v6   ;;  %v9179_v45 = vpop.permute.xlu0 %801 }
  0x8a   :  { %15129 = vst [vmem:[#allocation6_spill] sm:$0xff] %v9176_v44  ;;  %15130 = vst [vmem:[#allocation7_spill] sm:$0xff] %v9179_v45  ;;  %8680 = vset.pattern.permute.xlu1 %v14714_v0 }
  0x8b   :  { %777 = vperm.xlu1 %8680, %v8960_v8  }
  0x8d   :  { %v9183_v46 = vpop.permute.xlu1 %145  ;;  %457 = vperm.xlu0 %8789, %v8960_v8  }
  0x8e   :  { %15131 = vst [vmem:[#allocation8_spill] sm:$0xff] %v9183_v46  ;;  %v9186_v47 = vpop.permute.xlu0 %110  ;;  %v15174_v46 = vmov 4  }
  0x8f   :  { %15132 = vst [vmem:[#allocation9_spill] sm:$0xff] %v9186_v47  ;;  %8681 = vset.pattern.permute.xlu1 %v14719_v24 }
  0x90   :  { %1409 = vperm.xlu1 %8681, %v8948_v6  }
  0x91   :  { %v9190_v48 = vpop.permute.xlu1 %155  ;;  %465 = vperm.xlu0 %8789, %v8973_v10  }
  0x92   :  { %15133 = vst [vmem:[#allocation10_spill] sm:$0xff] %v9190_v48  ;;  %v9193_v49 = vpop.permute.xlu0 %115 }
  0x93   :  { %15134 = vst [vmem:[#allocation11_spill] sm:$0xff] %v9193_v49 }
  0x94   :  { %8682 = vset.pattern.permute.xlu1 %v14712_v15 }
  0x95   :  { %v9196_v50 = vpop.permute.xlu1 %165  ;;  %461 = vperm.xlu1 %8682, %v8999_v14   ;;  %473 = vperm.xlu0 %8789, %v8980_v11  }
  0x96   :  { %15135 = vst [vmem:[#allocation12_spill] sm:$0xff] %v9196_v50  ;;  %v9200_v51 = vpop.permute.xlu0 %130 }
  0x97   :  { %15136 = vst [vmem:[#allocation13_spill] sm:$0xff] %v9200_v51 }
  0x99   :  { %v9202_v52 = vpop.permute.xlu1 %175  ;;  %8683 = vset.pattern.permute.xlu1 %v14710_v28  ;;  %477 = vperm.xlu0 %8789, %v8941_v5  }
  0x9a   :  { %15137 = vst [vmem:[#allocation14_spill] sm:$0xff] %v9202_v52  ;;  %1725 = vperm.xlu1 %8683, %v8985_v12   ;;  %v9207_v53 = vpop.permute.xlu0 %140 }
  0x9b   :  { %15138 = vst [vmem:[#allocation15_spill] sm:$0xff] %v9207_v53 }
  0x9d   :  { %485 = vperm.xlu0 %8789, %v9101_v31  }
  0x9e   :  { %v9210_v54 = vpop.permute.xlu1 %433  ;;  %8684 = vset.pattern.permute.xlu1 %v14706_v37  ;;  %v9213_v55 = vpop.permute.xlu0 %150 }
  0x9f   :  { %15139 = vst [vmem:[#allocation16_spill] sm:$0xff] %v9210_v54  ;;  %15140 = vst [vmem:[#allocation17_spill] sm:$0xff] %v9213_v55  ;;  %2357 = vperm.xlu1 %8684, %v8924_v2  }
  0xa1   :  { %489 = vperm.xlu0 %8789, %v9108_v32  }
  0xa2   :  { %v9217_v56 = vpop.permute.xlu0 %160 }
  0xa3   :  { %15141 = vst [vmem:[#allocation18_spill] sm:$0xff] %v9217_v56  ;;  %8685 = vset.pattern.permute.xlu1 %v14708_v19  ;;  %v9220_v57 = vpop.permute.xlu1 %749 }
  0xa4   :  { %15142 = vst [vmem:[#allocation19_spill] sm:$0xff] %v9220_v57  ;;  %1097 = vperm.xlu1 %8685, %v8960_v8  }
  0xa5   :  { %501 = vperm.xlu0 %8789, %v9115_v33  }
  0xa6   :  { %v9224_v58 = vpop.permute.xlu0 %170 }
  0xa7   :  { %15143 = vst [vmem:[#allocation20_spill] sm:$0xff] %v9224_v58  ;;  %v15164_v58 = vmov 7  }
  0xa8   :  { %8686 = vset.pattern.permute.xlu1 %v14710_v28  ;;  %v9227_v59 = vpop.permute.xlu1 %437  ;;  %v88_v28 = vld [vmem:[%s14693_s0 + $0x90] sm:$0xff] }
  0xa9   :  { %15144 = vst [vmem:[#allocation21_spill] sm:$0xff] %v9227_v59  ;;  %1729 = vperm.xlu1 %8686, %v8948_v6   ;;  %505 = vperm.xlu0 %8789, %v9123_v34  }
  0xaa   :  { %v9231_v60 = vpop.permute.xlu0 %190 }
  0xab   :  { %15145 = vst [vmem:[#allocation22_spill] sm:$0xff] %v9231_v60  ;;  %v15159_v60 = vmov 5  }
  0xad   :  { %8687 = vset.pattern.permute.xlu1 %v14714_v0  ;;  %v9234_v61 = vpop.permute.xlu1 %1069  ;;  %517 = vperm.xlu0 %8789, %v9131_v35  }
  0xae   :  { %15146 = vst [vmem:[#allocation23_spill] sm:$0xff] %v9234_v61  ;;  %781 = vperm.xlu1 %8687, %v8999_v14   ;;  %v9238_v62 = vpop.permute.xlu0 %195 }
  0xaf   :  { %15147 = vst [vmem:[#allocation24_spill] sm:$0xff] %v9238_v62  ;;  %v15156_v62 = vmov 1  }
  0xb1   :  { %v9240_v63 = vpop.permute.xlu1 %1073  ;;  %521 = vperm.xlu0 %8789, %v9139_v36  }
  0xb2   :  { %15148 = vst [vmem:[#allocation25_spill] sm:$0xff] %v9240_v63  ;;  %8688 = vset.pattern.permute.xlu1 %v14719_v24  ;;  %v9244_v23 = vpop.permute.xlu0 %2712 }
  0xb3   :  { %15149 = vst [vmem:[#allocation26_spill] sm:$0xff] %v9244_v23  ;;  %1413 = vperm.xlu1 %8688, %v8992_v13  }
  0xb5   :  { %533 = vperm.xlu0 %8789, %v9146_v38  }
  0xb6   :  { %v9248_v27 = vpop.permute.xlu1 %757  ;;  %v9250_v1 = vpop.permute.xlu0 %210 }
  0xb7   :  { %15150 = vst [vmem:[#allocation27_spill] sm:$0xff] %v9248_v27  ;;  %15151 = vst [vmem:[#allocation28_spill] sm:$0xff] %v9250_v1  ;;  %8689 = vset.pattern.permute.xlu1 %v14714_v0  ;;  %v68_v0 = vld [vmem:[%s14692_s1 + $0xf0] sm:$0xff] }
  0xb8   :  { %785 = vperm.xlu1 %8689, %v8973_v10  }
  0xb9   :  { %537 = vperm.xlu0 %8789, %v9153_v39  }
  0xba   :  { %v9255_v37 = vpop.permute.xlu1 %761  ;;  %v9257_v19 = vpop.permute.xlu0 %215 }
  0xbb   :  { %15152 = vst [vmem:[#allocation29_spill] sm:$0xff] %v9255_v37  ;;  %15153 = vst [vmem:[#allocation30_spill] sm:$0xff] %v9257_v19 }
  0xbc   :  { %8690 = vset.pattern.permute.xlu1 %v14719_v24  ;;  %v9279_v24 = vld [vmem:[%s14692_s1 + $0xf8] sm:$0xff] }
  0xbd   :  { %1417 = vperm.xlu1 %8690, %v8960_v8   ;;  %2736 = vrot.lane.b32.xlu0 %v88_v28, %s8853_s13 }
  0xbe   :  { %v9265_v15 = vpop.permute.xlu0 %2720 }
  0xbf   :  { %15154 = vst [vmem:[#allocation31_spill] sm:$0xff] %v9265_v15  ;;  %v9270_v1 = vpop.permute.xlu1 %1393 }
  0xc0   :  { %15155 = vst [vmem:[#allocation32_spill] sm:$0xff] %v9270_v1 }
  0xc1   :  { %8691 = vset.pattern.permute.xlu1 %v15156_v62  ;;  %549 = vperm.xlu0 %8789, %v68_v0  }
  0xc2   :  { %469 = vperm.xlu1 %8691, %v9007_v16   ;;  %v9274_v19 = vpop.permute.xlu0 %230 }
  0xc3   :  { %15157 = vst [vmem:[#allocation33_spill] sm:$0xff] %v9274_v19 }
  0xc4   :  { %v9281_v28 = vpop.permute.xlu1 %1077 }
  0xc5   :  { %15158 = vst [vmem:[#allocation34_spill] sm:$0xff] %v9281_v28  ;;  %553 = vperm.xlu0 %8789, %v9279_v24  }
  0xc6   :  { %8692 = vset.pattern.permute.xlu1 %v15159_v60  ;;  %v9285_v45 = vpop.permute.xlu0 %235 }
  0xc7   :  { %15160 = vst [vmem:[#allocation35_spill] sm:$0xff] %v9285_v45  ;;  %1733 = vperm.xlu1 %8692, %v8992_v13  }
  0xc9   :  { %v9288_v52 = vpop.permute.xlu1 %1709  ;;  %8795 = vset.pattern.permute.xlu0 %v15162_v43 }
  0xca   :  { %15161 = vst [vmem:[#allocation36_spill] sm:$0xff] %v9288_v52  ;;  %1085 = vperm.xlu0 %8795, %v8985_v12   ;;  %v9292_v19 = vpop.permute.xlu0 %2728 }
  0xcb   :  { %15163 = vst [vmem:[#allocation37_spill] sm:$0xff] %v9292_v19  ;;  %8693 = vset.pattern.permute.xlu1 %v15164_v58 }
  0xcc   :  { %2365 = vperm.xlu1 %8693, %v8985_v12  }
  0xce   :  { %v9296_v50 = vpop.permute.xlu1 %1081  ;;  %1093 = vperm.xlu0 %8795, %v8992_v13   ;;  %v9299_v15 = vpop.permute.xlu0 %250 }
  0xcf   :  { %15165 = vst [vmem:[#allocation38_spill] sm:$0xff] %v9296_v50  ;;  %15166 = vst [vmem:[#allocation39_spill] sm:$0xff] %v9299_v15  ;;  %v15171_v15 = vmov 2  }
  0xd0   :  { %8694 = vset.pattern.permute.xlu1 %v15162_v43 }
  0xd1   :  { %1105 = vperm.xlu1 %8694, %v8973_v10  }
  0xd2   :  { %1101 = vperm.xlu0 %8795, %v8999_v14   ;;  %v9304_v45 = vpop.permute.xlu0 %255 }
  0xd3   :  { %15167 = vst [vmem:[#allocation40_spill] sm:$0xff] %v9304_v45  ;;  %v9306_v48 = vpop.permute.xlu1 %765 }
  0xd4   :  { %15168 = vst [vmem:[#allocation41_spill] sm:$0xff] %v9306_v48 }
  0xd5   :  { %8695 = vset.pattern.permute.xlu1 %v15159_v60 }
  0xd6   :  { %1737 = vperm.xlu1 %8695, %v8960_v8   ;;  %1113 = vperm.xlu0 %8795, %v8980_v11  }
  0xd7   :  { %v9311_v19 = vpop.permute.xlu0 %1389 }
  0xd8   :  { %15169 = vst [vmem:[#allocation42_spill] sm:$0xff] %v9311_v19  ;;  %v9313_v56 = vpop.permute.xlu1 %1397 }
  0xd9   :  { %15170 = vst [vmem:[#allocation43_spill] sm:$0xff] %v9313_v56 }
  0xda   :  { %8696 = vset.pattern.permute.xlu1 %v15171_v15  ;;  %1189 = vperm.xlu0 %8795, %v68_v0  }
  0xdb   :  { %789 = vperm.xlu1 %8696, %v9007_v16   ;;  %v9317_v55 = vpop.permute.xlu0 %1445 }
  0xdc   :  { %15172 = vst [vmem:[#allocation44_spill] sm:$0xff] %v9317_v55 }
  0xdd   :  { %v9319_v45 = vpop.permute.xlu1 %769 }
  0xde   :  { %15173 = vst [vmem:[#allocation45_spill] sm:$0xff] %v9319_v45  ;;  %8802 = vset.pattern.permute.xlu0 %v15159_v60 }
  0xdf   :  { %8697 = vset.pattern.permute.xlu1 %v15174_v46  ;;  %1713 = vperm.xlu0 %8802, %v8929_v3   ;;  %v9324_v23 = vpop.permute.xlu0 %1449 }
  0xe0   :  { %15175 = vst [vmem:[#allocation46_spill] sm:$0xff] %v9324_v23  ;;  %1421 = vperm.xlu1 %8697, %v8999_v14  }
  0xe2   :  { %v9327_v56 = vpop.permute.xlu1 %1401 }
  0xe3   :  { %15176 = vst [vmem:[#allocation47_spill] sm:$0xff] %v9327_v56  ;;  %1757 = vperm.xlu0 %8802, %v8941_v5   ;;  %v9330_v0 = vpop.permute.xlu0 %1461 }
  0xe4   :  { %15177 = vst [vmem:[#allocation48_spill] sm:$0xff] %v9330_v0  ;;  %8698 = vset.pattern.permute.xlu1 %v15171_v15  ;;  %v9349_v0 = vld [vmem:[%s14693_s0] sm:$0xff] }
  0xe5   :  { %793 = vperm.xlu1 %8698, %v8980_v11  }
  0xe7   :  { %v9334_v55 = vpop.permute.xlu1 %453  ;;  %1761 = vperm.xlu0 %8802, %v8953_v7   ;;  %v9337_v45 = vpop.permute.xlu0 %1465 }
  0xe8   :  { %15178 = vst [vmem:[#allocation49_spill] sm:$0xff] %v9334_v55  ;;  %15179 = vst [vmem:[#allocation50_spill] sm:$0xff] %v9337_v45 }
  0xe9   :  { %8699 = vset.pattern.permute.xlu1 %v15174_v46 }
  0xea   :  { %1425 = vperm.xlu1 %8699, %v8973_v10  }
  0xeb   :  { %1773 = vperm.xlu0 %8802, %v9017_v17   ;;  %v9342_v23 = vpop.permute.xlu0 %1477 }
  0xec   :  { %15180 = vst [vmem:[#allocation51_spill] sm:$0xff] %v9342_v23  ;;  %v9344_v56 = vpop.permute.xlu1 %1717 }
  0xed   :  { %15181 = vst [vmem:[#allocation52_spill] sm:$0xff] %v9344_v56 }
  0xee   :  { %2700 = vrot.lane.b32.xlu1 %v9349_v0, %s8853_s13 }
  0xef   :  { %1777 = vperm.xlu0 %8802, %v9024_v18   ;;  %v9354_v45 = vpop.permute.xlu0 %1481  ;;  %8700 = vset.pattern.permute.xlu1 %v15162_v43 }
  0xf0   :  { %15182 = vst [vmem:[#allocation53_spill] sm:$0xff] %v9354_v45  ;;  %v9373_v45 = vld [vmem:[%s14693_s0 + $0x8] sm:$0xff] }
  0xf1   :  { %v9357_v55 = vpop.permute.xlu1 %2349 }
  0xf2   :  { %15183 = vst [vmem:[#allocation54_spill] sm:$0xff] %v9357_v55  ;;  %1109 = vperm.xlu1 %8700, %v9007_v16  }
  0xf3   :  { %1789 = vperm.xlu0 %8802, %v9040_v21   ;;  %v9361_v23 = vpop.permute.xlu0 %1493 }
  0xf4   :  { %15184 = vst [vmem:[#allocation55_spill] sm:$0xff] %v9361_v23 }
  0xf6   :  { %v9363_v56 = vpop.permute.xlu1 %1089  ;;  %8701 = vset.pattern.permute.xlu1 %v15159_v60 }
  0xf7   :  { %15185 = vst [vmem:[#allocation56_spill] sm:$0xff] %v9363_v56  ;;  %1793 = vperm.xlu0 %8802, %v9048_v22   ;;  %1741 = vperm.xlu1 %8701, %v8999_v14   ;;  %v9368_v48 = vpop.permute.xlu0 %1497 }
  0xf8   :  { %15186 = vst [vmem:[#allocation57_spill] sm:$0xff] %v9368_v48  ;;  %v91_v48 = vld [vmem:[%s14693_s0 + $0xa8] sm:$0xff] }
  0xfb   :  { %v9375_v55 = vpop.permute.xlu1 %1721  ;;  %1805 = vperm.xlu0 %8802, %v9061_v25   ;;  %2702 = vrot.lane.b32.xlu1 %v9373_v45, %s8853_s13 }
  0xfc   :  { %15187 = vst [vmem:[#allocation58_spill] sm:$0xff] %v9375_v55  ;;  %v9380_v23 = vpop.permute.xlu0 %429  ;;  %8702 = vset.pattern.permute.xlu1 %v15156_v62 }
  0xfd   :  { %15188 = vst [vmem:[#allocation59_spill] sm:$0xff] %v9380_v23 }
  0xff   :  { %1809 = vperm.xlu0 %8802, %v9068_v26   ;;  %481 = vperm.xlu1 %8702, %v8953_v7  }
 0x100   :  { %v9388_v56 = vpop.permute.xlu1 %773  ;;  %v9390_v55 = vpop.permute.xlu0 %441 }
 0x101   :  { %15189 = vst [vmem:[#allocation60_spill] sm:$0xff] %v9388_v56  ;;  %15190 = vst [vmem:[#allocation61_spill] sm:$0xff] %v9390_v55 }
 0x103   :  { %2742 = vrot.lane.b32.xlu0 %v91_v48, %s8853_s13  ;;  %8703 = vset.pattern.permute.xlu1 %v15159_v60 }
 0x104   :  { %v9394_v50 = vpop.permute.xlu0 %445  ;;  %1745 = vperm.xlu1 %8703, %v8973_v10  }
 0x105   :  { %15191 = vst [vmem:[#allocation62_spill] sm:$0xff] %v9394_v50  ;;  %v9397_v52 = vpop.permute.xlu1 %1405  ;;  %v14763_v50 = vmov 6  }
 0x106   :  { %15192 = vst [vmem:[#allocation63_spill] sm:$0xff] %v9397_v52 }
 0x107   :  { %1825 = vperm.xlu0 %8802, %v9089_v30  }
 0x108   :  { %v9400_v53 = vpop.permute.xlu0 %449  ;;  %8704 = vset.pattern.permute.xlu1 %v15164_v58 }
 0x109   :  { %15193 = vst [vmem:[#allocation64_spill] sm:$0xff] %v9400_v53  ;;  %2377 = vperm.xlu1 %8704, %v8960_v8  }
 0x10a   :  { %v9404_v56 = vpop.permute.xlu1 %777 }
 0x10b   :  { %15194 = vst [vmem:[#allocation65_spill] sm:$0xff] %v9404_v56  ;;  %8806 = vset.pattern.permute.xlu0 %v15164_v58 }
 0x10c   :  { %2353 = vperm.xlu0 %8806, %v8929_v3   ;;  %v9408_v48 = vpop.permute.xlu0 %457 }
 0x10d   :  { %15195 = vst [vmem:[#allocation66_spill] sm:$0xff] %v9408_v48  ;;  %8705 = vset.pattern.permute.xlu1 %v15174_v46 }
 0x10e   :  { %1429 = vperm.xlu1 %8705, %v9007_v16  }
 0x10f   :  { %v9412_v52 = vpop.permute.xlu1 %1409 }
 0x110   :  { %15196 = vst [vmem:[#allocation67_spill] sm:$0xff] %v9412_v52  ;;  %2361 = vperm.xlu0 %8806, %v8936_v4   ;;  %v9415_v53 = vpop.permute.xlu0 %465 }
 0x111   :  { %15197 = vst [vmem:[#allocation68_spill] sm:$0xff] %v9415_v53 }
 0x112   :  { %8706 = vset.pattern.permute.xlu1 %v14763_v50  ;;  %v9434_v50 = vld [vmem:[%s14693_s0 + $0x10] sm:$0xff] }
 0x113   :  { %2061 = vperm.xlu1 %8706, %v8999_v14  }
 0x114   :  { %v9419_v56 = vpop.permute.xlu1 %461  ;;  %2369 = vperm.xlu0 %8806, %v8948_v6   ;;  %v9422_v48 = vpop.permute.xlu0 %473 }
 0x115   :  { %15198 = vst [vmem:[#allocation69_spill] sm:$0xff] %v9419_v56  ;;  %15199 = vst [vmem:[#allocation70_spill] sm:$0xff] %v9422_v48  ;;  %v15203_v56 = vmov 0  }
 0x117   :  { %8708 = vset.pattern.permute.xlu1 %v15174_v46 }
 0x118   :  { %2373 = vperm.xlu0 %8806, %v8992_v13   ;;  %1433 = vperm.xlu1 %8708, %v8980_v11   ;;  %v9427_v52 = vpop.permute.xlu0 %477 }
 0x119   :  { %15200 = vst [vmem:[#allocation71_spill] sm:$0xff] %v9427_v52  ;;  %v9429_v53 = vpop.permute.xlu1 %1725 }
 0x11a   :  { %15201 = vst [vmem:[#allocation72_spill] sm:$0xff] %v9429_v53 }
 0x11c   :  { %2381 = vperm.xlu0 %8806, %v8999_v14   ;;  %2704 = vrot.lane.b32.xlu1 %v9434_v50, %s8853_s13  ;;  %v9439_v48 = vpop.permute.xlu0 %485 }
 0x11d   :  { %15202 = vst [vmem:[#allocation73_spill] sm:$0xff] %v9439_v48  ;;  %8709 = vset.pattern.permute.xlu1 %v15203_v56 }
 0x11e   :  { %v9442_v37 = vpop.permute.xlu1 %2357 }
 0x11f   :  { %15204 = vst [vmem:[#allocation74_spill] sm:$0xff] %v9442_v37 }
 0x120   :  { %2385 = vperm.xlu0 %8806, %v8973_v10   ;;  %180 = vperm.xlu1 %8709, %v9101_v31   ;;  %v9446_v52 = vpop.permute.xlu0 %489 }
 0x121   :  { %15205 = vst [vmem:[#allocation75_spill] sm:$0xff] %v9446_v52 }
 0x123   :  { %v9448_v53 = vpop.permute.xlu1 %1097 }
 0x124   :  { %15206 = vst [vmem:[#allocation76_spill] sm:$0xff] %v9448_v53  ;;  %2397 = vperm.xlu0 %8806, %v8941_v5   ;;  %8710 = vset.pattern.permute.xlu1 %v15162_v43  ;;  %v9452_v14 = vpop.permute.xlu0 %501 }
 0x125   :  { %15207 = vst [vmem:[#allocation77_spill] sm:$0xff] %v9452_v14  ;;  %1117 = vperm.xlu1 %8710, %v8941_v5   ;;  %v9468_v14 = vld [vmem:[%s14693_s0 + $0x18] sm:$0xff] }
 0x128   :  { %v9455_v48 = vpop.permute.xlu1 %1729  ;;  %2401 = vperm.xlu0 %8806, %v8953_v7   ;;  %v9458_v37 = vpop.permute.xlu0 %505 }
 0x129   :  { %15208 = vst [vmem:[#allocation78_spill] sm:$0xff] %v9455_v48  ;;  %15209 = vst [vmem:[#allocation79_spill] sm:$0xff] %v9458_v37  ;;  %8711 = vset.pattern.permute.xlu1 %v15159_v60 }
 0x12a   :  { %1749 = vperm.xlu1 %8711, %v9007_v16  }
 0x12c   :  { %2413 = vperm.xlu0 %8806, %v9017_v17   ;;  %v9463_v52 = vpop.permute.xlu0 %517 }
 0x12d   :  { %15210 = vst [vmem:[#allocation80_spill] sm:$0xff] %v9463_v52  ;;  %v9470_v53 = vpop.permute.xlu1 %781 }
 0x12e   :  { %15211 = vst [vmem:[#allocation81_spill] sm:$0xff] %v9470_v53  ;;  %2706 = vrot.lane.b32.xlu1 %v9468_v14, %s8853_s13 }
 0x12f   :  { %8712 = vset.pattern.permute.xlu1 %v15203_v56 }
 0x130   :  { %2417 = vperm.xlu0 %8806, %v9024_v18   ;;  %v9476_v37 = vpop.permute.xlu0 %521 }
 0x131   :  { %15212 = vst [vmem:[#allocation82_spill] sm:$0xff] %v9476_v37 }
 0x132   :  { %v9478_v48 = vpop.permute.xlu1 %1413  ;;  %185 = vperm.xlu1 %8712, %v9108_v32  }
 0x133   :  { %15213 = vst [vmem:[#allocation83_spill] sm:$0xff] %v9478_v48 }
 0x134   :  { %2429 = vperm.xlu0 %8806, %v9040_v21   ;;  %v9482_v52 = vpop.permute.xlu0 %533 }
 0x135   :  { %15214 = vst [vmem:[#allocation84_spill] sm:$0xff] %v9482_v52 }
 0x136   :  { %8713 = vset.pattern.permute.xlu1 %v15162_v43 }
 0x137   :  { %v9485_v53 = vpop.permute.xlu1 %785  ;;  %1121 = vperm.xlu1 %8713, %v8953_v7  }
 0x138   :  { %15215 = vst [vmem:[#allocation85_spill] sm:$0xff] %v9485_v53  ;;  %2433 = vperm.xlu0 %8806, %v9048_v22   ;;  %v9489_v51 = vpop.permute.xlu0 %537  ;;  %v92_v22 = vld [vmem:[%s14693_s0 + $0xb0] sm:$0xff]  ;;  %v15227_v53 = vmov 6  }
 0x139   :  { %15216 = vst [vmem:[#allocation86_spill] sm:$0xff] %v9489_v51 }
 0x13b   :  { %8714 = vset.pattern.permute.xlu1 %v15159_v60 }
 0x13c   :  { %v9492_v37 = vpop.permute.xlu1 %1417  ;;  %2445 = vperm.xlu0 %8806, %v9061_v25   ;;  %1753 = vperm.xlu1 %8714, %v8980_v11   ;;  %v9496_v48 = vpop.permute.xlu0 %2736 }
 0x13d   :  { %15217 = vst [vmem:[#allocation87_spill] sm:$0xff] %v9492_v37  ;;  %15218 = vst [vmem:[#allocation88_spill] sm:$0xff] %v9496_v48  ;;  %v102_v37 = vld [vmem:[%s14694_s2] sm:$0xff] }
 0x140   :  { %2449 = vperm.xlu0 %8806, %v9068_v26   ;;  %8715 = vset.pattern.permute.xlu1 %v15171_v15  ;;  %v9500_v52 = vpop.permute.xlu0 %549 }
 0x141   :  { %15219 = vst [vmem:[#allocation89_spill] sm:$0xff] %v9500_v52  ;;  %v9505_v51 = vpop.permute.xlu1 %469  ;;  %805 = vperm.xlu1 %8715, %v9101_v31  }
 0x142   :  { %15220 = vst [vmem:[#allocation90_spill] sm:$0xff] %v9505_v51 }
 0x144   :  { %2744 = vrot.lane.b32.xlu0 %v92_v22, %s8853_s13  ;;  %v9509_v25 = vpop.permute.xlu0 %553 }
 0x145   :  { %15221 = vst [vmem:[#allocation91_spill] sm:$0xff] %v9509_v25  ;;  %8716 = vset.pattern.permute.xlu1 %v15174_v46 }
 0x146   :  { %v9512_v48 = vpop.permute.xlu1 %1733  ;;  %1437 = vperm.xlu1 %8716, %v8941_v5  }
 0x147   :  { %15222 = vst [vmem:[#allocation92_spill] sm:$0xff] %v9512_v48 }
 0x148   :  { %2461 = vperm.xlu0 %8806, %v9081_v29  }
 0x149   :  { %v9516_v26 = vpop.permute.xlu0 %1085 }
 0x14a   :  { %15223 = vst [vmem:[#allocation93_spill] sm:$0xff] %v9516_v26  ;;  %8717 = vset.pattern.permute.xlu1 %v15171_v15 }
 0x14b   :  { %v9519_v52 = vpop.permute.xlu1 %2365  ;;  %809 = vperm.xlu1 %8717, %v9108_v32  }
 0x14c   :  { %15224 = vst [vmem:[#allocation94_spill] sm:$0xff] %v9519_v52  ;;  %2465 = vperm.xlu0 %8806, %v9089_v30   ;;  %v103_v30 = vld [vmem:[%s14694_s2 + $0x8] sm:$0xff] }
 0x14d   :  { %v9523_v22 = vpop.permute.xlu0 %1093  ;;  %v8612_v48 = vpack.c.bf16 %v103_v30, %v102_v37  ;;  %v104_v37 = vld [vmem:[%s14694_s2 + $0x10] sm:$0xff]  ;;  %v105_v30 = vld [vmem:[%s14694_s2 + $0x18] sm:$0xff] }
 0x14e   :  { %15225 = vst [vmem:[#allocation95_spill] sm:$0xff] %v9523_v22  ;;  %v8616_v52 = vpack.c.bf16 %v105_v30, %v104_v37 }
 0x14f   :  { %8718 = vset.pattern.permute.xlu1 %v15174_v46  ;;  %8613 = vmatprep.subr.bf16.mxu0 %v8612_v48 }
 0x150   :  { %v9526_v25 = vpop.permute.xlu1 %1105  ;;  %8811 = vset.pattern.permute.xlu0 %v15227_v53  ;;  %1441 = vperm.xlu1 %8718, %v8953_v7  }
 0x151   :  { %15226 = vst [vmem:[#allocation96_spill] sm:$0xff] %v9526_v25  ;;  %2029 = vperm.xlu0 %8811, %v8965_v9   ;;  %v9531_v51 = vpop.permute.xlu0 %1101  ;;  %v9542_v25 = vld [vmem:[%s14693_s0 + $0x20] sm:$0xff]  ;;  %8615 = vmatpush3.bf16.msra.mxu0 %v8612_v48 }
 0x152   :  { %15228 = vst [vmem:[#allocation97_spill] sm:$0xff] %v9531_v51  ;;  %8644 = vmatprep.subr.bf16.mxu1 %v8612_v48  ;;  %8617 = vmatprep.subr.bf16.mxu0 %v8616_v52 }
 0x153   :  { %8646 = vmatpush3.bf16.msra.mxu1 %v8612_v48 }
 0x154   :  { %2708 = vrot.lane.b32.xlu1 %v9542_v25, %s8853_s13  ;;  %8645 = vmatprep.subr.bf16.mxu1 %v8616_v52 }
 0x155   :  { %v9546_v9 = vpop.permute.xlu1 %1737  ;;  %2033 = vperm.xlu0 %8811, %v8929_v3   ;;  %v9549_v51 = vpop.permute.xlu0 %1113  ;;  %8719 = vset.pattern.permute.xlu1 %v15156_v62 }
 0x156   :  { %15229 = vst [vmem:[#allocation98_spill] sm:$0xff] %v9546_v9  ;;  %15230 = vst [vmem:[#allocation99_spill] sm:$0xff] %v9549_v51  ;;  %8619 = vmatpush3.bf16.msra.mxu0 %v8616_v52  ;;  %v9792_v9 = vld [vmem:[%s14693_s0 + $0x40] sm:$0xff] }
 0x157   :  { %8647 = vmatpush3.bf16.msra.mxu1 %v8616_v52  ;;  %15278 = vst [vmem:[#allocation147_spill] sm:$0xff] %v9792_v9 }
 0x158   :  { %493 = vperm.xlu1 %8719, %v9017_v17  }
 0x159   :  { %2037 = vperm.xlu0 %8811, %v8924_v2   ;;  %v9560_v3 = vpop.permute.xlu0 %1189 }
 0x15a   :  { %15231 = vst [vmem:[#allocation100_spill] sm:$0xff] %v9560_v3  ;;  %v9562_v51 = vpop.permute.xlu1 %789 }
 0x15b   :  { %15232 = vst [vmem:[#allocation101_spill] sm:$0xff] %v9562_v51 }
 0x15c   :  { %8720 = vset.pattern.permute.xlu1 %v15162_v43 }
 0x15d   :  { %2041 = vperm.xlu0 %8811, %v8936_v4   ;;  %1125 = vperm.xlu1 %8720, %v9101_v31   ;;  %v9581_v4 = vld [vmem:[%s14693_s0 + $0x28] sm:$0xff] }
 0x15e   :  { %v9567_v37 = vpop.permute.xlu0 %1713 }
 0x15f   :  { %15233 = vst [vmem:[#allocation102_spill] sm:$0xff] %v9567_v37  ;;  %v9569_v30 = vpop.permute.xlu1 %1421 }
 0x160   :  { %15234 = vst [vmem:[#allocation103_spill] sm:$0xff] %v9569_v30 }
 0x161   :  { %2045 = vperm.xlu0 %8811, %v8985_v12   ;;  %8721 = vset.pattern.permute.xlu1 %v15164_v58 }
 0x162   :  { %2389 = vperm.xlu1 %8721, %v9007_v16   ;;  %v9574_v2 = vpop.permute.xlu0 %1757 }
 0x163   :  { %15235 = vst [vmem:[#allocation104_spill] sm:$0xff] %v9574_v2 }
 0x164   :  { %v9576_v48 = vpop.permute.xlu1 %793 }
 0x165   :  { %15236 = vst [vmem:[#allocation105_spill] sm:$0xff] %v9576_v48  ;;  %2049 = vperm.xlu0 %8811, %v8948_v6  }
 0x166   :  { %2710 = vrot.lane.b32.xlu1 %v9581_v4, %s8853_s13  ;;  %v9586_v52 = vpop.permute.xlu0 %1761 }
 0x167   :  { %15237 = vst [vmem:[#allocation106_spill] sm:$0xff] %v9586_v52  ;;  %8722 = vset.pattern.permute.xlu1 %v15156_v62 }
 0x169   :  { %v9589_v12 = vpop.permute.xlu1 %1425  ;;  %2053 = vperm.xlu0 %8811, %v8992_v13  }
 0x16a   :  { %15238 = vst [vmem:[#allocation107_spill] sm:$0xff] %v9589_v12  ;;  %497 = vperm.xlu1 %8722, %v9024_v18   ;;  %v9593_v3 = vpop.permute.xlu0 %1773  ;;  %v95_v12 = vld [vmem:[%s14693_s0 + $0xc8] sm:$0xff] }
 0x16b   :  { %15239 = vst [vmem:[#allocation108_spill] sm:$0xff] %v9593_v3 }
 0x16d   :  { %2057 = vperm.xlu0 %8811, %v8960_v8   ;;  %v9596_v2 = vpop.permute.xlu1 %2700 }
 0x16e   :  { %8723 = vset.pattern.permute.xlu1 %v15162_v43  ;;  %v9599_v6 = vpop.permute.xlu0 %1777 }
 0x16f   :  { %15240 = vst [vmem:[#allocation109_spill] sm:$0xff] %v9599_v6  ;;  %1129 = vperm.xlu1 %8723, %v9108_v32  }
 0x171   :  { %2065 = vperm.xlu0 %8811, %v8973_v10   ;;  %v9603_v52 = vpop.permute.xlu1 %1109 }
 0x172   :  { %15241 = vst [vmem:[#allocation110_spill] sm:$0xff] %v9603_v52  ;;  %v9605_v48 = vpop.permute.xlu0 %1789 }
 0x173   :  { %15242 = vst [vmem:[#allocation111_spill] sm:$0xff] %v9605_v48  ;;  %8724 = vset.pattern.permute.xlu1 %v15164_v58 }
 0x174   :  { %2393 = vperm.xlu1 %8724, %v8980_v11  }
 0x175   :  { %2069 = vperm.xlu0 %8811, %v9007_v16  }
 0x176   :  { %v9610_v8 = vpop.permute.xlu1 %1741  ;;  %v9612_v13 = vpop.permute.xlu0 %1793 }
 0x177   :  { %15243 = vst [vmem:[#allocation112_spill] sm:$0xff] %v9610_v8  ;;  %15244 = vst [vmem:[#allocation113_spill] sm:$0xff] %v9612_v13 }
 0x178   :  { %8725 = vset.pattern.permute.xlu1 %v15171_v15 }
 0x179   :  { %2073 = vperm.xlu0 %8811, %v8980_v11   ;;  %813 = vperm.xlu1 %8725, %v9017_v17  }
 0x17a   :  { %v9617_v10 = vpop.permute.xlu1 %2702  ;;  %v9619_v6 = vpop.permute.xlu0 %1805 }
 0x17b   :  { %15245 = vst [vmem:[#allocation114_spill] sm:$0xff] %v9619_v6 }
 0x17d   :  { %8726 = vset.pattern.permute.xlu1 %v15227_v53  ;;  %2085 = vperm.xlu0 %8811, %v9101_v31  }
 0x17e   :  { %2077 = vperm.xlu1 %8726, %v8941_v5   ;;  %v9624_v16 = vpop.permute.xlu1 %481  ;;  %v9626_v48 = vpop.permute.xlu0 %1809 }
 0x17f   :  { %15246 = vst [vmem:[#allocation115_spill] sm:$0xff] %v9624_v16  ;;  %15247 = vst [vmem:[#allocation116_spill] sm:$0xff] %v9626_v48 }
 0x181   :  { %2089 = vperm.xlu0 %8811, %v9108_v32  }
 0x182   :  { %8727 = vset.pattern.permute.xlu1 %v15171_v15  ;;  %v9630_v11 = vpop.permute.xlu0 %2742 }
 0x183   :  { %15248 = vst [vmem:[#allocation117_spill] sm:$0xff] %v9630_v11  ;;  %817 = vperm.xlu1 %8727, %v9024_v18   ;;  %v9633_v13 = vpop.permute.xlu1 %1745 }
 0x184   :  { %15249 = vst [vmem:[#allocation118_spill] sm:$0xff] %v9633_v13 }
 0x185   :  { %2101 = vperm.xlu0 %8811, %v9115_v33  }
 0x186   :  { %v9636_v6 = vpop.permute.xlu0 %1825 }
 0x187   :  { %15250 = vst [vmem:[#allocation119_spill] sm:$0xff] %v9636_v6  ;;  %8728 = vset.pattern.permute.xlu1 %v15227_v53 }
 0x188   :  { %2081 = vperm.xlu1 %8728, %v8953_v7   ;;  %v9640_v5 = vpop.permute.xlu1 %2377 }
 0x189   :  { %15251 = vst [vmem:[#allocation120_spill] sm:$0xff] %v9640_v5  ;;  %2105 = vperm.xlu0 %8811, %v9123_v34  }
 0x18b   :  { %v9643_v48 = vpop.permute.xlu0 %2353 }
 0x18c   :  { %15252 = vst [vmem:[#allocation121_spill] sm:$0xff] %v9643_v48  ;;  %8729 = vset.pattern.permute.xlu1 %v15203_v56 }
 0x18d   :  { %200 = vperm.xlu1 %8729, %v9115_v33   ;;  %v9647_v11 = vpop.permute.xlu1 %1429  ;;  %2117 = vperm.xlu0 %8811, %v9131_v35  }
 0x18e   :  { %15253 = vst [vmem:[#allocation122_spill] sm:$0xff] %v9647_v11 }
 0x18f   :  { %v9650_v3 = vpop.permute.xlu0 %2361 }
 0x190   :  { %15254 = vst [vmem:[#allocation123_spill] sm:$0xff] %v9650_v3 }
 0x191   :  { %8730 = vset.pattern.permute.xlu1 %v15162_v43  ;;  %2121 = vperm.xlu0 %8811, %v9139_v36   ;;  %v9670_v36 = vld [vmem:[%s14693_s0 + $0x38] sm:$0xff] }
 0x192   :  { %1133 = vperm.xlu1 %8730, %v9017_v17   ;;  %v9655_v7 = vpop.permute.xlu1 %2061  ;;  %15259 = vst [vmem:[#allocation128_spill] sm:$0xff] %v9670_v36 }
 0x193   :  { %15255 = vst [vmem:[#allocation124_spill] sm:$0xff] %v9655_v7  ;;  %v9657_v6 = vpop.permute.xlu0 %2369 }
 0x194   :  { %15256 = vst [vmem:[#allocation125_spill] sm:$0xff] %v9657_v6 }
 0x195   :  { %2133 = vperm.xlu0 %8811, %v9146_v38  }
 0x196   :  { %8731 = vset.pattern.permute.xlu1 %v15159_v60 }
 0x197   :  { %v9661_v16 = vpop.permute.xlu0 %2373  ;;  %1765 = vperm.xlu1 %8731, %v9101_v31   ;;  %v9664_v35 = vpop.permute.xlu1 %1433 }
 0x198   :  { %15257 = vst [vmem:[#allocation126_spill] sm:$0xff] %v9661_v16  ;;  %15258 = vst [vmem:[#allocation127_spill] sm:$0xff] %v9664_v35 }
 0x199   :  { %2137 = vperm.xlu0 %8811, %v9153_v39  }
 0x19b   :  { %v9672_v13 = vpop.permute.xlu0 %2381  ;;  %2714 = vrot.lane.b32.xlu1 %v9670_v36, %s8853_s13  ;;  %v9676_v38 = vpop.permute.xlu1 %2704 }
 0x19c   :  { %15260 = vst [vmem:[#allocation129_spill] sm:$0xff] %v9672_v13  ;;  %15261 = vst [vmem:[#allocation130_spill] sm:$0xff] %v9676_v38  ;;  %8732 = vset.pattern.permute.xlu1 %v15203_v56 }
 0x19d   :  { %2141 = vperm.xlu0 %8811, %v9081_v29  }
 0x19f   :  { %205 = vperm.xlu1 %8732, %v9123_v34   ;;  %v9681_v31 = vpop.permute.xlu1 %180  ;;  %v9683_v39 = vpop.permute.xlu0 %2385 }
 0x1a0   :  { %15262 = vst [vmem:[#allocation131_spill] sm:$0xff] %v9681_v31  ;;  %15263 = vst [vmem:[#allocation132_spill] sm:$0xff] %v9683_v39 }
 0x1a1   :  { %2153 = vperm.xlu0 %8811, %v9279_v24   ;;  %v96_v24 = vld [vmem:[%s14693_s0 + $0xd0] sm:$0xff] }
 0x1a3   :  { %8733 = vset.pattern.permute.xlu1 %v15162_v43  ;;  %v9687_v35 = vpop.permute.xlu0 %2397 }
 0x1a4   :  { %15264 = vst [vmem:[#allocation133_spill] sm:$0xff] %v9687_v35  ;;  %1137 = vperm.xlu1 %8733, %v9024_v18   ;;  %v9693_v11 = vpop.permute.xlu1 %1117 }
 0x1a5   :  { %15265 = vst [vmem:[#allocation134_spill] sm:$0xff] %v9693_v11  ;;  %2750 = vrot.lane.b32.xlu0 %v95_v12, %s8853_s13  ;;  %v98_v12 = vld [vmem:[%s14693_s0 + $0xe0] sm:$0xff]  ;;  %v268_v11 = vlaneseq }
 0x1a6   :  { %8814 = vset.pattern.permute.xlu0 %v15164_v58 }
 0x1a7   :  { %v9697_v29 = vpop.permute.xlu0 %2401  ;;  %v9725_v39 = vshrl.u32 %v268_v11, 7 }
 0x1a8   :  { %15266 = vst [vmem:[#allocation135_spill] sm:$0xff] %v9697_v29  ;;  %8734 = vset.pattern.permute.xlu1 %v15159_v60 }
 0x1a9   :  { %1769 = vperm.xlu1 %8734, %v9108_v32   ;;  %v9704_v31 = vpop.permute.xlu1 %1749  ;;  %2752 = vrot.lane.b32.xlu0 %v96_v24, %s8853_s13  ;;  %v100_v24 = vld [vmem:[%s14693_s0 + $0xf0] sm:$0xff]  ;;  %v9756_v13 = vsub.s32 3, %v9725_v39 }
 0x1aa   :  { %15267 = vst [vmem:[#allocation136_spill] sm:$0xff] %v9704_v31  ;;  %v9732_v31 = vsub.s32 0, %v9725_v39 }
 0x1ab   :  { %v9707_v35 = vpop.permute.xlu0 %2413  ;;  %v1199_v60 = vrot.slane %v9349_v0, %v9756_v13  ;;  %v1203_v36 = vrot.slane %v9373_v45, %v9756_v13  ;;  %v1207_v16 = vrot.slane %v9434_v50, %v9756_v13 }
 0x1ac   :  { %15268 = vst [vmem:[#allocation137_spill] sm:$0xff] %v9707_v35  ;;  %v271_v11 = vrot.slane %v9349_v0, %v9732_v31  ;;  %v279_v7 = vrot.slane %v9434_v50, %v9732_v31  ;;  %v291_v8 = vrot.slane %v9581_v4, %v9732_v31 }
 0x1ad   :  { %8735 = vset.pattern.permute.xlu1 %v15171_v15  ;;  %v9713_v29 = vpop.permute.xlu1 %2706  ;;  %2756 = vrot.lane.b32.xlu0 %v98_v12, %s8853_s13 }
 0x1ae   :  { %15269 = vst [vmem:[#allocation138_spill] sm:$0xff] %v9713_v29  ;;  %821 = vperm.xlu1 %8735, %v9115_v33   ;;  %v398_v38 = vmul.f32 %v279_v7, %v9163_v40 }
 0x1af   :  { %v9717_v32 = vpop.permute.xlu0 %2417 }
 0x1b0   :  { %15270 = vst [vmem:[#allocation139_spill] sm:$0xff] %v9717_v32  ;;  %v9735_v32 = vsub.s32 1, %v9725_v39 }
 0x1b1   :  { %v9722_v35 = vpop.permute.xlu1 %185  ;;  %2760 = vrot.lane.b32.xlu0 %v100_v24, %s8853_s13  ;;  %v9748_v24 = vsub.s32 2, %v9725_v39 }
 0x1b2   :  { %15271 = vst [vmem:[#allocation140_spill] sm:$0xff] %v9722_v35  ;;  %8736 = vset.pattern.permute.xlu1 %v15174_v46 }
 0x1b3   :  { %1453 = vperm.xlu1 %8736, %v9017_v17   ;;  %v9729_v12 = vpop.permute.xlu0 %2429  ;;  %v559_v17 = vrot.slane %v9349_v0, %v9735_v32  ;;  %v887_v30 = vrot.slane %v9434_v50, %v9748_v24 }
 0x1b4   :  { %15272 = vst [vmem:[#allocation141_spill] sm:$0xff] %v9729_v12 }
 0x1b6   :  { %v9737_v52 = vpop.permute.xlu1 %1121 }
 0x1b7   :  { %15273 = vst [vmem:[#allocation142_spill] sm:$0xff] %v9737_v52  ;;  %8737 = vset.pattern.permute.xlu1 %v15171_v15  ;;  %v9740_v35 = vpop.permute.xlu0 %2433  ;;  %v396_v52 = vmul.f32 %v271_v11, %v9186_v47  ;;  %v275_v11 = vrot.slane %v9373_v45, %v9732_v31  ;;  %v9777_v47 = vsub.s32 5, %v9725_v39  ;;  %v9809_v15 = vsub.s32 7, %v9725_v39 }
 0x1b8   :  { %15274 = vst [vmem:[#allocation143_spill] sm:$0xff] %v9740_v35  ;;  %825 = vperm.xlu1 %8737, %v9123_v34   ;;  %v684_v35 = vmul.f32 %v559_v17, %v9380_v23  ;;  %v883_v34 = vrot.slane %v9373_v45, %v9748_v24  ;;  %v563_v17 = vrot.slane %v9373_v45, %v9735_v32 }
 0x1b9   :  { %v879_v23 = vrot.slane %v9349_v0, %v9748_v24  ;;  %v397_v6 = vmul.f32 %v275_v11, %v9193_v49  ;;  %v571_v11 = vrot.slane %v9468_v14, %v9735_v32  ;;  %v1006_v49 = vmul.f32 %v887_v30, %v9248_v27 }
 0x1ba   :  { %v9884_v27 = vsub.s32 6, %v9725_v39 }
 0x1bb   :  { %v9750_v12 = vpop.permute.xlu1 %1753  ;;  %v9752_v51 = vpop.permute.xlu0 %2445 }
 0x1bc   :  { %15275 = vst [vmem:[#allocation144_spill] sm:$0xff] %v9750_v12  ;;  %15276 = vst [vmem:[#allocation145_spill] sm:$0xff] %v9752_v51  ;;  %8738 = vset.pattern.permute.xlu1 %v15174_v46  ;;  %v283_v12 = vrot.slane %v9468_v14, %v9732_v31  ;;  %v9767_v51 = vsub.s32 4, %v9725_v39  ;;  %v567_v46 = vrot.slane %v9434_v50, %v9735_v32  ;;  %v15288_v39 = vld [vmem:[#allocation15_spill] sm:$0xff] }
 0x1bd   :  { %1457 = vperm.xlu1 %8738, %v9024_v18   ;;  %v716_v18 = vadd.f32 %v684_v35, %v396_v52  ;;  %v685_v52 = vmul.f32 %v563_v17, %v9210_v54  ;;  %v1004_v35 = vmul.f32 %v879_v23, %v9220_v57  ;;  %v1005_v57 = vmul.f32 %v883_v34, %v9167_v41 }
 0x1be   :  { %v1523_v53 = vrot.slane %v9373_v45, %v9767_v51  ;;  %v1519_v23 = vrot.slane %v9349_v0, %v9767_v51  ;;  %v687_v34 = vmul.f32 %v571_v11, %v9390_v55  ;;  %v579_v11 = vrot.slane %v9581_v4, %v9735_v32  ;;  %v15305_v55 = vld [vmem:[#allocation54_spill] sm:$0xff] }
 0x1bf   :  { %v9787_v5 = vpop.permute.xlu0 %2449  ;;  %v1036_v54 = vadd.f32 %v1004_v35, %v716_v18  ;;  %v717_v29 = vadd.f32 %v685_v52, %v397_v6  ;;  %v686_v18 = vmul.f32 %v567_v46, %v9227_v59  ;;  %v1324_v35 = vmul.f32 %v1199_v60, %v9234_v61 }
 0x1c0   :  { %15277 = vst [vmem:[#allocation146_spill] sm:$0xff] %v9787_v5  ;;  %v9800_v56 = vpop.permute.xlu1 %805  ;;  %v891_v5 = vrot.slane %v9468_v14, %v9748_v24  ;;  %v1325_v46 = vmul.f32 %v1203_v36, %v9240_v63  ;;  %v1644_v60 = vmul.f32 %v1519_v23, %v9311_v19  ;;  %v575_v52 = vrot.slane %v9542_v25, %v9735_v32 }
 0x1c1   :  { %15279 = vst [vmem:[#allocation148_spill] sm:$0xff] %v9800_v56  ;;  %2716 = vrot.lane.b32.xlu1 %v9792_v9, %s8853_s13  ;;  %v1839_v56 = vrot.slane %v9349_v0, %v9777_v47  ;;  %v1356_v7 = vadd.f32 %v1324_v35, %v1036_v54  ;;  %v399_v9 = vmul.f32 %v283_v12, %v9169_v42 }
 0x1c2   :  { %8739 = vset.pattern.permute.xlu1 %v15156_v62  ;;  %v9874_v36 = vmul.f32 %v291_v8, %v9176_v44  ;;  %v718_v23 = vadd.f32 %v686_v18, %v398_v38  ;;  %v1037_v54 = vadd.f32 %v1005_v57, %v717_v29  ;;  %v1645_v30 = vmul.f32 %v1523_v53, %v9270_v1  ;;  %v15285_v8 = vld [vmem:[#allocation13_spill] sm:$0xff] }
 0x1c3   :  { %v9827_v17 = vpop.permute.xlu0 %2744  ;;  %v1326_v59 = vmul.f32 %v1207_v16, %v9281_v28  ;;  %v15286_v57 = vrot.slane %v9542_v25, %v9732_v31  ;;  %v1676_v18 = vadd.f32 %v1644_v60, %v1356_v7  ;;  %v15287_v53 = vld [vmem:[#allocation29_spill] sm:$0xff]  ;;  %v2159_v16 = vrot.slane %v9349_v0, %v9884_v27 }
 0x1c4   :  { %15280 = vst [vmem:[#allocation149_spill] sm:$0xff] %v9827_v17  ;;  %v9855_v17 = vld [vmem:[%s14693_s0 + $0x30] sm:$0xff]  ;;  %v1357_v29 = vadd.f32 %v1325_v46, %v1037_v54  ;;  %v1038_v35 = vadd.f32 %v1006_v49, %v718_v23  ;;  %v1007_v44 = vmul.f32 %v891_v5, %v15287_v53  ;;  %v15291_v54 = vld [vmem:[#allocation62_spill] sm:$0xff]  ;;  %v15306_v42 = vrot.slane %v9349_v0, %v9809_v15 }
 0x1c5   :  { %509 = vperm.xlu1 %8739, %v9040_v21   ;;  %v9844_v3 = vpop.permute.xlu1 %1437  ;;  %v719_v21 = vadd.f32 %v687_v34, %v399_v9  ;;  %v400_v38 = vmul.f32 %v15286_v57, %v15285_v8  ;;  %v1843_v9 = vrot.slane %v9373_v45, %v9777_v47  ;;  %v15289_v34 = vrot.slane %v9032_v20, %v9732_v31  ;;  %v15290_v57 = vld [vmem:[#allocation36_spill] sm:$0xff] }
 0x1c6   :  { %15281 = vst [vmem:[#allocation150_spill] sm:$0xff] %v9844_v3  ;;  %v1964_v46 = vmul.f32 %v1839_v56, %v15290_v57  ;;  %v688_v8 = vmul.f32 %v575_v52, %v15291_v54  ;;  %v1677_v5 = vadd.f32 %v1645_v30, %v1357_v29  ;;  %v1358_v60 = vadd.f32 %v1326_v59, %v1038_v35  ;;  %v15293_v56 = vld [vmem:[#allocation38_spill] sm:$0xff]  ;;  %v15303_v57 = vld [vmem:[#allocation52_spill] sm:$0xff] }
 0x1c7   :  { %v9860_v6 = vpop.permute.xlu0 %2461  ;;  %v402_v28 = vmul.f32 %v15289_v34, %v15288_v39  ;;  %v1039_v7 = vadd.f32 %v1007_v44, %v719_v21  ;;  %v15294_v52 = vrot.slane %v9468_v14, %v9756_v13  ;;  %v15295_v39 = vld [vmem:[#allocation41_spill] sm:$0xff]  ;;  %v15296_v59 = vrot.slane %v9542_v25, %v9748_v24 }
 0x1c8   :  { %15282 = vst [vmem:[#allocation151_spill] sm:$0xff] %v9860_v6  ;;  %v1215_v21 = vrot.slane %v9542_v25, %v9756_v13  ;;  %v1996_v30 = vadd.f32 %v1964_v46, %v1676_v18  ;;  %v1965_v29 = vmul.f32 %v1843_v9, %v9567_v37  ;;  %v15299_v54 = vrot.slane %v9434_v50, %v9767_v51  ;;  %v15300_v46 = vld [vmem:[#allocation49_spill] sm:$0xff] }
 0x1c9   :  { %8740 = vset.pattern.permute.xlu1 %v15162_v43  ;;  %v1327_v49 = vmul.f32 %v15294_v52, %v15293_v56  ;;  %v1008_v44 = vmul.f32 %v15296_v59, %v15295_v39  ;;  %v2163_v52 = vrot.slane %v9373_v45, %v9884_v27  ;;  %v9936_v59 = vld [vmem:[%s14693_s0 + $0x48] sm:$0xff]  ;;  %v15301_v9 = vrot.slane %v9032_v20, %v9735_v32 }
 0x1ca   :  { %1141 = vperm.xlu1 %8740, %v9115_v33   ;;  %v9879_v12 = vpop.permute.xlu1 %809  ;;  %v8822_v33 = vld [vmem:[%s14692_s1 + $0x70] sm:$0xff]  ;;  %v15298_v39 = vld [vmem:[#allocation43_spill] sm:$0xff]  ;;  %v720_v53 = vadd.f32 %v688_v8, %v400_v38  ;;  %v2604_v61 = vmul.f32 %v15306_v42, %v15305_v55  ;;  %v1328_v8 = vmul.f32 %v1215_v21, %v9516_v26  ;;  %v2167_v38 = vrot.slane %v9434_v50, %v9884_v27  ;;  %v15310_v26 = vld [vmem:[#allocation45_spill] sm:$0xff] }
 0x1cb   :  { %15283 = vst [vmem:[#allocation152_spill] sm:$0xff] %v9879_v12  ;;  %v9886_v40 = vpop.permute.xlu0 %2465  ;;  %v1646_v18 = vmul.f32 %v15299_v54, %v15298_v39  ;;  %v690_v56 = vmul.f32 %v15301_v9, %v15300_v46  ;;  %v1359_v37 = vadd.f32 %v1327_v49, %v1039_v7  ;;  %v1997_v0 = vadd.f32 %v1965_v29, %v1677_v5 }
 0x1cc   :  { %15284 = vst [vmem:[#allocation153_spill] sm:$0xff] %v9886_v40  ;;  %v1040_v46 = vadd.f32 %v1008_v44, %v720_v53  ;;  %v1223_v5 = vrot.slane %v9855_v17, %v9756_v13  ;;  %v15380_v40 = vld [vmem:[#allocation112_spill] sm:$0xff] }
 0x1cd   :  { %v1678_v9 = vadd.f32 %v1646_v18, %v1358_v60  ;;  %v722_v53 = vadd.f32 %v690_v56, %v402_v28  ;;  %v15315_v28 = vrot.slane %v9468_v14, %v9777_v47  ;;  %v15317_v56 = vrot.slane %v9855_v17, %v9748_v24 }
 0x1ce   :  { %8741 = vset.pattern.permute.xlu1 %v15164_v58 }
 0x1cf   :  { %2405 = vperm.xlu1 %8741, %v8822_v33   ;;  %v9913_v34 = vpop.permute.xlu1 %1441  ;;  %v2483_v33 = vrot.slane %v9373_v45, %v9809_v15  ;;  %v15304_v45 = vrot.slane %v9434_v50, %v9777_v47 }
 0x1d0   :  { %15292 = vst [vmem:[#allocation154_spill] sm:$0xff] %v9913_v34  ;;  %v9925_v35 = vpop.permute.xlu0 %2029 }
 0x1d1   :  { %15297 = vst [vmem:[#allocation155_spill] sm:$0xff] %v9925_v35  ;;  %v2284_v23 = vmul.f32 %v2159_v16, %v9925_v35  ;;  %v15302_v16 = vld [vmem:[#allocation64_spill] sm:$0xff]  ;;  %v1966_v19 = vmul.f32 %v15304_v45, %v15303_v57  ;;  %v2605_v42 = vmul.f32 %v2483_v33, %v9643_v48  ;;  %v15308_v45 = vld [vmem:[#allocation47_spill] sm:$0xff]  ;;  %v15311_v57 = vrot.slane %v9581_v4, %v9748_v24  ;;  %v10234_v48 = vld [vmem:[%s14692_s1 + $0xc0] sm:$0xff] }
 0x1d2   :  { %v689_v35 = vmul.f32 %v579_v11, %v15302_v16 }
 0x1d3   :  { %2718 = vrot.lane.b32.xlu1 %v9936_v59, %s8853_s13  ;;  %v9957_v54 = vpop.permute.xlu1 %2708  ;;  %v2316_v20 = vadd.f32 %v2284_v23, %v1996_v30  ;;  %v15309_v23 = vrot.slane %v9468_v14, %v9767_v51  ;;  %v1009_v16 = vmul.f32 %v15311_v57, %v15310_v26  ;;  %v1998_v44 = vadd.f32 %v1966_v19, %v1678_v9  ;;  %v15320_v9 = vld [vmem:[#allocation56_spill] sm:$0xff] }
 0x1d4   :  { %v9960_v11 = vpop.permute.xlu0 %2033  ;;  %8742 = vset.pattern.permute.xlu1 %v15156_v62  ;;  %v721_v30 = vadd.f32 %v689_v35, %v9874_v36  ;;  %v1360_v35 = vadd.f32 %v1328_v8, %v1040_v46  ;;  %v15319_v8 = vrot.slane %v9542_v25, %v9767_v51 }
 0x1d5   :  { %15307 = vst [vmem:[#allocation156_spill] sm:$0xff] %v9960_v11  ;;  %v2285_v49 = vmul.f32 %v2163_v52, %v9960_v11  ;;  %v2636_v7 = vadd.f32 %v2604_v61, %v2316_v20  ;;  %v1647_v21 = vmul.f32 %v15309_v23, %v15308_v45  ;;  %v9981_v61 = vld [vmem:[%s14692_s1 + $0xa8] sm:$0xff]  ;;  %v2491_v52 = vrot.slane %v9468_v14, %v9809_v15 }
 0x1d6   :  { %v2171_v20 = vrot.slane %v9468_v14, %v9884_v27  ;;  %v15323_v14 = vrot.slane %v9434_v50, %v9809_v15 }
 0x1d7   :  { %v2317_v29 = vadd.f32 %v2285_v49, %v1997_v0  ;;  %513 = vperm.xlu1 %8742, %v9981_v61   ;;  %v9984_v60 = vpop.permute.xlu1 %493  ;;  %v2797_v36 = vsel %vm2796_vm0, %v2636_v7, %v9596_v2  ;;  %v1679_v33 = vadd.f32 %v1647_v21, %v1359_v37  ;;  %v15314_v49 = vld [vmem:[#allocation58_spill] sm:$0xff]  ;;  %v15316_v2 = vld [vmem:[#allocation60_spill] sm:$0xff]  ;;  %v15318_v37 = vld [vmem:[#allocation63_spill] sm:$0xff] }
 0x1d8   :  { %15312 = vst [vmem:[#allocation157_spill] sm:$0xff] %v9984_v60  ;;  %v9988_v57 = vpop.permute.xlu0 %2037  ;;  %8444 = vmatprep.mubr.msk.f32.mxu0 %vm2829_vm1, %v2797_v36  ;;  %v1967_v19 = vmul.f32 %v15315_v28, %v15314_v49  ;;  %v1010_v46 = vmul.f32 %v15317_v56, %v15316_v2  ;;  %v1648_v7 = vmul.f32 %v15319_v8, %v15318_v37  ;;  %v15322_v21 = vld [vmem:[#allocation74_spill] sm:$0xff]  ;;  %v15329_v2 = vld [vmem:[#allocation72_spill] sm:$0xff]  ;;  %v15376_v49 = vld [vmem:[#allocation81_spill] sm:$0xff] }
 0x1d9   :  { %15313 = vst [vmem:[#allocation158_spill] sm:$0xff] %v9988_v57  ;;  %v2286_v18 = vmul.f32 %v2167_v38, %v9988_v57  ;;  %v2637_v0 = vadd.f32 %v2605_v42, %v2317_v29  ;;  %v1041_v38 = vadd.f32 %v1009_v16, %v721_v30  ;;  %v15321_v42 = vrot.slane %v9581_v4, %v9756_v13 }
 0x1da   :  { %v2606_v29 = vmul.f32 %v15323_v14, %v15322_v21  ;;  %v1680_v56 = vadd.f32 %v1648_v7, %v1360_v35  ;;  %v1330_v8 = vmul.f32 %v1223_v5, %v9523_v22  ;;  %v1999_v30 = vadd.f32 %v1967_v19, %v1679_v33  ;;  %v15327_v19 = vld [vmem:[#allocation67_spill] sm:$0xff] }
 0x1db   :  { %v1329_v23 = vmul.f32 %v15321_v42, %v15320_v9  ;;  %v2318_v36 = vadd.f32 %v2286_v18, %v1998_v44  ;;  %8743 = vset.pattern.permute.xlu1 %v15162_v43  ;;  %v2798_v28 = vsel %vm2796_vm0, %v2637_v0, %v9617_v10  ;;  %v10025_v42 = vld [vmem:[%s14692_s1 + $0x98] sm:$0xff]  ;;  %v15326_v44 = vld [vmem:[#allocation123_spill] sm:$0xff]  ;;  %v2175_v5 = vrot.slane %v9542_v25, %v9884_v27 }
 0x1dc   :  { %v10020_v16 = vpop.permute.xlu0 %2041  ;;  %1145 = vperm.xlu1 %8743, %v10025_v42   ;;  %v10028_v50 = vpop.permute.xlu1 %1125  ;;  %8445 = vmatmul.mubr.msk.f32.vlgmr.msra.gmra.mrb[0].mxu0 %vm2829_vm1, %v2798_v28  ;;  %v2607_v18 = vmul.f32 %v2491_v52, %v15326_v44  ;;  %v1042_v33 = vadd.f32 %v1010_v46, %v722_v53  ;;  %v15328_v7 = vrot.slane %v9581_v4, %v9767_v51  ;;  %v15332_v46 = vld [vmem:[#allocation78_spill] sm:$0xff] }
 0x1dd   :  { %15324 = vst [vmem:[#allocation159_spill] sm:$0xff] %v10020_v16  ;;  %15325 = vst [vmem:[#allocation160_spill] sm:$0xff] %v10028_v50  ;;  %v2287_v10 = vmul.f32 %v2171_v20, %v10020_v16  ;;  %v2638_v35 = vadd.f32 %v2606_v29, %v2318_v36  ;;  %v1361_v0 = vadd.f32 %v1329_v23, %v1041_v38  ;;  %v15331_v29 = vld [vmem:[#allocation130_spill] sm:$0xff] }
 0x1de   :  { %v1649_v14 = vmul.f32 %v15328_v7, %v15327_v19  ;;  %v1543_v22 = vrot.slane %v9855_v17, %v9767_v51  ;;  %v15330_v52 = vrot.slane %v9542_v25, %v9777_v47  ;;  %v2495_v20 = vrot.slane %v9542_v25, %v9809_v15 }
 0x1df   :  { %v2319_v37 = vadd.f32 %v2287_v10, %v1999_v30  ;;  %v2799_v53 = vsel %vm2796_vm0, %v2638_v35, %v15331_v29  ;;  %v15333_v38 = vrot.slane %v9581_v4, %v9777_v47  ;;  %v1362_v36 = vadd.f32 %v1330_v8, %v1042_v33  ;;  %v8825_v10 = vld [vmem:[%s14692_s1 + $0x78] sm:$0xff]  ;;  %v15336_v29 = vld [vmem:[#allocation83_spill] sm:$0xff] }
 0x1e0   :  { %v1968_v28 = vmul.f32 %v15330_v52, %v15329_v2  ;;  %v2499_v7 = vrot.slane %v9581_v4, %v9809_v15  ;;  %v10055_v19 = vpop.permute.xlu0 %2045  ;;  %8744 = vset.pattern.permute.xlu1 %v15164_v58  ;;  %8447 = vmatprep.mubr.msk.f32.mxu0 %vm2829_vm1, %v2799_v53  ;;  %v2179_v8 = vrot.slane %v9581_v4, %v9884_v27  ;;  %v15340_v4 = vld [vmem:[#allocation125_spill] sm:$0xff] }
 0x1e1   :  { %v1969_v23 = vmul.f32 %v15333_v38, %v15332_v46  ;;  %15334 = vst [vmem:[#allocation130_spill] sm:$0xff] %v10055_v19  ;;  %v2288_v30 = vmul.f32 %v2175_v5, %v10055_v19  ;;  %2409 = vperm.xlu1 %8744, %v8825_v10   ;;  %v10063_v35 = vpop.permute.xlu1 %2389  ;;  %v2639_v33 = vadd.f32 %v2607_v18, %v2319_v37  ;;  %v15338_v19 = vld [vmem:[#allocation138_spill] sm:$0xff]  ;;  %v15341_v18 = vmov 2  }
 0x1e2   :  { %v2000_v25 = vadd.f32 %v1968_v28, %v1680_v56  ;;  %15335 = vst [vmem:[#allocation161_spill] sm:$0xff] %v10063_v35  ;;  %v1681_v52 = vadd.f32 %v1649_v14, %v1361_v0  ;;  %v1650_v38 = vmul.f32 %v1543_v22, %v15336_v29  ;;  %v1863_v53 = vrot.slane %v9855_v17, %v9777_v47  ;;  %v15337_v56 = vld [vmem:[#allocation94_spill] sm:$0xff] }
 0x1e3   :  { %v2608_v28 = vmul.f32 %v2495_v20, %v15337_v56  ;;  %v2800_v2 = vsel %vm2796_vm0, %v2639_v33, %v15338_v19  ;;  %v2503_v9 = vrot.slane %v9855_v17, %v9809_v15  ;;  %v2609_v22 = vmul.f32 %v2499_v7, %v15340_v4  ;;  %v10086_v20 = vld [vmem:[%s14692_s1 + $0xa0] sm:$0xff]  ;;  %v15360_v56 = vld [vmem:[#allocation76_spill] sm:$0xff]  ;;  %v10169_v4 = vld [vmem:[%s14692_s1 + $0xb8] sm:$0xff] }
 0x1e4   :  { %v2320_v5 = vadd.f32 %v2288_v30, %v2000_v25  ;;  %v2001_v46 = vadd.f32 %v1969_v23, %v1681_v52  ;;  %v1682_v10 = vadd.f32 %v1650_v38, %v1362_v36  ;;  %v10075_v21 = vpop.permute.xlu0 %2049  ;;  %8448 = vmatmul.mubr.msk.f32.gmra.mrb[2].mxu0 %vm2829_vm1, %v2800_v2  ;;  %v2183_v14 = vrot.slane %v9855_v17, %v9884_v27  ;;  %v15342_v23 = vld [vmem:[#allocation92_spill] sm:$0xff]  ;;  %v15344_v30 = vld [vmem:[#allocation126_spill] sm:$0xff] }
 0x1e5   :  { %15339 = vst [vmem:[#allocation138_spill] sm:$0xff] %v10075_v21  ;;  %v2289_v37 = vmul.f32 %v2179_v8, %v10075_v21  ;;  %8745 = vset.pattern.permute.xlu1 %v15341_v18  ;;  %v2711_v0 = vpop.permute.xlu1 %2710  ;;  %v1970_v2 = vmul.f32 %v1863_v53, %v15342_v23  ;;  %v2610_v17 = vmul.f32 %v2503_v9, %v15344_v30  ;;  %v15362_v21 = vld [vmem:[#allocation87_spill] sm:$0xff] }
 0x1e6   :  { %v2640_v19 = vadd.f32 %v2608_v28, %v2320_v5  ;;  %829 = vperm.xlu1 %8745, %v10086_v20   ;;  %v15346_v28 = vmov 6  }
 0x1e7   :  { %v2321_v36 = vadd.f32 %v2289_v37, %v2001_v46  ;;  %v2002_v33 = vadd.f32 %v1970_v2, %v1682_v10  ;;  %v15348_v10 = vld [vmem:[#allocation26_spill] sm:$0xff]  ;;  %v10124_v2 = vld [vmem:[%s14692_s1 + $0xb0] sm:$0xff] }
 0x1e8   :  { %v2801_v7 = vsel %vm2796_vm0, %v2640_v19, %v9957_v54  ;;  %v10092_v25 = vpop.permute.xlu0 %2053  ;;  %v8827_v54 = vld [vmem:[%s14692_s1 + $0x80] sm:$0xff]  ;;  %v15351_v19 = vmov 0  }
 0x1e9   :  { %15343 = vst [vmem:[#allocation162_spill] sm:$0xff] %v10092_v25  ;;  %8450 = vmatprep.mubr.msk.f32.mxu0 %vm2829_vm1, %v2801_v7  ;;  %v2641_v8 = vadd.f32 %v2609_v22, %v2321_v36  ;;  %v2290_v52 = vmul.f32 %v2183_v14, %v10092_v25  ;;  %v10097_v38 = vpop.permute.xlu1 %497  ;;  %v15353_v7 = vld [vmem:[#allocation128_spill] sm:$0xff] }
 0x1ea   :  { %15345 = vst [vmem:[#allocation163_spill] sm:$0xff] %v10097_v38  ;;  %8746 = vset.pattern.permute.xlu1 %v15346_v28  ;;  %v1227_v30 = vrot.slane %v15353_v7, %v9756_v13  ;;  %v15391_v38 = vld [vmem:[#allocation85_spill] sm:$0xff] }
 0x1eb   :  { %v2802_v53 = vsel %vm2796_vm0, %v2641_v8, %v2711_v0  ;;  %v2322_v46 = vadd.f32 %v2290_v52, %v2002_v33  ;;  %2093 = vperm.xlu1 %8746, %v8827_v54   ;;  %v8828_v0 = vld [vmem:[%s14692_s1 + $0x88] sm:$0xff]  ;;  %v299_v33 = vrot.slane %v15353_v7, %v9732_v31  ;;  %v15355_v52 = vmov 5  }
 0x1ec   :  { %8451 = vmatmul.mubr.msk.f32.gmra.mrb[4].mxu0 %vm2829_vm1, %v2802_v53  ;;  %v10141_v53 = vld [vmem:[%s14692_s1 + $0x90] sm:$0xff] }
 0x1ed   :  { %v2642_v5 = vadd.f32 %v2610_v17, %v2322_v46  ;;  %v587_v17 = vrot.slane %v15353_v7, %v9735_v32  ;;  %v15356_v46 = vld [vmem:[#allocation66_spill] sm:$0xff] }
 0x1ee   :  { %v10105_v9 = vpop.permute.xlu1 %1129 }
 0x1ef   :  { %15347 = vst [vmem:[#allocation164_spill] sm:$0xff] %v10105_v9  ;;  %8747 = vset.pattern.permute.xlu1 %v15341_v18  ;;  %v2803_v22 = vsel %vm2796_vm0, %v2642_v5, %v15348_v10  ;;  %v691_v54 = vmul.f32 %v587_v17, %v15356_v46  ;;  %v15357_v5 = vld [vmem:[#allocation8_spill] sm:$0xff]  ;;  %v1547_v17 = vrot.slane %v15353_v7, %v9767_v51 }
 0x1f0   :  { %833 = vperm.xlu1 %8747, %v9981_v61   ;;  %8453 = vmatprep.mubr.msk.f32.mxu0 %vm2829_vm1, %v2803_v22  ;;  %v403_v10 = vmul.f32 %v299_v33, %v15357_v5  ;;  %v10149_v22 = vld [vmem:[%s14693_s0 + $0x58] sm:$0xff]  ;;  %v1331_v46 = vmul.f32 %v1227_v30, %v15360_v56  ;;  %v1867_v5 = vrot.slane %v15353_v7, %v9777_v47  ;;  %v15364_v56 = vld [vmem:[#allocation98_spill] sm:$0xff] }
 0x1f1   :  { %v15359_v33 = vld [vmem:[#allocation65_spill] sm:$0xff]  ;;  %v1651_v57 = vmul.f32 %v1547_v17, %v15362_v21 }
 0x1f2   :  { %v723_v23 = vadd.f32 %v691_v54, %v403_v10  ;;  %v1971_v26 = vmul.f32 %v1867_v5, %v15364_v56  ;;  %v15367_v5 = vld [vmem:[#allocation120_spill] sm:$0xff] }
 0x1f3   :  { %v10112_v37 = vpop.permute.xlu1 %2393 }
 0x1f4   :  { %15349 = vst [vmem:[#allocation26_spill] sm:$0xff] %v10112_v37  ;;  %8748 = vset.pattern.permute.xlu1 %v15346_v28 }
 0x1f5   :  { %2097 = vperm.xlu1 %8748, %v8828_v0   ;;  %v907_v0 = vrot.slane %v15353_v7, %v9748_v24 }
 0x1f7   :  { %v1011_v29 = vmul.f32 %v907_v0, %v15359_v33  ;;  %v2187_v0 = vrot.slane %v15353_v7, %v9884_v27  ;;  %v10177_v33 = vpop.permute.xlu0 %2057 }
 0x1f8   :  { %v10118_v14 = vpop.permute.xlu1 %813  ;;  %15363 = vst [vmem:[#allocation169_spill] sm:$0xff] %v10177_v33 }
 0x1f9   :  { %15350 = vst [vmem:[#allocation165_spill] sm:$0xff] %v10118_v14  ;;  %8749 = vset.pattern.permute.xlu1 %v15351_v19  ;;  %v1043_v10 = vadd.f32 %v1011_v29, %v723_v23  ;;  %v2291_v44 = vmul.f32 %v2187_v0, %v10177_v33  ;;  %v2507_v23 = vrot.slane %v15353_v7, %v9809_v15  ;;  %v15375_v33 = vld [vmem:[#allocation69_spill] sm:$0xff] }
 0x1fa   :  { %220 = vperm.xlu1 %8749, %v10124_v2  }
 0x1fb   :  { %v1363_v30 = vadd.f32 %v1331_v46, %v1043_v10  ;;  %v2611_v10 = vmul.f32 %v2507_v23, %v15367_v5 }
 0x1fd   :  { %v10127_v36 = vpop.permute.xlu1 %2077  ;;  %v1683_v39 = vadd.f32 %v1651_v57, %v1363_v30 }
 0x1fe   :  { %15352 = vst [vmem:[#allocation166_spill] sm:$0xff] %v10127_v36  ;;  %8750 = vset.pattern.permute.xlu1 %v15162_v43 }
 0x1ff   :  { %1149 = vperm.xlu1 %8750, %v10086_v20   ;;  %v2003_v29 = vadd.f32 %v1971_v26, %v1683_v39  ;;  %v15369_v39 = vmov 4  }
 0x201   :  { %v2323_v17 = vadd.f32 %v2291_v44, %v2003_v29  ;;  %v15372_v29 = vld [vmem:[#allocation147_spill] sm:$0xff] }
 0x202   :  { %v10133_v8 = vpop.permute.xlu1 %817  ;;  %v303_v23 = vrot.slane %v15372_v29, %v9732_v31  ;;  %v1231_v21 = vrot.slane %v15372_v29, %v9756_v13  ;;  %v1551_v55 = vrot.slane %v15372_v29, %v9767_v51  ;;  %v1871_v11 = vrot.slane %v15372_v29, %v9777_v47 }
 0x203   :  { %15354 = vst [vmem:[#allocation128_spill] sm:$0xff] %v10133_v8  ;;  %8751 = vset.pattern.permute.xlu1 %v15355_v52  ;;  %v2643_v57 = vadd.f32 %v2611_v10, %v2323_v17  ;;  %v591_v17 = vrot.slane %v15372_v29, %v9735_v32  ;;  %v10215_v10 = vld [vmem:[%s14693_s0 + $0x60] sm:$0xff]  ;;  %v2191_v63 = vrot.slane %v15372_v29, %v9884_v27  ;;  %v10287_v8 = vpop.permute.xlu0 %2065 }
 0x204   :  { %1781 = vperm.xlu1 %8751, %v10141_v53   ;;  %v1972_v6 = vmul.f32 %v1871_v11, %v15380_v40  ;;  %15388 = vst [vmem:[#allocation178_spill] sm:$0xff] %v10287_v8 }
 0x205   :  { %v692_v56 = vmul.f32 %v591_v17, %v15375_v33  ;;  %v15378_v33 = vld [vmem:[#allocation97_spill] sm:$0xff] }
 0x207   :  { %v10155_v25 = vpop.permute.xlu1 %2081 }
 0x208   :  { %15358 = vst [vmem:[#allocation167_spill] sm:$0xff] %v10155_v25  ;;  %2722 = vrot.lane.b32.xlu1 %v10149_v22, %s8853_s13 }
 0x209   :  { %8752 = vset.pattern.permute.xlu1 %v15351_v19 }
 0x20c   :  { %225 = vperm.xlu1 %8752, %v10169_v4   ;;  %v10172_v54 = vpop.permute.xlu1 %200 }
 0x20d   :  { %15361 = vst [vmem:[#allocation168_spill] sm:$0xff] %v10172_v54 }
 0x210   :  { %8753 = vset.pattern.permute.xlu1 %v15162_v43 }
 0x211   :  { %1153 = vperm.xlu1 %8753, %v9981_v61   ;;  %v10183_v16 = vpop.permute.xlu1 %1133 }
 0x212   :  { %15365 = vst [vmem:[#allocation170_spill] sm:$0xff] %v10183_v16  ;;  %v15393_v16 = vld [vmem:[#allocation96_spill] sm:$0xff] }
 0x215   :  { %8754 = vset.pattern.permute.xlu1 %v15355_v52 }
 0x216   :  { %1785 = vperm.xlu1 %8754, %v10025_v42   ;;  %v10189_v46 = vpop.permute.xlu1 %1765 }
 0x217   :  { %15366 = vst [vmem:[#allocation171_spill] sm:$0xff] %v10189_v46 }
 0x21a   :  { %8755 = vset.pattern.permute.xlu1 %v15341_v18  ;;  %v2715_v0 = vpop.permute.xlu1 %2714 }
 0x21b   :  { %v2804_v30 = vsel %vm2796_vm0, %v2643_v57, %v2715_v0  ;;  %837 = vperm.xlu1 %8755, %v10124_v2   ;;  %v911_v57 = vrot.slane %v15372_v29, %v9748_v24 }
 0x21c   :  { %8454 = vmatmul.mubr.msk.f32.gmra.mrb[6].mxu0 %vm2829_vm1, %v2804_v30  ;;  %v15374_v30 = vld [vmem:[#allocation17_spill] sm:$0xff] }
 0x21d   :  { %v404_v5 = vmul.f32 %v303_v23, %v15374_v30  ;;  %v1012_v45 = vmul.f32 %v911_v57, %v15376_v49  ;;  %v1332_v30 = vmul.f32 %v1231_v21, %v15378_v33  ;;  %v15379_v57 = vld [vmem:[#allocation103_spill] sm:$0xff]  ;;  %v15385_v33 = vld [vmem:[#allocation18_spill] sm:$0xff] }
 0x21e   :  { %v10196_v26 = vpop.permute.xlu1 %205  ;;  %v1652_v49 = vmul.f32 %v1551_v55, %v15379_v57  ;;  %v10256_v55 = vld [vmem:[%s14693_s0 + $0x50] sm:$0xff] }
 0x21f   :  { %15368 = vst [vmem:[#allocation172_spill] sm:$0xff] %v10196_v26  ;;  %8756 = vset.pattern.permute.xlu1 %v15369_v39  ;;  %v724_v17 = vadd.f32 %v692_v56, %v404_v5  ;;  %v2511_v26 = vrot.slane %v15372_v29, %v9809_v15  ;;  %v15382_v5 = vld [vmem:[#allocation124_spill] sm:$0xff]  ;;  %v599_v11 = vrot.slane %v10256_v55, %v9735_v32 }
 0x220   :  { %1469 = vperm.xlu1 %8756, %v10086_v20   ;;  %v595_v29 = vrot.slane %v9936_v59, %v9735_v32 }
 0x221   :  { %v1044_v1 = vadd.f32 %v1012_v45, %v724_v17  ;;  %v2292_v45 = vmul.f32 %v2191_v63, %v15382_v5  ;;  %v15383_v17 = vld [vmem:[#allocation129_spill] sm:$0xff]  ;;  %v915_v5 = vrot.slane %v9936_v59, %v9748_v24 }
 0x222   :  { %v2612_v40 = vmul.f32 %v2511_v26, %v15383_v17  ;;  %v1239_v17 = vrot.slane %v10256_v55, %v9756_v13 }
 0x223   :  { %v10200_v44 = vpop.permute.xlu1 %1137  ;;  %v1364_v41 = vadd.f32 %v1332_v30, %v1044_v1  ;;  %v311_v1 = vrot.slane %v10256_v55, %v9732_v31  ;;  %v1013_v54 = vmul.f32 %v915_v5, %v15391_v38  ;;  %v1875_v5 = vrot.slane %v9936_v59, %v9777_v47 }
 0x224   :  { %15370 = vst [vmem:[#allocation173_spill] sm:$0xff] %v10200_v44  ;;  %8757 = vset.pattern.permute.xlu1 %v15341_v18  ;;  %v1235_v44 = vrot.slane %v9936_v59, %v9756_v13 }
 0x225   :  { %841 = vperm.xlu1 %8757, %v10169_v4   ;;  %v1684_v56 = vadd.f32 %v1652_v49, %v1364_v41  ;;  %v919_v41 = vrot.slane %v10256_v55, %v9748_v24  ;;  %v307_v49 = vrot.slane %v9936_v59, %v9732_v31 }
 0x227   :  { %v2004_v30 = vadd.f32 %v1972_v6, %v1684_v56  ;;  %v406_v6 = vmul.f32 %v311_v1, %v15385_v33  ;;  %v15386_v56 = vld [vmem:[#allocation90_spill] sm:$0xff] }
 0x228   :  { %v10204_v7 = vpop.permute.xlu1 %1769  ;;  %v694_v26 = vmul.f32 %v599_v11, %v15386_v56  ;;  %v1559_v11 = vrot.slane %v10256_v55, %v9767_v51  ;;  %v15390_v33 = vld [vmem:[#allocation10_spill] sm:$0xff] }
 0x229   :  { %15371 = vst [vmem:[#allocation174_spill] sm:$0xff] %v10204_v7  ;;  %8758 = vset.pattern.permute.xlu1 %v15369_v39  ;;  %v2324_v57 = vadd.f32 %v2292_v45, %v2004_v30  ;;  %v15389_v30 = vld [vmem:[#allocation101_spill] sm:$0xff] }
 0x22a   :  { %1473 = vperm.xlu1 %8758, %v9981_v61   ;;  %v1014_v1 = vmul.f32 %v919_v41, %v15389_v30  ;;  %v1879_v30 = vrot.slane %v10256_v55, %v9777_v47 }
 0x22b   :  { %v2644_v45 = vadd.f32 %v2612_v40, %v2324_v57  ;;  %v726_v40 = vadd.f32 %v694_v26, %v406_v6  ;;  %v15392_v57 = vld [vmem:[#allocation110_spill] sm:$0xff]  ;;  %v2195_v6 = vrot.slane %v9936_v59, %v9884_v27  ;;  %v10321_v26 = vpop.permute.xlu0 %2069 }
 0x22c   :  { %v1334_v41 = vmul.f32 %v1239_v17, %v15392_v57  ;;  %v10313_v17 = vld [vmem:[%s14692_s1 + $0xc8] sm:$0xff]  ;;  %15397 = vst [vmem:[#allocation180_spill] sm:$0xff] %v10321_v26 }
 0x22d   :  { %v10219_v0 = vpop.permute.xlu1 %821  ;;  %v1046_v38 = vadd.f32 %v1014_v1, %v726_v40  ;;  %v15398_v1 = vld [vmem:[#allocation136_spill] sm:$0xff] }
 0x22e   :  { %15373 = vst [vmem:[#allocation147_spill] sm:$0xff] %v10219_v0  ;;  %2724 = vrot.lane.b32.xlu1 %v10215_v10, %s8853_s13  ;;  %v405_v0 = vmul.f32 %v307_v49, %v15390_v33  ;;  %v1333_v49 = vmul.f32 %v1235_v44, %v15393_v16  ;;  %v15394_v33 = vld [vmem:[#allocation122_spill] sm:$0xff]  ;;  %v15396_v44 = vld [vmem:[#allocation107_spill] sm:$0xff] }
 0x22f   :  { %8759 = vset.pattern.permute.xlu1 %v15156_v62  ;;  %v1654_v14 = vmul.f32 %v1559_v11, %v15394_v33  ;;  %v1974_v11 = vmul.f32 %v1879_v30, %v15398_v1  ;;  %v15399_v33 = vld [vmem:[#allocation118_spill] sm:$0xff]  ;;  %v2203_v1 = vrot.slane %v10149_v22, %v9884_v27 }
 0x230   :  { %v1973_v57 = vmul.f32 %v1875_v5, %v15399_v33 }
 0x232   :  { %525 = vperm.xlu1 %8759, %v10234_v48   ;;  %v10237_v23 = vpop.permute.xlu1 %1453 }
 0x233   :  { %15377 = vst [vmem:[#allocation175_spill] sm:$0xff] %v10237_v23 }
 0x236   :  { %8760 = vset.pattern.permute.xlu1 %v15162_v43 }
 0x237   :  { %1157 = vperm.xlu1 %8760, %v10124_v2   ;;  %v10250_v21 = vpop.permute.xlu1 %825 }
 0x238   :  { %15381 = vst [vmem:[#allocation176_spill] sm:$0xff] %v10250_v21  ;;  %v15387_v21 = vld [vmem:[#allocation68_spill] sm:$0xff] }
 0x23b   :  { %8761 = vset.pattern.permute.xlu1 %v15164_v58 }
 0x23c   :  { %2421 = vperm.xlu1 %8761, %v10141_v53   ;;  %v10269_v63 = vpop.permute.xlu1 %1457  ;;  %v10282_v53 = vld [vmem:[%s14693_s0 + $0x68] sm:$0xff] }
 0x23d   :  { %15384 = vst [vmem:[#allocation177_spill] sm:$0xff] %v10269_v63  ;;  %v693_v63 = vmul.f32 %v595_v29, %v15387_v21  ;;  %v1555_v29 = vrot.slane %v9936_v59, %v9767_v51 }
 0x23f   :  { %v725_v23 = vadd.f32 %v693_v63, %v405_v0  ;;  %v1653_v63 = vmul.f32 %v1555_v29, %v15396_v44 }
 0x240   :  { %2726 = vrot.lane.b32.xlu1 %v10282_v53, %s8853_s13  ;;  %v2717_v56 = vpop.permute.xlu1 %2716 }
 0x241   :  { %v2805_v21 = vsel %vm2796_vm0, %v2644_v45, %v2717_v56  ;;  %8762 = vset.pattern.permute.xlu1 %v15156_v62  ;;  %v2199_v56 = vrot.slane %v10256_v55, %v9884_v27  ;;  %v1045_v0 = vadd.f32 %v1013_v54, %v725_v23  ;;  %v1366_v45 = vadd.f32 %v1334_v41, %v1046_v38 }
 0x242   :  { %8456 = vmatprep.mubr.msk.f32.mxu0 %vm2829_vm1, %v2805_v21  ;;  %v2515_v54 = vrot.slane %v9936_v59, %v9809_v15  ;;  %v2293_v23 = vmul.f32 %v2195_v6, %v10287_v8  ;;  %v2519_v38 = vrot.slane %v10256_v55, %v9809_v15 }
 0x243   :  { %v1365_v40 = vadd.f32 %v1333_v49, %v1045_v0  ;;  %v1686_v16 = vadd.f32 %v1654_v14, %v1366_v45  ;;  %v2294_v60 = vmul.f32 %v2199_v56, %v10321_v26  ;;  %v15401_v49 = vld [vmem:[#allocation132_spill] sm:$0xff] }
 0x244   :  { %529 = vperm.xlu1 %8762, %v10313_v17   ;;  %v10316_v21 = vpop.permute.xlu1 %509  ;;  %v2613_v5 = vmul.f32 %v2515_v54, %v15401_v49  ;;  %v2614_v0 = vmul.f32 %v2519_v38, %v10063_v35  ;;  %v923_v38 = vrot.slane %v10149_v22, %v9748_v24  ;;  %v1883_v35 = vrot.slane %v10149_v22, %v9777_v47 }
 0x245   :  { %15395 = vst [vmem:[#allocation179_spill] sm:$0xff] %v10316_v21  ;;  %v1685_v21 = vadd.f32 %v1653_v63, %v1365_v40  ;;  %v2006_v30 = vadd.f32 %v1974_v11, %v1686_v16 }
 0x247   :  { %v2005_v41 = vadd.f32 %v1973_v57, %v1685_v21  ;;  %v2326_v14 = vadd.f32 %v2294_v60, %v2006_v30  ;;  %v15403_v60 = vld [vmem:[#allocation31_spill] sm:$0xff]  ;;  %v15410_v30 = vld [vmem:[#allocation70_spill] sm:$0xff] }
 0x248   :  { %8763 = vset.pattern.permute.xlu1 %v15162_v43 }
 0x249   :  { %1161 = vperm.xlu1 %8763, %v10169_v4   ;;  %v10331_v29 = vpop.permute.xlu1 %1141  ;;  %v2325_v56 = vadd.f32 %v2293_v23, %v2005_v41  ;;  %v2646_v63 = vadd.f32 %v2614_v0, %v2326_v14  ;;  %v315_v23 = vrot.slane %v10149_v22, %v9732_v31  ;;  %v15411_v14 = vld [vmem:[#allocation12_spill] sm:$0xff]  ;;  %v1243_v0 = vrot.slane %v10149_v22, %v9756_v13 }
 0x24a   :  { %15400 = vst [vmem:[#allocation181_spill] sm:$0xff] %v10331_v29 }
 0x24b   :  { %v2645_v6 = vadd.f32 %v2613_v5, %v2325_v56  ;;  %v2807_v55 = vsel %vm2796_vm0, %v2646_v63, %v15403_v60  ;;  %v407_v5 = vmul.f32 %v315_v23, %v15411_v14  ;;  %v10388_v56 = vld [vmem:[%s14693_s0 + $0x78] sm:$0xff]  ;;  %v1563_v60 = vrot.slane %v10149_v22, %v9767_v51 }
 0x24c   :  { %v15412_v63 = vld [vmem:[#allocation105_spill] sm:$0xff] }
 0x24d   :  { %8764 = vset.pattern.permute.xlu1 %v15164_v58 }
 0x24e   :  { %2425 = vperm.xlu1 %8764, %v10025_v42   ;;  %v10339_v59 = vpop.permute.xlu1 %2405 }
 0x24f   :  { %15402 = vst [vmem:[#allocation182_spill] sm:$0xff] %v10339_v59 }
 0x252   :  { %8765 = vset.pattern.permute.xlu1 %v15341_v18  ;;  %v2719_v45 = vpop.permute.xlu1 %2718 }
 0x253   :  { %v2806_v16 = vsel %vm2796_vm0, %v2645_v6, %v2719_v45  ;;  %845 = vperm.xlu1 %8765, %v10234_v48   ;;  %v1015_v6 = vmul.f32 %v923_v38, %v15412_v63  ;;  %v10406_v38 = vld [vmem:[%s14692_s1 + $0xd8] sm:$0xff]  ;;  %v10414_v63 = vpop.permute.xlu0 %2073 }
 0x254   :  { %8457 = vmatmul.mubr.msk.f32.gmra.mrb[8].mxu0 %vm2829_vm1, %v2806_v16  ;;  %15417 = vst [vmem:[#allocation190_spill] sm:$0xff] %v10414_v63 }
 0x255   :  { %8459 = vmatprep.mubr.msk.f32.mxu0 %vm2829_vm1, %v2807_v55  ;;  %v15414_v55 = vld [vmem:[#allocation99_spill] sm:$0xff] }
 0x256   :  { %v10348_v57 = vpop.permute.xlu1 %513 }
 0x257   :  { %15404 = vst [vmem:[#allocation31_spill] sm:$0xff] %v10348_v57  ;;  %8766 = vset.pattern.permute.xlu1 %v15346_v28 }
 0x258   :  { %2109 = vperm.xlu1 %8766, %v10086_v20   ;;  %v10366_v20 = vld [vmem:[%s14692_s1 + $0xd0] sm:$0xff] }
 0x25b   :  { %v10352_v42 = vpop.permute.xlu1 %1145 }
 0x25c   :  { %15405 = vst [vmem:[#allocation183_spill] sm:$0xff] %v10352_v42  ;;  %8767 = vset.pattern.permute.xlu1 %v15341_v18 }
 0x25d   :  { %849 = vperm.xlu1 %8767, %v10313_v17  }
 0x260   :  { %v10356_v21 = vpop.permute.xlu1 %2409 }
 0x261   :  { %15406 = vst [vmem:[#allocation184_spill] sm:$0xff] %v10356_v21  ;;  %8768 = vset.pattern.permute.xlu1 %v15346_v28 }
 0x262   :  { %2113 = vperm.xlu1 %8768, %v9981_v61   ;;  %v603_v61 = vrot.slane %v10149_v22, %v9735_v32 }
 0x264   :  { %v695_v41 = vmul.f32 %v603_v61, %v15410_v30  ;;  %v1335_v61 = vmul.f32 %v1243_v0, %v15414_v55  ;;  %v2295_v30 = vmul.f32 %v2203_v1, %v10414_v63  ;;  %v1247_v63 = vrot.slane %v10215_v10, %v9756_v13 }
 0x265   :  { %v10360_v11 = vpop.permute.xlu1 %829 }
 0x266   :  { %15407 = vst [vmem:[#allocation185_spill] sm:$0xff] %v10360_v11  ;;  %8769 = vset.pattern.permute.xlu1 %v15351_v19  ;;  %v727_v16 = vadd.f32 %v695_v41, %v407_v5  ;;  %v15416_v41 = vld [vmem:[#allocation127_spill] sm:$0xff] }
 0x267   :  { %240 = vperm.xlu1 %8769, %v10366_v20   ;;  %v1655_v5 = vmul.f32 %v1563_v60, %v15416_v41  ;;  %v2523_v60 = vrot.slane %v10149_v22, %v9809_v15  ;;  %v15435_v11 = vld [vmem:[#allocation131_spill] sm:$0xff] }
 0x268   :  { %v1047_v23 = vadd.f32 %v1015_v6, %v727_v16  ;;  %v15418_v6 = vld [vmem:[#allocation144_spill] sm:$0xff] }
 0x269   :  { %v1975_v16 = vmul.f32 %v1883_v35, %v15418_v6  ;;  %v2615_v35 = vmul.f32 %v2523_v60, %v10112_v37  ;;  %v15424_v60 = vld [vmem:[#allocation71_spill] sm:$0xff]  ;;  %v10459_v6 = vld [vmem:[%s14693_s0 + $0x80] sm:$0xff] }
 0x26a   :  { %v10369_v40 = vpop.permute.xlu1 %2093  ;;  %v1367_v0 = vadd.f32 %v1335_v61, %v1047_v23 }
 0x26b   :  { %15408 = vst [vmem:[#allocation186_spill] sm:$0xff] %v10369_v40  ;;  %8770 = vset.pattern.permute.xlu1 %v15162_v43 }
 0x26c   :  { %1165 = vperm.xlu1 %8770, %v10234_v48   ;;  %v1687_v55 = vadd.f32 %v1655_v5, %v1367_v0  ;;  %v15423_v0 = vld [vmem:[#allocation20_spill] sm:$0xff] }
 0x26e   :  { %v2007_v41 = vadd.f32 %v1975_v16, %v1687_v55 }
 0x26f   :  { %v10375_v54 = vpop.permute.xlu1 %833 }
 0x270   :  { %15409 = vst [vmem:[#allocation187_spill] sm:$0xff] %v10375_v54  ;;  %8771 = vset.pattern.permute.xlu1 %v15355_v52  ;;  %v2327_v49 = vadd.f32 %v2295_v30, %v2007_v41  ;;  %v319_v30 = vrot.slane %v10215_v10, %v9732_v31  ;;  %v927_v41 = vrot.slane %v10215_v10, %v9748_v24 }
 0x271   :  { %1797 = vperm.xlu1 %8771, %v10124_v2  }
 0x272   :  { %v2647_v23 = vadd.f32 %v2615_v35, %v2327_v49  ;;  %v607_v49 = vrot.slane %v10215_v10, %v9735_v32  ;;  %v408_v16 = vmul.f32 %v319_v30, %v15423_v0  ;;  %v1567_v30 = vrot.slane %v10215_v10, %v9767_v51  ;;  %v15428_v0 = vld [vmem:[#allocation134_spill] sm:$0xff] }
 0x274   :  { %v10393_v45 = vpop.permute.xlu1 %2097  ;;  %v696_v35 = vmul.f32 %v607_v49, %v15424_v60 }
 0x275   :  { %15413 = vst [vmem:[#allocation188_spill] sm:$0xff] %v10393_v45  ;;  %2730 = vrot.lane.b32.xlu1 %v10388_v56, %s8853_s13 }
 0x276   :  { %8772 = vset.pattern.permute.xlu1 %v15351_v19  ;;  %v728_v37 = vadd.f32 %v696_v35, %v408_v16  ;;  %v1887_v16 = vrot.slane %v10215_v10, %v9777_v47  ;;  %v1656_v35 = vmul.f32 %v1567_v30, %v9844_v3  ;;  %v611_v30 = vrot.slane %v10282_v53, %v9735_v32 }
 0x277   :  { %v2527_v3 = vrot.slane %v10215_v10, %v9809_v15 }
 0x279   :  { %245 = vperm.xlu1 %8772, %v10406_v38   ;;  %v10409_v26 = vpop.permute.xlu1 %220 }
 0x27a   :  { %15415 = vst [vmem:[#allocation189_spill] sm:$0xff] %v10409_v26  ;;  %v15437_v26 = vld [vmem:[#allocation14_spill] sm:$0xff] }
 0x27d   :  { %8773 = vset.pattern.permute.xlu1 %v15162_v43 }
 0x27e   :  { %1169 = vperm.xlu1 %8773, %v10313_v17   ;;  %v10420_v14 = vpop.permute.xlu1 %1149 }
 0x27f   :  { %15419 = vst [vmem:[#allocation191_spill] sm:$0xff] %v10420_v14 }
 0x282   :  { %8774 = vset.pattern.permute.xlu1 %v15355_v52 }
 0x283   :  { %1801 = vperm.xlu1 %8774, %v10169_v4   ;;  %v10426_v61 = vpop.permute.xlu1 %1781 }
 0x284   :  { %15420 = vst [vmem:[#allocation192_spill] sm:$0xff] %v10426_v61 }
 0x287   :  { %8775 = vset.pattern.permute.xlu1 %v15341_v18  ;;  %v2723_v1 = vpop.permute.xlu1 %2722 }
 0x288   :  { %v2808_v5 = vsel %vm2796_vm0, %v2647_v23, %v2723_v1  ;;  %853 = vperm.xlu1 %8775, %v10366_v20   ;;  %v15426_v1 = vld [vmem:[#allocation5_spill] sm:$0xff] }
 0x289   :  { %8460 = vmatmul.mubr.msk.f32.gmra.mrb[10].mxu0 %vm2829_vm1, %v2808_v5  ;;  %v1016_v5 = vmul.f32 %v927_v41, %v15426_v1  ;;  %v1336_v41 = vmul.f32 %v1247_v63, %v15428_v0  ;;  %v10475_v1 = vld [vmem:[%s14692_s1 + $0xe0] sm:$0xff]  ;;  %v15430_v63 = vld [vmem:[#allocation104_spill] sm:$0xff] }
 0x28b   :  { %v10433_v22 = vpop.permute.xlu1 %225  ;;  %v1048_v60 = vadd.f32 %v1016_v5, %v728_v37  ;;  %v2207_v37 = vrot.slane %v10215_v10, %v9884_v27  ;;  %v1976_v5 = vmul.f32 %v1887_v16, %v15430_v63  ;;  %v323_v10 = vrot.slane %v10282_v53, %v9732_v31 }
 0x28c   :  { %15421 = vst [vmem:[#allocation193_spill] sm:$0xff] %v10433_v22  ;;  %8776 = vset.pattern.permute.xlu1 %v15369_v39 }
 0x28d   :  { %1485 = vperm.xlu1 %8776, %v10234_v48   ;;  %v1368_v33 = vadd.f32 %v1336_v41, %v1048_v60  ;;  %v2296_v44 = vmul.f32 %v2207_v37, %v10127_v36  ;;  %v10495_v60 = vld [vmem:[%s14693_s0 + $0x70] sm:$0xff]  ;;  %v931_v37 = vrot.slane %v10282_v53, %v9748_v24  ;;  %v15432_v36 = vld [vmem:[#allocation115_spill] sm:$0xff]  ;;  %v409_v57 = vmul.f32 %v323_v10, %v15437_v26 }
 0x28e   :  { %v327_v41 = vrot.slane %v10495_v60, %v9732_v31  ;;  %v697_v63 = vmul.f32 %v611_v30, %v15432_v36  ;;  %v1251_v30 = vrot.slane %v10282_v53, %v9756_v13  ;;  %v1575_v10 = vrot.slane %v10495_v60, %v9767_v51 }
 0x28f   :  { %v1688_v0 = vadd.f32 %v1656_v35, %v1368_v33  ;;  %v615_v33 = vrot.slane %v10495_v60, %v9735_v32  ;;  %v935_v35 = vrot.slane %v10495_v60, %v9748_v24 }
 0x290   :  { %v10441_v55 = vpop.permute.xlu1 %1153  ;;  %v410_v54 = vmul.f32 %v327_v41, %v15435_v11  ;;  %v729_v41 = vadd.f32 %v697_v63, %v409_v57  ;;  %v1891_v57 = vrot.slane %v10282_v53, %v9777_v47 }
 0x291   :  { %15422 = vst [vmem:[#allocation194_spill] sm:$0xff] %v10441_v55  ;;  %8777 = vset.pattern.permute.xlu1 %v15341_v18  ;;  %v2008_v16 = vadd.f32 %v1976_v5, %v1688_v0  ;;  %v15434_v55 = vld [vmem:[#allocation73_spill] sm:$0xff]  ;;  %v1255_v0 = vrot.slane %v10495_v60, %v9756_v13 }
 0x292   :  { %857 = vperm.xlu1 %8777, %v10406_v38  }
 0x293   :  { %v2328_v14 = vadd.f32 %v2296_v44, %v2008_v16  ;;  %v15439_v16 = vld [vmem:[#allocation7_spill] sm:$0xff]  ;;  %v1338_v36 = vmul.f32 %v1255_v0, %v10028_v50  ;;  %v2215_v50 = vrot.slane %v10495_v60, %v9884_v27 }
 0x295   :  { %v10449_v23 = vpop.permute.xlu1 %1785 }
 0x296   :  { %15425 = vst [vmem:[#allocation195_spill] sm:$0xff] %v10449_v23  ;;  %8778 = vset.pattern.permute.xlu1 %v15369_v39 }
 0x297   :  { %1489 = vperm.xlu1 %8778, %v10313_v17  }
 0x29a   :  { %v10463_v49 = vpop.permute.xlu1 %837 }
 0x29b   :  { %15427 = vst [vmem:[#allocation196_spill] sm:$0xff] %v10463_v49  ;;  %2732 = vrot.lane.b32.xlu1 %v10459_v6, %s8853_s13  ;;  %v698_v49 = vmul.f32 %v615_v33, %v15434_v55  ;;  %v10525_v33 = vld [vmem:[%s14693_s0 + $0x88] sm:$0xff] }
 0x29c   :  { %8779 = vset.pattern.permute.xlu1 %v15156_v62 }
 0x29d   :  { %v730_v11 = vadd.f32 %v698_v49, %v410_v54 }
 0x29f   :  { %541 = vperm.xlu1 %8779, %v10475_v1   ;;  %v10478_v8 = vpop.permute.xlu1 %1469 }
 0x2a0   :  { %15429 = vst [vmem:[#allocation197_spill] sm:$0xff] %v10478_v8 }
 0x2a3   :  { %8780 = vset.pattern.permute.xlu1 %v15162_v43 }
 0x2a4   :  { %1173 = vperm.xlu1 %8780, %v10366_v20   ;;  %v10490_v22 = vpop.permute.xlu1 %841 }
 0x2a5   :  { %15431 = vst [vmem:[#allocation198_spill] sm:$0xff] %v10490_v22  ;;  %v15433_v22 = vld [vmem:[#allocation133_spill] sm:$0xff] }
 0x2a6   :  { %v2616_v8 = vmul.f32 %v2527_v3, %v15433_v22  ;;  %v15438_v3 = vld [vmem:[#allocation148_spill] sm:$0xff]  ;;  %v1017_v22 = vmul.f32 %v931_v37, %v15439_v16  ;;  %v15440_v37 = vld [vmem:[#allocation142_spill] sm:$0xff] }
 0x2a7   :  { %v1018_v44 = vmul.f32 %v935_v35, %v15438_v3  ;;  %v1337_v3 = vmul.f32 %v1251_v30, %v15440_v37  ;;  %v15443_v30 = vld [vmem:[#allocation44_spill] sm:$0xff]  ;;  %v15445_v37 = vld [vmem:[#allocation106_spill] sm:$0xff] }
 0x2a8   :  { %8781 = vset.pattern.permute.xlu1 %v15164_v58  ;;  %v2648_v55 = vadd.f32 %v2616_v8, %v2328_v14  ;;  %v1895_v14 = vrot.slane %v10495_v60, %v9777_v47  ;;  %v1049_v49 = vadd.f32 %v1017_v22, %v729_v41  ;;  %v10559_v22 = vld [vmem:[%s14692_s1 + $0xe8] sm:$0xff]  ;;  %v1977_v26 = vmul.f32 %v1891_v57, %v15445_v37 }
 0x2a9   :  { %2437 = vperm.xlu1 %8781, %v10124_v2   ;;  %v10515_v5 = vpop.permute.xlu1 %1473  ;;  %v1571_v2 = vrot.slane %v10282_v53, %v9767_v51  ;;  %v1050_v8 = vadd.f32 %v1018_v44, %v730_v11  ;;  %v1658_v11 = vmul.f32 %v1575_v10, %v15443_v30  ;;  %v2211_v10 = vrot.slane %v10282_v53, %v9884_v27 }
 0x2aa   :  { %15436 = vst [vmem:[#allocation199_spill] sm:$0xff] %v10515_v5  ;;  %v1978_v30 = vmul.f32 %v1895_v14, %v10189_v46  ;;  %v2531_v14 = vrot.slane %v10282_v53, %v9809_v15 }
 0x2ab   :  { %v1657_v63 = vmul.f32 %v1571_v2, %v9913_v34  ;;  %v1370_v44 = vadd.f32 %v1338_v36, %v1050_v8  ;;  %v1369_v2 = vadd.f32 %v1337_v3, %v1049_v49  ;;  %v2535_v49 = vrot.slane %v10495_v60, %v9809_v15 }
 0x2ad   :  { %2734 = vrot.lane.b32.xlu1 %v10525_v33, %s8853_s13  ;;  %v2725_v35 = vpop.permute.xlu1 %2724  ;;  %v1690_v3 = vadd.f32 %v1658_v11, %v1370_v44  ;;  %v2618_v60 = vmul.f32 %v2535_v49, %v10339_v59 }
 0x2ae   :  { %v2809_v16 = vsel %vm2796_vm0, %v2648_v55, %v2725_v35  ;;  %8783 = vset.pattern.permute.xlu1 %v15156_v62 }
 0x2af   :  { %v10541_v54 = vpop.f32.mrb[0].mxu0  ;;  %8462 = vmatprep.mubr.msk.f32.mxu0 %vm2829_vm1, %v2809_v16  ;;  %v2010_v57 = vadd.f32 %v1978_v30, %v1690_v3 }
 0x2b0   :  { %15441 = vst [vmem:[#allocation200_spill] sm:$0xff] %v10541_v54  ;;  %v3152_v0 = vsel %vm2796_vm0, %v10541_v54, 0.0  ;;  %v3223_v62 = vmul.f32 %v10541_v54, %v10541_v54  ;;  %v10549_v55 = vpop.f32.mrb[1].mxu0  ;;  %v1689_v54 = vadd.f32 %v1657_v63, %v1369_v2  ;;  %v15450_v2 = vld [vmem:[#allocation135_spill] sm:$0xff] }
 0x2b1   :  { %15442 = vst [vmem:[#allocation201_spill] sm:$0xff] %v10549_v55  ;;  %v3151_v35 = vsel %vm2796_vm0, %v10549_v55, 0.0  ;;  %v3222_v16 = vmul.f32 %v10549_v55, %v10549_v55  ;;  %545 = vperm.xlu1 %8783, %v10559_v22   ;;  %v10562_v41 = vpop.permute.xlu1 %525  ;;  %v10572_v55 = vpop.permute.xlu0 %2085  ;;  %v2617_v30 = vmul.f32 %v2531_v14, %v15450_v2 }
 0x2b2   :  { %15444 = vst [vmem:[#allocation202_spill] sm:$0xff] %v10562_v41  ;;  %v3255_v36 = vsel %vm2796_vm0, %v3223_v62, 0.0  ;;  %v3153_v8 = vadd.f32 %v3152_v0, %v3151_v35  ;;  %15446 = vst [vmem:[#allocation203_spill] sm:$0xff] %v10572_v55  ;;  %v2297_v0 = vmul.f32 %v2211_v10, %v10155_v25  ;;  %v2298_v63 = vmul.f32 %v2215_v50, %v10572_v55 }
 0x2b3   :  { %v3254_v34 = vsel %vm2796_vm0, %v3222_v16, 0.0 }
 0x2b4   :  { %v3256_v41 = vadd.f32 %v3255_v36, %v3254_v34  ;;  %v2009_v34 = vadd.f32 %v1977_v26, %v1689_v54  ;;  %v2330_v26 = vadd.f32 %v2298_v63, %v2010_v57 }
 0x2b5   :  { %8784 = vset.pattern.permute.xlu1 %v15162_v43 }
 0x2b6   :  { %1177 = vperm.xlu1 %8784, %v10406_v38   ;;  %v10581_v62 = vpop.permute.xlu1 %1157  ;;  %v2329_v10 = vadd.f32 %v2297_v0, %v2009_v34  ;;  %v2650_v55 = vadd.f32 %v2618_v60, %v2330_v26  ;;  %v15454_v60 = vld [vmem:[#allocation37_spill] sm:$0xff] }
 0x2b7   :  { %15447 = vst [vmem:[#allocation204_spill] sm:$0xff] %v10581_v62  ;;  %v10584_v35 = vpop.f32.mrb[2].mxu0 }
 0x2b8   :  { %15448 = vst [vmem:[#allocation205_spill] sm:$0xff] %v10584_v35  ;;  %v10586_v11 = vpop.f32.mrb[3].mxu0  ;;  %v3225_v44 = vmul.f32 %v10584_v35, %v10584_v35  ;;  %v3156_v54 = vsel %vm2796_vm0, %v10584_v35, 0.0  ;;  %v2649_v14 = vadd.f32 %v2617_v30, %v2329_v10  ;;  %v2223_v35 = vrot.slane %v10459_v6, %v9884_v27 }
 0x2b9   :  { %15449 = vst [vmem:[#allocation206_spill] sm:$0xff] %v10586_v11  ;;  %v3154_v53 = vsel %vm2796_vm0, %v10586_v11, 0.0  ;;  %v3224_v16 = vmul.f32 %v10586_v11, %v10586_v11  ;;  %v15481_v11 = vld [vmem:[#allocation108_spill] sm:$0xff] }
 0x2ba   :  { %v3155_v50 = vadd.f32 %v3154_v53, %v3153_v8  ;;  %8785 = vset.pattern.permute.xlu1 %v15164_v58  ;;  %v3259_v46 = vsel %vm2796_vm0, %v3225_v44, 0.0  ;;  %v2811_v44 = vsel %vm2796_vm0, %v2650_v55, %v15454_v60 }
 0x2bb   :  { %v3257_v36 = vsel %vm2796_vm0, %v3224_v16, 0.0  ;;  %2441 = vperm.xlu1 %8785, %v10169_v4   ;;  %v10601_v3 = vpop.permute.xlu1 %2421 }
 0x2bc   :  { %15451 = vst [vmem:[#allocation207_spill] sm:$0xff] %v10601_v3  ;;  %v3258_v49 = vadd.f32 %v3257_v36, %v3256_v41  ;;  %v3157_v59 = vadd.f32 %v3156_v54, %v3155_v50 }
 0x2be   :  { %v3260_v0 = vadd.f32 %v3259_v46, %v3258_v49 }
 0x2bf   :  { %8786 = vset.pattern.permute.xlu1 %v15341_v18  ;;  %v2727_v8 = vpop.permute.xlu1 %2726  ;;  %v10605_v57 = vpop.f32.mrb[4].mxu0 }
 0x2c0   :  { %15452 = vst [vmem:[#allocation208_spill] sm:$0xff] %v10605_v57  ;;  %v2810_v63 = vsel %vm2796_vm0, %v2649_v14, %v2727_v8  ;;  %861 = vperm.xlu1 %8786, %v10475_v1   ;;  %v10609_v34 = vpop.f32.mrb[5].mxu0  ;;  %v3227_v4 = vmul.f32 %v10605_v57, %v10605_v57  ;;  %v3160_v16 = vsel %vm2796_vm0, %v10605_v57, 0.0  ;;  %v15479_v57 = vld [vmem:[#allocation175_spill] sm:$0xff] }
 0x2c1   :  { %15453 = vst [vmem:[#allocation209_spill] sm:$0xff] %v10609_v34  ;;  %v3158_v41 = vsel %vm2796_vm0, %v10609_v34, 0.0  ;;  %v3226_v46 = vmul.f32 %v10609_v34, %v10609_v34  ;;  %8463 = vmatmul.mubr.msk.f32.gmra.mrb[12].mxu0 %vm2829_vm1, %v2810_v63  ;;  %v939_v63 = vrot.slane %v10388_v56, %v9748_v24 }
 0x2c2   :  { %v3159_v53 = vadd.f32 %v3158_v41, %v3157_v59  ;;  %8465 = vmatprep.mubr.msk.f32.mxu0 %vm2829_vm1, %v2811_v44  ;;  %v3263_v54 = vsel %vm2796_vm0, %v3227_v4, 0.0  ;;  %v15461_v4 = vld [vmem:[#allocation75_spill] sm:$0xff]  ;;  %v1259_v44 = vrot.slane %v10388_v56, %v9756_v13 }
 0x2c3   :  { %v3261_v30 = vsel %vm2796_vm0, %v3226_v46, 0.0  ;;  %v10624_v10 = vpop.permute.xlu1 %529  ;;  %v15462_v46 = vld [vmem:[#allocation140_spill] sm:$0xff] }
 0x2c4   :  { %15455 = vst [vmem:[#allocation37_spill] sm:$0xff] %v10624_v10  ;;  %v3262_v50 = vadd.f32 %v3261_v30, %v3260_v0  ;;  %8787 = vset.pattern.permute.xlu1 %v15346_v28  ;;  %v3161_v26 = vadd.f32 %v3160_v16, %v3159_v53  ;;  %v331_v0 = vrot.slane %v10388_v56, %v9732_v31  ;;  %v10667_v53 = vld [vmem:[%s14693_s0 + $0x98] sm:$0xff] }
 0x2c5   :  { %2125 = vperm.xlu1 %8787, %v10234_v48   ;;  %v10643_v48 = vld [vmem:[%s14692_s1 + $0xf0] sm:$0xff]  ;;  %v1019_v16 = vmul.f32 %v939_v63, %v9879_v12  ;;  %v10683_v63 = vld [vmem:[%s14692_s1 + $0xf8] sm:$0xff] }
 0x2c6   :  { %v3264_v36 = vadd.f32 %v3263_v54, %v3262_v50  ;;  %v411_v60 = vmul.f32 %v331_v0, %v15462_v46  ;;  %v1579_v50 = vrot.slane %v10388_v56, %v9767_v51  ;;  %v15465_v46 = vld [vmem:[#allocation46_spill] sm:$0xff] }
 0x2c8   :  { %v10629_v55 = vpop.permute.xlu1 %1161  ;;  %v1659_v2 = vmul.f32 %v1579_v50, %v15465_v46 }
 0x2c9   :  { %15456 = vst [vmem:[#allocation210_spill] sm:$0xff] %v10629_v55  ;;  %8788 = vset.pattern.permute.xlu1 %v15341_v18 }
 0x2ca   :  { %865 = vperm.xlu1 %8788, %v10559_v22  }
 0x2cd   :  { %v10633_v59 = vpop.permute.xlu1 %2425 }
 0x2ce   :  { %15457 = vst [vmem:[#allocation211_spill] sm:$0xff] %v10633_v59  ;;  %8790 = vset.pattern.permute.xlu1 %v15346_v28 }
 0x2cf   :  { %2129 = vperm.xlu1 %8790, %v10313_v17   ;;  %v619_v17 = vrot.slane %v10388_v56, %v9735_v32 }
 0x2d1   :  { %v699_v41 = vmul.f32 %v619_v17, %v15461_v4  ;;  %v1339_v17 = vmul.f32 %v1259_v44, %v10105_v9  ;;  %v1899_v4 = vrot.slane %v10388_v56, %v9777_v47  ;;  %v10692_v44 = vpop.permute.xlu0 %2089 }
 0x2d2   :  { %v10637_v49 = vpop.permute.xlu1 %845  ;;  %15466 = vst [vmem:[#allocation217_spill] sm:$0xff] %v10692_v44 }
 0x2d3   :  { %15458 = vst [vmem:[#allocation212_spill] sm:$0xff] %v10637_v49  ;;  %8791 = vset.pattern.permute.xlu1 %v15351_v19  ;;  %v731_v54 = vadd.f32 %v699_v41, %v411_v60  ;;  %v1979_v60 = vmul.f32 %v1899_v4, %v10204_v7 }
 0x2d4   :  { %260 = vperm.xlu1 %8791, %v10643_v48  }
 0x2d5   :  { %v1051_v0 = vadd.f32 %v1019_v16, %v731_v54  ;;  %v2539_v54 = vrot.slane %v10388_v56, %v9809_v15 }
 0x2d7   :  { %v10646_v14 = vpop.permute.xlu1 %2109  ;;  %v1371_v41 = vadd.f32 %v1339_v17, %v1051_v0  ;;  %v2619_v4 = vmul.f32 %v2539_v54, %v10356_v21 }
 0x2d8   :  { %15459 = vst [vmem:[#allocation213_spill] sm:$0xff] %v10646_v14  ;;  %8792 = vset.pattern.permute.xlu1 %v15162_v43 }
 0x2d9   :  { %1181 = vperm.xlu1 %8792, %v10475_v1   ;;  %v1691_v16 = vadd.f32 %v1659_v2, %v1371_v41 }
 0x2db   :  { %v2011_v25 = vadd.f32 %v1979_v60, %v1691_v16 }
 0x2dc   :  { %v10654_v8 = vpop.permute.xlu1 %849 }
 0x2dd   :  { %15460 = vst [vmem:[#allocation214_spill] sm:$0xff] %v10654_v8  ;;  %8793 = vset.pattern.permute.xlu1 %v15355_v52 }
 0x2de   :  { %1813 = vperm.xlu1 %8793, %v10366_v20  }
 0x2e1   :  { %v10670_v30 = vpop.permute.xlu1 %2113 }
 0x2e2   :  { %15463 = vst [vmem:[#allocation215_spill] sm:$0xff] %v10670_v30  ;;  %2738 = vrot.lane.b32.xlu1 %v10667_v53, %s8853_s13 }
 0x2e3   :  { %8794 = vset.pattern.permute.xlu1 %v15351_v19  ;;  %v2219_v19 = vrot.slane %v10388_v56, %v9884_v27 }
 0x2e5   :  { %v2299_v50 = vmul.f32 %v2219_v19, %v10692_v44 }
 0x2e6   :  { %265 = vperm.xlu1 %8794, %v10683_v63   ;;  %v10686_v12 = vpop.permute.xlu1 %240 }
 0x2e7   :  { %15464 = vst [vmem:[#allocation216_spill] sm:$0xff] %v10686_v12  ;;  %v2331_v56 = vadd.f32 %v2299_v50, %v2011_v25 }
 0x2e9   :  { %v2651_v44 = vadd.f32 %v2619_v4, %v2331_v56 }
 0x2ea   :  { %8796 = vset.pattern.permute.xlu1 %v15162_v43 }
 0x2eb   :  { %1185 = vperm.xlu1 %8796, %v10559_v22   ;;  %v10698_v9 = vpop.permute.xlu1 %1165 }
 0x2ec   :  { %15467 = vst [vmem:[#allocation218_spill] sm:$0xff] %v10698_v9  ;;  %v15489_v9 = vld [vmem:[#allocation147_spill] sm:$0xff] }
 0x2ef   :  { %8797 = vset.pattern.permute.xlu1 %v15355_v52  ;;  %v10703_v17 = vpop.f32.mrb[6].mxu0 }
 0x2f0   :  { %15468 = vst [vmem:[#allocation219_spill] sm:$0xff] %v10703_v17  ;;  %1817 = vperm.xlu1 %8797, %v10406_v38   ;;  %v10706_v0 = vpop.permute.xlu1 %1797  ;;  %v10708_v2 = vpop.f32.mrb[7].mxu0  ;;  %v3229_v41 = vmul.f32 %v10703_v17, %v10703_v17  ;;  %v3164_v54 = vsel %vm2796_vm0, %v10703_v17, 0.0 }
 0x2f1   :  { %15469 = vst [vmem:[#allocation220_spill] sm:$0xff] %v10706_v0  ;;  %15470 = vst [vmem:[#allocation221_spill] sm:$0xff] %v10708_v2  ;;  %v3162_v60 = vsel %vm2796_vm0, %v10708_v2, 0.0  ;;  %v3228_v19 = vmul.f32 %v10708_v2, %v10708_v2 }
 0x2f2   :  { %v3163_v16 = vadd.f32 %v3162_v60, %v3161_v26  ;;  %v3267_v46 = vsel %vm2796_vm0, %v3229_v41, 0.0  ;;  %v1263_v41 = vrot.slane %v10459_v6, %v9756_v13 }
 0x2f3   :  { %v3265_v21 = vsel %vm2796_vm0, %v3228_v19, 0.0  ;;  %v10753_v19 = vld [vmem:[%s14693_s0 + $0xa0] sm:$0xff] }
 0x2f4   :  { %v3266_v7 = vadd.f32 %v3265_v21, %v3264_v36  ;;  %8798 = vset.pattern.permute.xlu1 %v15341_v18  ;;  %v2731_v25 = vpop.permute.xlu1 %2730  ;;  %v10720_v50 = vadd.f32 %v3164_v54, %v3163_v16  ;;  %v335_v36 = vrot.slane %v10459_v6, %v9732_v31  ;;  %v15476_v16 = vld [vmem:[#allocation165_spill] sm:$0xff] }
 0x2f5   :  { %v2812_v37 = vsel %vm2796_vm0, %v2651_v44, %v2731_v25  ;;  %869 = vperm.xlu1 %8798, %v10643_v48   ;;  %v15474_v44 = vld [vmem:[#allocation22_spill] sm:$0xff]  ;;  %v1583_v25 = vrot.slane %v10459_v6, %v9767_v51 }
 0x2f6   :  { %8466 = vmatmul.mubr.msk.f32.gmra.mrb[14].mxu0 %vm2829_vm1, %v2812_v37  ;;  %v10726_v26 = vadd.f32 %v3267_v46, %v3266_v7  ;;  %v623_v37 = vrot.slane %v10459_v6, %v9735_v32  ;;  %v943_v46 = vrot.slane %v10459_v6, %v9748_v24  ;;  %v412_v4 = vmul.f32 %v335_v36, %v15474_v44 }
 0x2f7   :  { %v1903_v44 = vrot.slane %v10459_v6, %v9777_v47  ;;  %v1660_v34 = vmul.f32 %v1583_v25, %v15479_v57 }
 0x2f8   :  { %v10728_v60 = vpop.permute.xlu1 %245  ;;  %v1020_v54 = vmul.f32 %v943_v46, %v15476_v16 }
 0x2f9   :  { %15471 = vst [vmem:[#allocation222_spill] sm:$0xff] %v10728_v60  ;;  %8799 = vset.pattern.permute.xlu1 %v15369_v39 }
 0x2fa   :  { %1501 = vperm.xlu1 %8799, %v10475_v1  }
 0x2fd   :  { %v10732_v21 = vpop.permute.xlu1 %1169 }
 0x2fe   :  { %15472 = vst [vmem:[#allocation223_spill] sm:$0xff] %v10732_v21  ;;  %8800 = vset.pattern.permute.xlu1 %v15341_v18  ;;  %v15475_v18 = vld [vmem:[#allocation157_spill] sm:$0xff]  ;;  %v15488_v21 = vld [vmem:[#allocation163_spill] sm:$0xff] }
 0x2ff   :  { %873 = vperm.xlu1 %8800, %v10683_v63   ;;  %v700_v56 = vmul.f32 %v623_v37, %v15475_v18  ;;  %v15478_v37 = vld [vmem:[#allocation170_spill] sm:$0xff] }
 0x300   :  { %v1340_v18 = vmul.f32 %v1263_v41, %v15478_v37  ;;  %v2543_v41 = vrot.slane %v10459_v6, %v9809_v15  ;;  %v627_v6 = vrot.slane %v10525_v33, %v9735_v32  ;;  %v15485_v37 = vld [vmem:[#allocation168_spill] sm:$0xff] }
 0x301   :  { %v732_v36 = vadd.f32 %v700_v56, %v412_v4  ;;  %v1980_v4 = vmul.f32 %v1903_v44, %v15481_v11  ;;  %v15484_v11 = vld [vmem:[#allocation77_spill] sm:$0xff] }
 0x302   :  { %v10740_v7 = vpop.permute.xlu1 %1801 }
 0x303   :  { %15473 = vst [vmem:[#allocation224_spill] sm:$0xff] %v10740_v7  ;;  %8801 = vset.pattern.permute.xlu1 %v15369_v39  ;;  %v1052_v2 = vadd.f32 %v1020_v54, %v732_v36  ;;  %v2300_v54 = vmul.f32 %v2223_v35, %v10369_v40  ;;  %v947_v36 = vrot.slane %v10525_v33, %v9748_v24 }
 0x304   :  { %1505 = vperm.xlu1 %8801, %v10559_v22  }
 0x305   :  { %v1372_v16 = vadd.f32 %v1340_v18, %v1052_v2 }
 0x307   :  { %v10758_v17 = vpop.permute.xlu1 %853  ;;  %v1692_v56 = vadd.f32 %v1660_v34, %v1372_v16  ;;  %v339_v34 = vrot.slane %v10525_v33, %v9732_v31 }
 0x308   :  { %15477 = vst [vmem:[#allocation225_spill] sm:$0xff] %v10758_v17  ;;  %2740 = vrot.lane.b32.xlu1 %v10753_v19, %s8853_s13 }
 0x309   :  { %8803 = vset.pattern.permute.xlu1 %v15355_v52  ;;  %v2012_v18 = vadd.f32 %v1980_v4, %v1692_v56  ;;  %v15487_v4 = vld [vmem:[#allocation24_spill] sm:$0xff] }
 0x30a   :  { %v413_v56 = vmul.f32 %v339_v34, %v15487_v4 }
 0x30b   :  { %v2332_v40 = vadd.f32 %v2300_v54, %v2012_v18  ;;  %v15490_v54 = vld [vmem:[#allocation128_spill] sm:$0xff] }
 0x30c   :  { %1821 = vperm.xlu1 %8803, %v10475_v1   ;;  %v10768_v46 = vpop.permute.xlu1 %1485  ;;  %v8842_v1 = vld [vmem:[%s14693_s0 + $0x90] sm:$0xff]  ;;  %v1021_v18 = vmul.f32 %v947_v36, %v15490_v54 }
 0x30d   :  { %15480 = vst [vmem:[#allocation226_spill] sm:$0xff] %v10768_v46  ;;  %v631_v2 = vrot.slane %v8842_v1, %v9735_v32  ;;  %v343_v44 = vrot.slane %v8842_v1, %v9732_v31  ;;  %v951_v35 = vrot.slane %v8842_v1, %v9748_v24  ;;  %v1271_v60 = vrot.slane %v8842_v1, %v9756_v13 }
 0x30f   :  { %v702_v57 = vmul.f32 %v631_v2, %v15484_v11  ;;  %v1587_v2 = vrot.slane %v10525_v33, %v9767_v51  ;;  %v1591_v11 = vrot.slane %v8842_v1, %v9767_v51 }
 0x310   :  { %8804 = vset.pattern.permute.xlu1 %v15164_v58 }
 0x311   :  { %2453 = vperm.xlu1 %8804, %v10366_v20   ;;  %v10778_v25 = vpop.permute.xlu1 %857  ;;  %v15483_v20 = vld [vmem:[#allocation137_spill] sm:$0xff] }
 0x312   :  { %15482 = vst [vmem:[#allocation227_spill] sm:$0xff] %v10778_v25  ;;  %v2620_v16 = vmul.f32 %v2543_v41, %v15483_v20  ;;  %v414_v25 = vmul.f32 %v343_v44, %v15485_v37  ;;  %v701_v41 = vmul.f32 %v627_v6, %v15488_v21  ;;  %v1267_v20 = vrot.slane %v10525_v33, %v9756_v13  ;;  %v15491_v21 = vld [vmem:[#allocation173_spill] sm:$0xff] }
 0x314   :  { %v2652_v44 = vadd.f32 %v2620_v16, %v2332_v40  ;;  %v734_v37 = vadd.f32 %v702_v57, %v414_v25  ;;  %v733_v6 = vadd.f32 %v701_v41, %v413_v56  ;;  %v1341_v4 = vmul.f32 %v1267_v20, %v15491_v21  ;;  %v15493_v16 = vld [vmem:[#allocation48_spill] sm:$0xff] }
 0x315   :  { %8805 = vset.pattern.permute.xlu1 %v15162_v43  ;;  %v1022_v43 = vmul.f32 %v951_v35, %v15489_v9  ;;  %v1911_v9 = vrot.slane %v8842_v1, %v9777_v47  ;;  %v1907_v40 = vrot.slane %v10525_v33, %v9777_v47 }
 0x316   :  { %1193 = vperm.xlu1 %8805, %v10683_v63   ;;  %v10798_v46 = vpop.permute.xlu1 %1489  ;;  %v1053_v57 = vadd.f32 %v1021_v18, %v733_v6  ;;  %v15495_v18 = vld [vmem:[#allocation109_spill] sm:$0xff] }
 0x317   :  { %15486 = vst [vmem:[#allocation228_spill] sm:$0xff] %v10798_v46  ;;  %v1342_v46 = vmul.f32 %v1271_v60, %v10331_v29  ;;  %v1054_v36 = vadd.f32 %v1022_v43, %v734_v37  ;;  %v15492_v60 = vld [vmem:[#allocation177_spill] sm:$0xff]  ;;  %v1662_v29 = vmul.f32 %v1591_v11, %v15493_v16  ;;  %v1982_v37 = vmul.f32 %v1911_v9, %v10426_v61  ;;  %v15514_v16 = vld [vmem:[#allocation50_spill] sm:$0xff] }
 0x318   :  { %v1661_v25 = vmul.f32 %v1587_v2, %v15492_v60  ;;  %v1373_v20 = vadd.f32 %v1341_v4, %v1053_v57  ;;  %v2231_v43 = vrot.slane %v8842_v1, %v9884_v27  ;;  %v2547_v4 = vrot.slane %v10525_v33, %v9809_v15  ;;  %v15498_v57 = vld [vmem:[#allocation139_spill] sm:$0xff] }
 0x319   :  { %v1374_v56 = vadd.f32 %v1342_v46, %v1054_v36  ;;  %v2551_v46 = vrot.slane %v8842_v1, %v9809_v15  ;;  %v15524_v60 = vld [vmem:[#allocation31_spill] sm:$0xff] }
 0x31a   :  { %8807 = vset.pattern.permute.xlu1 %v15164_v58  ;;  %v2733_v34 = vpop.permute.xlu1 %2732  ;;  %v1693_v2 = vadd.f32 %v1661_v25, %v1373_v20  ;;  %v2621_v25 = vmul.f32 %v2547_v4, %v15498_v57 }
 0x31b   :  { %2457 = vperm.xlu1 %8807, %v10406_v38   ;;  %v2813_v35 = vsel %vm2796_vm0, %v2652_v44, %v2733_v34  ;;  %v2227_v38 = vrot.slane %v10525_v33, %v9884_v27  ;;  %v1981_v44 = vmul.f32 %v1907_v40, %v15495_v18  ;;  %v10829_v34 = vpop.permute.xlu0 %2101  ;;  %v1694_v11 = vadd.f32 %v1662_v29, %v1374_v56 }
 0x31c   :  { %8468 = vmatprep.mubr.msk.f32.mxu1 %vm2829_vm1, %v2813_v35  ;;  %15496 = vst [vmem:[#allocation230_spill] sm:$0xff] %v10829_v34  ;;  %v2302_v35 = vmul.f32 %v2231_v43, %v10829_v34  ;;  %v2622_v40 = vmul.f32 %v2551_v46, %v10601_v3 }
 0x31d   :  { %v2301_v6 = vmul.f32 %v2227_v38, %v10393_v45  ;;  %v2014_v9 = vadd.f32 %v1982_v37, %v1694_v11  ;;  %v2013_v36 = vadd.f32 %v1981_v44, %v1693_v2 }
 0x31e   :  { %v10820_v41 = vpop.permute.xlu1 %541 }
 0x31f   :  { %15494 = vst [vmem:[#allocation229_spill] sm:$0xff] %v10820_v41  ;;  %8808 = vset.pattern.permute.xlu1 %v15369_v39  ;;  %v2333_v29 = vadd.f32 %v2301_v6, %v2013_v36  ;;  %v2334_v1 = vadd.f32 %v2302_v35, %v2014_v9 }
 0x320   :  { %1509 = vperm.xlu1 %8808, %v10643_v48  }
 0x321   :  { %v2654_v44 = vadd.f32 %v2622_v40, %v2334_v1  ;;  %v2653_v4 = vadd.f32 %v2621_v25, %v2333_v29  ;;  %v10875_v25 = vld [vmem:[%s14693_s0 + $0xb8] sm:$0xff]  ;;  %v10889_v29 = vld [vmem:[%s14693_s0 + $0xc0] sm:$0xff] }
 0x323   :  { %v10835_v39 = vpop.permute.xlu1 %1173 }
 0x324   :  { %15497 = vst [vmem:[#allocation231_spill] sm:$0xff] %v10835_v39  ;;  %1513 = vperm.xlu1 %8808, %v10683_v63  }
 0x327   :  { %v10841_v56 = vpop.f32.mrb[8].mxu0 }
 0x328   :  { %15499 = vst [vmem:[#allocation232_spill] sm:$0xff] %v10841_v56  ;;  %8809 = vset.pattern.permute.xlu1 %v15346_v28  ;;  %v10844_v33 = vpop.permute.xlu1 %2437  ;;  %v10846_v20 = vpop.f32.mrb[9].mxu0  ;;  %v3231_v38 = vmul.f32 %v10841_v56, %v10841_v56  ;;  %v3168_v11 = vsel %vm2796_vm0, %v10841_v56, 0.0  ;;  %v15526_v56 = vld [vmem:[#allocation189_spill] sm:$0xff] }
 0x329   :  { %15500 = vst [vmem:[#allocation233_spill] sm:$0xff] %v10844_v33  ;;  %15501 = vst [vmem:[#allocation234_spill] sm:$0xff] %v10846_v20  ;;  %v3166_v37 = vsel %vm2796_vm0, %v10846_v20, 0.0  ;;  %v3230_v43 = vmul.f32 %v10846_v20, %v10846_v20  ;;  %2145 = vperm.xlu1 %8809, %v10559_v22   ;;  %v15502_v22 = vld [vmem:[#allocation88_spill] sm:$0xff] }
 0x32a   :  { %v3167_v2 = vadd.f32 %v3166_v37, %v10720_v50  ;;  %v3271_v36 = vsel %vm2796_vm0, %v3231_v38, 0.0  ;;  %v2815_v50 = vsel %vm2796_vm0, %v2654_v44, %v15502_v22  ;;  %v347_v37 = vrot.slane %v10667_v53, %v9732_v31  ;;  %v10909_v44 = vld [vmem:[%s14693_s0 + $0xd8] sm:$0xff] }
 0x32b   :  { %v3269_v46 = vsel %vm2796_vm0, %v3230_v43, 0.0  ;;  %v1595_v22 = vrot.slane %v10667_v53, %v9767_v51 }
 0x32c   :  { %v3270_v6 = vadd.f32 %v3269_v46, %v10726_v26  ;;  %v2735_v9 = vpop.permute.xlu1 %2734  ;;  %v10860_v35 = vadd.f32 %v3168_v11, %v3167_v2  ;;  %v15510_v2 = vld [vmem:[#allocation172_spill] sm:$0xff]  ;;  %v1275_v46 = vrot.slane %v10667_v53, %v9756_v13 }
 0x32d   :  { %v2814_v3 = vsel %vm2796_vm0, %v2653_v4, %v2735_v9  ;;  %8810 = vset.pattern.permute.xlu1 %v15355_v52  ;;  %v415_v11 = vmul.f32 %v347_v37, %v15510_v2  ;;  %v10922_v4 = vld [vmem:[%s14693_s0 + $0xe8] sm:$0xff]  ;;  %v10935_v37 = vld [vmem:[%s14693_s0 + $0xf8] sm:$0xff] }
 0x32e   :  { %1829 = vperm.xlu1 %8810, %v10643_v48   ;;  %8469 = vmatmul.mubr.msk.f32.vlgmr.msra.gmra.mrb[0].mxu1 %vm2829_vm1, %v2814_v3  ;;  %v3272_v40 = vadd.f32 %v3271_v36, %v3270_v6  ;;  %v15511_v6 = vld [vmem:[#allocation176_spill] sm:$0xff] }
 0x32f   :  { %8471 = vmatprep.mubr.msk.f32.mxu1 %vm2829_vm1, %v2815_v50 }
 0x330   :  { %v10870_v26 = vpop.permute.xlu1 %545 }
 0x331   :  { %15503 = vst [vmem:[#allocation88_spill] sm:$0xff] %v10870_v26 }
 0x332   :  { %2746 = vrot.lane.b32.xlu1 %v10875_v25, %s8853_s13 }
 0x335   :  { %v10879_v52 = vpop.permute.xlu1 %1177 }
 0x336   :  { %15504 = vst [vmem:[#allocation235_spill] sm:$0xff] %v10879_v52  ;;  %1833 = vperm.xlu1 %8810, %v10683_v63  }
 0x33a   :  { %8812 = vset.pattern.permute.xlu1 %v15346_v28  ;;  %v10883_v3 = vpop.permute.xlu1 %2441  ;;  %v635_v28 = vrot.slane %v10667_v53, %v9735_v32 }
 0x33b   :  { %15505 = vst [vmem:[#allocation236_spill] sm:$0xff] %v10883_v3  ;;  %2149 = vperm.xlu1 %8812, %v10643_v48  }
 0x33f   :  { %2748 = vrot.lane.b32.xlu1 %v10889_v29, %s8853_s13  ;;  %v10893_v1 = vpop.permute.xlu1 %861 }
 0x340   :  { %15506 = vst [vmem:[#allocation237_spill] sm:$0xff] %v10893_v1  ;;  %8813 = vset.pattern.permute.xlu1 %v15164_v58  ;;  %v955_v58 = vrot.slane %v10667_v53, %v9748_v24 }
 0x342   :  { %v1023_v9 = vmul.f32 %v955_v58, %v15511_v6  ;;  %v1915_v58 = vrot.slane %v10667_v53, %v9777_v47  ;;  %v1663_v6 = vmul.f32 %v1595_v22, %v15514_v16 }
 0x343   :  { %2469 = vperm.xlu1 %8813, %v10643_v48   ;;  %v15509_v48 = vld [vmem:[#allocation79_spill] sm:$0xff] }
 0x344   :  { %v10897_v38 = vpop.permute.xlu1 %2125 }
 0x345   :  { %15507 = vst [vmem:[#allocation238_spill] sm:$0xff] %v10897_v38  ;;  %v15534_v38 = vld [vmem:[#allocation191_spill] sm:$0xff] }
 0x347   :  { %2473 = vperm.xlu1 %8813, %v10683_v63   ;;  %v703_v63 = vmul.f32 %v635_v28, %v15509_v48  ;;  %v1343_v28 = vmul.f32 %v1275_v46, %v10352_v42  ;;  %v10947_v46 = vpop.permute.xlu0 %2105 }
 0x348   :  { %15515 = vst [vmem:[#allocation242_spill] sm:$0xff] %v10947_v46 }
 0x349   :  { %v10904_v43 = vpop.permute.xlu1 %865  ;;  %v735_v50 = vadd.f32 %v703_v63, %v415_v11  ;;  %v1983_v63 = vmul.f32 %v1915_v58, %v10449_v23  ;;  %v2235_v11 = vrot.slane %v10667_v53, %v9884_v27 }
 0x34a   :  { %15508 = vst [vmem:[#allocation239_spill] sm:$0xff] %v10904_v43 }
 0x34b   :  { %2754 = vrot.lane.b32.xlu1 %v10909_v44, %s8853_s13  ;;  %v1055_v34 = vadd.f32 %v1023_v9, %v735_v50  ;;  %v2555_v9 = vrot.slane %v10667_v53, %v9809_v15  ;;  %v2303_v57 = vmul.f32 %v2235_v11, %v10947_v46 }
 0x34d   :  { %v1375_v48 = vadd.f32 %v1343_v28, %v1055_v34  ;;  %v2623_v45 = vmul.f32 %v2555_v9, %v10633_v59 }
 0x34e   :  { %v10925_v36 = vpop.permute.xlu1 %2129 }
 0x34f   :  { %15512 = vst [vmem:[#allocation240_spill] sm:$0xff] %v10925_v36  ;;  %2758 = vrot.lane.b32.xlu1 %v10922_v4, %s8853_s13  ;;  %v1695_v42 = vadd.f32 %v1663_v6, %v1375_v48 }
 0x351   :  { %v2015_v2 = vadd.f32 %v1983_v63, %v1695_v42 }
 0x353   :  { %v10939_v61 = vpop.permute.xlu1 %260  ;;  %2762 = vrot.lane.b32.xlu1 %v10935_v37, %s8853_s13  ;;  %v2335_v58 = vadd.f32 %v2303_v57, %v2015_v2 }
 0x354   :  { %15513 = vst [vmem:[#allocation241_spill] sm:$0xff] %v10939_v61  ;;  %v15528_v61 = vld [vmem:[#allocation187_spill] sm:$0xff] }
 0x355   :  { %v2655_v9 = vadd.f32 %v2623_v45, %v2335_v58  ;;  %v10985_v45 = vld [vmem:[%s14693_s0 + $0xb0] sm:$0xff] }
 0x356   :  { %v359_v58 = vrot.slane %v10985_v45, %v9732_v31  ;;  %v1607_v26 = vrot.slane %v10985_v45, %v9767_v51 }
 0x358   :  { %v10951_v50 = vpop.permute.xlu1 %1181  ;;  %v418_v20 = vmul.f32 %v359_v58, %v15526_v56  ;;  %v1599_v58 = vrot.slane %v10753_v19, %v9767_v51 }
 0x359   :  { %15516 = vst [vmem:[#allocation243_spill] sm:$0xff] %v10951_v50 }
 0x35c   :  { %v10955_v22 = vpop.f32.mrb[10].mxu0 }
 0x35d   :  { %15517 = vst [vmem:[#allocation244_spill] sm:$0xff] %v10955_v22  ;;  %v10957_v34 = vpop.permute.xlu1 %1813  ;;  %v10959_v28 = vpop.f32.mrb[11].mxu0  ;;  %v3233_v48 = vmul.f32 %v10955_v22, %v10955_v22  ;;  %v3172_v63 = vsel %vm2796_vm0, %v10955_v22, 0.0  ;;  %v15525_v22 = vld [vmem:[#allocation179_spill] sm:$0xff] }
 0x35e   :  { %15518 = vst [vmem:[#allocation245_spill] sm:$0xff] %v10957_v34  ;;  %15519 = vst [vmem:[#allocation246_spill] sm:$0xff] %v10959_v28  ;;  %v3170_v53 = vsel %vm2796_vm0, %v10959_v28, 0.0  ;;  %v3232_v42 = vmul.f32 %v10959_v28, %v10959_v28 }
 0x35f   :  { %v3171_v6 = vadd.f32 %v3170_v53, %v10860_v35  ;;  %v3275_v2 = vsel %vm2796_vm0, %v3233_v48, 0.0 }
 0x360   :  { %v3273_v11 = vsel %vm2796_vm0, %v3232_v42, 0.0 }
 0x361   :  { %v3274_v59 = vadd.f32 %v3273_v11, %v3272_v40  ;;  %v2739_v46 = vpop.permute.xlu1 %2738  ;;  %v10971_v57 = vadd.f32 %v3172_v63, %v3171_v6  ;;  %v647_v40 = vrot.slane %v10985_v45, %v9735_v32  ;;  %v351_v6 = vrot.slane %v10753_v19, %v9732_v31 }
 0x362   :  { %v2816_v23 = vsel %vm2796_vm0, %v2655_v9, %v2739_v46  ;;  %v10992_v46 = vld [vmem:[%s14693_s0 + $0xa8] sm:$0xff]  ;;  %v959_v63 = vrot.slane %v10753_v19, %v9748_v24  ;;  %v967_v11 = vrot.slane %v10985_v45, %v9748_v24  ;;  %v15523_v9 = vld [vmem:[#allocation80_spill] sm:$0xff] }
 0x363   :  { %8472 = vmatmul.mubr.msk.f32.gmra.mrb[2].mxu1 %vm2829_vm1, %v2816_v23  ;;  %v10976_v16 = vadd.f32 %v3275_v2, %v3274_v59  ;;  %v643_v23 = vrot.slane %v10992_v46, %v9735_v32  ;;  %v639_v59 = vrot.slane %v10753_v19, %v9735_v32  ;;  %v355_v48 = vrot.slane %v10992_v46, %v9732_v31 }
 0x364   :  { %v963_v53 = vrot.slane %v10992_v46, %v9748_v24  ;;  %v706_v2 = vmul.f32 %v647_v40, %v15523_v9  ;;  %v1283_v54 = vrot.slane %v10992_v46, %v9756_v13  ;;  %v1603_v40 = vrot.slane %v10992_v46, %v9767_v51 }
 0x365   :  { %v10978_v18 = vpop.permute.xlu1 %265  ;;  %v705_v21 = vmul.f32 %v643_v23, %v15524_v60  ;;  %v704_v28 = vmul.f32 %v639_v59, %v15525_v22  ;;  %v15529_v23 = vld [vmem:[#allocation28_spill] sm:$0xff]  ;;  %v15530_v60 = vld [vmem:[#allocation185_spill] sm:$0xff] }
 0x366   :  { %15520 = vst [vmem:[#allocation247_spill] sm:$0xff] %v10978_v18  ;;  %v1287_v18 = vrot.slane %v10985_v45, %v9756_v13  ;;  %v1025_v50 = vmul.f32 %v963_v53, %v15528_v61  ;;  %v416_v9 = vmul.f32 %v351_v6, %v15529_v23  ;;  %v1024_v52 = vmul.f32 %v959_v63, %v15530_v60  ;;  %v15531_v59 = vld [vmem:[#allocation196_spill] sm:$0xff] }
 0x367   :  { %v1026_v22 = vmul.f32 %v967_v11, %v15531_v59  ;;  %v738_v1 = vadd.f32 %v706_v2, %v418_v20  ;;  %v1919_v63 = vrot.slane %v10753_v19, %v9777_v47  ;;  %v1923_v11 = vrot.slane %v10992_v46, %v9777_v47  ;;  %v15537_v2 = vld [vmem:[#allocation51_spill] sm:$0xff] }
 0x368   :  { %v736_v61 = vadd.f32 %v704_v28, %v416_v9  ;;  %v1346_v6 = vmul.f32 %v1287_v18, %v10581_v62  ;;  %v1665_v60 = vmul.f32 %v1603_v40, %v10515_v5  ;;  %v2243_v18 = vrot.slane %v10992_v46, %v9884_v27 }
 0x369   :  { %v1666_v40 = vmul.f32 %v1607_v26, %v15537_v2  ;;  %v2559_v26 = vrot.slane %v10753_v19, %v9809_v15  ;;  %v15543_v2 = vld [vmem:[#allocation141_spill] sm:$0xff] }
 0x36a   :  { %v10980_v35 = vpop.permute.xlu1 %1185  ;;  %v1056_v23 = vadd.f32 %v1024_v52, %v736_v61  ;;  %v15538_v61 = vld [vmem:[#allocation113_spill] sm:$0xff] }
 0x36b   :  { %15521 = vst [vmem:[#allocation248_spill] sm:$0xff] %v10980_v35  ;;  %v15527_v35 = vld [vmem:[#allocation30_spill] sm:$0xff]  ;;  %v1985_v52 = vmul.f32 %v1923_v11, %v15538_v61  ;;  %v2624_v62 = vmul.f32 %v2559_v26, %v15543_v2  ;;  %v387_v26 = vrot.slane %v10922_v4, %v9732_v31 }
 0x36c   :  { %v417_v43 = vmul.f32 %v355_v48, %v15527_v35  ;;  %v15533_v35 = vld [vmem:[#allocation194_spill] sm:$0xff] }
 0x36d   :  { %v1345_v53 = vmul.f32 %v1283_v54, %v15533_v35  ;;  %v1927_v54 = vrot.slane %v10985_v45, %v9777_v47  ;;  %v15557_v35 = vld [vmem:[#allocation40_spill] sm:$0xff] }
 0x36e   :  { %v737_v48 = vadd.f32 %v705_v21, %v417_v43  ;;  %v15535_v21 = vld [vmem:[#allocation197_spill] sm:$0xff] }
 0x36f   :  { %v11004_v42 = vpop.permute.xlu1 %1817  ;;  %v1664_v43 = vmul.f32 %v1599_v58, %v15535_v21 }
 0x370   :  { %15522 = vst [vmem:[#allocation249_spill] sm:$0xff] %v11004_v42  ;;  %v1279_v42 = vrot.slane %v10753_v19, %v9756_v13  ;;  %v1057_v59 = vadd.f32 %v1025_v50, %v737_v48  ;;  %v2239_v50 = vrot.slane %v10753_v19, %v9884_v27 }
 0x372   :  { %v1344_v36 = vmul.f32 %v1279_v42, %v15534_v38  ;;  %v1377_v20 = vadd.f32 %v1345_v53, %v1057_v59  ;;  %v1986_v59 = vmul.f32 %v1927_v54, %v10706_v0  ;;  %v2247_v53 = vrot.slane %v10985_v45, %v9884_v27 }
 0x374   :  { %v11031_v56 = vpop.permute.xlu1 %869  ;;  %v1376_v42 = vadd.f32 %v1344_v36, %v1056_v23  ;;  %v2563_v36 = vrot.slane %v10992_v46, %v9809_v15  ;;  %v11061_v23 = vpop.permute.xlu0 %2117 }
 0x375   :  { %15532 = vst [vmem:[#allocation250_spill] sm:$0xff] %v11031_v56  ;;  %v1058_v56 = vadd.f32 %v1026_v22, %v738_v1  ;;  %v1697_v1 = vadd.f32 %v1665_v60, %v1377_v20  ;;  %v15539_v22 = vld [vmem:[#allocation111_spill] sm:$0xff]  ;;  %15540 = vst [vmem:[#allocation252_spill] sm:$0xff] %v11061_v23  ;;  %v2304_v60 = vmul.f32 %v2239_v50, %v10646_v14 }
 0x376   :  { %v1984_v58 = vmul.f32 %v1919_v63, %v15539_v22  ;;  %v1696_v48 = vadd.f32 %v1664_v43, %v1376_v42  ;;  %v2567_v63 = vrot.slane %v10985_v45, %v9809_v15  ;;  %v2306_v46 = vmul.f32 %v2247_v53, %v11061_v23  ;;  %v15542_v42 = vld [vmem:[#allocation143_spill] sm:$0xff]  ;;  %v11147_v23 = vld [vmem:[%s14693_s0 + $0xf0] sm:$0xff] }
 0x377   :  { %v1378_v9 = vadd.f32 %v1346_v6, %v1058_v56  ;;  %v2305_v56 = vmul.f32 %v2243_v18, %v10670_v30  ;;  %v2017_v43 = vadd.f32 %v1985_v52, %v1697_v1  ;;  %v2625_v18 = vmul.f32 %v2563_v36, %v15542_v42  ;;  %v15545_v1 = vld [vmem:[#allocation117_spill] sm:$0xff]  ;;  %v11102_v36 = vld [vmem:[%s14693_s0 + $0xe0] sm:$0xff]  ;;  %v15555_v42 = vld [vmem:[#allocation39_spill] sm:$0xff] }
 0x378   :  { %v2016_v54 = vadd.f32 %v1984_v58, %v1696_v48  ;;  %v2626_v19 = vmul.f32 %v2567_v63, %v10844_v33  ;;  %v15546_v48 = vld [vmem:[#allocation149_spill] sm:$0xff]  ;;  %v679_v2 = vrot.slane %v11147_v23, %v9735_v32  ;;  %v971_v30 = vrot.slane %v10875_v25, %v9748_v24 }
 0x379   :  { %v11048_v28 = vpop.permute.xlu1 %1501  ;;  %v1698_v6 = vadd.f32 %v1666_v40, %v1378_v9  ;;  %v2337_v0 = vadd.f32 %v2305_v56, %v2017_v43  ;;  %v383_v56 = vrot.slane %v11102_v36, %v9732_v31 }
 0x37a   :  { %15536 = vst [vmem:[#allocation251_spill] sm:$0xff] %v11048_v28  ;;  %v2336_v22 = vadd.f32 %v2304_v60, %v2016_v54  ;;  %v1611_v60 = vrot.slane %v10875_v25, %v9767_v51  ;;  %v2255_v28 = vrot.slane %v10889_v29, %v9884_v27 }
 0x37b   :  { %v2018_v20 = vadd.f32 %v1986_v59, %v1698_v6  ;;  %v2657_v40 = vadd.f32 %v2625_v18, %v2337_v0  ;;  %v11113_v6 = vld [vmem:[%s14693_s0 + $0xd0] sm:$0xff] }
 0x37c   :  { %v2656_v14 = vadd.f32 %v2624_v62, %v2336_v22  ;;  %v367_v62 = vrot.slane %v10889_v29, %v9732_v31  ;;  %v1623_v63 = vrot.slane %v11113_v6, %v9767_v51 }
 0x37d   :  { %v2338_v9 = vadd.f32 %v2306_v46, %v2018_v20  ;;  %v2818_v58 = vsel %vm2796_vm0, %v2657_v40, %v15545_v1  ;;  %v1627_v20 = vrot.slane %v10909_v44, %v9767_v51  ;;  %v663_v40 = vrot.slane %v11113_v6, %v9735_v32  ;;  %v15552_v1 = vld [vmem:[#allocation33_spill] sm:$0xff] }
 0x37e   :  { %v11068_v11 = vpop.permute.xlu1 %873 }
 0x37f   :  { %15541 = vst [vmem:[#allocation253_spill] sm:$0xff] %v11068_v11  ;;  %v2658_v45 = vadd.f32 %v2626_v19, %v2338_v9  ;;  %v651_v9 = vrot.slane %v10875_v25, %v9735_v32 }
 0x381   :  { %v2819_v59 = vsel %vm2796_vm0, %v2658_v45, %v15546_v48  ;;  %v667_v45 = vrot.slane %v10909_v44, %v9735_v32  ;;  %v363_v48 = vrot.slane %v10875_v25, %v9732_v31 }
 0x383   :  { %v11074_v50 = vpop.permute.xlu1 %1505 }
 0x384   :  { %15544 = vst [vmem:[#allocation254_spill] sm:$0xff] %v11074_v50 }
 0x387   :  { %v2741_v21 = vpop.permute.xlu1 %2740 }
 0x388   :  { %v2817_v52 = vsel %vm2796_vm0, %v2656_v14, %v2741_v21  ;;  %v11093_v14 = vld [vmem:[%s14693_s0 + $0xc8] sm:$0xff] }
 0x389   :  { %8474 = vmatprep.mubr.msk.f32.mxu1 %vm2829_vm1, %v2817_v52  ;;  %v371_v21 = vrot.slane %v11093_v14, %v9732_v31  ;;  %v1619_v50 = vrot.slane %v11093_v14, %v9767_v51 }
 0x38a   :  { %8475 = vmatmul.mubr.msk.f32.gmra.mrb[4].mxu1 %vm2829_vm1, %v2818_v58  ;;  %v11137_v58 = vmul.f32 %v367_v62, %v15552_v1  ;;  %v15554_v1 = vld [vmem:[#allocation35_spill] sm:$0xff] }
 0x38b   :  { %8477 = vmatprep.mubr.msk.f32.mxu1 %vm2829_vm1, %v2819_v59  ;;  %v11084_v53 = vpop.permute.xlu1 %1821  ;;  %v11157_v38 = vmul.f32 %v371_v21, %v15554_v1  ;;  %v15563_v1 = vld [vmem:[#allocation193_spill] sm:$0xff] }
 0x38c   :  { %15547 = vst [vmem:[#allocation117_spill] sm:$0xff] %v11084_v53  ;;  %v2267_v53 = vrot.slane %v10909_v44, %v9884_v27 }
 0x390   :  { %v11086_v0 = vpop.permute.xlu1 %2453 }
 0x391   :  { %15548 = vst [vmem:[#allocation149_spill] sm:$0xff] %v11086_v0 }
 0x394   :  { %v11097_v22 = vpop.f32.mrb[12].mxu0 }
 0x395   :  { %15549 = vst [vmem:[#allocation255_spill] sm:$0xff] %v11097_v22  ;;  %v11117_v43 = vpop.permute.xlu1 %1193  ;;  %v11119_v54 = vpop.f32.mrb[13].mxu0  ;;  %v3235_v46 = vmul.f32 %v11097_v22, %v11097_v22  ;;  %v3176_v59 = vsel %vm2796_vm0, %v11097_v22, 0.0  ;;  %v11168_v22 = vmul.f32 %v387_v26, %v15557_v35 }
 0x396   :  { %15550 = vst [vmem:[#allocation256_spill] sm:$0xff] %v11117_v43  ;;  %15551 = vst [vmem:[#allocation257_spill] sm:$0xff] %v11119_v54  ;;  %v3174_v18 = vsel %vm2796_vm0, %v11119_v54, 0.0  ;;  %v3234_v19 = vmul.f32 %v11119_v54, %v11119_v54  ;;  %v15559_v54 = vld [vmem:[#allocation53_spill] sm:$0xff] }
 0x397   :  { %v3175_v52 = vadd.f32 %v3174_v18, %v10971_v57  ;;  %v683_v57 = vrot.slane %v10935_v37, %v9735_v32  ;;  %v3279_v61 = vsel %vm2796_vm0, %v3235_v46, 0.0  ;;  %15558 = vst [vmem:[#allocation260_spill] sm:$0xff] %v11168_v22  ;;  %v1291_v46 = vrot.slane %v10875_v25, %v9756_v13 }
 0x398   :  { %v3277_v33 = vsel %vm2796_vm0, %v3234_v19, 0.0  ;;  %v11160_v19 = vmul.f32 %v383_v56, %v15555_v42 }
 0x399   :  { %v3278_v62 = vadd.f32 %v3277_v33, %v10976_v16  ;;  %v11154_v18 = vadd.f32 %v3176_v59, %v3175_v52  ;;  %v1667_v16 = vmul.f32 %v1611_v60, %v15559_v54  ;;  %v1319_v33 = vrot.slane %v11147_v23, %v9756_v13  ;;  %v15561_v52 = vld [vmem:[#allocation55_spill] sm:$0xff]  ;;  %v15562_v59 = vld [vmem:[#allocation82_spill] sm:$0xff] }
 0x39a   :  { %v11165_v5 = vpop.permute.xlu1 %2457  ;;  %v11176_v56 = vmul.f32 %v1623_v63, %v15561_v52  ;;  %v707_v42 = vmul.f32 %v651_v9, %v15562_v59  ;;  %v1935_v60 = vrot.slane %v10889_v29, %v9777_v47  ;;  %v2575_v9 = vrot.slane %v10889_v29, %v9809_v15  ;;  %v15569_v54 = vld [vmem:[#allocation86_spill] sm:$0xff]  ;;  %v15572_v63 = vld [vmem:[#allocation91_spill] sm:$0xff] }
 0x39b   :  { %15553 = vst [vmem:[#allocation258_spill] sm:$0xff] %v11154_v18  ;;  %15556 = vst [vmem:[#allocation259_spill] sm:$0xff] %v11165_v5  ;;  %v11173_v21 = vadd.f32 %v3279_v61, %v3278_v62  ;;  %v419_v18 = vmul.f32 %v363_v48, %v15563_v1  ;;  %v15564_v5 = vld [vmem:[#allocation57_spill] sm:$0xff]  ;;  %v1939_v61 = vrot.slane %v11093_v14, %v9777_v47  ;;  %v15566_v62 = vld [vmem:[#allocation84_spill] sm:$0xff] }
 0x39c   :  { %v11183_v26 = vmul.f32 %v1627_v20, %v15564_v5  ;;  %v11192_v35 = vmul.f32 %v663_v40, %v15566_v62  ;;  %v2579_v48 = vrot.slane %v11093_v14, %v9809_v15  ;;  %v15567_v20 = vld [vmem:[#allocation198_spill] sm:$0xff]  ;;  %v11199_v5 = vpop.permute.xlu0 %2121  ;;  %v11202_v59 = vmul.f32 %v667_v45, %v15569_v54  ;;  %v15570_v1 = vld [vmem:[#allocation89_spill] sm:$0xff] }
 0x39d   :  { %15560 = vst [vmem:[#allocation261_spill] sm:$0xff] %v11173_v21  ;;  %v1027_v52 = vmul.f32 %v971_v30, %v15567_v20  ;;  %15568 = vst [vmem:[#allocation263_spill] sm:$0xff] %v11199_v5  ;;  %v11205_v21 = vmul.f32 %v679_v2, %v15570_v1  ;;  %v11208_v43 = vmul.f32 %v683_v57, %v15572_v63  ;;  %v15577_v54 = vld [vmem:[#allocation114_spill] sm:$0xff]  ;;  %v15578_v1 = vld [vmem:[#allocation116_spill] sm:$0xff] }
 0x39e   :  { %15565 = vst [vmem:[#allocation262_spill] sm:$0xff] %v11183_v26  ;;  %v15575_v26 = vld [vmem:[#allocation100_spill] sm:$0xff]  ;;  %v739_v20 = vadd.f32 %v707_v42, %v419_v18  ;;  %v1347_v45 = vmul.f32 %v1291_v46, %v10629_v55  ;;  %v11221_v2 = vmul.f32 %v1935_v60, %v15577_v54  ;;  %v11224_v57 = vmul.f32 %v1939_v61, %v15578_v1  ;;  %v15585_v1 = vld [vmem:[#allocation202_spill] sm:$0xff] }
 0x39f   :  { %15571 = vst [vmem:[#allocation264_spill] sm:$0xff] %v11205_v21  ;;  %15573 = vst [vmem:[#allocation265_spill] sm:$0xff] %v11208_v43  ;;  %v11212_v62 = vpop.permute.xlu1 %1509  ;;  %v11215_v11 = vmul.f32 %v1319_v33, %v15575_v26  ;;  %v655_v40 = vrot.slane %v10889_v29, %v9735_v32  ;;  %v2251_v63 = vrot.slane %v10875_v25, %v9884_v27  ;;  %v15579_v33 = vld [vmem:[#allocation145_spill] sm:$0xff] }
 0x3a0   :  { %15574 = vst [vmem:[#allocation266_spill] sm:$0xff] %v11212_v62  ;;  %v11231_v26 = vmul.f32 %v2575_v9, %v15579_v33  ;;  %v1059_v42 = vadd.f32 %v1027_v52, %v739_v20  ;;  %v1931_v18 = vrot.slane %v10875_v25, %v9777_v47  ;;  %v11238_v46 = vpop.permute.xlu0 %2133  ;;  %v659_v60 = vrot.slane %v11093_v14, %v9735_v32 }
 0x3a1   :  { %15576 = vst [vmem:[#allocation267_spill] sm:$0xff] %v11215_v11  ;;  %v15581_v11 = vld [vmem:[#allocation146_spill] sm:$0xff]  ;;  %15583 = vst [vmem:[#allocation270_spill] sm:$0xff] %v11238_v46  ;;  %v975_v61 = vrot.slane %v10889_v29, %v9748_v24  ;;  %v979_v54 = vrot.slane %v11093_v14, %v9748_v24  ;;  %v375_v9 = vrot.slane %v11113_v6, %v9732_v31 }
 0x3a2   :  { %15580 = vst [vmem:[#allocation268_spill] sm:$0xff] %v11231_v26  ;;  %v11234_v30 = vmul.f32 %v2579_v48, %v15581_v11  ;;  %v1379_v52 = vadd.f32 %v1347_v45, %v1059_v42  ;;  %v1295_v20 = vrot.slane %v10889_v29, %v9756_v13  ;;  %v379_v33 = vrot.slane %v10909_v44, %v9732_v31 }
 0x3a3   :  { %v11248_v48 = vpop.permute.xlu1 %1513  ;;  %v1299_v11 = vrot.slane %v11093_v14, %v9756_v13  ;;  %v708_v55 = vmul.f32 %v655_v40, %v15585_v1  ;;  %v2307_v62 = vmul.f32 %v2251_v63, %v11199_v5  ;;  %v983_v43 = vrot.slane %v11113_v6, %v9748_v24 }
 0x3a4   :  { %15582 = vst [vmem:[#allocation269_spill] sm:$0xff] %v11234_v30  ;;  %15584 = vst [vmem:[#allocation271_spill] sm:$0xff] %v11248_v48  ;;  %v1615_v48 = vrot.slane %v10889_v29, %v9767_v51  ;;  %v1987_v45 = vmul.f32 %v1931_v18, %v10740_v7  ;;  %v987_v42 = vrot.slane %v10909_v44, %v9748_v24 }
 0x3a5   :  { %v2263_v26 = vrot.slane %v11113_v6, %v9884_v27  ;;  %v709_v40 = vmul.f32 %v659_v60, %v10624_v10  ;;  %v671_v63 = vrot.slane %v11102_v36, %v9735_v32  ;;  %v1303_v1 = vrot.slane %v11113_v6, %v9756_v13  ;;  %v11282_v60 = vpop.permute.xlu0 %2137 }
 0x3a6   :  { %v1699_v5 = vadd.f32 %v1667_v16, %v1379_v52  ;;  %v2571_v21 = vrot.slane %v10875_v25, %v9809_v15  ;;  %15586 = vst [vmem:[#allocation272_spill] sm:$0xff] %v11282_v60  ;;  %v740_v30 = vadd.f32 %v708_v55, %v11137_v58  ;;  %v1028_v22 = vmul.f32 %v975_v61, %v10637_v49 }
 0x3a7   :  { %v422_v18 = vmul.f32 %v375_v9, %v10686_v12  ;;  %v991_v16 = vrot.slane %v11102_v36, %v9748_v24  ;;  %v1029_v52 = vmul.f32 %v979_v54, %v10654_v8  ;;  %v11293_v25 = vmul.f32 %v2263_v26, %v11238_v46  ;;  %v15588_v9 = vld [vmem:[#allocation218_spill] sm:$0xff]  ;;  %v15589_v54 = vld [vmem:[#allocation223_spill] sm:$0xff] }
 0x3a8   :  { %v11284_v10 = vpop.permute.xlu1 %2145  ;;  %v2019_v7 = vadd.f32 %v1987_v45, %v1699_v5  ;;  %v1030_v55 = vmul.f32 %v983_v43, %v10758_v17  ;;  %v2271_v61 = vrot.slane %v11102_v36, %v9884_v27  ;;  %v1348_v12 = vmul.f32 %v1295_v20, %v15588_v9  ;;  %v15591_v20 = vld [vmem:[#allocation226_spill] sm:$0xff] }
 0x3a9   :  { %15587 = vst [vmem:[#allocation273_spill] sm:$0xff] %v11284_v10  ;;  %v741_v10 = vadd.f32 %v709_v40, %v11157_v38  ;;  %v1349_v5 = vmul.f32 %v1299_v11, %v15589_v54  ;;  %v2627_v26 = vmul.f32 %v2571_v21, %v10883_v3  ;;  %v11307_v45 = vmul.f32 %v2267_v53, %v11282_v60  ;;  %v15592_v11 = vld [vmem:[#allocation228_spill] sm:$0xff]  ;;  %v11317_v21 = vpop.permute.xlu0 %2141  ;;  %v15674_v3 = vld [vmem:[#allocation155_spill] sm:$0xff] }
 0x3aa   :  { %v1060_v29 = vadd.f32 %v1028_v22, %v740_v30  ;;  %v742_v38 = vadd.f32 %v11192_v35, %v422_v18  ;;  %v1350_v43 = vmul.f32 %v1303_v1, %v10835_v39  ;;  %v2259_v40 = vrot.slane %v11093_v14, %v9884_v27  ;;  %15593 = vst [vmem:[#allocation275_spill] sm:$0xff] %v11317_v21  ;;  %v15594_v30 = vld [vmem:[#allocation222_spill] sm:$0xff] }
 0x3ab   :  { %v1061_v46 = vadd.f32 %v1029_v52, %v741_v10  ;;  %v2339_v17 = vadd.f32 %v2307_v62, %v2019_v7  ;;  %v1668_v9 = vmul.f32 %v1615_v48, %v15591_v20  ;;  %v1669_v49 = vmul.f32 %v1619_v50, %v15592_v11 }
 0x3ac   :  { %v1062_v53 = vadd.f32 %v1030_v55, %v742_v38  ;;  %v11320_v22 = vmul.f32 %v2271_v61, %v11317_v21  ;;  %v391_v35 = vrot.slane %v11147_v23, %v9732_v31  ;;  %v1943_v14 = vrot.slane %v11113_v6, %v9777_v47 }
 0x3ad   :  { %v11313_v58 = vpop.permute.xlu1 %1829  ;;  %v1380_v1 = vadd.f32 %v1348_v12, %v1060_v29  ;;  %v423_v10 = vmul.f32 %v379_v33, %v15594_v30  ;;  %v1381_v7 = vadd.f32 %v1349_v5, %v1061_v46  ;;  %v2659_v62 = vadd.f32 %v2627_v26, %v2339_v17  ;;  %v15595_v46 = vld [vmem:[#allocation227_spill] sm:$0xff]  ;;  %v11359_v21 = vpop.permute.xlu0 %2153 }
 0x3ae   :  { %15590 = vst [vmem:[#allocation274_spill] sm:$0xff] %v11313_v58  ;;  %v1382_v48 = vadd.f32 %v1350_v43, %v1062_v53  ;;  %v1311_v50 = vrot.slane %v11102_v36, %v9756_v13  ;;  %v395_v18 = vrot.slane %v10935_v37, %v9732_v31  ;;  %v1315_v52 = vrot.slane %v10922_v4, %v9756_v13  ;;  %v15596_v43 = vld [vmem:[#allocation240_spill] sm:$0xff] }
 0x3af   :  { %v1700_v61 = vadd.f32 %v1668_v9, %v1380_v1  ;;  %v1701_v38 = vadd.f32 %v1669_v49, %v1381_v7  ;;  %v1947_v12 = vrot.slane %v10909_v44, %v9777_v47  ;;  %v1031_v17 = vmul.f32 %v987_v42, %v15595_v46  ;;  %v15597_v42 = vld [vmem:[#allocation238_spill] sm:$0xff]  ;;  %15600 = vst [vmem:[#allocation277_spill] sm:$0xff] %v11359_v21 }
 0x3b0   :  { %v1990_v5 = vmul.f32 %v1943_v14, %v10957_v34  ;;  %v999_v26 = vrot.slane %v11147_v23, %v9748_v24  ;;  %v1631_v29 = vrot.slane %v11102_v36, %v9767_v51  ;;  %v743_v9 = vadd.f32 %v11202_v59, %v423_v10  ;;  %v15599_v59 = vld [vmem:[#allocation237_spill] sm:$0xff] }
 0x3b1   :  { %v2747_v55 = vpop.permute.xlu1 %2746  ;;  %v712_v49 = vmul.f32 %v671_v63, %v10820_v41  ;;  %v2309_v53 = vmul.f32 %v2259_v40, %v15596_v43  ;;  %v1003_v1 = vrot.slane %v10935_v37, %v9748_v24  ;;  %v2308_v7 = vmul.f32 %v2255_v28, %v15597_v42  ;;  %v15619_v43 = vld [vmem:[#allocation249_spill] sm:$0xff] }
 0x3b2   :  { %v2820_v33 = vsel %vm2796_vm0, %v2659_v62, %v2747_v55  ;;  %v1702_v14 = vadd.f32 %v11176_v56, %v1382_v48  ;;  %v1635_v62 = vrot.slane %v10922_v4, %v9767_v51  ;;  %v2583_v55 = vrot.slane %v11113_v6, %v9809_v15  ;;  %v15601_v48 = vld [vmem:[#allocation88_spill] sm:$0xff] }
 0x3b3   :  { %8478 = vmatmul.mubr.msk.f32.gmra.mrb[6].mxu1 %vm2829_vm1, %v2820_v33  ;;  %v1032_v10 = vmul.f32 %v991_v16, %v15599_v59  ;;  %v2020_v63 = vadd.f32 %v11221_v2, %v1700_v61  ;;  %v2021_v40 = vadd.f32 %v11224_v57, %v1701_v38  ;;  %v1951_v28 = vrot.slane %v11102_v36, %v9777_v47  ;;  %v15603_v2 = vld [vmem:[#allocation235_spill] sm:$0xff] }
 0x3b4   :  { %v1063_v56 = vadd.f32 %v1031_v17, %v743_v9  ;;  %v15602_v41 = vrot.slane %v10922_v4, %v9735_v32  ;;  %v2022_v6 = vadd.f32 %v1990_v5, %v1702_v14  ;;  %v1323_v39 = vrot.slane %v10935_v37, %v9756_v13  ;;  %v15605_v59 = vld [vmem:[#allocation243_spill] sm:$0xff]  ;;  %v15606_v9 = vld [vmem:[#allocation241_spill] sm:$0xff] }
 0x3b5   :  { %v11354_v33 = vpop.permute.xlu1 %1833  ;;  %v744_v16 = vadd.f32 %v712_v49, %v11160_v19  ;;  %v15604_v57 = vrot.slane %v10909_v44, %v9756_v13  ;;  %v2341_v38 = vadd.f32 %v2309_v53, %v2021_v40  ;;  %v1352_v60 = vmul.f32 %v1311_v50, %v15605_v59  ;;  %v15607_v14 = vld [vmem:[#allocation239_spill] sm:$0xff]  ;;  %v15615_v59 = vld [vmem:[#allocation264_spill] sm:$0xff] }
 0x3b6   :  { %15598 = vst [vmem:[#allocation276_spill] sm:$0xff] %v11354_v33  ;;  %v713_v34 = vmul.f32 %v15602_v41, %v15601_v48  ;;  %v2340_v17 = vadd.f32 %v2308_v7, %v2020_v63  ;;  %v426_v46 = vmul.f32 %v391_v35, %v15606_v9  ;;  %v2630_v42 = vmul.f32 %v2583_v55, %v11086_v0  ;;  %v15609_v48 = vld [vmem:[#allocation251_spill] sm:$0xff]  ;;  %v15611_v7 = vld [vmem:[#allocation260_spill] sm:$0xff]  ;;  %v15612_v63 = vld [vmem:[#allocation250_spill] sm:$0xff] }
 0x3b7   :  { %v1351_v61 = vmul.f32 %v15604_v57, %v15603_v2  ;;  %v2587_v41 = vrot.slane %v10909_v44, %v9809_v15  ;;  %v1064_v5 = vadd.f32 %v1032_v10, %v744_v16  ;;  %v15608_v19 = vrot.slane %v10922_v4, %v9748_v24  ;;  %v2751_v16 = vpop.permute.xlu0 %2750  ;;  %v15613_v57 = vld [vmem:[#allocation269_spill] sm:$0xff] }
 0x3b8   :  { %v1672_v30 = vmul.f32 %v1631_v29, %v15609_v48  ;;  %v1639_v53 = vrot.slane %v11147_v23, %v9767_v51  ;;  %v745_v35 = vadd.f32 %v713_v34, %v15611_v7  ;;  %v1034_v55 = vmul.f32 %v999_v26, %v15612_v63  ;;  %v15614_v29 = vld [vmem:[#allocation117_spill] sm:$0xff]  ;;  %v15617_v34 = vld [vmem:[#allocation268_spill] sm:$0xff]  ;;  %v15618_v63 = vld [vmem:[#allocation247_spill] sm:$0xff] }
 0x3b9   :  { %v1033_v49 = vmul.f32 %v15608_v19, %v15607_v14  ;;  %v2342_v40 = vadd.f32 %v11293_v25, %v2022_v6  ;;  %v1643_v44 = vrot.slane %v10935_v37, %v9767_v51  ;;  %v1383_v10 = vadd.f32 %v1351_v61, %v1063_v56  ;;  %v15616_v14 = vld [vmem:[#allocation248_spill] sm:$0xff] }
 0x3ba   :  { %v11386_v50 = vpop.permute.xlu1 %2149  ;;  %v2661_v19 = vadd.f32 %v15613_v57, %v2341_v38  ;;  %v1384_v9 = vadd.f32 %v1352_v60, %v1064_v5  ;;  %v1992_v48 = vmul.f32 %v1951_v28, %v15614_v29  ;;  %v746_v0 = vadd.f32 %v15615_v59, %v426_v46  ;;  %v15620_v5 = vld [vmem:[#allocation254_spill] sm:$0xff] }
 0x3bb   :  { %15610 = vst [vmem:[#allocation278_spill] sm:$0xff] %v11386_v50  ;;  %v1353_v2 = vmul.f32 %v1315_v52, %v15616_v14  ;;  %v2662_v20 = vadd.f32 %v2630_v42, %v2342_v40  ;;  %v2660_v7 = vadd.f32 %v15617_v34, %v2340_v17  ;;  %v1065_v26 = vadd.f32 %v1033_v49, %v745_v35  ;;  %v15621_v42 = vld [vmem:[#allocation253_spill] sm:$0xff]  ;;  %v2753_v49 = vpop.permute.xlu0 %2752  ;;  %v15625_v40 = vld [vmem:[#allocation266_spill] sm:$0xff]  ;;  %v15627_v34 = vld [vmem:[#allocation267_spill] sm:$0xff] }
 0x3bc   :  { %v427_v25 = vmul.f32 %v395_v18, %v15618_v63  ;;  %v1704_v6 = vadd.f32 %v1672_v30, %v1384_v9  ;;  %v2275_v56 = vrot.slane %v10922_v4, %v9884_v27  ;;  %v1991_v38 = vmul.f32 %v1947_v12, %v15619_v43  ;;  %v15622_v9 = vld [vmem:[#allocation262_spill] sm:$0xff] }
 0x3bd   :  { %v1066_v60 = vadd.f32 %v1034_v55, %v746_v0  ;;  %v1673_v28 = vmul.f32 %v1635_v62, %v15620_v5  ;;  %v2822_v52 = vsel %vm2796_vm0, %v2661_v19, %v2751_v16  ;;  %v1035_v59 = vmul.f32 %v1003_v1, %v15621_v42  ;;  %v15623_v62 = vld [vmem:[#allocation265_spill] sm:$0xff]  ;;  %v15624_v1 = vld [vmem:[#allocation256_spill] sm:$0xff] }
 0x3be   :  { %v2749_v61 = vpop.permute.xlu1 %2748  ;;  %v2024_v17 = vadd.f32 %v1992_v48, %v1704_v6  ;;  %v1959_v30 = vrot.slane %v11147_v23, %v9777_v47  ;;  %v1385_v18 = vadd.f32 %v1353_v2, %v1065_v26  ;;  %v1703_v35 = vadd.f32 %v15622_v9, %v1383_v10 }
 0x3bf   :  { %v2821_v46 = vsel %vm2796_vm0, %v2660_v7, %v2749_v61  ;;  %v1963_v0 = vrot.slane %v10935_v37, %v9777_v47  ;;  %v2823_v12 = vsel %vm2796_vm0, %v2662_v20, %v2753_v49  ;;  %v747_v55 = vadd.f32 %v15623_v62, %v427_v25  ;;  %v15629_v61 = vld [vmem:[#allocation119_spill] sm:$0xff] }
 0x3c0   :  { %8480 = vmatprep.mubr.msk.f32.mxu1 %vm2829_vm1, %v2821_v46  ;;  %v1355_v48 = vmul.f32 %v1323_v39, %v15624_v1  ;;  %v1674_v16 = vmul.f32 %v1639_v53, %v15625_v40  ;;  %v2279_v57 = vrot.slane %v11147_v23, %v9884_v27  ;;  %v2023_v10 = vadd.f32 %v1991_v38, %v1703_v35  ;;  %v15628_v39 = vld [vmem:[#allocation271_spill] sm:$0xff] }
 0x3c1   :  { %8481 = vmatmul.mubr.msk.f32.gmra.mrb[8].mxu1 %vm2829_vm1, %v2822_v52  ;;  %v1705_v19 = vadd.f32 %v1673_v28, %v1385_v18  ;;  %v1386_v7 = vadd.f32 %v15627_v34, %v1066_v60  ;;  %v2599_v20 = vrot.slane %v11147_v23, %v9809_v15  ;;  %v2344_v26 = vadd.f32 %v11320_v22, %v2024_v17  ;;  %v15631_v49 = vld [vmem:[#allocation151_spill] sm:$0xff]  ;;  %v15634_v23 = vld [vmem:[#allocation273_spill] sm:$0xff] }
 0x3c2   :  { %8483 = vmatprep.mubr.msk.f32.mxu1 %vm2829_vm1, %v2823_v12  ;;  %v11420_v2 = vpop.permute.xlu1 %2469  ;;  %v1067_v25 = vadd.f32 %v1035_v59, %v747_v55  ;;  %v1675_v6 = vmul.f32 %v1643_v44, %v15628_v39  ;;  %v1994_v53 = vmul.f32 %v1959_v30, %v11313_v58  ;;  %v15630_v46 = vrot.slane %v10922_v4, %v9777_v47  ;;  %v15633_v28 = vld [vmem:[#allocation259_spill] sm:$0xff] }
 0x3c3   :  { %15626 = vst [vmem:[#allocation260_spill] sm:$0xff] %v11420_v2  ;;  %v15632_v38 = vrot.slane %v11102_v36, %v9809_v15  ;;  %v2631_v18 = vmul.f32 %v2587_v41, %v15633_v28  ;;  %v2313_v9 = vmul.f32 %v2275_v56, %v15634_v23  ;;  %v1706_v59 = vadd.f32 %v1674_v16, %v1386_v7  ;;  %v2757_v56 = vpop.permute.xlu0 %2756  ;;  %v15636_v7 = vld [vmem:[#allocation153_spill] sm:$0xff] }
 0x3c4   :  { %v1993_v52 = vmul.f32 %v15630_v46, %v15629_v61  ;;  %v1387_v22 = vadd.f32 %v1355_v48, %v1067_v25  ;;  %v1995_v44 = vmul.f32 %v1963_v0, %v11354_v33  ;;  %v2314_v17 = vmul.f32 %v2279_v57, %v11386_v50 }
 0x3c5   :  { %v2632_v60 = vmul.f32 %v15632_v38, %v15631_v49  ;;  %v2283_v35 = vrot.slane %v10935_v37, %v9884_v27  ;;  %v2343_v12 = vadd.f32 %v11307_v45, %v2023_v10  ;;  %v2026_v34 = vadd.f32 %v1994_v53, %v1706_v59 }
 0x3c6   :  { %v11440_v30 = vpop.permute.xlu1 %2473  ;;  %v2025_v62 = vadd.f32 %v1993_v52, %v1705_v19  ;;  %v1707_v55 = vadd.f32 %v1675_v6, %v1387_v22  ;;  %v2634_v41 = vmul.f32 %v2599_v20, %v11420_v2  ;;  %v2603_v0 = vrot.slane %v10935_v37, %v9809_v15 }
 0x3c7   :  { %15635 = vst [vmem:[#allocation269_spill] sm:$0xff] %v11440_v30  ;;  %v2664_v36 = vadd.f32 %v2632_v60, %v2344_v26  ;;  %v2663_v48 = vadd.f32 %v2631_v18, %v2343_v12  ;;  %v15637_v25 = vrot.slane %v10922_v4, %v9809_v15  ;;  %v2346_v10 = vadd.f32 %v2314_v17, %v2026_v34  ;;  %v15638_v60 = vld [vmem:[#allocation258_spill] sm:$0xff]  ;;  %v15639_v12 = vld [vmem:[#allocation261_spill] sm:$0xff] }
 0x3c8   :  { %v2345_v16 = vadd.f32 %v2313_v9, %v2025_v62  ;;  %v2027_v45 = vadd.f32 %v1995_v44, %v1707_v55  ;;  %v2315_v52 = vmul.f32 %v2283_v35, %v11359_v21  ;;  %v2761_v9 = vpop.permute.xlu0 %2760  ;;  %v2635_v22 = vmul.f32 %v2603_v0, %v11440_v30 }
 0x3c9   :  { %v11448_v57 = vpop.f32.mrb[14].mxu0  ;;  %v2633_v46 = vmul.f32 %v15637_v25, %v15636_v7  ;;  %v2825_v4 = vsel %vm2796_vm0, %v2664_v36, %v2757_v56  ;;  %v2666_v38 = vadd.f32 %v2634_v41, %v2346_v10 }
 0x3ca   :  { %v2755_v19 = vpop.permute.xlu1 %2754  ;;  %v11454_v26 = vpop.f32.mrb[15].mxu0  ;;  %v3237_v20 = vmul.f32 %v11448_v57, %v11448_v57  ;;  %v3180_v59 = vsel %vm2796_vm0, %v11448_v57, 0.0  ;;  %v2347_v55 = vadd.f32 %v2315_v52, %v2027_v45 }
 0x3cb   :  { %v2824_v6 = vsel %vm2796_vm0, %v2663_v48, %v2755_v19  ;;  %v3178_v37 = vsel %vm2796_vm0, %v11454_v26, 0.0  ;;  %v3236_v53 = vmul.f32 %v11454_v26, %v11454_v26  ;;  %v2665_v17 = vadd.f32 %v2633_v46, %v2345_v16 }
 0x3cc   :  { %v3179_v18 = vadd.f32 %v3178_v37, %v15638_v60  ;;  %8484 = vmatmul.mubr.msk.f32.gmra.mrb[10].mxu1 %vm2829_vm1, %v2824_v6  ;;  %v3283_v34 = vsel %vm2796_vm0, %v3237_v20, 0.0  ;;  %v2827_v56 = vsel %vm2796_vm0, %v2666_v38, %v2761_v9  ;;  %v2667_v0 = vadd.f32 %v2635_v22, %v2347_v55 }
 0x3cd   :  { %v3281_v44 = vsel %vm2796_vm0, %v3236_v53, 0.0  ;;  %8486 = vmatprep.mubr.msk.f32.mxu1 %vm2829_vm1, %v2825_v4 }
 0x3ce   :  { %v3282_v35 = vadd.f32 %v3281_v44, %v15639_v12  ;;  %v2759_v62 = vpop.permute.xlu1 %2758  ;;  %v3181_v36 = vadd.f32 %v3180_v59, %v3179_v18 }
 0x3cf   :  { %v2826_v41 = vsel %vm2796_vm0, %v2665_v17, %v2759_v62 }
 0x3d0   :  { %8487 = vmatmul.mubr.msk.f32.gmra.mrb[12].mxu1 %vm2829_vm1, %v2826_v41  ;;  %v3284_v48 = vadd.f32 %v3283_v34, %v3282_v35 }
 0x3d1   :  { %8489 = vmatprep.mubr.msk.f32.mxu1 %vm2829_vm1, %v2827_v56 }
 0x3d2   :  { %v2763_v25 = vpop.permute.xlu1 %2762 }
 0x3d3   :  { %v2828_v16 = vsel %vm2796_vm0, %v2667_v0, %v2763_v25 }
 0x3d4   :  { %8490 = vmatmul.mubr.msk.f32.gmra.mrb[14].mxu1 %vm2829_vm1, %v2828_v16 }
 0x401   :  { %v11480_v46 = vpop.f32.mrb[0].mxu1 }
 0x402   :  { %v11482_v45 = vpop.f32.mrb[1].mxu1  ;;  %v3239_v10 = vmul.f32 %v11480_v46, %v11480_v46  ;;  %v3184_v37 = vsel %vm2796_vm0, %v11480_v46, 0.0 }
 0x403   :  { %v3182_v19 = vsel %vm2796_vm0, %v11482_v45, 0.0  ;;  %v3238_v20 = vmul.f32 %v11482_v45, %v11482_v45 }
 0x404   :  { %v3183_v6 = vadd.f32 %v3182_v19, %v3181_v36  ;;  %v3287_v38 = vsel %vm2796_vm0, %v3239_v10, 0.0 }
 0x405   :  { %v3285_v53 = vsel %vm2796_vm0, %v3238_v20, 0.0 }
 0x406   :  { %v3286_v52 = vadd.f32 %v3285_v53, %v3284_v48  ;;  %v3185_v4 = vadd.f32 %v3184_v37, %v3183_v6 }
 0x408   :  { %v3288_v60 = vadd.f32 %v3287_v38, %v3286_v52 }
 0x436   :  { %v11494_v18 = vpop.f32.mrb[2].mxu1 }
 0x437   :  { %v11496_v9 = vpop.f32.mrb[3].mxu1  ;;  %v3241_v22 = vmul.f32 %v11494_v18, %v11494_v18  ;;  %v3188_v12 = vsel %vm2796_vm0, %v11494_v18, 0.0 }
 0x438   :  { %v3186_v59 = vsel %vm2796_vm0, %v11496_v9, 0.0  ;;  %v3240_v44 = vmul.f32 %v11496_v9, %v11496_v9 }
 0x439   :  { %v3187_v17 = vadd.f32 %v3186_v59, %v3185_v4  ;;  %v3291_v55 = vsel %vm2796_vm0, %v3241_v22, 0.0 }
 0x43a   :  { %v3289_v35 = vsel %vm2796_vm0, %v3240_v44, 0.0 }
 0x43b   :  { %v3290_v62 = vadd.f32 %v3289_v35, %v3288_v60  ;;  %v3189_v36 = vadd.f32 %v3188_v12, %v3187_v17 }
 0x43d   :  { %v3292_v34 = vadd.f32 %v3291_v55, %v3290_v62 }
 0x45d   :  { %v11508_v41 = vpop.f32.mrb[4].mxu1 }
 0x45e   :  { %v11510_v56 = vpop.f32.mrb[5].mxu1  ;;  %v3243_v48 = vmul.f32 %v11508_v41, %v11508_v41  ;;  %v3192_v10 = vsel %vm2796_vm0, %v11508_v41, 0.0 }
 0x45f   :  { %v3190_v0 = vsel %vm2796_vm0, %v11510_v56, 0.0  ;;  %v3242_v25 = vmul.f32 %v11510_v56, %v11510_v56 }
 0x460   :  { %v3191_v16 = vadd.f32 %v3190_v0, %v3189_v36  ;;  %v3295_v37 = vsel %vm2796_vm0, %v3243_v48, 0.0 }
 0x461   :  { %v3293_v19 = vsel %vm2796_vm0, %v3242_v25, 0.0 }
 0x462   :  { %v3294_v20 = vadd.f32 %v3293_v19, %v3292_v34  ;;  %v3193_v6 = vadd.f32 %v3192_v10, %v3191_v16 }
 0x464   :  { %v3296_v53 = vadd.f32 %v3295_v37, %v3294_v20 }
 0x486   :  { %v11522_v52 = vpop.f32.mrb[6].mxu1 }
 0x487   :  { %v11524_v4 = vpop.f32.mrb[7].mxu1  ;;  %v3245_v38 = vmul.f32 %v11522_v52, %v11522_v52  ;;  %v3196_v44 = vsel %vm2796_vm0, %v11522_v52, 0.0 }
 0x488   :  { %v3194_v60 = vsel %vm2796_vm0, %v11524_v4, 0.0  ;;  %v3244_v22 = vmul.f32 %v11524_v4, %v11524_v4 }
 0x489   :  { %v3195_v59 = vadd.f32 %v3194_v60, %v3193_v6  ;;  %v3299_v62 = vsel %vm2796_vm0, %v3245_v38, 0.0 }
 0x48a   :  { %v3297_v17 = vsel %vm2796_vm0, %v3244_v22, 0.0 }
 0x48b   :  { %v3298_v12 = vadd.f32 %v3297_v17, %v3296_v53  ;;  %v3197_v35 = vadd.f32 %v3196_v44, %v3195_v59 }
 0x48d   :  { %v3300_v36 = vadd.f32 %v3299_v62, %v3298_v12 }
 0x494   :  { %v11536_v55 = vpop.f32.mrb[8].mxu1 }
 0x495   :  { %v11538_v34 = vpop.f32.mrb[9].mxu1  ;;  %v3247_v48 = vmul.f32 %v11536_v55, %v11536_v55  ;;  %v3200_v10 = vsel %vm2796_vm0, %v11536_v55, 0.0 }
 0x496   :  { %v3198_v0 = vsel %vm2796_vm0, %v11538_v34, 0.0  ;;  %v3246_v25 = vmul.f32 %v11538_v34, %v11538_v34 }
 0x497   :  { %v3199_v16 = vadd.f32 %v3198_v0, %v3197_v35  ;;  %v3303_v37 = vsel %vm2796_vm0, %v3247_v48, 0.0  ;;  %v3502_v48 = vld [vmem:[%s14695_s5 + $0x8] sm:$0xff]  ;;  %v3503_v0 = vld [vmem:[%s14695_s5 + $0x10] sm:$0xff] }
 0x498   :  { %v3301_v19 = vsel %vm2796_vm0, %v3246_v25, 0.0 }
 0x499   :  { %v3302_v20 = vadd.f32 %v3301_v19, %v3300_v36  ;;  %v3201_v6 = vadd.f32 %v3200_v10, %v3199_v16  ;;  %v3501_v36 = vld [vmem:[%s14695_s5] sm:$0xff] }
 0x49b   :  { %v3304_v53 = vadd.f32 %v3303_v37, %v3302_v20 }
 0x49f   :  { %v11550_v38 = vpop.f32.mrb[10].mxu1 }
 0x4a0   :  { %v3249_v60 = vmul.f32 %v11550_v38, %v11550_v38  ;;  %v11554_v22 = vpop.f32.mrb[11].mxu1  ;;  %v3204_v12 = vsel %vm2796_vm0, %v11550_v38, 0.0 }
 0x4a1   :  { %v3202_v59 = vsel %vm2796_vm0, %v11554_v22, 0.0  ;;  %v3248_v44 = vmul.f32 %v11554_v22, %v11554_v22 }
 0x4a2   :  { %v3203_v17 = vadd.f32 %v3202_v59, %v3201_v6  ;;  %v3307_v25 = vsel %vm2796_vm0, %v3249_v60, 0.0  ;;  %v3504_v6 = vld [vmem:[%s14695_s5 + $0x18] sm:$0xff] }
 0x4a3   :  { %v3305_v35 = vsel %vm2796_vm0, %v3248_v44, 0.0  ;;  %v11563_v62 = vpop.f32.mrb[12].mxu1  ;;  %v8620_v44 = vpack.c.bf16 %v3502_v48, %v3501_v36  ;;  %v8624_v2 = vpack.c.bf16 %v3504_v6, %v3503_v0 }
 0x4a4   :  { %v3306_v16 = vadd.f32 %v3305_v35, %v3304_v53  ;;  %v3251_v10 = vmul.f32 %v11563_v62, %v11563_v62  ;;  %v11577_v19 = vpop.f32.mrb[13].mxu1  ;;  %v3205_v20 = vadd.f32 %v3204_v12, %v3203_v17  ;;  %v3208_v35 = vsel %vm2796_vm0, %v11563_v62, 0.0 }
 0x4a5   :  { %v3206_v37 = vsel %vm2796_vm0, %v11577_v19, 0.0  ;;  %v3250_v59 = vmul.f32 %v11577_v19, %v11577_v19  ;;  %8621 = vmatprep.subr.bf16.mxu1 %v8620_v44 }
 0x4a6   :  { %v3207_v60 = vadd.f32 %v3206_v37, %v3205_v20  ;;  %v3308_v53 = vadd.f32 %v3307_v25, %v3306_v16  ;;  %8623 = vmatpush3.bf16.msra.mxu1 %v8620_v44  ;;  %v3311_v21 = vsel %vm2796_vm0, %v3251_v10, 0.0 }
 0x4a7   :  { %v3309_v30 = vsel %vm2796_vm0, %v3250_v59, 0.0  ;;  %v11589_v17 = vpop.f32.mrb[14].mxu1  ;;  %8625 = vmatprep.subr.bf16.mxu1 %v8624_v2 }
 0x4a8   :  { %v3310_v12 = vadd.f32 %v3309_v30, %v3308_v53  ;;  %v11591_v50 = vpop.f32.mrb[15].mxu1  ;;  %v3209_v58 = vadd.f32 %v3208_v35, %v3207_v60  ;;  %v3253_v36 = vmul.f32 %v11589_v17, %v11589_v17  ;;  %v3212_v30 = vsel %vm2796_vm0, %v11589_v17, 0.0 }
 0x4a9   :  { %v3210_v48 = vsel %vm2796_vm0, %v11591_v50, 0.0  ;;  %v3252_v0 = vmul.f32 %v11591_v50, %v11591_v50 }
 0x4aa   :  { %v3211_v25 = vadd.f32 %v3210_v48, %v3209_v58  ;;  %v3312_v16 = vadd.f32 %v3311_v21, %v3310_v12  ;;  %8627 = vmatpush3.bf16.msra.mxu1 %v8624_v2  ;;  %v3315_v10 = vsel %vm2796_vm0, %v3253_v36, 0.0 }
 0x4ab   :  { %v3313_v20 = vsel %vm2796_vm0, %v3252_v0, 0.0 }
 0x4ac   :  { %v3213_v6 = vadd.f32 %v3212_v30, %v3211_v25  ;;  %v3314_v37 = vadd.f32 %v3313_v20, %v3312_v16  ;;  %v15640_v16 = vld [vmem:[#allocation201_spill] sm:$0xff]  ;;  %v15641_v20 = vld [vmem:[#allocation200_spill] sm:$0xff] }
 0x4ae   :  { %v3214_v59 = vrot.slane %v3213_v6, 4  ;;  %v3316_v44 = vadd.f32 %v3315_v10, %v3314_v37  ;;  %v15644_v10 = vld [vmem:[#allocation209_spill] sm:$0xff] }
 0x4b0   :  { %v3215_v60 = vadd.f32 %v3214_v59, %v3213_v6  ;;  %v3317_v53 = vrot.slane %v3316_v44, 4 }
 0x4b2   :  { %v3216_v35 = vrot.slane %v3215_v60, 2  ;;  %v3318_v40 = vadd.f32 %v3317_v53, %v3316_v44 }
 0x4b4   :  { %v3217_v33 = vadd.f32 %v3216_v35, %v3215_v60  ;;  %v3319_v39 = vrot.slane %v3318_v40, 2  ;;  %v15645_v60 = vld [vmem:[#allocation208_spill] sm:$0xff] }
 0x4b6   :  { %v3218_v58 = vrot.slane %v3217_v33, 1  ;;  %v3320_v21 = vadd.f32 %v3319_v39, %v3318_v40  ;;  %v15642_v40 = vld [vmem:[#allocation206_spill] sm:$0xff]  ;;  %v15643_v39 = vld [vmem:[#allocation205_spill] sm:$0xff] }
 0x4b8   :  { %v3219_v12 = vadd.f32 %v3218_v58, %v3217_v33  ;;  %v3321_v48 = vrot.slane %v3320_v21, 1  ;;  %v15647_v58 = vld [vmem:[#allocation219_spill] sm:$0xff] }
 0x4ba   :  { %v11604_v49 = vmul.f32 0.00390625, %v3219_v12  ;;  %v3322_v0 = vadd.f32 %v3321_v48, %v3320_v21  ;;  %v15648_v12 = vld [vmem:[#allocation234_spill] sm:$0xff] }
 0x4bc   :  { %v3323_v25 = vmul.f32 0.00390625, %v3322_v0  ;;  %v3324_v2 = vmul.f32 %v11604_v49, %v11604_v49  ;;  %v3357_v36 = vsub.f32 %v11591_v50, %v11604_v49  ;;  %v3327_v30 = vsub.f32 %v15640_v16, %v11604_v49  ;;  %v15646_v50 = vld [vmem:[#allocation221_spill] sm:$0xff]  ;;  %v15649_v0 = vld [vmem:[#allocation232_spill] sm:$0xff] }
 0x4bd   :  { %v3328_v6 = vsub.f32 %v15641_v20, %v11604_v49  ;;  %v3329_v33 = vsub.f32 %v15642_v40, %v11604_v49  ;;  %v3330_v37 = vsub.f32 %v15643_v39, %v11604_v49  ;;  %v3331_v59 = vsub.f32 %v15644_v10, %v11604_v49  ;;  %v15650_v20 = vld [vmem:[#allocation246_spill] sm:$0xff]  ;;  %v15652_v10 = vld [vmem:[#allocation257_spill] sm:$0xff] }
 0x4be   :  { %v3325_v44 = vsub.f32 %v3323_v25, %v3324_v2  ;;  %v3332_v53 = vsub.f32 %v15645_v60, %v11604_v49  ;;  %v3333_v35 = vsub.f32 %v15646_v50, %v11604_v49  ;;  %v3334_v21 = vsub.f32 %v15647_v58, %v11604_v49  ;;  %v15651_v25 = vld [vmem:[#allocation244_spill] sm:$0xff]  ;;  %v15653_v50 = vld [vmem:[#allocation255_spill] sm:$0xff] }
 0x4bf   :  { %v3335_v48 = vsub.f32 %v15648_v12, %v11604_v49  ;;  %v3336_v16 = vsub.f32 %v15649_v0, %v11604_v49  ;;  %v3337_v40 = vsub.f32 %v15650_v20, %v11604_v49  ;;  %v3338_v2 = vsub.f32 %v15651_v25, %v11604_v49 }
 0x4c0   :  { %v3326_v39 = vmax.f32 %v3325_v44, 0.0  ;;  %v3339_v60 = vsub.f32 %v15652_v10, %v11604_v49  ;;  %v3340_v1 = vsub.f32 %v15653_v50, %v11604_v49  ;;  %v3341_v58 = vsub.f32 %v11454_v26, %v11604_v49 }
 0x4c1   :  { %v3342_v12 = vsub.f32 %v11448_v57, %v11604_v49  ;;  %v3343_v0 = vsub.f32 %v11482_v45, %v11604_v49  ;;  %v3344_v20 = vsub.f32 %v11480_v46, %v11604_v49  ;;  %v3345_v44 = vsub.f32 %v11496_v9, %v11604_v49 }
 0x4c2   :  { %v3359_v25 = vadd.f32 1e-05, %v3326_v39  ;;  %v3346_v10 = vsub.f32 %v11494_v18, %v11604_v49  ;;  %v3347_v50 = vsub.f32 %v11510_v56, %v11604_v49  ;;  %v3348_v26 = vsub.f32 %v11508_v41, %v11604_v49 }
 0x4c3   :  { %v3349_v57 = vsub.f32 %v11524_v4, %v11604_v49  ;;  %v3350_v45 = vsub.f32 %v11522_v52, %v11604_v49  ;;  %v3351_v46 = vsub.f32 %v11538_v34, %v11604_v49  ;;  %v3352_v9 = vsub.f32 %v11536_v55, %v11604_v49  ;;  %v11675_v55 = vld [vmem:[%s14696_s3] ss:$0 sm:$0xff] }
 0x4c4   :  { %8815 = vrsqrt.f32 %v3359_v25  ;;  %v3353_v18 = vsub.f32 %v11554_v22, %v11604_v49  ;;  %v3354_v56 = vsub.f32 %v11550_v38, %v11604_v49  ;;  %v3355_v41 = vsub.f32 %v11577_v19, %v11604_v49  ;;  %v11680_v38 = vld [vmem:[%s14697_s4] ss:$0 sm:$0xff] }
 0x4c5   :  { %v3356_v4 = vsub.f32 %v11563_v62, %v11604_v49  ;;  %v3358_v52 = vsub.f32 %v11589_v17, %v11604_v49 }
 0x4ce   :  { %v8816_v34 = vpop.eup %8815 }
 0x4cf   :  { %v3391_v39 = vmul.f32 %v8816_v34, %v3357_v36  ;;  %v3362_v22 = vmul.f32 %v8816_v34, %v3328_v6  ;;  %v3361_v25 = vmul.f32 %v8816_v34, %v3327_v30  ;;  %v3363_v42 = vmul.f32 %v8816_v34, %v3329_v33 }
 0x4d0   :  { %v3364_v19 = vmul.f32 %v8816_v34, %v3330_v37  ;;  %v3365_v62 = vmul.f32 %v8816_v34, %v3331_v59  ;;  %v3366_v29 = vmul.f32 %v8816_v34, %v3332_v53  ;;  %v3367_v7 = vmul.f32 %v8816_v34, %v3333_v35 }
 0x4d1   :  { %v3429_v49 = vmul.f32 %v11675_v55, %v3391_v39  ;;  %v3400_v17 = vmul.f32 %v11675_v55, %v3362_v22  ;;  %v3368_v23 = vmul.f32 %v8816_v34, %v3334_v21  ;;  %v3369_v63 = vmul.f32 %v8816_v34, %v3335_v48 }
 0x4d2   :  { %v3370_v61 = vmul.f32 %v8816_v34, %v3336_v16  ;;  %v3371_v36 = vmul.f32 %v8816_v34, %v3337_v40  ;;  %v3372_v6 = vmul.f32 %v8816_v34, %v3338_v2  ;;  %v3373_v30 = vmul.f32 %v8816_v34, %v3339_v60 }
 0x4d3   :  { %v11685_v33 = vadd.f32 %v11680_v38, %v3429_v49  ;;  %v3438_v5 = vadd.f32 %v11680_v38, %v3400_v17  ;;  %v3374_v14 = vmul.f32 %v8816_v34, %v3340_v1  ;;  %v3375_v37 = vmul.f32 %v8816_v34, %v3341_v58 }
 0x4d4   :  { %v3376_v59 = vmul.f32 %v8816_v34, %v3342_v12  ;;  %v3377_v53 = vmul.f32 %v8816_v34, %v3343_v0  ;;  %v3378_v35 = vmul.f32 %v8816_v34, %v3344_v20  ;;  %v3379_v28 = vmul.f32 %v8816_v34, %v3345_v44 }
 0x4d5   :  { %v11688_v39 = vmax.f32 %v3438_v5, 0.0  ;;  %v3380_v22 = vmul.f32 %v8816_v34, %v3346_v10  ;;  %v3381_v21 = vmul.f32 %v8816_v34, %v3347_v50  ;;  %v3382_v48 = vmul.f32 %v8816_v34, %v3348_v26 }
 0x4d6   :  { %v3383_v16 = vmul.f32 %v8816_v34, %v3349_v57  ;;  %v3384_v40 = vmul.f32 %v8816_v34, %v3350_v45  ;;  %v3385_v2 = vmul.f32 %v8816_v34, %v3351_v46  ;;  %v3386_v60 = vmul.f32 %v8816_v34, %v3352_v9 }
 0x4d7   :  { %5045 = vrot.lane.b32.xlu1 %v11688_v39, %s8853_s13  ;;  %v3387_v49 = vmul.f32 %v8816_v34, %v3353_v18  ;;  %v3388_v17 = vmul.f32 %v8816_v34, %v3354_v56  ;;  %v3389_v1 = vmul.f32 %v8816_v34, %v3355_v41  ;;  %v3390_v58 = vmul.f32 %v8816_v34, %v3356_v4 }
 0x4d8   :  { %v3392_v12 = vmul.f32 %v8816_v34, %v3358_v52  ;;  %v3399_v0 = vmul.f32 %v11675_v55, %v3361_v25  ;;  %v3402_v44 = vmul.f32 %v11675_v55, %v3364_v19  ;;  %v3401_v10 = vmul.f32 %v11675_v55, %v3363_v42 }
 0x4d9   :  { %v3403_v50 = vmul.f32 %v11675_v55, %v3365_v62  ;;  %v3404_v26 = vmul.f32 %v11675_v55, %v3366_v29  ;;  %v3405_v57 = vmul.f32 %v11675_v55, %v3367_v7  ;;  %v3406_v45 = vmul.f32 %v11675_v55, %v3368_v23 }
 0x4da   :  { %v3437_v5 = vadd.f32 %v11680_v38, %v3399_v0  ;;  %v3407_v46 = vmul.f32 %v11675_v55, %v3369_v63  ;;  %v3408_v9 = vmul.f32 %v11675_v55, %v3370_v61  ;;  %v3409_v18 = vmul.f32 %v11675_v55, %v3371_v36 }
 0x4db   :  { %v3410_v56 = vmul.f32 %v11675_v55, %v3372_v6  ;;  %v3425_v42 = vmul.f32 %v11675_v55, %v3387_v49  ;;  %v3427_v41 = vmul.f32 %v11675_v55, %v3389_v1  ;;  %v3411_v29 = vmul.f32 %v11675_v55, %v3373_v30 }
 0x4dc   :  { %v11694_v20 = vmax.f32 %v3437_v5, 0.0  ;;  %v3428_v4 = vmul.f32 %v11675_v55, %v3390_v58  ;;  %v3430_v7 = vmul.f32 %v11675_v55, %v3392_v12  ;;  %v3440_v23 = vadd.f32 %v11680_v38, %v3402_v44 }
 0x4dd   :  { %v3412_v63 = vmul.f32 %v11675_v55, %v3374_v14  ;;  %v3413_v61 = vmul.f32 %v11675_v55, %v3375_v37  ;;  %v3414_v52 = vmul.f32 %v11675_v55, %v3376_v59  ;;  %v3415_v34 = vmul.f32 %v11675_v55, %v3377_v53 }
 0x4de   :  { %5043 = vrot.lane.b32.xlu0 %v11694_v20, %s8853_s13  ;;  %v3416_v25 = vmul.f32 %v11675_v55, %v3378_v35  ;;  %v3417_v19 = vmul.f32 %v11675_v55, %v3379_v28  ;;  %v3418_v62 = vmul.f32 %v11675_v55, %v3380_v22  ;;  %v11721_v36 = vmax.f32 %v3440_v23, 0.0 }
 0x4df   :  { %v3419_v6 = vmul.f32 %v11675_v55, %v3381_v21  ;;  %v3420_v30 = vmul.f32 %v11675_v55, %v3382_v48  ;;  %v3421_v14 = vmul.f32 %v11675_v55, %v3383_v16  ;;  %v3422_v37 = vmul.f32 %v11675_v55, %v3384_v40 }
 0x4e0   :  { %v3423_v59 = vmul.f32 %v11675_v55, %v3385_v2  ;;  %v3424_v53 = vmul.f32 %v11675_v55, %v3386_v60  ;;  %5049 = vrot.lane.b32.xlu1 %v11721_v36, %s8853_s13  ;;  %v3439_v28 = vadd.f32 %v11680_v38, %v3401_v10  ;;  %v3442_v35 = vadd.f32 %v11680_v38, %v3404_v26 }
 0x4e1   :  { %v3426_v22 = vmul.f32 %v11675_v55, %v3388_v17  ;;  %v3441_v21 = vadd.f32 %v11680_v38, %v3403_v50  ;;  %v3443_v48 = vadd.f32 %v11680_v38, %v3405_v57  ;;  %v3444_v16 = vadd.f32 %v11680_v38, %v3406_v45 }
 0x4e2   :  { %v3445_v40 = vadd.f32 %v11680_v38, %v3407_v46  ;;  %v3446_v2 = vadd.f32 %v11680_v38, %v3408_v9  ;;  %v3447_v60 = vadd.f32 %v11680_v38, %v3409_v18  ;;  %v11741_v49 = vadd.f32 %v11680_v38, %v3425_v42 }
 0x4e3   :  { %v3448_v1 = vadd.f32 %v11680_v38, %v3410_v56  ;;  %v11745_v58 = vadd.f32 %v11680_v38, %v3427_v41  ;;  %v11748_v55 = vadd.f32 %v11680_v38, %v3428_v4  ;;  %v11751_v17 = vadd.f32 %v11680_v38, %v3430_v7 }
 0x4e4   :  { %v3449_v12 = vadd.f32 %v11680_v38, %v3411_v29  ;;  %v3450_v0 = vadd.f32 %v11680_v38, %v3412_v63  ;;  %v11755_v5 = vmax.f32 %v3439_v28, 0.0  ;;  %v11757_v44 = vmax.f32 %v3442_v35, 0.0 }
 0x4e5   :  { %v3451_v10 = vadd.f32 %v11680_v38, %v3413_v61  ;;  %v3452_v50 = vadd.f32 %v11680_v38, %v3414_v52  ;;  %v3453_v26 = vadd.f32 %v11680_v38, %v3415_v34  ;;  %v3454_v57 = vadd.f32 %v11680_v38, %v3416_v25 }
 0x4e6   :  { %v3455_v45 = vadd.f32 %v11680_v38, %v3417_v19  ;;  %v3456_v46 = vadd.f32 %v11680_v38, %v3418_v62  ;;  %v3457_v9 = vadd.f32 %v11680_v38, %v3419_v6  ;;  %5047 = vrot.lane.b32.xlu0 %v11755_v5, %s8853_s13  ;;  %5053 = vrot.lane.b32.xlu1 %v11757_v44, %s8853_s13  ;;  %v11786_v7 = vmax.f32 %v3441_v21, 0.0 }
 0x4e7   :  { %v3458_v18 = vadd.f32 %v11680_v38, %v3420_v30  ;;  %v11772_v56 = vadd.f32 %v11680_v38, %v3421_v14  ;;  %v11775_v42 = vadd.f32 %v11680_v38, %v3422_v37  ;;  %v11778_v41 = vadd.f32 %v11680_v38, %v3423_v59 }
 0x4e8   :  { %v11781_v29 = vadd.f32 %v11680_v38, %v3424_v53  ;;  %v11784_v4 = vadd.f32 %v11680_v38, %v3426_v22  ;;  %v11788_v23 = vmax.f32 %v3444_v16, 0.0  ;;  %v11790_v63 = vmax.f32 %v3443_v48, 0.0  ;;  %v15658_v48 = vld [vmem:[#allocation11_spill] sm:$0xff] }
 0x4e9   :  { %v11792_v61 = vmax.f32 %v3445_v40, 0.0  ;;  %v11794_v52 = vmax.f32 %v3446_v2, 0.0  ;;  %v11796_v34 = vmax.f32 %v3447_v60, 0.0  ;;  %v11798_v25 = vmax.f32 %v3448_v1, 0.0  ;;  %v15659_v40 = vld [vmem:[#allocation16_spill] sm:$0xff] }
 0x4ea   :  { %v11800_v19 = vmax.f32 %v3449_v12, 0.0  ;;  %v11802_v62 = vmax.f32 %v3450_v0, 0.0  ;;  %v11804_v38 = vmax.f32 %v3451_v10, 0.0  ;;  %5051 = vrot.lane.b32.xlu0 %v11786_v7, %s8853_s13  ;;  %5057 = vrot.lane.b32.xlu1 %v11788_v23, %s8853_s13  ;;  %v11810_v6 = vmax.f32 %v3452_v50, 0.0  ;;  %v15660_v50 = vld [vmem:[#allocation3_spill] sm:$0xff] }
 0x4eb   :  { %15654 = vst [vmem:[#allocation264_spill] sm:$0xff] %v11792_v61  ;;  %15655 = vst [vmem:[#allocation268_spill] sm:$0xff] %v11796_v34  ;;  %v3514_v30 = vrot.slane %v11688_v39, %v9732_v31  ;;  %v3674_v14 = vrot.slane %v11688_v39, %v9735_v32  ;;  %v3866_v37 = vrot.slane %v11688_v39, %v9748_v24  ;;  %v11818_v59 = vmax.f32 %v3453_v26, 0.0 }
 0x4ec   :  { %15656 = vst [vmem:[#allocation262_spill] sm:$0xff] %v11798_v25  ;;  %15657 = vst [vmem:[#allocation265_spill] sm:$0xff] %v11802_v62  ;;  %v4058_v53 = vrot.slane %v11688_v39, %v9756_v13  ;;  %v4250_v28 = vrot.slane %v11688_v39, %v9767_v51  ;;  %v4442_v35 = vrot.slane %v11688_v39, %v9777_v47  ;;  %v11826_v22 = vmax.f32 %v3454_v57, 0.0 }
 0x4ed   :  { %v11828_v21 = vmax.f32 %v3455_v45, 0.0  ;;  %v3636_v16 = vmul.f32 %v3514_v30, %v15658_v48  ;;  %v3796_v2 = vmul.f32 %v3674_v14, %v15659_v40  ;;  %v11832_v60 = vmax.f32 %v3456_v46, 0.0  ;;  %v15661_v46 = vld [vmem:[#allocation25_spill] sm:$0xff]  ;;  %v15662_v30 = vld [vmem:[#allocation32_spill] sm:$0xff]  ;;  %v15663_v40 = vld [vmem:[#allocation102_spill] sm:$0xff] }
 0x4ee   :  { %v11834_v1 = vmax.f32 %v3457_v9, 0.0  ;;  %5055 = vrot.lane.b32.xlu0 %v11790_v63, %s8853_s13  ;;  %5061 = vrot.lane.b32.xlu1 %v11794_v52, %s8853_s13  ;;  %v4634_v12 = vrot.slane %v11688_v39, %v9884_v27  ;;  %v4826_v0 = vrot.slane %v11688_v39, %v9809_v15  ;;  %v3988_v26 = vmul.f32 %v3866_v37, %v15660_v50  ;;  %v15664_v39 = vld [vmem:[#allocation9_spill] sm:$0xff] }
 0x4ef   :  { %v3828_v10 = vadd.f32 %v3796_v2, %v3636_v16  ;;  %v3510_v57 = vrot.slane %v11694_v20, %v9732_v31  ;;  %v3670_v45 = vrot.slane %v11694_v20, %v9735_v32  ;;  %v4180_v9 = vmul.f32 %v4058_v53, %v15661_v46  ;;  %v15665_v2 = vld [vmem:[#allocation59_spill] sm:$0xff]  ;;  %v15666_v53 = vld [vmem:[#allocation156_spill] sm:$0xff]  ;;  %v15671_v46 = vld [vmem:[#allocation61_spill] sm:$0xff] }
 0x4f0   :  { %v4372_v14 = vmul.f32 %v4250_v28, %v15662_v30  ;;  %v4564_v48 = vmul.f32 %v4442_v35, %v15663_v40  ;;  %v3862_v43 = vrot.slane %v11694_v20, %v9748_v24  ;;  %v4054_v50 = vrot.slane %v11694_v20, %v9756_v13  ;;  %v15667_v35 = vld [vmem:[#allocation121_spill] sm:$0xff] }
 0x4f1   :  { %v4020_v11 = vadd.f32 %v3988_v26, %v3828_v10  ;;  %v3635_v16 = vmul.f32 %v3510_v57, %v15664_v39  ;;  %v3795_v37 = vmul.f32 %v3670_v45, %v15665_v2  ;;  %v11858_v54 = vmax.f32 %v3458_v18, 0.0  ;;  %v15668_v45 = vld [vmem:[#allocation19_spill] sm:$0xff] }
 0x4f2   :  { %5059 = vrot.lane.b32.xlu0 %v11792_v61, %s8853_s13  ;;  %5065 = vrot.lane.b32.xlu1 %v11798_v25, %s8853_s13  ;;  %v4756_v28 = vmul.f32 %v4634_v12, %v15666_v53  ;;  %v4948_v40 = vmul.f32 %v4826_v0, %v15667_v35  ;;  %v4246_v10 = vrot.slane %v11694_v20, %v9767_v51 }
 0x4f3   :  { %v4212_v26 = vadd.f32 %v4180_v9, %v4020_v11  ;;  %v3827_v57 = vadd.f32 %v3795_v37, %v3635_v16  ;;  %v3987_v2 = vmul.f32 %v3862_v43, %v15668_v45  ;;  %v4438_v18 = vrot.slane %v11694_v20, %v9777_v47  ;;  %v15669_v9 = vld [vmem:[#allocation23_spill] sm:$0xff]  ;;  %v15670_v45 = vld [vmem:[#allocation4_spill] sm:$0xff] }
 0x4f4   :  { %v4630_v39 = vrot.slane %v11694_v20, %v9884_v27  ;;  %v3522_v30 = vrot.slane %v11721_v36, %v9732_v31  ;;  %v3682_v12 = vrot.slane %v11721_v36, %v9735_v32  ;;  %v3874_v0 = vrot.slane %v11721_v36, %v9748_v24 }
 0x4f5   :  { %v4404_v35 = vadd.f32 %v4372_v14, %v4212_v26  ;;  %v4019_v11 = vadd.f32 %v3987_v2, %v3827_v57  ;;  %v4179_v16 = vmul.f32 %v4054_v50, %v15669_v9  ;;  %v4822_v43 = vrot.slane %v11694_v20, %v9809_v15  ;;  %v15672_v26 = vld [vmem:[#allocation42_spill] sm:$0xff]  ;;  %v15673_v57 = vld [vmem:[#allocation36_spill] sm:$0xff] }
 0x4f6   :  { %v11883_v37 = vmax.f32 %v11772_v56, 0.0  ;;  %5063 = vrot.lane.b32.xlu0 %v11796_v34, %s8853_s13  ;;  %5069 = vrot.lane.b32.xlu1 %v11802_v62, %s8853_s13  ;;  %v3638_v53 = vmul.f32 %v3522_v30, %v15670_v45  ;;  %v3798_v8 = vmul.f32 %v3682_v12, %v15671_v46  ;;  %v4066_v14 = vrot.slane %v11721_v36, %v9756_v13  ;;  %v15675_v62 = vld [vmem:[#allocation29_spill] sm:$0xff] }
 0x4f7   :  { %v4596_v50 = vadd.f32 %v4564_v48, %v4404_v35  ;;  %v4211_v2 = vadd.f32 %v4179_v16, %v4019_v11  ;;  %v4371_v20 = vmul.f32 %v4246_v10, %v15672_v26  ;;  %v4258_v56 = vrot.slane %v11721_v36, %v9767_v51 }
 0x4f8   :  { %v4563_v9 = vmul.f32 %v4438_v18, %v15673_v57  ;;  %v4755_v34 = vmul.f32 %v4630_v39, %v15674_v3  ;;  %v3830_v25 = vadd.f32 %v3798_v8, %v3638_v53  ;;  %v3990_v61 = vmul.f32 %v3874_v0, %v15675_v62  ;;  %v15676_v8 = vld [vmem:[#allocation54_spill] sm:$0xff] }
 0x4f9   :  { %v4403_v30 = vadd.f32 %v4371_v20, %v4211_v2  ;;  %v4450_v12 = vrot.slane %v11721_v36, %v9777_v47  ;;  %v4642_v48 = vrot.slane %v11721_v36, %v9884_v27  ;;  %v3518_v35 = vrot.slane %v11755_v5, %v9732_v31  ;;  %v15677_v18 = vld [vmem:[#allocation38_spill] sm:$0xff]  ;;  %v15678_v2 = vld [vmem:[#allocation47_spill] sm:$0xff] }
 0x4fa   :  { %v11906_v10 = vmax.f32 %v11775_v42, 0.0  ;;  %5067 = vrot.lane.b32.xlu0 %v11800_v19, %s8853_s13  ;;  %5073 = vrot.lane.b32.xlu1 %v11810_v6, %s8853_s13  ;;  %v4947_v39 = vmul.f32 %v4822_v43, %v15676_v8  ;;  %v4022_v53 = vadd.f32 %v3990_v61, %v3830_v25  ;;  %v4182_v0 = vmul.f32 %v4066_v14, %v15677_v18  ;;  %v15679_v3 = vld [vmem:[#allocation2_spill] sm:$0xff]  ;;  %v15681_v14 = vld [vmem:[#allocation159_spill] sm:$0xff] }
 0x4fb   :  { %v4788_v11 = vadd.f32 %v4756_v28, %v4596_v50  ;;  %v4595_v16 = vadd.f32 %v4563_v9, %v4403_v30  ;;  %v4374_v20 = vmul.f32 %v4258_v56, %v15678_v2  ;;  %v4834_v62 = vrot.slane %v11721_v36, %v9809_v15  ;;  %v15680_v61 = vld [vmem:[#allocation58_spill] sm:$0xff]  ;;  %v15682_v56 = vld [vmem:[#allocation21_spill] sm:$0xff] }
 0x4fc   :  { %v4214_v42 = vadd.f32 %v4182_v0, %v4022_v53  ;;  %v3637_v57 = vmul.f32 %v3518_v35, %v15679_v3  ;;  %v3678_v26 = vrot.slane %v11755_v5, %v9735_v32  ;;  %v3870_v46 = vrot.slane %v11755_v5, %v9748_v24  ;;  %v15691_v2 = vld [vmem:[#allocation45_spill] sm:$0xff]  ;;  %v15709_v8 = vld [vmem:[#allocation130_spill] sm:$0xff] }
 0x4fd   :  { %v4787_v43 = vadd.f32 %v4755_v34, %v4595_v16  ;;  %v4566_v25 = vmul.f32 %v4450_v12, %v15680_v61  ;;  %v4758_v28 = vmul.f32 %v4642_v48, %v15681_v14  ;;  %v4062_v9 = vrot.slane %v11755_v5, %v9756_v13  ;;  %v15683_v48 = vld [vmem:[#allocation123_spill] sm:$0xff]  ;;  %v15690_v61 = vld [vmem:[#allocation52_spill] sm:$0xff] }
 0x4fe   :  { %v11927_v50 = vmax.f32 %v11778_v41, 0.0  ;;  %5071 = vrot.lane.b32.xlu0 %v11804_v38, %s8853_s13  ;;  %5077 = vrot.lane.b32.xlu1 %v11826_v22, %s8853_s13  ;;  %v4406_v36 = vadd.f32 %v4374_v20, %v4214_v42  ;;  %v3797_v30 = vmul.f32 %v3678_v26, %v15682_v56  ;;  %v4254_v34 = vrot.slane %v11755_v5, %v9767_v51  ;;  %v15684_v20 = vld [vmem:[#allocation27_spill] sm:$0xff]  ;;  %v15685_v26 = vld [vmem:[#allocation34_spill] sm:$0xff] }
 0x4ff   :  { %v11936_v12 = vadd.f32 %v4948_v40, %v4788_v11  ;;  %v4950_v35 = vmul.f32 %v4834_v62, %v15683_v48  ;;  %v4446_v41 = vrot.slane %v11755_v5, %v9777_v47  ;;  %v4638_v53 = vrot.slane %v11755_v5, %v9884_v27 }
 0x500   :  { %v11943_v0 = vadd.f32 %v4947_v39, %v4787_v43  ;;  %v4598_v16 = vadd.f32 %v4566_v25, %v4406_v36  ;;  %v3829_v14 = vadd.f32 %v3797_v30, %v3637_v57  ;;  %v3989_v42 = vmul.f32 %v3870_v46, %v15684_v20  ;;  %v15687_v57 = vld [vmem:[#allocation43_spill] sm:$0xff]  ;;  %v15689_v30 = vld [vmem:[#allocation64_spill] sm:$0xff] }
 0x501   :  { %v4181_v56 = vmul.f32 %v4062_v9, %v15685_v26  ;;  %v3530_v40 = vrot.slane %v11757_v44, %v9732_v31  ;;  %v3690_v62 = vrot.slane %v11757_v44, %v9735_v32  ;;  %v3882_v11 = vrot.slane %v11757_v44, %v9748_v24  ;;  %v15688_v9 = vld [vmem:[#allocation6_spill] sm:$0xff] }
 0x502   :  { %v11954_v48 = vmax.f32 %v11781_v29, 0.0  ;;  %5075 = vrot.lane.b32.xlu0 %v11818_v59, %s8853_s13  ;;  %5081 = vrot.lane.b32.xlu1 %v11832_v60, %s8853_s13  ;;  %v4021_v46 = vadd.f32 %v3989_v42, %v3829_v14  ;;  %v4373_v39 = vmul.f32 %v4254_v34, %v15687_v57  ;;  %v4830_v43 = vrot.slane %v11755_v5, %v9809_v15 }
 0x503   :  { %v4790_v25 = vadd.f32 %v4758_v28, %v4598_v16  ;;  %v3640_v36 = vmul.f32 %v3530_v40, %v15688_v9  ;;  %v3800_v26 = vmul.f32 %v3690_v62, %v15689_v30  ;;  %v4074_v29 = vrot.slane %v11757_v44, %v9756_v13  ;;  %v15694_v40 = vld [vmem:[#allocation74_spill] sm:$0xff]  ;;  %v15696_v30 = vld [vmem:[#allocation13_spill] sm:$0xff] }
 0x504   :  { %15686 = vst [vmem:[#allocation267_spill] sm:$0xff] %v11954_v48  ;;  %v4213_v20 = vadd.f32 %v4181_v56, %v4021_v46  ;;  %v4565_v3 = vmul.f32 %v4446_v41, %v15690_v61  ;;  %v3992_v18 = vmul.f32 %v3882_v11, %v15691_v2  ;;  %v4266_v14 = vrot.slane %v11757_v44, %v9767_v51  ;;  %v15693_v41 = vld [vmem:[#allocation158_spill] sm:$0xff] }
 0x505   :  { %v3832_v34 = vadd.f32 %v3800_v26, %v3640_v36  ;;  %v4458_v5 = vrot.slane %v11757_v44, %v9777_v47  ;;  %v4650_v28 = vrot.slane %v11757_v44, %v9884_v27  ;;  %v3526_v16 = vrot.slane %v11786_v7, %v9732_v31  ;;  %v15695_v36 = vld [vmem:[#allocation56_spill] sm:$0xff] }
 0x506   :  { %v11978_v42 = vmax.f32 %v11741_v49, 0.0  ;;  %5079 = vrot.lane.b32.xlu0 %v11828_v21, %s8853_s13  ;;  %5085 = vrot.lane.b32.xlu1 %v11858_v54, %s8853_s13  ;;  %v4405_v56 = vadd.f32 %v4373_v39, %v4213_v20  ;;  %v4757_v26 = vmul.f32 %v4638_v53, %v15693_v41  ;;  %v4949_v62 = vmul.f32 %v4830_v43, %v15694_v40  ;;  %v15697_v39 = vld [vmem:[#allocation67_spill] sm:$0xff] }
 0x507   :  { %v11986_v11 = vadd.f32 %v4950_v35, %v4790_v25  ;;  %v4024_v46 = vadd.f32 %v3992_v18, %v3832_v34  ;;  %v4184_v2 = vmul.f32 %v4074_v29, %v15695_v36  ;;  %v4842_v49 = vrot.slane %v11757_v44, %v9809_v15  ;;  %v15698_v35 = vld [vmem:[#allocation78_spill] sm:$0xff] }
 0x508   :  { %15692 = vst [vmem:[#allocation258_spill] sm:$0xff] %v11978_v42  ;;  %v4597_v61 = vadd.f32 %v4565_v3, %v4405_v56  ;;  %v3639_v9 = vmul.f32 %v3526_v16, %v15696_v30  ;;  %v3686_v57 = vrot.slane %v11786_v7, %v9735_v32  ;;  %v3878_v20 = vrot.slane %v11786_v7, %v9748_v24  ;;  %v15699_v18 = vld [vmem:[#allocation138_spill] sm:$0xff]  ;;  %v15701_v16 = vld [vmem:[#allocation125_spill] sm:$0xff] }
 0x509   :  { %v4216_v53 = vadd.f32 %v4184_v2, %v4024_v46  ;;  %v4376_v43 = vmul.f32 %v4266_v14, %v15697_v39  ;;  %v4568_v25 = vmul.f32 %v4458_v5, %v15698_v35  ;;  %v4760_v34 = vmul.f32 %v4650_v28, %v15699_v18  ;;  %v15700_v3 = vld [vmem:[#allocation62_spill] sm:$0xff]  ;;  %v15702_v35 = vld [vmem:[#allocation41_spill] sm:$0xff] }
 0x50a   :  { %v12000_v29 = vmax.f32 %v11784_v4, 0.0  ;;  %5083 = vrot.lane.b32.xlu0 %v11834_v1, %s8853_s13  ;;  %5089 = vrot.lane.b32.xlu1 %v11906_v10, %s8853_s13  ;;  %v3799_v44 = vmul.f32 %v3686_v57, %v15700_v3  ;;  %v4070_v2 = vrot.slane %v11786_v7, %v9756_v13  ;;  %v4262_v14 = vrot.slane %v11786_v7, %v9767_v51 }
 0x50b   :  { %v4408_v5 = vadd.f32 %v4376_v43, %v4216_v53  ;;  %v4952_v28 = vmul.f32 %v4842_v49, %v15701_v16  ;;  %v4454_v4 = vrot.slane %v11786_v7, %v9777_v47  ;;  %v4646_v56 = vrot.slane %v11786_v7, %v9884_v27  ;;  %v15708_v16 = vld [vmem:[#allocation66_spill] sm:$0xff] }
 0x50c   :  { %v4789_v46 = vadd.f32 %v4757_v26, %v4597_v61  ;;  %v3831_v18 = vadd.f32 %v3799_v44, %v3639_v9  ;;  %v3991_v39 = vmul.f32 %v3878_v20, %v15702_v35  ;;  %v4838_v57 = vrot.slane %v11786_v7, %v9809_v15  ;;  %v15704_v61 = vld [vmem:[#allocation93_spill] sm:$0xff]  ;;  %v15705_v26 = vld [vmem:[#allocation63_spill] sm:$0xff] }
 0x50d   :  { %v4600_v3 = vadd.f32 %v4568_v25, %v4408_v5  ;;  %v3538_v30 = vrot.slane %v11788_v23, %v9732_v31  ;;  %v3698_v49 = vrot.slane %v11788_v23, %v9735_v32  ;;  %v3890_v53 = vrot.slane %v11788_v23, %v9748_v24  ;;  %v15706_v25 = vld [vmem:[#allocation72_spill] sm:$0xff] }
 0x50e   :  { %v12026_v43 = vmax.f32 %v11745_v58, 0.0  ;;  %5087 = vrot.lane.b32.xlu0 %v11883_v37, %s8853_s13  ;;  %5093 = vrot.lane.b32.xlu1 %v11954_v48, %s8853_s13  ;;  %v4023_v7 = vadd.f32 %v3991_v39, %v3831_v18  ;;  %v4183_v9 = vmul.f32 %v4070_v2, %v15704_v61  ;;  %v4375_v20 = vmul.f32 %v4262_v14, %v15705_v26  ;;  %v15707_v5 = vld [vmem:[#allocation8_spill] sm:$0xff]  ;;  %v15710_v48 = vld [vmem:[#allocation94_spill] sm:$0xff]  ;;  %v15711_v61 = vld [vmem:[#allocation65_spill] sm:$0xff] }
 0x50f   :  { %v4567_v44 = vmul.f32 %v4454_v4, %v15706_v25  ;;  %v3642_v35 = vmul.f32 %v3538_v30, %v15707_v5  ;;  %v3802_v36 = vmul.f32 %v3698_v49, %v15708_v16  ;;  %v4082_v58 = vrot.slane %v11788_v23, %v9756_v13  ;;  %v15722_v16 = vld [vmem:[#allocation95_spill] sm:$0xff] }
 0x510   :  { %15703 = vst [vmem:[#allocation261_spill] sm:$0xff] %v12026_v43  ;;  %v12039_v40 = vadd.f32 %v4949_v62, %v4789_v46  ;;  %v4215_v41 = vadd.f32 %v4183_v9, %v4023_v7  ;;  %v4759_v45 = vmul.f32 %v4646_v56, %v15709_v8  ;;  %v4951_v39 = vmul.f32 %v4838_v57, %v15710_v48  ;;  %v15721_v48 = vld [vmem:[#allocation60_spill] sm:$0xff] }
 0x511   :  { %v4792_v18 = vadd.f32 %v4760_v34, %v4600_v3  ;;  %v3834_v2 = vadd.f32 %v3802_v36, %v3642_v35  ;;  %v3994_v14 = vmul.f32 %v3890_v53, %v15711_v61  ;;  %v4274_v4 = vrot.slane %v11788_v23, %v9767_v51  ;;  %v15713_v34 = vld [vmem:[#allocation76_spill] sm:$0xff] }
 0x512   :  { %v12047_v30 = vmax.f32 %v11748_v55, 0.0  ;;  %5091 = vrot.lane.b32.xlu0 %v11927_v50, %s8853_s13  ;;  %5097 = vrot.lane.b32.xlu1 %v12000_v29, %s8853_s13  ;;  %v4407_v62 = vadd.f32 %v4375_v20, %v4215_v41  ;;  %v4466_v56 = vrot.slane %v11788_v23, %v9777_v47  ;;  %v4658_v36 = vrot.slane %v11788_v23, %v9884_v27  ;;  %v15714_v20 = vld [vmem:[#allocation87_spill] sm:$0xff] }
 0x513   :  { %v4026_v35 = vadd.f32 %v3994_v14, %v3834_v2  ;;  %v4186_v3 = vmul.f32 %v4082_v58, %v15713_v34  ;;  %v4850_v55 = vrot.slane %v11788_v23, %v9809_v15  ;;  %v3534_v46 = vrot.slane %v11790_v63, %v9732_v31  ;;  %v15715_v2 = vld [vmem:[#allocation15_spill] sm:$0xff]  ;;  %v15718_v34 = vld [vmem:[#allocation169_spill] sm:$0xff] }
 0x514   :  { %15712 = vst [vmem:[#allocation201_spill] sm:$0xff] %v12047_v30  ;;  %v4599_v57 = vadd.f32 %v4567_v44, %v4407_v62  ;;  %v3694_v49 = vrot.slane %v11790_v63, %v9735_v32  ;;  %v3886_v41 = vrot.slane %v11790_v63, %v9748_v24  ;;  %v4078_v53 = vrot.slane %v11790_v63, %v9756_v13  ;;  %v15717_v44 = vld [vmem:[#allocation98_spill] sm:$0xff] }
 0x515   :  { %v12068_v7 = vadd.f32 %v4952_v28, %v4792_v18  ;;  %v4218_v9 = vadd.f32 %v4186_v3, %v4026_v35  ;;  %v4378_v58 = vmul.f32 %v4274_v4, %v15714_v20  ;;  %v3641_v23 = vmul.f32 %v3534_v46, %v15715_v2  ;;  %v15719_v28 = vld [vmem:[#allocation49_spill] sm:$0xff]  ;;  %v15720_v3 = vld [vmem:[#allocation120_spill] sm:$0xff] }
 0x516   :  { %v12073_v14 = vmax.f32 %v11751_v17, 0.0  ;;  %5095 = vrot.lane.b32.xlu0 %v11978_v42, %s8853_s13  ;;  %5101 = vrot.lane.b32.xlu1 %v12047_v30, %s8853_s13  ;;  %v4570_v62 = vmul.f32 %v4466_v56, %v15717_v44  ;;  %v4762_v61 = vmul.f32 %v4658_v36, %v15718_v34  ;;  %v3801_v18 = vmul.f32 %v3694_v49, %v15719_v28  ;;  %v15728_v34 = vld [vmem:[#allocation85_spill] sm:$0xff]  ;;  %v15767_v30 = vld [vmem:[#allocation142_spill] sm:$0xff] }
 0x517   :  { %v4410_v35 = vadd.f32 %v4378_v58, %v4218_v9  ;;  %v4954_v4 = vmul.f32 %v4850_v55, %v15720_v3  ;;  %v4270_v46 = vrot.slane %v11790_v63, %v9767_v51  ;;  %v4462_v17 = vrot.slane %v11790_v63, %v9777_v47 }
 0x518   :  { %15716 = vst [vmem:[#allocation200_spill] sm:$0xff] %v12073_v14  ;;  %v4791_v2 = vadd.f32 %v4759_v45, %v4599_v57  ;;  %v3833_v20 = vadd.f32 %v3801_v18, %v3641_v23  ;;  %v3993_v8 = vmul.f32 %v3886_v41, %v15721_v48  ;;  %v4185_v5 = vmul.f32 %v4078_v53, %v15722_v16  ;;  %v15724_v53 = vld [vmem:[#allocation83_spill] sm:$0xff]  ;;  %v15725_v23 = vld [vmem:[#allocation92_spill] sm:$0xff]  ;;  %v15726_v18 = vld [vmem:[#allocation10_spill] sm:$0xff] }
 0x519   :  { %v4602_v56 = vadd.f32 %v4570_v62, %v4410_v35  ;;  %v3546_v36 = vrot.slane %v11794_v52, %v9732_v31  ;;  %v3706_v49 = vrot.slane %v11794_v52, %v9735_v32  ;;  %v3898_v55 = vrot.slane %v11794_v52, %v9748_v24  ;;  %v15727_v35 = vld [vmem:[#allocation68_spill] sm:$0xff] }
 0x51a   :  { %v12096_v9 = vmax.f32 %v11685_v33, 0.0  ;;  %5099 = vrot.lane.b32.xlu0 %v12026_v43, %s8853_s13  ;;  %5105 = vrot.lane.b32.xlu1 %v12073_v14, %s8853_s13  ;;  %v4025_v45 = vadd.f32 %v3993_v8, %v3833_v20  ;;  %v4654_v57 = vrot.slane %v11790_v63, %v9884_v27  ;;  %v4846_v41 = vrot.slane %v11790_v63, %v9809_v15  ;;  %v15757_v43 = vld [vmem:[#allocation101_spill] sm:$0xff] }
 0x51b   :  { %v4377_v58 = vmul.f32 %v4270_v46, %v15724_v53  ;;  %v4569_v62 = vmul.f32 %v4462_v17, %v15725_v23  ;;  %v3644_v33 = vmul.f32 %v3546_v36, %v15726_v18  ;;  %v3804_v16 = vmul.f32 %v3706_v49, %v15727_v35  ;;  %v15731_v36 = vld [vmem:[#allocation96_spill] sm:$0xff]  ;;  %v15737_v18 = vld [vmem:[#allocation69_spill] sm:$0xff] }
 0x51c   :  { %15723 = vst [vmem:[#allocation206_spill] sm:$0xff] %v12096_v9  ;;  %v12110_v48 = vadd.f32 %v4951_v39, %v4791_v2  ;;  %v4794_v3 = vadd.f32 %v4762_v61, %v4602_v56  ;;  %v4217_v28 = vadd.f32 %v4185_v5, %v4025_v45  ;;  %v4090_v8 = vrot.slane %v11794_v52, %v9756_v13  ;;  %v15729_v39 = vld [vmem:[#allocation162_spill] sm:$0xff]  ;;  %v15732_v45 = vld [vmem:[#allocation264_spill] sm:$0xff] }
 0x51d   :  { %v3836_v20 = vadd.f32 %v3804_v16, %v3644_v33  ;;  %v3996_v44 = vmul.f32 %v3898_v55, %v15728_v34  ;;  %v4282_v63 = vrot.slane %v11794_v52, %v9767_v51  ;;  %v4474_v46 = vrot.slane %v11794_v52, %v9777_v47  ;;  %v15730_v61 = vld [vmem:[#allocation126_spill] sm:$0xff]  ;;  %v15738_v53 = vld [vmem:[#allocation132_spill] sm:$0xff] }
 0x51e   :  { %5103 = vrot.lane.b32.xlu0 %v12096_v9, %s8853_s13  ;;  %v4409_v17 = vadd.f32 %v4377_v58, %v4217_v28  ;;  %v4761_v2 = vmul.f32 %v4654_v57, %v15729_v39  ;;  %v4953_v5 = vmul.f32 %v4846_v41, %v15730_v61  ;;  %v4666_v56 = vrot.slane %v11794_v52, %v9884_v27  ;;  %v15733_v58 = vld [vmem:[#allocation107_spill] sm:$0xff]  ;;  %v15746_v9 = vld [vmem:[#allocation124_spill] sm:$0xff] }
 0x51f   :  { %v4028_v16 = vadd.f32 %v3996_v44, %v3836_v20  ;;  %v4188_v49 = vmul.f32 %v4090_v8, %v15731_v36  ;;  %v4858_v55 = vrot.slane %v11794_v52, %v9809_v15  ;;  %v3542_v33 = vrot.slane %v15732_v45, %v9732_v31  ;;  %v15734_v20 = vld [vmem:[#allocation118_spill] sm:$0xff]  ;;  %v15735_v36 = vld [vmem:[#allocation17_spill] sm:$0xff] }
 0x520   :  { %v12130_v34 = vadd.f32 %v4954_v4, %v4794_v3  ;;  %v4601_v35 = vadd.f32 %v4569_v62, %v4409_v17  ;;  %v3702_v28 = vrot.slane %v15732_v45, %v9735_v32  ;;  %v3894_v57 = vrot.slane %v15732_v45, %v9748_v24  ;;  %v15736_v52 = vld [vmem:[#allocation178_spill] sm:$0xff] }
 0x521   :  { %v4220_v41 = vadd.f32 %v4188_v49, %v4028_v16  ;;  %v4380_v44 = vmul.f32 %v4282_v63, %v15733_v58  ;;  %v4572_v8 = vmul.f32 %v4474_v46, %v15734_v20  ;;  %v3643_v61 = vmul.f32 %v3542_v33, %v15735_v36  ;;  %v15739_v49 = vld [vmem:[#allocation81_spill] sm:$0xff]  ;;  %v15744_v20 = vld [vmem:[#allocation112_spill] sm:$0xff] }
 0x522   :  { %v4764_v39 = vmul.f32 %v4666_v56, %v15736_v52  ;;  %v3803_v23 = vmul.f32 %v3702_v28, %v15737_v18  ;;  %v4086_v3 = vrot.slane %v15732_v45, %v9756_v13  ;;  %v4278_v4 = vrot.slane %v15732_v45, %v9767_v51  ;;  %v15740_v28 = vld [vmem:[#allocation262_spill] sm:$0xff] }
 0x523   :  { %v4793_v62 = vadd.f32 %v4761_v2, %v4601_v35  ;;  %v4412_v17 = vadd.f32 %v4380_v44, %v4220_v41  ;;  %v4956_v16 = vmul.f32 %v4858_v55, %v15738_v53  ;;  %v4470_v63 = vrot.slane %v15732_v45, %v9777_v47  ;;  %v15743_v44 = vld [vmem:[#allocation12_spill] sm:$0xff] }
 0x524   :  { %v3835_v46 = vadd.f32 %v3803_v23, %v3643_v61  ;;  %v3995_v33 = vmul.f32 %v3894_v57, %v15739_v49  ;;  %v4662_v56 = vrot.slane %v15732_v45, %v9884_v27  ;;  %v3554_v18 = vrot.slane %v15740_v28, %v9732_v31  ;;  %v15741_v23 = vld [vmem:[#allocation97_spill] sm:$0xff]  ;;  %v15742_v57 = vld [vmem:[#allocation103_spill] sm:$0xff] }
 0x525   :  { %v4604_v52 = vadd.f32 %v4572_v8, %v4412_v17  ;;  %v4854_v36 = vrot.slane %v15732_v45, %v9809_v15  ;;  %v3714_v35 = vrot.slane %v15740_v28, %v9735_v32  ;;  %v3906_v2 = vrot.slane %v15740_v28, %v9748_v24  ;;  %v15745_v17 = vld [vmem:[#allocation70_spill] sm:$0xff] }
 0x526   :  { %v4027_v55 = vadd.f32 %v3995_v33, %v3835_v46  ;;  %v4187_v61 = vmul.f32 %v4086_v3, %v15741_v23  ;;  %v4379_v41 = vmul.f32 %v4278_v4, %v15742_v57  ;;  %v3646_v49 = vmul.f32 %v3554_v18, %v15743_v44  ;;  %v15747_v46 = vld [vmem:[#allocation129_spill] sm:$0xff]  ;;  %v15754_v44 = vld [vmem:[#allocation90_spill] sm:$0xff] }
 0x527   :  { %v12162_v53 = vadd.f32 %v4953_v5, %v4793_v62  ;;  %v4571_v8 = vmul.f32 %v4470_v63, %v15744_v20  ;;  %v3806_v58 = vmul.f32 %v3714_v35, %v15745_v17  ;;  %v4098_v45 = vrot.slane %v15740_v28, %v9756_v13  ;;  %v15748_v18 = vld [vmem:[#allocation105_spill] sm:$0xff]  ;;  %v15753_v17 = vld [vmem:[#allocation144_spill] sm:$0xff]  ;;  %v15756_v57 = vld [vmem:[#allocation26_spill] sm:$0xff] }
 0x528   :  { %v4796_v25 = vadd.f32 %v4764_v39, %v4604_v52  ;;  %v4219_v26 = vadd.f32 %v4187_v61, %v4027_v55  ;;  %v4763_v14 = vmul.f32 %v4662_v56, %v15746_v9  ;;  %v4290_v3 = vrot.slane %v15740_v28, %v9767_v51  ;;  %v15749_v52 = vld [vmem:[#allocation268_spill] sm:$0xff]  ;;  %v15750_v61 = vld [vmem:[#allocation99_spill] sm:$0xff] }
 0x529   :  { %v4955_v4 = vmul.f32 %v4854_v36, %v15747_v46  ;;  %v3838_v33 = vadd.f32 %v3806_v58, %v3646_v49  ;;  %v3998_v5 = vmul.f32 %v3906_v2, %v15748_v18  ;;  %v4482_v62 = vrot.slane %v15740_v28, %v9777_v47  ;;  %v15751_v2 = vld [vmem:[#allocation127_spill] sm:$0xff]  ;;  %v15752_v18 = vld [vmem:[#allocation18_spill] sm:$0xff] }
 0x52a   :  { %v4411_v63 = vadd.f32 %v4379_v41, %v4219_v26  ;;  %v4674_v35 = vrot.slane %v15740_v28, %v9884_v27  ;;  %v4866_v39 = vrot.slane %v15740_v28, %v9809_v15  ;;  %v3550_v56 = vrot.slane %v15749_v52, %v9732_v31 }
 0x52b   :  { %v4030_v55 = vadd.f32 %v3998_v5, %v3838_v33  ;;  %v4190_v9 = vmul.f32 %v4098_v45, %v15750_v61  ;;  %v3710_v36 = vrot.slane %v15749_v52, %v9735_v32  ;;  %v3902_v58 = vrot.slane %v15749_v52, %v9748_v24  ;;  %v15755_v5 = vld [vmem:[#allocation190_spill] sm:$0xff] }
 0x52c   :  { %v12186_v49 = vadd.f32 %v4956_v16, %v4796_v25  ;;  %v4603_v26 = vadd.f32 %v4571_v8, %v4411_v63  ;;  %v4382_v41 = vmul.f32 %v4290_v3, %v15751_v2  ;;  %v3645_v46 = vmul.f32 %v3550_v56, %v15752_v18 }
 0x52d   :  { %v4222_v28 = vadd.f32 %v4190_v9, %v4030_v55  ;;  %v4574_v20 = vmul.f32 %v4482_v62, %v15753_v17  ;;  %v3805_v33 = vmul.f32 %v3710_v36, %v15754_v44  ;;  %v4094_v45 = vrot.slane %v15749_v52, %v9756_v13  ;;  %v15765_v17 = vld [vmem:[#allocation161_spill] sm:$0xff] }
 0x52e   :  { %v4766_v61 = vmul.f32 %v4674_v35, %v15755_v5  ;;  %v4958_v23 = vmul.f32 %v4866_v39, %v15756_v57  ;;  %v3997_v25 = vmul.f32 %v3902_v58, %v15757_v43  ;;  %v4286_v16 = vrot.slane %v15749_v52, %v9767_v51  ;;  %v15758_v35 = vld [vmem:[#allocation265_spill] sm:$0xff] }
 0x52f   :  { %v4795_v8 = vadd.f32 %v4763_v14, %v4603_v26  ;;  %v4414_v3 = vadd.f32 %v4382_v41, %v4222_v28  ;;  %v3837_v63 = vadd.f32 %v3805_v33, %v3645_v46  ;;  %v4478_v9 = vrot.slane %v15749_v52, %v9777_v47  ;;  %v15759_v14 = vld [vmem:[#allocation110_spill] sm:$0xff]  ;;  %v15761_v33 = vld [vmem:[#allocation115_spill] sm:$0xff] }
 0x530   :  { %v4670_v62 = vrot.slane %v15749_v52, %v9884_v27  ;;  %v4862_v56 = vrot.slane %v15749_v52, %v9809_v15  ;;  %v3562_v39 = vrot.slane %v15758_v35, %v9732_v31  ;;  %v3722_v55 = vrot.slane %v15758_v35, %v9735_v32  ;;  %v15760_v41 = vld [vmem:[#allocation14_spill] sm:$0xff] }
 0x531   :  { %v4606_v36 = vadd.f32 %v4574_v20, %v4414_v3  ;;  %v4029_v58 = vadd.f32 %v3997_v25, %v3837_v63  ;;  %v4189_v26 = vmul.f32 %v4094_v45, %v15759_v14  ;;  %v3914_v46 = vrot.slane %v15758_v35, %v9748_v24  ;;  %v15762_v20 = vld [vmem:[#allocation122_spill] sm:$0xff]  ;;  %v15763_v3 = vld [vmem:[#allocation136_spill] sm:$0xff] }
 0x532   :  { %v3648_v28 = vmul.f32 %v3562_v39, %v15760_v41  ;;  %v3808_v43 = vmul.f32 %v3722_v55, %v15761_v33  ;;  %v4106_v52 = vrot.slane %v15758_v35, %v9756_v13  ;;  %v4298_v57 = vrot.slane %v15758_v35, %v9767_v51  ;;  %v15764_v63 = vld [vmem:[#allocation180_spill] sm:$0xff]  ;;  %v15766_v41 = vld [vmem:[#allocation7_spill] sm:$0xff] }
 0x533   :  { %v12218_v5 = vadd.f32 %v4955_v4, %v4795_v8  ;;  %v4221_v44 = vadd.f32 %v4189_v26, %v4029_v58  ;;  %v4381_v25 = vmul.f32 %v4286_v16, %v15762_v20  ;;  %v4573_v45 = vmul.f32 %v4478_v9, %v15763_v3  ;;  %v15768_v58 = vld [vmem:[#allocation154_spill] sm:$0xff]  ;;  %v15950_v20 = vld [vmem:[#allocation155_spill] sm:$0xff] }
 0x534   :  { %v4765_v14 = vmul.f32 %v4670_v62, %v15764_v63  ;;  %v4957_v18 = vmul.f32 %v4862_v56, %v15765_v17  ;;  %v3840_v39 = vadd.f32 %v3808_v43, %v3648_v28  ;;  %v4000_v55 = vmul.f32 %v3914_v46, %v15766_v41  ;;  %v15789_v63 = vld [vmem:[#allocation184_spill] sm:$0xff] }
 0x535   :  { %v4798_v33 = vadd.f32 %v4766_v61, %v4606_v36  ;;  %v4413_v2 = vadd.f32 %v4381_v25, %v4221_v44  ;;  %v4192_v42 = vmul.f32 %v4106_v52, %v15767_v30  ;;  %v4490_v4 = vrot.slane %v15758_v35, %v9777_v47  ;;  %v15769_v36 = vld [vmem:[#allocation20_spill] sm:$0xff]  ;;  %v15772_v30 = vld [vmem:[#allocation5_spill] sm:$0xff] }
 0x536   :  { %v4032_v8 = vadd.f32 %v4000_v55, %v3840_v39  ;;  %v4384_v26 = vmul.f32 %v4298_v57, %v15768_v58  ;;  %v3558_v16 = vrot.slane %v11800_v19, %v9732_v31  ;;  %v3718_v9 = vrot.slane %v11800_v19, %v9735_v32  ;;  %v15770_v57 = vld [vmem:[#allocation71_spill] sm:$0xff] }
 0x537   :  { %v4605_v62 = vadd.f32 %v4573_v45, %v4413_v2  ;;  %v4682_v43 = vrot.slane %v15758_v35, %v9884_v27  ;;  %v4874_v44 = vrot.slane %v15758_v35, %v9809_v15  ;;  %v3910_v61 = vrot.slane %v11800_v19, %v9748_v24  ;;  %v15771_v45 = vld [vmem:[#allocation106_spill] sm:$0xff] }
 0x538   :  { %v4224_v56 = vadd.f32 %v4192_v42, %v4032_v8  ;;  %v3647_v46 = vmul.f32 %v3558_v16, %v15769_v36  ;;  %v3807_v28 = vmul.f32 %v3718_v9, %v15770_v57  ;;  %v4102_v52 = vrot.slane %v11800_v19, %v9756_v13  ;;  %v15773_v8 = vld [vmem:[#allocation167_spill] sm:$0xff]  ;;  %v15781_v36 = vld [vmem:[#allocation152_spill] sm:$0xff] }
 0x539   :  { %v12243_v25 = vadd.f32 %v4958_v23, %v4798_v33  ;;  %v4797_v2 = vadd.f32 %v4765_v14, %v4605_v62  ;;  %v4576_v39 = vmul.f32 %v4490_v4, %v15771_v45  ;;  %v4294_v55 = vrot.slane %v11800_v19, %v9767_v51  ;;  %v15774_v9 = vld [vmem:[#allocation135_spill] sm:$0xff]  ;;  %v15775_v62 = vld [vmem:[#allocation134_spill] sm:$0xff] }
 0x53a   :  { %v4416_v35 = vadd.f32 %v4384_v26, %v4224_v56  ;;  %v3839_v58 = vadd.f32 %v3807_v28, %v3647_v46  ;;  %v3999_v41 = vmul.f32 %v3910_v61, %v15772_v30  ;;  %v4486_v42 = vrot.slane %v11800_v19, %v9777_v47  ;;  %v15776_v56 = vld [vmem:[#allocation150_spill] sm:$0xff]  ;;  %v15777_v28 = vld [vmem:[#allocation140_spill] sm:$0xff] }
 0x53b   :  { %v4768_v16 = vmul.f32 %v4682_v43, %v15773_v8  ;;  %v4960_v57 = vmul.f32 %v4874_v44, %v15774_v9  ;;  %v4678_v23 = vrot.slane %v11800_v19, %v9884_v27  ;;  %v3570_v14 = vrot.slane %v11810_v6, %v9732_v31 }
 0x53c   :  { %v4608_v33 = vadd.f32 %v4576_v39, %v4416_v35  ;;  %v4031_v4 = vadd.f32 %v3999_v41, %v3839_v58  ;;  %v4191_v26 = vmul.f32 %v4102_v52, %v15775_v62  ;;  %v3730_v61 = vrot.slane %v11810_v6, %v9735_v32  ;;  %v15778_v39 = vld [vmem:[#allocation104_spill] sm:$0xff]  ;;  %v15779_v58 = vld [vmem:[#allocation75_spill] sm:$0xff]  ;;  %v15780_v62 = vld [vmem:[#allocation166_spill] sm:$0xff] }
 0x53d   :  { %v4383_v46 = vmul.f32 %v4294_v55, %v15776_v56  ;;  %v3650_v30 = vmul.f32 %v3570_v14, %v15777_v28  ;;  %v3922_v43 = vrot.slane %v11810_v6, %v9748_v24  ;;  %v4114_v44 = vrot.slane %v11810_v6, %v9756_v13 }
 0x53e   :  { %v12266_v9 = vadd.f32 %v4957_v18, %v4797_v2  ;;  %v4223_v8 = vadd.f32 %v4191_v26, %v4031_v4  ;;  %v4575_v41 = vmul.f32 %v4486_v42, %v15778_v39  ;;  %v3810_v52 = vmul.f32 %v3730_v61, %v15779_v58  ;;  %v15782_v2 = vld [vmem:[#allocation164_spill] sm:$0xff]  ;;  %v15783_v61 = vld [vmem:[#allocation133_spill] sm:$0xff] }
 0x53f   :  { %v4800_v35 = vadd.f32 %v4768_v16, %v4608_v33  ;;  %v4767_v45 = vmul.f32 %v4678_v23, %v15780_v62  ;;  %v4870_v55 = vrot.slane %v11800_v19, %v9809_v15  ;;  %v4306_v14 = vrot.slane %v11810_v6, %v9767_v51  ;;  %v15788_v58 = vld [vmem:[#allocation217_spill] sm:$0xff] }
 0x540   :  { %v4415_v28 = vadd.f32 %v4383_v46, %v4223_v8  ;;  %v3842_v56 = vadd.f32 %v3810_v52, %v3650_v30  ;;  %v4002_v17 = vmul.f32 %v3922_v43, %v15781_v36  ;;  %v4498_v18 = vrot.slane %v11810_v6, %v9777_v47  ;;  %v15784_v43 = vld [vmem:[#allocation131_spill] sm:$0xff] }
 0x541   :  { %v4194_v42 = vmul.f32 %v4114_v44, %v15782_v2  ;;  %v4690_v16 = vrot.slane %v11810_v6, %v9884_v27  ;;  %v4882_v23 = vrot.slane %v11810_v6, %v9809_v15  ;;  %v3566_v19 = vrot.slane %v11804_v38, %v9732_v31  ;;  %v15785_v2 = vld [vmem:[#allocation46_spill] sm:$0xff] }
 0x542   :  { %v4607_v33 = vadd.f32 %v4575_v41, %v4415_v28  ;;  %v4034_v4 = vadd.f32 %v4002_v17, %v3842_v56  ;;  %v3726_v30 = vrot.slane %v11804_v38, %v9735_v32  ;;  %v3918_v8 = vrot.slane %v11804_v38, %v9748_v24  ;;  %v15786_v28 = vld [vmem:[#allocation174_spill] sm:$0xff]  ;;  %v15787_v56 = vld [vmem:[#allocation73_spill] sm:$0xff] }
 0x543   :  { %v12289_v26 = vadd.f32 %v4960_v57, %v4800_v35  ;;  %v4959_v46 = vmul.f32 %v4870_v55, %v15783_v61  ;;  %v3649_v44 = vmul.f32 %v3566_v19, %v15784_v43  ;;  %v4110_v6 = vrot.slane %v11804_v38, %v9756_v13  ;;  %v15790_v61 = vld [vmem:[#allocation148_spill] sm:$0xff] }
 0x544   :  { %v4226_v52 = vadd.f32 %v4194_v42, %v4034_v4  ;;  %v4386_v36 = vmul.f32 %v4306_v14, %v15785_v2  ;;  %v4578_v17 = vmul.f32 %v4498_v18, %v15786_v28  ;;  %v3809_v41 = vmul.f32 %v3726_v30, %v15787_v56  ;;  %v15791_v42 = vld [vmem:[#allocation160_spill] sm:$0xff]  ;;  %v15797_v28 = vld [vmem:[#allocation182_spill] sm:$0xff] }
 0x545   :  { %v4799_v62 = vadd.f32 %v4767_v45, %v4607_v33  ;;  %v4770_v39 = vmul.f32 %v4690_v16, %v15788_v58  ;;  %v4962_v57 = vmul.f32 %v4882_v23, %v15789_v63  ;;  %v4302_v35 = vrot.slane %v11804_v38, %v9767_v51  ;;  %v15796_v58 = vld [vmem:[#allocation203_spill] sm:$0xff] }
 0x546   :  { %v4418_v19 = vadd.f32 %v4386_v36, %v4226_v52  ;;  %v3841_v43 = vadd.f32 %v3809_v41, %v3649_v44  ;;  %v4001_v3 = vmul.f32 %v3918_v8, %v15790_v61  ;;  %v4494_v14 = vrot.slane %v11804_v38, %v9777_v47  ;;  %v15793_v41 = vld [vmem:[#allocation24_spill] sm:$0xff]  ;;  %v15794_v61 = vld [vmem:[#allocation171_spill] sm:$0xff] }
 0x547   :  { %v4193_v18 = vmul.f32 %v4110_v6, %v15791_v42  ;;  %v4686_v45 = vrot.slane %v11804_v38, %v9884_v27  ;;  %v4878_v16 = vrot.slane %v11804_v38, %v9809_v15  ;;  %v3578_v23 = vrot.slane %v11826_v22, %v9732_v31  ;;  %v15792_v6 = vld [vmem:[#allocation44_spill] sm:$0xff] }
 0x548   :  { %v4610_v33 = vadd.f32 %v4578_v17, %v4418_v19  ;;  %v4033_v4 = vadd.f32 %v4001_v3, %v3841_v43  ;;  %v3738_v36 = vrot.slane %v11826_v22, %v9735_v32  ;;  %v3930_v30 = vrot.slane %v11826_v22, %v9748_v24  ;;  %v15795_v17 = vld [vmem:[#allocation163_spill] sm:$0xff] }
 0x549   :  { %v5046_v55 = vpop.permute.xlu1 %5045  ;;  %v12318_v44 = vadd.f32 %v4959_v46, %v4799_v62  ;;  %v4385_v52 = vmul.f32 %v4302_v35, %v15792_v6  ;;  %v3652_v38 = vmul.f32 %v3578_v23, %v15793_v41  ;;  %v4577_v63 = vmul.f32 %v4494_v14, %v15794_v61  ;;  %v15814_v6 = vld [vmem:[#allocation176_spill] sm:$0xff] }
 0x54a   :  { %v5140_v8 = vsel %vm2796_vm0, %v11936_v12, %v5046_v55  ;;  %v4225_v42 = vadd.f32 %v4193_v18, %v4033_v4  ;;  %v3812_v3 = vmul.f32 %v3738_v36, %v15795_v17  ;;  %v4122_v43 = vrot.slane %v11826_v22, %v9756_v13  ;;  %v15798_v55 = vld [vmem:[#allocation128_spill] sm:$0xff]  ;;  %v15799_v4 = vld [vmem:[#allocation173_spill] sm:$0xff] }
 0x54b   :  { %v4802_v19 = vadd.f32 %v4770_v39, %v4610_v33  ;;  %v4769_v56 = vmul.f32 %v4686_v45, %v15796_v58  ;;  %v4961_v2 = vmul.f32 %v4878_v16, %v15797_v28  ;;  %v4314_v12 = vrot.slane %v11826_v22, %v9767_v51  ;;  %v15805_v28 = vld [vmem:[#allocation139_spill] sm:$0xff]  ;;  %v15806_v17 = vld [vmem:[#allocation165_spill] sm:$0xff] }
 0x54c   :  { %v4417_v46 = vadd.f32 %v4385_v52, %v4225_v42  ;;  %v3844_v35 = vadd.f32 %v3812_v3, %v3652_v38  ;;  %v4004_v18 = vmul.f32 %v3930_v30, %v15798_v55  ;;  %v4506_v14 = vrot.slane %v11826_v22, %v9777_v47  ;;  %v15801_v38 = vld [vmem:[#allocation22_spill] sm:$0xff]  ;;  %v15804_v55 = vld [vmem:[#allocation188_spill] sm:$0xff] }
 0x54d   :  { %v4698_v39 = vrot.slane %v11826_v22, %v9884_v27  ;;  %v4890_v45 = vrot.slane %v11826_v22, %v9809_v15  ;;  %v3574_v16 = vrot.slane %v11818_v59, %v9732_v31  ;;  %v4196_v36 = vmul.f32 %v4122_v43, %v15799_v4 }
 0x54e   :  { %v4609_v42 = vadd.f32 %v4577_v63, %v4417_v46  ;;  %v4036_v33 = vadd.f32 %v4004_v18, %v3844_v35  ;;  %v3734_v30 = vrot.slane %v11818_v59, %v9735_v32  ;;  %v3926_v22 = vrot.slane %v11818_v59, %v9748_v24  ;;  %v15802_v46 = vld [vmem:[#allocation109_spill] sm:$0xff] }
 0x54f   :  { %v3651_v3 = vmul.f32 %v3574_v16, %v15801_v38  ;;  %v4580_v43 = vmul.f32 %v4506_v14, %v15802_v46  ;;  %v15803_v35 = vld [vmem:[#allocation157_spill] sm:$0xff]  ;;  %v4310_v16 = vrot.slane %v11818_v59, %v9767_v51 }
 0x550   :  { %v5044_v62 = vpop.permute.xlu0 %5043  ;;  %v4228_v63 = vadd.f32 %v4196_v36, %v4036_v33  ;;  %v3811_v18 = vmul.f32 %v3734_v30, %v15803_v35  ;;  %v4801_v4 = vadd.f32 %v4769_v56, %v4609_v42  ;;  %v4003_v61 = vmul.f32 %v3926_v22, %v15806_v17  ;;  %v15809_v22 = vld [vmem:[#allocation172_spill] sm:$0xff] }
 0x551   :  { %v5139_v23 = vsel %vm2796_vm0, %v11943_v0, %v5044_v62  ;;  %v15800_v0 = vld [vmem:[#allocation177_spill] sm:$0xff]  ;;  %v4118_v62 = vrot.slane %v11818_v59, %v9756_v13  ;;  %v4694_v56 = vrot.slane %v11818_v59, %v9884_v27  ;;  %v3746_v36 = vrot.slane %v11832_v60, %v9735_v32 }
 0x552   :  { %8500 = vmatprep.mubr.msk.f32.mxu1 %vm2829_vm1, %v5139_v23  ;;  %v4388_v52 = vmul.f32 %v4314_v12, %v15800_v0  ;;  %v12352_v23 = vadd.f32 %v4962_v57, %v4802_v19  ;;  %v4964_v12 = vmul.f32 %v4890_v45, %v15805_v28  ;;  %v5050_v38 = vpop.permute.xlu1 %5049  ;;  %v3843_v58 = vadd.f32 %v3811_v18, %v3651_v3  ;;  %v15807_v19 = vld [vmem:[#allocation170_spill] sm:$0xff] }
 0x553   :  { %8501 = vmatmul.mubr.msk.f32.vlgmr.msra.gmra.mrb[16].mxu1 %vm2829_vm1, %v5140_v8  ;;  %v4772_v8 = vmul.f32 %v4698_v39, %v15804_v55  ;;  %v4502_v57 = vrot.slane %v11818_v59, %v9777_v47  ;;  %v4195_v14 = vmul.f32 %v4118_v62, %v15807_v19  ;;  %v4886_v39 = vrot.slane %v11818_v59, %v9809_v15 }
 0x554   :  { %v4420_v0 = vadd.f32 %v4388_v52, %v4228_v63  ;;  %v3586_v45 = vrot.slane %v11832_v60, %v9732_v31  ;;  %v4035_v33 = vadd.f32 %v4003_v61, %v3843_v58  ;;  %v3938_v30 = vrot.slane %v11832_v60, %v9748_v24  ;;  %v15808_v52 = vld [vmem:[#allocation175_spill] sm:$0xff]  ;;  %v15810_v58 = vld [vmem:[#allocation108_spill] sm:$0xff] }
 0x555   :  { %v4387_v3 = vmul.f32 %v4310_v16, %v15808_v52  ;;  %v4130_v63 = vrot.slane %v11832_v60, %v9756_v13  ;;  %v4322_v59 = vrot.slane %v11832_v60, %v9767_v51  ;;  %v12380_v18 = vadd.f32 %v4961_v2, %v4801_v4  ;;  %v15812_v16 = vld [vmem:[#allocation186_spill] sm:$0xff] }
 0x556   :  { %v4612_v42 = vadd.f32 %v4580_v43, %v4420_v0  ;;  %v3654_v62 = vmul.f32 %v3586_v45, %v15809_v22  ;;  %v4227_v0 = vadd.f32 %v4195_v14, %v4035_v33  ;;  %v4579_v61 = vmul.f32 %v4502_v57, %v15810_v58  ;;  %v15811_v43 = vld [vmem:[#allocation79_spill] sm:$0xff]  ;;  %v15813_v45 = vld [vmem:[#allocation137_spill] sm:$0xff] }
 0x557   :  { %v3814_v19 = vmul.f32 %v3746_v36, %v15811_v43  ;;  %v5142_v17 = vsel %vm2796_vm0, %v11986_v11, %v5050_v38  ;;  %v4771_v52 = vmul.f32 %v4694_v56, %v15812_v16  ;;  %v4963_v22 = vmul.f32 %v4886_v39, %v15813_v45  ;;  %v15815_v14 = vld [vmem:[#allocation183_spill] sm:$0xff]  ;;  %v15816_v11 = vld [vmem:[#allocation50_spill] sm:$0xff] }
 0x558   :  { %v4804_v28 = vadd.f32 %v4772_v8, %v4612_v42  ;;  %v5048_v55 = vpop.permute.xlu0 %5047  ;;  %v5054_v35 = vpop.permute.xlu1 %5053  ;;  %v4419_v46 = vadd.f32 %v4387_v3, %v4227_v0  ;;  %v4006_v2 = vmul.f32 %v3938_v30, %v15814_v6  ;;  %v4514_v4 = vrot.slane %v11832_v60, %v9777_v47 }
 0x559   :  { %v3846_v41 = vadd.f32 %v3814_v19, %v3654_v62  ;;  %v5141_v57 = vsel %vm2796_vm0, %v12039_v40, %v5048_v55  ;;  %v4198_v33 = vmul.f32 %v4130_v63, %v15815_v14  ;;  %v4390_v38 = vmul.f32 %v4322_v59, %v15816_v11  ;;  %v15817_v62 = vld [vmem:[#allocation195_spill] sm:$0xff]  ;;  %v15818_v59 = vld [vmem:[#allocation168_spill] sm:$0xff] }
 0x55a   :  { %v4706_v8 = vrot.slane %v11832_v60, %v9884_v27  ;;  %8503 = vmatprep.mubr.msk.f32.mxu1 %vm2829_vm1, %v5141_v57  ;;  %v4611_v56 = vadd.f32 %v4579_v61, %v4419_v46  ;;  %v4898_v19 = vrot.slane %v11832_v60, %v9809_v15  ;;  %v3582_v42 = vrot.slane %v11828_v21, %v9732_v31  ;;  %v15821_v57 = vld [vmem:[#allocation211_spill] sm:$0xff] }
 0x55b   :  { %v4038_v39 = vadd.f32 %v4006_v2, %v3846_v41  ;;  %8504 = vmatmul.mubr.msk.f32.gmra.mrb[18].mxu1 %vm2829_vm1, %v5142_v17  ;;  %v5144_v40 = vsel %vm2796_vm0, %v12068_v7, %v5054_v35  ;;  %v12405_v55 = vadd.f32 %v4964_v12, %v4804_v28  ;;  %v3742_v36 = vrot.slane %v11828_v21, %v9735_v32  ;;  %v15819_v7 = vld [vmem:[#allocation242_spill] sm:$0xff]  ;;  %v15820_v35 = vld [vmem:[#allocation77_spill] sm:$0xff] }
 0x55c   :  { %v3934_v46 = vrot.slane %v11828_v21, %v9748_v24  ;;  %v5052_v41 = vpop.permute.xlu0 %5051  ;;  %v5058_v30 = vpop.permute.xlu1 %5057  ;;  %v4803_v3 = vadd.f32 %v4771_v52, %v4611_v56  ;;  %v4582_v63 = vmul.f32 %v4514_v4, %v15817_v62  ;;  %v3653_v0 = vmul.f32 %v3582_v42, %v15818_v59 }
 0x55d   :  { %v4230_v60 = vadd.f32 %v4198_v33, %v4038_v39  ;;  %v5143_v17 = vsel %vm2796_vm0, %v12110_v48, %v5052_v41  ;;  %v4774_v28 = vmul.f32 %v4706_v8, %v15819_v7  ;;  %v3813_v12 = vmul.f32 %v3742_v36, %v15820_v35  ;;  %v15822_v39 = vld [vmem:[#allocation147_spill] sm:$0xff] }
 0x55e   :  { %v4126_v61 = vrot.slane %v11828_v21, %v9756_v13  ;;  %8506 = vmatprep.mubr.msk.f32.mxu1 %vm2829_vm1, %v5143_v17  ;;  %v4966_v52 = vmul.f32 %v4898_v19, %v15821_v57  ;;  %v4318_v4 = vrot.slane %v11828_v21, %v9767_v51  ;;  %v4510_v33 = vrot.slane %v11828_v21, %v9777_v47  ;;  %v15824_v17 = vld [vmem:[#allocation30_spill] sm:$0xff] }
 0x55f   :  { %v4422_v2 = vadd.f32 %v4390_v38, %v4230_v60  ;;  %8507 = vmatmul.mubr.msk.f32.gmra.mrb[20].mxu1 %vm2829_vm1, %v5144_v40  ;;  %v5146_v48 = vsel %vm2796_vm0, %v12130_v34, %v5058_v30  ;;  %v12428_v8 = vadd.f32 %v4963_v22, %v4803_v3  ;;  %v3845_v56 = vadd.f32 %v3813_v12, %v3653_v0  ;;  %v15823_v30 = vld [vmem:[#allocation181_spill] sm:$0xff] }
 0x560   :  { %v4005_v42 = vmul.f32 %v3934_v46, %v15822_v39  ;;  %v5056_v36 = vpop.permute.xlu0 %5055  ;;  %v5062_v38 = vpop.permute.xlu1 %5061  ;;  %v3594_v19 = vrot.slane %v11858_v54, %v9732_v31  ;;  %v3754_v60 = vrot.slane %v11858_v54, %v9735_v32  ;;  %v3946_v40 = vrot.slane %v11858_v54, %v9748_v24 }
 0x561   :  { %v4614_v41 = vadd.f32 %v4582_v63, %v4422_v2  ;;  %v5145_v34 = vsel %vm2796_vm0, %v12162_v53, %v5056_v36  ;;  %v4197_v3 = vmul.f32 %v4126_v61, %v15823_v30  ;;  %v4702_v46 = vrot.slane %v11828_v21, %v9884_v27  ;;  %v15825_v2 = vld [vmem:[#allocation31_spill] sm:$0xff]  ;;  %v15826_v53 = vld [vmem:[#allocation48_spill] sm:$0xff] }
 0x562   :  { %v4037_v22 = vadd.f32 %v4005_v42, %v3845_v56  ;;  %8509 = vmatprep.mubr.msk.f32.mxu1 %vm2829_vm1, %v5145_v34  ;;  %v4894_v0 = vrot.slane %v11828_v21, %v9809_v15  ;;  %v3656_v12 = vmul.f32 %v3594_v19, %v15824_v17  ;;  %v3816_v39 = vmul.f32 %v3754_v60, %v15825_v2  ;;  %v15827_v42 = vld [vmem:[#allocation192_spill] sm:$0xff]  ;;  %v15828_v30 = vld [vmem:[#allocation187_spill] sm:$0xff] }
 0x563   :  { %v4806_v63 = vadd.f32 %v4774_v28, %v4614_v41  ;;  %8510 = vmatmul.mubr.msk.f32.gmra.mrb[22].mxu1 %vm2829_vm1, %v5146_v48  ;;  %v4389_v56 = vmul.f32 %v4318_v4, %v15826_v53  ;;  %v4581_v61 = vmul.f32 %v4510_v33, %v15827_v42  ;;  %v4138_v36 = vrot.slane %v11858_v54, %v9756_v13 }
 0x564   :  { %v4229_v57 = vadd.f32 %v4197_v3, %v4037_v22  ;;  %v5148_v28 = vsel %vm2796_vm0, %v12186_v49, %v5062_v38  ;;  %v5060_v41 = vpop.permute.xlu0 %5059  ;;  %v5066_v34 = vpop.permute.xlu1 %5065  ;;  %v3848_v21 = vadd.f32 %v3816_v39, %v3656_v12  ;;  %v4008_v19 = vmul.f32 %v3946_v40, %v15828_v30  ;;  %v15829_v22 = vld [vmem:[#allocation230_spill] sm:$0xff]  ;;  %v15830_v38 = vld [vmem:[#allocation207_spill] sm:$0xff] }
 0x565   :  { %v4330_v60 = vrot.slane %v11858_v54, %v9767_v51  ;;  %v5147_v48 = vsel %vm2796_vm0, %v12218_v5, %v5060_v41  ;;  %v4773_v33 = vmul.f32 %v4702_v46, %v15829_v22  ;;  %v4522_v3 = vrot.slane %v11858_v54, %v9777_v47  ;;  %v15831_v40 = vld [vmem:[#allocation194_spill] sm:$0xff]  ;;  %v15832_v41 = vld [vmem:[#allocation199_spill] sm:$0xff] }
 0x566   :  { %v4421_v4 = vadd.f32 %v4389_v56, %v4229_v57  ;;  %8512 = vmatprep.mubr.msk.f32.mxu1 %vm2829_vm1, %v5147_v48  ;;  %v12463_v49 = vadd.f32 %v4966_v52, %v4806_v63  ;;  %v4965_v39 = vmul.f32 %v4894_v0, %v15830_v38  ;;  %v4040_v12 = vadd.f32 %v4008_v19, %v3848_v21  ;;  %v15833_v21 = vld [vmem:[#allocation113_spill] sm:$0xff] }
 0x567   :  { %v4200_v30 = vmul.f32 %v4138_v36, %v15831_v40  ;;  %8513 = vmatmul.mubr.msk.f32.gmra.mrb[24].mxu1 %vm2829_vm1, %v5148_v28  ;;  %v4714_v5 = vrot.slane %v11858_v54, %v9884_v27  ;;  %v3590_v57 = vrot.slane %v11834_v1, %v9732_v31  ;;  %v3750_v46 = vrot.slane %v11834_v1, %v9735_v32 }
 0x568   :  { %v4613_v42 = vadd.f32 %v4581_v61, %v4421_v4  ;;  %v5150_v52 = vsel %vm2796_vm0, %v12243_v25, %v5066_v34  ;;  %v5064_v63 = vpop.permute.xlu0 %5063  ;;  %v5070_v0 = vpop.permute.xlu1 %5069  ;;  %v4392_v36 = vmul.f32 %v4330_v60, %v15832_v41  ;;  %v3942_v61 = vrot.slane %v11834_v1, %v9748_v24  ;;  %v15834_v34 = vld [vmem:[#allocation28_spill] sm:$0xff] }
 0x569   :  { %v4232_v56 = vadd.f32 %v4200_v30, %v4040_v12  ;;  %v5149_v28 = vsel %vm2796_vm0, %v12266_v9, %v5064_v63  ;;  %v4584_v19 = vmul.f32 %v4522_v3, %v15833_v21  ;;  %v4906_v48 = vrot.slane %v11858_v54, %v9809_v15  ;;  %v15835_v12 = vld [vmem:[#allocation179_spill] sm:$0xff]  ;;  %v15837_v21 = vld [vmem:[#allocation185_spill] sm:$0xff] }
 0x56a   :  { %v4134_v4 = vrot.slane %v11834_v1, %v9756_v13  ;;  %8515 = vmatprep.mubr.msk.f32.mxu1 %vm2829_vm1, %v5149_v28  ;;  %v4805_v25 = vadd.f32 %v4773_v33, %v4613_v42  ;;  %v3655_v60 = vmul.f32 %v3590_v57, %v15834_v34  ;;  %v3815_v41 = vmul.f32 %v3750_v46, %v15835_v12  ;;  %v15836_v3 = vld [vmem:[#allocation215_spill] sm:$0xff] }
 0x56b   :  { %v4424_v30 = vadd.f32 %v4392_v36, %v4232_v56  ;;  %8516 = vmatmul.mubr.msk.f32.gmra.mrb[26].mxu1 %vm2829_vm1, %v5150_v52  ;;  %v5152_v9 = vsel %vm2796_vm0, %v12289_v26, %v5070_v0  ;;  %v4776_v63 = vmul.f32 %v4714_v5, %v15836_v3  ;;  %v4007_v54 = vmul.f32 %v3942_v61, %v15837_v21  ;;  %v15838_v52 = vld [vmem:[#allocation143_spill] sm:$0xff] }
 0x56c   :  { %v4326_v40 = vrot.slane %v11834_v1, %v9767_v51  ;;  %v5068_v38 = vpop.permute.xlu0 %5067  ;;  %v5074_v28 = vpop.permute.xlu1 %5073  ;;  %v3847_v33 = vadd.f32 %v3815_v41, %v3655_v60  ;;  %v4518_v57 = vrot.slane %v11834_v1, %v9777_v47  ;;  %v4710_v46 = vrot.slane %v11834_v1, %v9884_v27  ;;  %v15840_v60 = vld [vmem:[#allocation197_spill] sm:$0xff] }
 0x56d   :  { %v4616_v42 = vadd.f32 %v4584_v19, %v4424_v30  ;;  %v5151_v26 = vsel %vm2796_vm0, %v12318_v44, %v5068_v38  ;;  %v4968_v5 = vmul.f32 %v4906_v48, %v15838_v52  ;;  %v4902_v0 = vrot.slane %v11834_v1, %v9809_v15  ;;  %v15839_v19 = vld [vmem:[#allocation191_spill] sm:$0xff]  ;;  %v15841_v44 = vld [vmem:[#allocation193_spill] sm:$0xff] }
 0x56e   :  { %v3602_v56 = vrot.slane %v11906_v10, %v9732_v31  ;;  %8518 = vmatprep.mubr.msk.f32.mxu1 %vm2829_vm1, %v5151_v26  ;;  %v4997_v41 = vadd.f32 %v4965_v39, %v4805_v25  ;;  %v4039_v61 = vadd.f32 %v4007_v54, %v3847_v33  ;;  %v4199_v30 = vmul.f32 %v4134_v4, %v15839_v19  ;;  %v15842_v54 = vld [vmem:[#allocation111_spill] sm:$0xff]  ;;  %v15844_v33 = vld [vmem:[#allocation141_spill] sm:$0xff] }
 0x56f   :  { %v4808_v36 = vadd.f32 %v4776_v63, %v4616_v42  ;;  %8519 = vmatmul.mubr.msk.f32.gmra.mrb[28].mxu1 %vm2829_vm1, %v5152_v9  ;;  %v4391_v21 = vmul.f32 %v4326_v40, %v15840_v60  ;;  %v3762_v48 = vrot.slane %v11906_v10, %v9735_v32  ;;  %v3954_v1 = vrot.slane %v11906_v10, %v9748_v24  ;;  %v15843_v42 = vld [vmem:[#allocation213_spill] sm:$0xff] }
 0x570   :  { %v3658_v38 = vmul.f32 %v3602_v56, %v15841_v44  ;;  %v5154_v26 = vsel %vm2796_vm0, %v12352_v23, %v5074_v28  ;;  %v5072_v39 = vpop.permute.xlu0 %5071  ;;  %v5078_v25 = vpop.permute.xlu1 %5077  ;;  %v4231_v63 = vadd.f32 %v4199_v30, %v4039_v61  ;;  %v4583_v4 = vmul.f32 %v4518_v57, %v15842_v54  ;;  %v15845_v44 = vld [vmem:[#allocation82_spill] sm:$0xff] }
 0x571   :  { %v4775_v9 = vmul.f32 %v4710_v46, %v15843_v42  ;;  %v5153_v40 = vsel %vm2796_vm0, %v12380_v18, %v5072_v39  ;;  %v4967_v56 = vmul.f32 %v4902_v0, %v15844_v33  ;;  %v3818_v60 = vmul.f32 %v3762_v48, %v15845_v44  ;;  %v15846_v0 = vld [vmem:[#allocation198_spill] sm:$0xff]  ;;  %v15850_v33 = vld [vmem:[#allocation80_spill] sm:$0xff] }
 0x572   :  { %v4146_v19 = vrot.slane %v11906_v10, %v9756_v13  ;;  %8521 = vmatprep.mubr.msk.f32.mxu1 %vm2829_vm1, %v5153_v40  ;;  %v5000_v23 = vadd.f32 %v4968_v5, %v4808_v36  ;;  %v4423_v28 = vadd.f32 %v4391_v21, %v4231_v63  ;;  %v4338_v61 = vrot.slane %v11906_v10, %v9767_v51  ;;  %v15848_v40 = vld [vmem:[#allocation53_spill] sm:$0xff] }
 0x573   :  { %v4530_v57 = vrot.slane %v11906_v10, %v9777_v47  ;;  %8522 = vmatmul.mubr.msk.f32.gmra.mrb[30].mxu1 %vm2829_vm1, %v5154_v26  ;;  %v5156_v18 = vsel %vm2796_vm0, %v12405_v55, %v5078_v25  ;;  %v3850_v46 = vadd.f32 %v3818_v60, %v3658_v38  ;;  %v4010_v30 = vmul.f32 %v3954_v1, %v15846_v0  ;;  %v15847_v38 = vld [vmem:[#allocation210_spill] sm:$0xff]  ;;  %v15849_v0 = vld [vmem:[#allocation189_spill] sm:$0xff] }
 0x574   :  { %v3598_v48 = vrot.slane %v11883_v37, %v9732_v31  ;;  %v5076_v39 = vpop.permute.xlu0 %5075  ;;  %v5082_v5 = vpop.permute.xlu1 %5081  ;;  %v4615_v21 = vadd.f32 %v4583_v4, %v4423_v28  ;;  %v4722_v36 = vrot.slane %v11906_v10, %v9884_v27  ;;  %v3758_v63 = vrot.slane %v11883_v37, %v9735_v32 }
 0x575   :  { %v3950_v26 = vrot.slane %v11883_v37, %v9748_v24  ;;  %v5155_v55 = vsel %vm2796_vm0, %v12428_v8, %v5076_v39  ;;  %v4042_v60 = vadd.f32 %v4010_v30, %v3850_v46  ;;  %v4202_v1 = vmul.f32 %v4146_v19, %v15847_v38  ;;  %v15851_v30 = vld [vmem:[#allocation224_spill] sm:$0xff] }
 0x576   :  { %v4142_v25 = vrot.slane %v11883_v37, %v9756_v13  ;;  %8524 = vmatprep.mubr.msk.f32.mxu1 %vm2829_vm1, %v5155_v55  ;;  %v4807_v4 = vadd.f32 %v4775_v9, %v4615_v21  ;;  %v4394_v28 = vmul.f32 %v4338_v61, %v15848_v40  ;;  %v3657_v44 = vmul.f32 %v3598_v48, %v15849_v0  ;;  %v15852_v55 = vld [vmem:[#allocation263_spill] sm:$0xff]  ;;  %v15853_v61 = vld [vmem:[#allocation196_spill] sm:$0xff] }
 0x577   :  { %v3817_v42 = vmul.f32 %v3758_v63, %v15850_v33  ;;  %8525 = vmatmul.mubr.msk.f32.gmra.mrb[32].mxu1 %vm2829_vm1, %v5156_v18  ;;  %v5158_v8 = vsel %vm2796_vm0, %v12463_v49, %v5082_v5  ;;  %v4234_v46 = vadd.f32 %v4202_v1, %v4042_v60  ;;  %v4586_v19 = vmul.f32 %v4530_v57, %v15851_v30  ;;  %v15854_v5 = vld [vmem:[#allocation204_spill] sm:$0xff] }
 0x578   :  { %v4914_v39 = vrot.slane %v11906_v10, %v9809_v15  ;;  %v5080_v38 = vpop.permute.xlu0 %5079  ;;  %v4778_v9 = vmul.f32 %v4722_v36, %v15852_v55  ;;  %v4009_v40 = vmul.f32 %v3950_v26, %v15853_v61  ;;  %v4334_v48 = vrot.slane %v11883_v37, %v9767_v51  ;;  %v5086_v63 = vpop.permute.xlu1 %5085  ;;  %v15864_v55 = vld [vmem:[#allocation223_spill] sm:$0xff] }
 0x579   :  { %v3849_v21 = vadd.f32 %v3817_v42, %v3657_v44  ;;  %v5157_v18 = vsel %vm2796_vm0, %v4997_v41, %v5080_v38  ;;  %v4999_v33 = vadd.f32 %v4967_v56, %v4807_v4  ;;  %v4426_v49 = vadd.f32 %v4394_v28, %v4234_v46  ;;  %v15855_v56 = vld [vmem:[#allocation267_spill] sm:$0xff] }
 0x57a   :  { %v4201_v60 = vmul.f32 %v4142_v25, %v15854_v5  ;;  %8527 = vmatprep.mubr.msk.f32.mxu1 %vm2829_vm1, %v5157_v18  ;;  %v4526_v10 = vrot.slane %v11883_v37, %v9777_v47  ;;  %v4718_v44 = vrot.slane %v11883_v37, %v9884_v27  ;;  %v4910_v42 = vrot.slane %v11883_v37, %v9809_v15  ;;  %v15857_v46 = vld [vmem:[#allocation35_spill] sm:$0xff] }
 0x57b   :  { %v4041_v57 = vadd.f32 %v4009_v40, %v3849_v21  ;;  %8528 = vmatmul.mubr.msk.f32.gmra.mrb[34].mxu1 %vm2829_vm1, %v5158_v8  ;;  %v4618_v41 = vadd.f32 %v4586_v19, %v4426_v49  ;;  %v3610_v36 = vrot.slane %v15855_v56, %v9732_v31  ;;  %v3770_v26 = vrot.slane %v15855_v56, %v9735_v32  ;;  %v15856_v40 = vld [vmem:[#allocation51_spill] sm:$0xff]  ;;  %v15858_v21 = vld [vmem:[#allocation37_spill] sm:$0xff] }
 0x57c   :  { %v3962_v38 = vrot.slane %v15855_v56, %v9748_v24  ;;  %v5160_v1 = vsel %vm2796_vm0, %v5000_v23, %v5086_v63  ;;  %v5084_v25 = vpop.permute.xlu0 %5083  ;;  %v4393_v28 = vmul.f32 %v4334_v48, %v15856_v40  ;;  %v4154_v37 = vrot.slane %v15855_v56, %v9756_v13  ;;  %v15859_v23 = vld [vmem:[#allocation236_spill] sm:$0xff] }
 0x57d   :  { %v4233_v4 = vadd.f32 %v4201_v60, %v4041_v57  ;;  %v5159_v8 = vsel %vm2796_vm0, %v4999_v33, %v5084_v25  ;;  %v3660_v19 = vmul.f32 %v3610_v36, %v15857_v46  ;;  %v3820_v18 = vmul.f32 %v3770_v26, %v15858_v21  ;;  %v15860_v57 = vld [vmem:[#allocation220_spill] sm:$0xff]  ;;  %v15862_v33 = vld [vmem:[#allocation233_spill] sm:$0xff]  ;;  %v15863_v46 = vld [vmem:[#allocation214_spill] sm:$0xff] }
 0x57e   :  { %v4346_v49 = vrot.slane %v15855_v56, %v9767_v51  ;;  %8530 = vmatprep.mubr.msk.f32.mxu1 %vm2829_vm1, %v5159_v8  ;;  %v4810_v5 = vadd.f32 %v4778_v9, %v4618_v41  ;;  %v4970_v63 = vmul.f32 %v4914_v39, %v15859_v23  ;;  %v4585_v48 = vmul.f32 %v4526_v10, %v15860_v57  ;;  %v15861_v40 = vld [vmem:[#allocation252_spill] sm:$0xff]  ;;  %v5090_v41 = vpop.permute.xlu1 %5089  ;;  %v15866_v8 = vld [vmem:[#allocation33_spill] sm:$0xff] }
 0x57f   :  { %v4425_v60 = vadd.f32 %v4393_v28, %v4233_v4  ;;  %8531 = vmatmul.mubr.msk.f32.gmra.mrb[36].mxu1 %vm2829_vm1, %v5160_v1  ;;  %v4777_v61 = vmul.f32 %v4718_v44, %v15861_v40  ;;  %v4969_v25 = vmul.f32 %v4910_v42, %v15862_v33  ;;  %v3852_v36 = vadd.f32 %v3820_v18, %v3660_v19  ;;  %v15865_v4 = vld [vmem:[#allocation228_spill] sm:$0xff]  ;;  %v15867_v19 = vld [vmem:[#allocation202_spill] sm:$0xff] }
 0x580   :  { %v4012_v26 = vmul.f32 %v3962_v38, %v15863_v46  ;;  %v4204_v30 = vmul.f32 %v4154_v37, %v15864_v55  ;;  %v3606_v9 = vrot.slane %v11927_v50, %v9732_v31  ;;  %v3766_v39 = vrot.slane %v11927_v50, %v9735_v32 }
 0x581   :  { %v4617_v21 = vadd.f32 %v4585_v48, %v4425_v60  ;;  %v4396_v1 = vmul.f32 %v4346_v49, %v15865_v4  ;;  %v4538_v44 = vrot.slane %v15855_v56, %v9777_v47  ;;  %v4730_v42 = vrot.slane %v15855_v56, %v9884_v27  ;;  %v5088_v60 = vpop.permute.xlu0 %5087 }
 0x582   :  { %v4044_v10 = vadd.f32 %v4012_v26, %v3852_v36  ;;  %v5002_v38 = vadd.f32 %v4970_v63, %v4810_v5  ;;  %v3659_v37 = vmul.f32 %v3606_v9, %v15866_v8  ;;  %v3819_v18 = vmul.f32 %v3766_v39, %v15867_v19  ;;  %v15868_v63 = vld [vmem:[#allocation116_spill] sm:$0xff]  ;;  %v15871_v8 = vld [vmem:[#allocation218_spill] sm:$0xff] }
 0x583   :  { %v4809_v28 = vadd.f32 %v4777_v61, %v4617_v21  ;;  %v4922_v55 = vrot.slane %v15855_v56, %v9809_v15  ;;  %v3958_v49 = vrot.slane %v11927_v50, %v9748_v24  ;;  %v4150_v36 = vrot.slane %v11927_v50, %v9756_v13 }
 0x584   :  { %v4236_v48 = vadd.f32 %v4204_v30, %v4044_v10  ;;  %v5162_v26 = vsel %vm2796_vm0, %v5002_v38, %v5090_v41  ;;  %v3851_v5 = vadd.f32 %v3819_v18, %v3659_v37  ;;  %v4342_v61 = vrot.slane %v11927_v50, %v9767_v51  ;;  %v15869_v30 = vld [vmem:[#allocation240_spill] sm:$0xff] }
 0x585   :  { %v5001_v4 = vadd.f32 %v4969_v25, %v4809_v28  ;;  %v4588_v9 = vmul.f32 %v4538_v44, %v15868_v63  ;;  %v4780_v39 = vmul.f32 %v4730_v42, %v15869_v30  ;;  %v15870_v10 = vld [vmem:[#allocation212_spill] sm:$0xff]  ;;  %v4203_v46 = vmul.f32 %v4150_v36, %v15871_v8  ;;  %v15878_v30 = vld [vmem:[#allocation227_spill] sm:$0xff] }
 0x586   :  { %v4428_v21 = vadd.f32 %v4396_v1, %v4236_v48  ;;  %v4011_v56 = vmul.f32 %v3958_v49, %v15870_v10  ;;  %v4534_v33 = vrot.slane %v11927_v50, %v9777_v47  ;;  %v4726_v25 = vrot.slane %v11927_v50, %v9884_v27  ;;  %v15874_v49 = vld [vmem:[#allocation86_spill] sm:$0xff] }
 0x587   :  { %v5161_v19 = vsel %vm2796_vm0, %v5001_v4, %v5088_v60  ;;  %v3618_v44 = vrot.slane %v12000_v29, %v9732_v31  ;;  %v3778_v42 = vrot.slane %v12000_v29, %v9735_v32  ;;  %v15872_v4 = vld [vmem:[#allocation226_spill] sm:$0xff]  ;;  %v4918_v28 = vrot.slane %v11927_v50, %v9809_v15 }
 0x588   :  { %8533 = vmatprep.mubr.msk.f32.mxu1 %vm2829_vm1, %v5161_v19  ;;  %v4620_v41 = vadd.f32 %v4588_v9, %v4428_v21  ;;  %v4043_v1 = vadd.f32 %v4011_v56, %v3851_v5  ;;  %v4395_v38 = vmul.f32 %v4342_v61, %v15872_v4  ;;  %v3970_v37 = vrot.slane %v12000_v29, %v9748_v24  ;;  %v15873_v60 = vld [vmem:[#allocation222_spill] sm:$0xff] }
 0x589   :  { %8534 = vmatmul.mubr.msk.f32.gmra.mrb[38].mxu1 %vm2829_vm1, %v5162_v26  ;;  %v4162_v19 = vrot.slane %v12000_v29, %v9756_v13  ;;  %v3662_v48 = vmul.f32 %v3618_v44, %v15873_v60  ;;  %v3822_v36 = vmul.f32 %v3778_v42, %v15874_v49  ;;  %v4354_v5 = vrot.slane %v12000_v29, %v9767_v51  ;;  %v15875_v21 = vld [vmem:[#allocation146_spill] sm:$0xff]  ;;  %v15880_v42 = vld [vmem:[#allocation235_spill] sm:$0xff] }
 0x58a   :  { %v4235_v18 = vadd.f32 %v4203_v46, %v4043_v1  ;;  %v4812_v26 = vadd.f32 %v4780_v39, %v4620_v41  ;;  %v4972_v61 = vmul.f32 %v4922_v55, %v15875_v21  ;;  %v15876_v9 = vld [vmem:[#allocation114_spill] sm:$0xff]  ;;  %v4014_v63 = vmul.f32 %v3970_v37, %v15878_v30  ;;  %v15879_v1 = vld [vmem:[#allocation145_spill] sm:$0xff] }
 0x58b   :  { %v4587_v56 = vmul.f32 %v4534_v33, %v15876_v9  ;;  %v15877_v50 = vld [vmem:[#allocation238_spill] sm:$0xff]  ;;  %v3854_v10 = vadd.f32 %v3822_v36, %v3662_v48  ;;  %v4546_v46 = vrot.slane %v12000_v29, %v9777_v47  ;;  %v4971_v44 = vmul.f32 %v4918_v28, %v15879_v1  ;;  %v5094_v48 = vpop.permute.xlu1 %5093  ;;  %v15883_v36 = vld [vmem:[#allocation216_spill] sm:$0xff]  ;;  %v15885_v9 = vld [vmem:[#allocation249_spill] sm:$0xff] }
 0x58c   :  { %v4779_v4 = vmul.f32 %v4726_v25, %v15877_v50  ;;  %v4427_v8 = vadd.f32 %v4395_v38, %v4235_v18  ;;  %v4206_v49 = vmul.f32 %v4162_v19, %v15880_v42  ;;  %v15881_v60 = vld [vmem:[#allocation258_spill] sm:$0xff]  ;;  %v15882_v25 = vld [vmem:[#allocation57_spill] sm:$0xff]  ;;  %v4738_v37 = vrot.slane %v12000_v29, %v9884_v27  ;;  %v15884_v28 = vld [vmem:[#allocation84_spill] sm:$0xff] }
 0x58d   :  { %v3614_v39 = vrot.slane %v15881_v60, %v9732_v31  ;;  %v3774_v55 = vrot.slane %v15881_v60, %v9735_v32  ;;  %v4046_v41 = vadd.f32 %v4014_v63, %v3854_v10  ;;  %v4398_v38 = vmul.f32 %v4354_v5, %v15882_v25  ;;  %v5092_v63 = vpop.permute.xlu0 %5091 }
 0x58e   :  { %v4619_v33 = vadd.f32 %v4587_v56, %v4427_v8  ;;  %v5004_v18 = vadd.f32 %v4972_v61, %v4812_v26  ;;  %v3966_v19 = vrot.slane %v15881_v60, %v9748_v24  ;;  %v4590_v21 = vmul.f32 %v4546_v46, %v15885_v9  ;;  %v15886_v26 = vld [vmem:[#allocation225_spill] sm:$0xff] }
 0x58f   :  { %v3661_v30 = vmul.f32 %v3614_v39, %v15883_v36  ;;  %v3821_v1 = vmul.f32 %v3774_v55, %v15884_v28  ;;  %v4238_v50 = vadd.f32 %v4206_v49, %v4046_v41  ;;  %v4158_v8 = vrot.slane %v15881_v60, %v9756_v13  ;;  %v15887_v49 = vld [vmem:[#allocation272_spill] sm:$0xff]  ;;  %v15888_v41 = vld [vmem:[#allocation231_spill] sm:$0xff] }
 0x590   :  { %v4811_v42 = vadd.f32 %v4779_v4, %v4619_v33  ;;  %v4930_v10 = vrot.slane %v12000_v29, %v9809_v15  ;;  %v4013_v61 = vmul.f32 %v3966_v19, %v15886_v26  ;;  %v4350_v56 = vrot.slane %v15881_v60, %v9767_v51  ;;  %v15889_v19 = vld [vmem:[#allocation201_spill] sm:$0xff] }
 0x591   :  { %v3853_v5 = vadd.f32 %v3821_v1, %v3661_v30  ;;  %v5164_v39 = vsel %vm2796_vm0, %v5004_v18, %v5094_v48  ;;  %v4430_v4 = vadd.f32 %v4398_v38, %v4238_v50  ;;  %v4782_v33 = vmul.f32 %v4738_v37, %v15887_v49  ;;  %v15896_v49 = vld [vmem:[#allocation270_spill] sm:$0xff] }
 0x592   :  { %v5003_v55 = vadd.f32 %v4971_v44, %v4811_v42  ;;  %v4205_v9 = vmul.f32 %v4158_v8, %v15888_v41  ;;  %v4542_v28 = vrot.slane %v15881_v60, %v9777_v47  ;;  %v4734_v29 = vrot.slane %v15881_v60, %v9884_v27  ;;  %v15890_v42 = vld [vmem:[#allocation55_spill] sm:$0xff]  ;;  %v15892_v8 = vld [vmem:[#allocation88_spill] sm:$0xff] }
 0x593   :  { %v4045_v46 = vadd.f32 %v4013_v61, %v3853_v5  ;;  %v4622_v1 = vadd.f32 %v4590_v21, %v4430_v4  ;;  %v3626_v26 = vrot.slane %v15889_v19, %v9732_v31  ;;  %v3786_v50 = vrot.slane %v15889_v19, %v9735_v32  ;;  %v15891_v21 = vld [vmem:[#allocation40_spill] sm:$0xff] }
 0x594   :  { %v5163_v30 = vsel %vm2796_vm0, %v5003_v55, %v5092_v63  ;;  %v4397_v38 = vmul.f32 %v4350_v56, %v15890_v42  ;;  %v4926_v37 = vrot.slane %v15881_v60, %v9809_v15  ;;  %v3978_v18 = vrot.slane %v15889_v19, %v9748_v24  ;;  %v15894_v56 = vld [vmem:[#allocation259_spill] sm:$0xff] }
 0x595   :  { %8536 = vmatprep.mubr.msk.f32.mxu1 %vm2829_vm1, %v5163_v30  ;;  %v4237_v44 = vadd.f32 %v4205_v9, %v4045_v46  ;;  %v3664_v48 = vmul.f32 %v3626_v26, %v15891_v21  ;;  %v3824_v63 = vmul.f32 %v3786_v50, %v15892_v8  ;;  %v4170_v5 = vrot.slane %v15889_v19, %v9756_v13  ;;  %v15893_v9 = vld [vmem:[#allocation245_spill] sm:$0xff]  ;;  %v15895_v60 = vld [vmem:[#allocation239_spill] sm:$0xff] }
 0x596   :  { %8537 = vmatmul.mubr.msk.f32.gmra.mrb[40].mxu1 %vm2829_vm1, %v5164_v39  ;;  %v4814_v61 = vadd.f32 %v4782_v33, %v4622_v1  ;;  %v4589_v4 = vmul.f32 %v4542_v28, %v15893_v9  ;;  %v4974_v46 = vmul.f32 %v4930_v10, %v15894_v56  ;;  %v4016_v42 = vmul.f32 %v3978_v18, %v15895_v60  ;;  %v15897_v21 = vld [vmem:[#allocation149_spill] sm:$0xff]  ;;  %v15899_v1 = vld [vmem:[#allocation248_spill] sm:$0xff]  ;;  %v5098_v18 = vpop.permute.xlu1 %5097  ;;  %v15920_v9 = vld [vmem:[#allocation271_spill] sm:$0xff] }
 0x597   :  { %v4429_v55 = vadd.f32 %v4397_v38, %v4237_v44  ;;  %v3856_v30 = vadd.f32 %v3824_v63, %v3664_v48  ;;  %v4362_v41 = vrot.slane %v15889_v19, %v9767_v51  ;;  %v4781_v26 = vmul.f32 %v4734_v29, %v15896_v49  ;;  %v15898_v8 = vld [vmem:[#allocation261_spill] sm:$0xff]  ;;  %v15900_v63 = vld [vmem:[#allocation39_spill] sm:$0xff] }
 0x598   :  { %v4973_v50 = vmul.f32 %v4926_v37, %v15897_v21  ;;  %v3622_v36 = vrot.slane %v15898_v8, %v9732_v31  ;;  %v4208_v44 = vmul.f32 %v4170_v5, %v15899_v1  ;;  %v4554_v28 = vrot.slane %v15889_v19, %v9777_v47  ;;  %v5096_v37 = vpop.permute.xlu0 %5095  ;;  %v15901_v21 = vld [vmem:[#allocation254_spill] sm:$0xff]  ;;  %v15913_v56 = vld [vmem:[#allocation253_spill] sm:$0xff] }
 0x599   :  { %v4621_v39 = vadd.f32 %v4589_v4, %v4429_v55  ;;  %v4048_v33 = vadd.f32 %v4016_v42, %v3856_v30  ;;  %v3782_v10 = vrot.slane %v15898_v8, %v9735_v32  ;;  %v5006_v38 = vadd.f32 %v4974_v46, %v4814_v61  ;;  %v15902_v30 = vld [vmem:[#allocation229_spill] sm:$0xff] }
 0x59a   :  { %v3663_v55 = vmul.f32 %v3622_v36, %v15900_v63  ;;  %v3974_v29 = vrot.slane %v15898_v8, %v9748_v24  ;;  %v4400_v42 = vmul.f32 %v4362_v41, %v15901_v21  ;;  %v4166_v1 = vrot.slane %v15898_v8, %v9756_v13  ;;  %v15903_v63 = vld [vmem:[#allocation237_spill] sm:$0xff]  ;;  %v15905_v21 = vld [vmem:[#allocation243_spill] sm:$0xff] }
 0x59b   :  { %v4813_v48 = vadd.f32 %v4781_v26, %v4621_v39  ;;  %v4240_v4 = vadd.f32 %v4208_v44, %v4048_v33  ;;  %v3823_v5 = vmul.f32 %v3782_v10, %v15902_v30  ;;  %v4746_v61 = vrot.slane %v15889_v19, %v9884_v27  ;;  %v15904_v44 = vld [vmem:[#allocation119_spill] sm:$0xff] }
 0x59c   :  { %v4358_v46 = vrot.slane %v15898_v8, %v9767_v51  ;;  %v5166_v36 = vsel %vm2796_vm0, %v5006_v38, %v5098_v18  ;;  %v4015_v33 = vmul.f32 %v3974_v29, %v15903_v63  ;;  %v4592_v10 = vmul.f32 %v4554_v28, %v15904_v44  ;;  %v15906_v38 = vld [vmem:[#allocation200_spill] sm:$0xff]  ;;  %v15907_v28 = vld [vmem:[#allocation251_spill] sm:$0xff] }
 0x59d   :  { %v5005_v49 = vadd.f32 %v4973_v50, %v4813_v48  ;;  %v4432_v39 = vadd.f32 %v4400_v42, %v4240_v4  ;;  %v3855_v26 = vadd.f32 %v3823_v5, %v3663_v55  ;;  %v4938_v30 = vrot.slane %v15889_v19, %v9809_v15  ;;  %v15908_v42 = vld [vmem:[#allocation247_spill] sm:$0xff] }
 0x59e   :  { %v4550_v50 = vrot.slane %v15898_v8, %v9777_v47  ;;  %v4207_v60 = vmul.f32 %v4166_v1, %v15905_v21  ;;  %v3634_v18 = vrot.slane %v15906_v38, %v9732_v31  ;;  %v3794_v55 = vrot.slane %v15906_v38, %v9735_v32  ;;  %v15909_v5 = vld [vmem:[#allocation91_spill] sm:$0xff] }
 0x59f   :  { %v5165_v41 = vsel %vm2796_vm0, %v5005_v49, %v5096_v37  ;;  %v4047_v48 = vadd.f32 %v4015_v33, %v3855_v26  ;;  %v4624_v49 = vadd.f32 %v4592_v10, %v4432_v39  ;;  %v4399_v29 = vmul.f32 %v4358_v46, %v15907_v28  ;;  %v15912_v10 = vld [vmem:[#allocation117_spill] sm:$0xff] }
 0x5a0   :  { %8539 = vmatprep.mubr.msk.f32.mxu1 %vm2829_vm1, %v5165_v41  ;;  %v4742_v19 = vrot.slane %v15898_v8, %v9884_v27  ;;  %v3986_v37 = vrot.slane %v15906_v38, %v9748_v24  ;;  %v3666_v1 = vmul.f32 %v3634_v18, %v15908_v42  ;;  %v3826_v26 = vmul.f32 %v3794_v55, %v15909_v5  ;;  %v15910_v41 = vld [vmem:[#allocation273_spill] sm:$0xff]  ;;  %v15914_v55 = vld [vmem:[#allocation275_spill] sm:$0xff]  ;;  %v15915_v42 = vld [vmem:[#allocation206_spill] sm:$0xff] }
 0x5a1   :  { %8540 = vmatmul.mubr.msk.f32.gmra.mrb[42].mxu1 %vm2829_vm1, %v5166_v36  ;;  %v4239_v4 = vadd.f32 %v4207_v60, %v4047_v48  ;;  %v4178_v33 = vrot.slane %v15906_v38, %v9756_v13  ;;  %v4784_v21 = vmul.f32 %v4746_v61, %v15910_v41  ;;  %v15911_v36 = vld [vmem:[#allocation153_spill] sm:$0xff]  ;;  %v4591_v46 = vmul.f32 %v4550_v50, %v15912_v10 }
 0x5a2   :  { %v4976_v39 = vmul.f32 %v4938_v30, %v15911_v36  ;;  %v4934_v28 = vrot.slane %v15898_v8, %v9809_v15  ;;  %v3858_v63 = vadd.f32 %v3826_v26, %v3666_v1  ;;  %v4018_v60 = vmul.f32 %v3986_v37, %v15913_v56  ;;  %v15916_v36 = vld [vmem:[#allocation256_spill] sm:$0xff]  ;;  %v15917_v37 = vld [vmem:[#allocation151_spill] sm:$0xff]  ;;  %v15918_v1 = vld [vmem:[#allocation241_spill] sm:$0xff] }
 0x5a3   :  { %v4431_v44 = vadd.f32 %v4399_v29, %v4239_v4  ;;  %v4370_v48 = vrot.slane %v15906_v38, %v9767_v51  ;;  %v4816_v18 = vadd.f32 %v4784_v21, %v4624_v49  ;;  %v4783_v5 = vmul.f32 %v4742_v19, %v15914_v55  ;;  %v15919_v21 = vld [vmem:[#allocation89_spill] sm:$0xff]  ;;  %v5102_v55 = vpop.permute.xlu1 %5101 }
 0x5a4   :  { %v3630_v61 = vrot.slane %v15915_v42, %v9732_v31  ;;  %v3790_v30 = vrot.slane %v15915_v42, %v9735_v32  ;;  %v4050_v10 = vadd.f32 %v4018_v60, %v3858_v63  ;;  %v4210_v8 = vmul.f32 %v4178_v33, %v15916_v36  ;;  %v15921_v36 = vld [vmem:[#allocation250_spill] sm:$0xff] }
 0x5a5   :  { %v4623_v50 = vadd.f32 %v4591_v46, %v4431_v44  ;;  %v4562_v29 = vrot.slane %v15906_v38, %v9777_v47  ;;  %v4975_v4 = vmul.f32 %v4934_v28, %v15917_v37  ;;  %v3982_v19 = vrot.slane %v15915_v42, %v9748_v24  ;;  %v5100_v46 = vpop.permute.xlu0 %5099 }
 0x5a6   :  { %v3665_v26 = vmul.f32 %v3630_v61, %v15918_v1  ;;  %v3825_v49 = vmul.f32 %v3790_v30, %v15919_v21  ;;  %v4242_v41 = vadd.f32 %v4210_v8, %v4050_v10  ;;  %v4402_v44 = vmul.f32 %v4370_v48, %v15920_v9  ;;  %v15922_v1 = vld [vmem:[#allocation276_spill] sm:$0xff] }
 0x5a7   :  { %v4815_v56 = vadd.f32 %v4783_v5, %v4623_v50  ;;  %v4174_v63 = vrot.slane %v15915_v42, %v9756_v13  ;;  %v5008_v33 = vadd.f32 %v4976_v39, %v4816_v18  ;;  %v4017_v28 = vmul.f32 %v3982_v19, %v15921_v36  ;;  %v15923_v50 = vld [vmem:[#allocation100_spill] sm:$0xff] }
 0x5a8   :  { %v3857_v60 = vadd.f32 %v3825_v49, %v3665_v26  ;;  %v4366_v61 = vrot.slane %v15915_v42, %v9767_v51  ;;  %v4434_v21 = vadd.f32 %v4402_v44, %v4242_v41  ;;  %v4594_v37 = vmul.f32 %v4562_v29, %v15922_v1  ;;  %v15924_v41 = vld [vmem:[#allocation266_spill] sm:$0xff] }
 0x5a9   :  { %v5007_v30 = vadd.f32 %v4975_v4, %v4815_v56  ;;  %v4754_v5 = vrot.slane %v15906_v38, %v9884_v27  ;;  %v5168_v10 = vsel %vm2796_vm0, %v5008_v33, %v5102_v55  ;;  %v4209_v8 = vmul.f32 %v4174_v63, %v15923_v50  ;;  %v15925_v55 = vld [vmem:[#allocation277_spill] sm:$0xff]  ;;  %v15926_v63 = vld [vmem:[#allocation274_spill] sm:$0xff] }
 0x5aa   :  { %v4049_v48 = vadd.f32 %v4017_v28, %v3857_v60  ;;  %v4558_v39 = vrot.slane %v15915_v42, %v9777_v47  ;;  %v4626_v26 = vadd.f32 %v4594_v37, %v4434_v21  ;;  %v4401_v4 = vmul.f32 %v4366_v61, %v15924_v41  ;;  %v15927_v60 = vld [vmem:[#allocation278_spill] sm:$0xff]  ;;  %v15928_v61 = vld [vmem:[#allocation269_spill] sm:$0xff] }
 0x5ab   :  { %v5167_v18 = vsel %vm2796_vm0, %v5007_v30, %v5100_v46  ;;  %v4750_v29 = vrot.slane %v15915_v42, %v9884_v27  ;;  %v4786_v49 = vmul.f32 %v4754_v5, %v15925_v55  ;;  %v4946_v19 = vrot.slane %v15906_v38, %v9809_v15  ;;  %v5104_v55 = vpop.permute.xlu0 %5103 }
 0x5ac   :  { %8542 = vmatprep.mubr.msk.f32.mxu1 %vm2829_vm1, %v5167_v18  ;;  %v4241_v56 = vadd.f32 %v4209_v8, %v4049_v48  ;;  %v4593_v33 = vmul.f32 %v4558_v39, %v15926_v63  ;;  %v4942_v37 = vrot.slane %v15915_v42, %v9809_v15  ;;  %v5106_v48 = vpop.permute.xlu1 %5105 }
 0x5ad   :  { %8543 = vmatmul.mubr.msk.f32.gmra.mrb[44].mxu1 %vm2829_vm1, %v5168_v10  ;;  %v4818_v21 = vadd.f32 %v4786_v49, %v4626_v26  ;;  %v4785_v28 = vmul.f32 %v4750_v29, %v15927_v60  ;;  %v4978_v30 = vmul.f32 %v4946_v19, %v15928_v61  ;;  %v15929_v10 = vld [vmem:[#allocation260_spill] sm:$0xff] }
 0x5ae   :  { %v4433_v44 = vadd.f32 %v4401_v4, %v4241_v56  ;;  %v4977_v18 = vmul.f32 %v4942_v37, %v15929_v10 }
 0x5af   :  { %v5010_v5 = vadd.f32 %v4978_v30, %v4818_v21 }
 0x5b0   :  { %v4625_v46 = vadd.f32 %v4593_v33, %v4433_v44 }
 0x5b1   :  { %v5170_v38 = vsel %vm2796_vm0, %v5010_v5, %v5106_v48 }
 0x5b2   :  { %v4817_v8 = vadd.f32 %v4785_v28, %v4625_v46 }
 0x5b4   :  { %v5009_v41 = vadd.f32 %v4977_v18, %v4817_v8 }
 0x5b6   :  { %v5169_v39 = vsel %vm2796_vm0, %v5009_v41, %v5104_v55 }
 0x5b7   :  { %8545 = vmatprep.mubr.msk.f32.mxu1 %vm2829_vm1, %v5169_v39 }
 0x5b8   :  { %8546 = vmatmul.mubr.msk.f32.gmra.mrb[46].mxu1 %vm2829_vm1, %v5170_v38 }
 0x626   :  { %v12793_v42 = vpop.f32.mrb[16].mxu1 }
 0x627   :  { %v5493_v26 = vsel %vm2829_vm1, %v12793_v42, 0.0  ;;  %v5563_v56 = vmul.f32 %v12793_v42, %v12793_v42  ;;  %v12799_v4 = vpop.f32.mrb[17].mxu1 }
 0x628   :  { %v5492_v29 = vsel %vm2829_vm1, %v12799_v4, 0.0  ;;  %v5562_v41 = vmul.f32 %v12799_v4, %v12799_v4 }
 0x629   :  { %v5595_v55 = vsel %vm2829_vm1, %v5563_v56, 0.0  ;;  %v5494_v49 = vadd.f32 %v5493_v26, %v5492_v29 }
 0x62a   :  { %v5594_v19 = vsel %vm2829_vm1, %v5562_v41, 0.0 }
 0x62b   :  { %v5596_v44 = vadd.f32 %v5595_v55, %v5594_v19 }
 0x62e   :  { %v12807_v33 = vpop.f32.mrb[18].mxu1 }
 0x62f   :  { %v12809_v37 = vpop.f32.mrb[19].mxu1  ;;  %v5565_v21 = vmul.f32 %v12807_v33, %v12807_v33  ;;  %v5497_v48 = vsel %vm2829_vm1, %v12807_v33, 0.0 }
 0x630   :  { %v5495_v46 = vsel %vm2829_vm1, %v12809_v37, 0.0  ;;  %v5564_v28 = vmul.f32 %v12809_v37, %v12809_v37 }
 0x631   :  { %v5496_v30 = vadd.f32 %v5495_v46, %v5494_v49  ;;  %v5599_v26 = vsel %vm2829_vm1, %v5565_v21, 0.0 }
 0x632   :  { %v5597_v8 = vsel %vm2829_vm1, %v5564_v28, 0.0  ;;  %v12820_v18 = vpop.f32.mrb[20].mxu1 }
 0x633   :  { %v5598_v5 = vadd.f32 %v5597_v8, %v5596_v44  ;;  %v12822_v38 = vpop.f32.mrb[21].mxu1  ;;  %v5498_v39 = vadd.f32 %v5497_v48, %v5496_v30  ;;  %v5567_v56 = vmul.f32 %v12820_v18, %v12820_v18  ;;  %v5501_v19 = vsel %vm2829_vm1, %v12820_v18, 0.0 }
 0x634   :  { %v5499_v29 = vsel %vm2829_vm1, %v12822_v38, 0.0  ;;  %v5566_v41 = vmul.f32 %v12822_v38, %v12822_v38 }
 0x635   :  { %v5500_v55 = vadd.f32 %v5499_v29, %v5498_v39  ;;  %v5600_v49 = vadd.f32 %v5599_v26, %v5598_v5  ;;  %v5603_v48 = vsel %vm2829_vm1, %v5567_v56, 0.0 }
 0x636   :  { %v5601_v44 = vsel %vm2829_vm1, %v5566_v41, 0.0  ;;  %v12834_v46 = vpop.f32.mrb[22].mxu1 }
 0x637   :  { %v5602_v28 = vadd.f32 %v5601_v44, %v5600_v49  ;;  %v12836_v21 = vpop.f32.mrb[23].mxu1  ;;  %v5502_v30 = vadd.f32 %v5501_v19, %v5500_v55  ;;  %v5569_v8 = vmul.f32 %v12834_v46, %v12834_v46  ;;  %v5505_v41 = vsel %vm2829_vm1, %v12834_v46, 0.0 }
 0x638   :  { %v5503_v39 = vsel %vm2829_vm1, %v12836_v21, 0.0  ;;  %v5568_v5 = vmul.f32 %v12836_v21, %v12836_v21 }
 0x639   :  { %v5504_v26 = vadd.f32 %v5503_v39, %v5502_v30  ;;  %v5604_v29 = vadd.f32 %v5603_v48, %v5602_v28  ;;  %v5607_v10 = vsel %vm2829_vm1, %v5569_v8, 0.0 }
 0x63a   :  { %v5605_v49 = vsel %vm2829_vm1, %v5568_v5, 0.0  ;;  %v12848_v44 = vpop.f32.mrb[24].mxu1 }
 0x63b   :  { %v5606_v55 = vadd.f32 %v5605_v49, %v5604_v29  ;;  %v12850_v56 = vpop.f32.mrb[25].mxu1  ;;  %v5506_v19 = vadd.f32 %v5505_v41, %v5504_v26  ;;  %v5571_v61 = vmul.f32 %v12848_v44, %v12848_v44  ;;  %v5509_v5 = vsel %vm2829_vm1, %v12848_v44, 0.0 }
 0x63c   :  { %v5507_v30 = vsel %vm2829_vm1, %v12850_v56, 0.0  ;;  %v5570_v28 = vmul.f32 %v12850_v56, %v12850_v56 }
 0x63d   :  { %v5508_v48 = vadd.f32 %v5507_v30, %v5506_v19  ;;  %v5608_v39 = vadd.f32 %v5607_v10, %v5606_v55  ;;  %v5611_v60 = vsel %vm2829_vm1, %v5571_v61, 0.0 }
 0x63e   :  { %v5609_v29 = vsel %vm2829_vm1, %v5570_v28, 0.0  ;;  %v12862_v49 = vpop.f32.mrb[26].mxu1 }
 0x63f   :  { %v5610_v26 = vadd.f32 %v5609_v29, %v5608_v39  ;;  %v12864_v8 = vpop.f32.mrb[27].mxu1  ;;  %v5510_v41 = vadd.f32 %v5509_v5, %v5508_v48  ;;  %v5573_v63 = vmul.f32 %v12862_v49, %v12862_v49  ;;  %v5513_v28 = vsel %vm2829_vm1, %v12862_v49, 0.0 }
 0x640   :  { %v5511_v19 = vsel %vm2829_vm1, %v12864_v8, 0.0  ;;  %v5572_v10 = vmul.f32 %v12864_v8, %v12864_v8 }
 0x641   :  { %v5512_v55 = vadd.f32 %v5511_v19, %v5510_v41  ;;  %v5612_v30 = vadd.f32 %v5611_v60, %v5610_v26  ;;  %v5615_v50 = vsel %vm2829_vm1, %v5573_v63, 0.0 }
 0x642   :  { %v5613_v39 = vsel %vm2829_vm1, %v5572_v10, 0.0  ;;  %v12876_v29 = vpop.f32.mrb[28].mxu1 }
 0x643   :  { %v5614_v48 = vadd.f32 %v5613_v39, %v5612_v30  ;;  %v12878_v61 = vpop.f32.mrb[29].mxu1  ;;  %v5514_v5 = vadd.f32 %v5513_v28, %v5512_v55  ;;  %v5575_v1 = vmul.f32 %v12876_v29, %v12876_v29  ;;  %v5517_v10 = vsel %vm2829_vm1, %v12876_v29, 0.0 }
 0x644   :  { %v5515_v41 = vsel %vm2829_vm1, %v12878_v61, 0.0  ;;  %v5574_v60 = vmul.f32 %v12878_v61, %v12878_v61 }
 0x645   :  { %v5516_v26 = vadd.f32 %v5515_v41, %v5514_v5  ;;  %v5616_v19 = vadd.f32 %v5615_v50, %v5614_v48  ;;  %v5619_v36 = vsel %vm2829_vm1, %v5575_v1, 0.0 }
 0x646   :  { %v5617_v30 = vsel %vm2829_vm1, %v5574_v60, 0.0  ;;  %v12890_v39 = vpop.f32.mrb[30].mxu1 }
 0x647   :  { %v5618_v55 = vadd.f32 %v5617_v30, %v5616_v19  ;;  %v12892_v63 = vpop.f32.mrb[31].mxu1  ;;  %v5518_v28 = vadd.f32 %v5517_v10, %v5516_v26  ;;  %v5577_v9 = vmul.f32 %v12890_v39, %v12890_v39  ;;  %v5521_v60 = vsel %vm2829_vm1, %v12890_v39, 0.0 }
 0x648   :  { %v5519_v5 = vsel %vm2829_vm1, %v12892_v63, 0.0  ;;  %v5576_v50 = vmul.f32 %v12892_v63, %v12892_v63 }
 0x649   :  { %v5520_v48 = vadd.f32 %v5519_v5, %v5518_v28  ;;  %v5620_v41 = vadd.f32 %v5619_v36, %v5618_v55  ;;  %v5623_v25 = vsel %vm2829_vm1, %v5577_v9, 0.0 }
 0x64a   :  { %v5621_v19 = vsel %vm2829_vm1, %v5576_v50, 0.0  ;;  %v12904_v30 = vpop.f32.mrb[32].mxu1 }
 0x64b   :  { %v5622_v26 = vadd.f32 %v5621_v19, %v5620_v41  ;;  %v12906_v1 = vpop.f32.mrb[33].mxu1  ;;  %v5522_v10 = vadd.f32 %v5521_v60, %v5520_v48  ;;  %v5579_v40 = vmul.f32 %v12904_v30, %v12904_v30  ;;  %v5525_v50 = vsel %vm2829_vm1, %v12904_v30, 0.0 }
 0x64c   :  { %v5523_v28 = vsel %vm2829_vm1, %v12906_v1, 0.0  ;;  %v5578_v36 = vmul.f32 %v12906_v1, %v12906_v1 }
 0x64d   :  { %v5524_v55 = vadd.f32 %v5523_v28, %v5522_v10  ;;  %v5624_v5 = vadd.f32 %v5623_v25, %v5622_v26  ;;  %v5627_v57 = vsel %vm2829_vm1, %v5579_v40, 0.0 }
 0x64e   :  { %v5625_v41 = vsel %vm2829_vm1, %v5578_v36, 0.0  ;;  %v12918_v19 = vpop.f32.mrb[34].mxu1 }
 0x64f   :  { %v5626_v48 = vadd.f32 %v5625_v41, %v5624_v5  ;;  %v12920_v9 = vpop.f32.mrb[35].mxu1  ;;  %v5526_v60 = vadd.f32 %v5525_v50, %v5524_v55  ;;  %v5581_v23 = vmul.f32 %v12918_v19, %v12918_v19  ;;  %v5529_v36 = vsel %vm2829_vm1, %v12918_v19, 0.0 }
 0x650   :  { %v5527_v10 = vsel %vm2829_vm1, %v12920_v9, 0.0  ;;  %v5580_v25 = vmul.f32 %v12920_v9, %v12920_v9 }
 0x651   :  { %v5528_v26 = vadd.f32 %v5527_v10, %v5526_v60  ;;  %v5628_v28 = vadd.f32 %v5627_v57, %v5626_v48  ;;  %v5631_v0 = vsel %vm2829_vm1, %v5581_v23, 0.0 }
 0x652   :  { %v5629_v5 = vsel %vm2829_vm1, %v5580_v25, 0.0  ;;  %v12932_v41 = vpop.f32.mrb[36].mxu1 }
 0x653   :  { %v5630_v55 = vadd.f32 %v5629_v5, %v5628_v28  ;;  %v12934_v40 = vpop.f32.mrb[37].mxu1  ;;  %v5530_v50 = vadd.f32 %v5529_v36, %v5528_v26  ;;  %v5583_v54 = vmul.f32 %v12932_v41, %v12932_v41  ;;  %v5533_v25 = vsel %vm2829_vm1, %v12932_v41, 0.0 }
 0x654   :  { %v5531_v60 = vsel %vm2829_vm1, %v12934_v40, 0.0  ;;  %v5582_v57 = vmul.f32 %v12934_v40, %v12934_v40 }
 0x655   :  { %v5532_v48 = vadd.f32 %v5531_v60, %v5530_v50  ;;  %v5632_v10 = vadd.f32 %v5631_v0, %v5630_v55  ;;  %v5635_v23 = vsel %vm2829_vm1, %v5583_v54, 0.0 }
 0x656   :  { %v5633_v28 = vsel %vm2829_vm1, %v5582_v57, 0.0 }
 0x657   :  { %v5634_v5 = vadd.f32 %v5633_v28, %v5632_v10  ;;  %v5534_v26 = vadd.f32 %v5533_v25, %v5532_v48 }
 0x659   :  { %v5636_v36 = vadd.f32 %v5635_v23, %v5634_v5 }
 0x65c   :  { %v12947_v52 = vpop.f32.mrb[38].mxu1 }
 0x65d   :  { %v12949_v3 = vpop.f32.mrb[39].mxu1  ;;  %v5585_v12 = vmul.f32 %v12947_v52, %v12947_v52  ;;  %v5537_v60 = vsel %vm2829_vm1, %v12947_v52, 0.0 }
 0x65e   :  { %v5535_v0 = vsel %vm2829_vm1, %v12949_v3, 0.0  ;;  %v5584_v55 = vmul.f32 %v12949_v3, %v12949_v3 }
 0x65f   :  { %v5536_v50 = vadd.f32 %v5535_v0, %v5534_v26  ;;  %v5639_v10 = vsel %vm2829_vm1, %v5585_v12, 0.0 }
 0x660   :  { %v5637_v54 = vsel %vm2829_vm1, %v5584_v55, 0.0 }
 0x661   :  { %v5638_v57 = vadd.f32 %v5637_v54, %v5636_v36  ;;  %v5538_v48 = vadd.f32 %v5537_v60, %v5536_v50 }
 0x663   :  { %v5640_v25 = vadd.f32 %v5639_v10, %v5638_v57 }
 0x669   :  { %v12961_v28 = vpop.f32.mrb[40].mxu1 }
 0x66a   :  { %v12963_v5 = vpop.f32.mrb[41].mxu1  ;;  %v5587_v23 = vmul.f32 %v12961_v28, %v12961_v28  ;;  %v5541_v36 = vsel %vm2829_vm1, %v12961_v28, 0.0 }
 0x66b   :  { %v5539_v26 = vsel %vm2829_vm1, %v12963_v5, 0.0  ;;  %v5586_v0 = vmul.f32 %v12963_v5, %v12963_v5 }
 0x66c   :  { %v5540_v34 = vadd.f32 %v5539_v26, %v5538_v48  ;;  %v5643_v60 = vsel %vm2829_vm1, %v5587_v23, 0.0 }
 0x66d   :  { %v5641_v12 = vsel %vm2829_vm1, %v5586_v0, 0.0 }
 0x66e   :  { %v5642_v55 = vadd.f32 %v5641_v12, %v5640_v25  ;;  %v5542_v50 = vadd.f32 %v5541_v36, %v5540_v34 }
 0x670   :  { %v5644_v54 = vadd.f32 %v5643_v60, %v5642_v55 }
 0x674   :  { %v12975_v57 = vpop.f32.mrb[42].mxu1 }
 0x675   :  { %v12977_v10 = vpop.f32.mrb[43].mxu1  ;;  %v5589_v22 = vmul.f32 %v12975_v57, %v12975_v57  ;;  %v5545_v34 = vsel %vm2829_vm1, %v12975_v57, 0.0 }
 0x676   :  { %v5543_v48 = vsel %vm2829_vm1, %v12977_v10, 0.0  ;;  %v5588_v26 = vmul.f32 %v12977_v10, %v12977_v10 }
 0x677   :  { %v5544_v53 = vadd.f32 %v5543_v48, %v5542_v50  ;;  %v5647_v36 = vsel %vm2829_vm1, %v5589_v22, 0.0 }
 0x678   :  { %v5645_v25 = vsel %vm2829_vm1, %v5588_v26, 0.0 }
 0x679   :  { %v5646_v23 = vadd.f32 %v5645_v25, %v5644_v54  ;;  %v5546_v0 = vadd.f32 %v5545_v34, %v5544_v53 }
 0x67b   :  { %v5648_v12 = vadd.f32 %v5647_v36, %v5646_v23  ;;  %v5841_v23 = vld [vmem:[%s14698_s8] sm:$0xff]  ;;  %v5842_v36 = vld [vmem:[%s14698_s8 + $0x8] sm:$0xff] }
 0x680   :  { %v12989_v55 = vpop.f32.mrb[44].mxu1 }
 0x681   :  { %v12991_v60 = vpop.f32.mrb[45].mxu1  ;;  %v5591_v2 = vmul.f32 %v12989_v55, %v12989_v55  ;;  %v5549_v53 = vsel %vm2829_vm1, %v12989_v55, 0.0 }
 0x682   :  { %v5547_v50 = vsel %vm2829_vm1, %v12991_v60, 0.0  ;;  %v5590_v48 = vmul.f32 %v12991_v60, %v12991_v60 }
 0x683   :  { %v5548_v17 = vadd.f32 %v5547_v50, %v5546_v0  ;;  %v5651_v34 = vsel %vm2829_vm1, %v5591_v2, 0.0  ;;  %v5843_v0 = vld [vmem:[%s14698_s8 + $0x10] sm:$0xff]  ;;  %v8628_v50 = vpack.c.bf16 %v5842_v36, %v5841_v23  ;;  %v5845_v2 = vld [vmem:[%s14698_s8 + $0x20] sm:$0xff] }
 0x684   :  { %v5649_v22 = vsel %vm2829_vm1, %v5590_v48, 0.0  ;;  %v5846_v48 = vld [vmem:[%s14698_s8 + $0x28] sm:$0xff] }
 0x685   :  { %v5650_v54 = vadd.f32 %v5649_v22, %v5648_v12  ;;  %v5550_v26 = vadd.f32 %v5549_v53, %v5548_v17  ;;  %v5844_v17 = vld [vmem:[%s14698_s8 + $0x18] sm:$0xff]  ;;  %8629 = vmatprep.subr.bf16.mxu0 %v8628_v50 }
 0x686   :  { %v8632_v12 = vpack.c.bf16 %v5844_v17, %v5843_v0  ;;  %8631 = vmatpush3.bf16.msra.mxu0 %v8628_v50  ;;  %v5847_v0 = vld [vmem:[%s14698_s8 + $0x30] sm:$0xff]  ;;  %v5848_v50 = vld [vmem:[%s14698_s8 + $0x38] sm:$0xff] }
 0x687   :  { %v5652_v25 = vadd.f32 %v5651_v34, %v5650_v54  ;;  %v8636_v54 = vpack.c.bf16 %v5846_v48, %v5845_v2  ;;  %v8640_v59 = vpack.c.bf16 %v5848_v50, %v5847_v0 }
 0x688   :  { %8633 = vmatprep.subr.bf16.mxu0 %v8632_v12 }
 0x68a   :  { %8635 = vmatpush3.bf16.msra.mxu0 %v8632_v12 }
 0x68b   :  { %v13021_v53 = vpop.f32.mrb[46].mxu1  ;;  %8637 = vmatprep.subr.bf16.mxu0 %v8636_v54 }
 0x68c   :  { %v13023_v22 = vpop.f32.mrb[47].mxu1  ;;  %v5593_v34 = vmul.f32 %v13021_v53, %v13021_v53  ;;  %v5553_v2 = vsel %vm2829_vm1, %v13021_v53, 0.0 }
 0x68d   :  { %v5551_v23 = vsel %vm2829_vm1, %v13023_v22, 0.0  ;;  %v5592_v36 = vmul.f32 %v13023_v22, %v13023_v22 }
 0x68e   :  { %v5552_v17 = vadd.f32 %v5551_v23, %v5550_v26  ;;  %v5655_v62 = vsel %vm2829_vm1, %v5593_v34, 0.0  ;;  %8639 = vmatpush3.bf16.msra.mxu0 %v8636_v54 }
 0x68f   :  { %v5653_v48 = vsel %vm2829_vm1, %v5592_v36, 0.0  ;;  %8641 = vmatprep.subr.bf16.mxu0 %v8640_v59 }
 0x690   :  { %v5554_v35 = vadd.f32 %v5553_v2, %v5552_v17  ;;  %v5654_v7 = vadd.f32 %v5653_v48, %v5652_v25 }
 0x692   :  { %v5555_v11 = vrot.slane %v5554_v35, 4  ;;  %v5656_v14 = vadd.f32 %v5655_v62, %v5654_v7  ;;  %8643 = vmatpush3.bf16.msra.mxu0 %v8640_v59 }
 0x694   :  { %v5556_v6 = vadd.f32 %v5555_v11, %v5554_v35  ;;  %v5657_v45 = vrot.slane %v5656_v14, 4 }
 0x696   :  { %v5557_v16 = vrot.slane %v5556_v6, 2  ;;  %v5658_v26 = vadd.f32 %v5657_v45, %v5656_v14 }
 0x698   :  { %v5558_v23 = vadd.f32 %v5557_v16, %v5556_v6  ;;  %v5659_v43 = vrot.slane %v5658_v26, 2 }
 0x69a   :  { %v5559_v58 = vrot.slane %v5558_v23, 1  ;;  %v5660_v36 = vadd.f32 %v5659_v43, %v5658_v26 }
 0x69c   :  { %v5560_v12 = vadd.f32 %v5559_v58, %v5558_v23  ;;  %v5661_v17 = vrot.slane %v5660_v36, 1 }
 0x69e   :  { %v13041_v25 = vmul.f32 0.00390625, %v5560_v12  ;;  %v5662_v0 = vadd.f32 %v5661_v17, %v5660_v36 }
 0x6a0   :  { %v5663_v50 = vmul.f32 0.00390625, %v5662_v0  ;;  %v5664_v62 = vmul.f32 %v13041_v25, %v13041_v25  ;;  %v5697_v11 = vsub.f32 %v13023_v22, %v13041_v25  ;;  %v5667_v45 = vsub.f32 %v12799_v4, %v13041_v25 }
 0x6a1   :  { %v5668_v6 = vsub.f32 %v12793_v42, %v13041_v25  ;;  %v5669_v58 = vsub.f32 %v12809_v37, %v13041_v25  ;;  %v5670_v43 = vsub.f32 %v12807_v33, %v13041_v25  ;;  %v5671_v16 = vsub.f32 %v12822_v38, %v13041_v25 }
 0x6a2   :  { %v5665_v14 = vsub.f32 %v5663_v50, %v5664_v62  ;;  %v5672_v59 = vsub.f32 %v12820_v18, %v13041_v25  ;;  %v5673_v7 = vsub.f32 %v12836_v21, %v13041_v25  ;;  %v5674_v35 = vsub.f32 %v12834_v46, %v13041_v25 }
 0x6a3   :  { %v5675_v42 = vsub.f32 %v12850_v56, %v13041_v25  ;;  %v5676_v4 = vsub.f32 %v12848_v44, %v13041_v25  ;;  %v5677_v33 = vsub.f32 %v12864_v8, %v13041_v25  ;;  %v5678_v37 = vsub.f32 %v12862_v49, %v13041_v25 }
 0x6a4   :  { %v5666_v38 = vmax.f32 %v5665_v14, 0.0  ;;  %v5679_v18 = vsub.f32 %v12878_v61, %v13041_v25  ;;  %v5680_v21 = vsub.f32 %v12876_v29, %v13041_v25  ;;  %v5681_v46 = vsub.f32 %v12892_v63, %v13041_v25 }
 0x6a5   :  { %v5682_v56 = vsub.f32 %v12890_v39, %v13041_v25  ;;  %v5683_v44 = vsub.f32 %v12906_v1, %v13041_v25  ;;  %v5684_v8 = vsub.f32 %v12904_v30, %v13041_v25  ;;  %v5685_v49 = vsub.f32 %v12920_v9, %v13041_v25 }
 0x6a6   :  { %v5699_v22 = vadd.f32 1e-05, %v5666_v38  ;;  %v5686_v61 = vsub.f32 %v12918_v19, %v13041_v25  ;;  %v5687_v29 = vsub.f32 %v12934_v40, %v13041_v25  ;;  %v5688_v63 = vsub.f32 %v12932_v41, %v13041_v25 }
 0x6a7   :  { %v5689_v39 = vsub.f32 %v12949_v3, %v13041_v25  ;;  %v5690_v1 = vsub.f32 %v12947_v52, %v13041_v25  ;;  %v5691_v30 = vsub.f32 %v12963_v5, %v13041_v25  ;;  %v5692_v9 = vsub.f32 %v12961_v28, %v13041_v25  ;;  %v13112_v28 = vld [vmem:[%s14699_s6] ss:$0 sm:$0xff]  ;;  %s8858_s6 = smov 32  }
 0x6a8   :  { %8817 = vrsqrt.f32 %v5699_v22  ;;  %v5693_v19 = vsub.f32 %v12977_v10, %v13041_v25  ;;  %v5694_v40 = vsub.f32 %v12975_v57, %v13041_v25  ;;  %v5695_v41 = vsub.f32 %v12991_v60, %v13041_v25  ;;  %v13117_v57 = vld [vmem:[%s14700_s7] ss:$0 sm:$0xff] }
 0x6a9   :  { %v5696_v3 = vsub.f32 %v12989_v55, %v13041_v25  ;;  %v5698_v52 = vsub.f32 %v13021_v53, %v13041_v25 }
 0x6b2   :  { %v8818_v5 = vpop.eup %8817 }
 0x6b3   :  { %v5731_v54 = vmul.f32 %v8818_v5, %v5697_v11  ;;  %v5702_v10 = vmul.f32 %v8818_v5, %v5668_v6  ;;  %v5701_v34 = vmul.f32 %v8818_v5, %v5667_v45  ;;  %v5703_v2 = vmul.f32 %v8818_v5, %v5669_v58 }
 0x6b4   :  { %v5704_v60 = vmul.f32 %v8818_v5, %v5670_v43  ;;  %v5705_v55 = vmul.f32 %v8818_v5, %v5671_v16  ;;  %v5706_v48 = vmul.f32 %v8818_v5, %v5672_v59  ;;  %v5707_v26 = vmul.f32 %v8818_v5, %v5673_v7 }
 0x6b5   :  { %v5769_v53 = vmul.f32 %v13112_v28, %v5731_v54  ;;  %v5740_v23 = vmul.f32 %v13112_v28, %v5702_v10  ;;  %v5708_v36 = vmul.f32 %v8818_v5, %v5674_v35  ;;  %v5709_v12 = vmul.f32 %v8818_v5, %v5675_v42 }
 0x6b6   :  { %v5710_v17 = vmul.f32 %v8818_v5, %v5676_v4  ;;  %v5711_v25 = vmul.f32 %v8818_v5, %v5677_v33  ;;  %v5712_v0 = vmul.f32 %v8818_v5, %v5678_v37  ;;  %v5713_v50 = vmul.f32 %v8818_v5, %v5679_v18 }
 0x6b7   :  { %v13122_v62 = vadd.f32 %v13117_v57, %v5769_v53  ;;  %v5778_v11 = vadd.f32 %v13117_v57, %v5740_v23  ;;  %v5714_v45 = vmul.f32 %v8818_v5, %v5680_v21  ;;  %v5715_v6 = vmul.f32 %v8818_v5, %v5681_v46 }
 0x6b8   :  { %v5716_v58 = vmul.f32 %v8818_v5, %v5682_v56  ;;  %v5717_v43 = vmul.f32 %v8818_v5, %v5683_v44  ;;  %v5718_v16 = vmul.f32 %v8818_v5, %v5684_v8  ;;  %v5719_v14 = vmul.f32 %v8818_v5, %v5685_v49 }
 0x6b9   :  { %v13125_v59 = vmax.f32 %v5778_v11, 0.0  ;;  %v5720_v7 = vmul.f32 %v8818_v5, %v5686_v61  ;;  %v5721_v35 = vmul.f32 %v8818_v5, %v5687_v29  ;;  %v5722_v42 = vmul.f32 %v8818_v5, %v5688_v63 }
 0x6ba   :  { %v5723_v4 = vmul.f32 %v8818_v5, %v5689_v39  ;;  %v5724_v33 = vmul.f32 %v8818_v5, %v5690_v1  ;;  %v5725_v37 = vmul.f32 %v8818_v5, %v5691_v30  ;;  %v5726_v38 = vmul.f32 %v8818_v5, %v5692_v9 }
 0x6bb   :  { %7389 = vrot.lane.b32.xlu1 %v13125_v59, %s8858_s6  ;;  %v5727_v18 = vmul.f32 %v8818_v5, %v5693_v19  ;;  %v5728_v21 = vmul.f32 %v8818_v5, %v5694_v40  ;;  %v5729_v46 = vmul.f32 %v8818_v5, %v5695_v41  ;;  %v5730_v56 = vmul.f32 %v8818_v5, %v5696_v3 }
 0x6bc   :  { %v5732_v44 = vmul.f32 %v8818_v5, %v5698_v52  ;;  %v5739_v8 = vmul.f32 %v13112_v28, %v5701_v34  ;;  %v5742_v61 = vmul.f32 %v13112_v28, %v5704_v60  ;;  %v5741_v29 = vmul.f32 %v13112_v28, %v5703_v2 }
 0x6bd   :  { %v5743_v63 = vmul.f32 %v13112_v28, %v5705_v55  ;;  %v5744_v39 = vmul.f32 %v13112_v28, %v5706_v48  ;;  %v5745_v1 = vmul.f32 %v13112_v28, %v5707_v26  ;;  %v5746_v30 = vmul.f32 %v13112_v28, %v5708_v36 }
 0x6be   :  { %v5777_v49 = vadd.f32 %v13117_v57, %v5739_v8  ;;  %v5747_v9 = vmul.f32 %v13112_v28, %v5709_v12  ;;  %v5748_v19 = vmul.f32 %v13112_v28, %v5710_v17  ;;  %v5749_v40 = vmul.f32 %v13112_v28, %v5711_v25 }
 0x6bf   :  { %v5750_v41 = vmul.f32 %v13112_v28, %v5712_v0  ;;  %v5765_v3 = vmul.f32 %v13112_v28, %v5727_v18  ;;  %v5767_v52 = vmul.f32 %v13112_v28, %v5729_v46  ;;  %v5751_v5 = vmul.f32 %v13112_v28, %v5713_v50 }
 0x6c0   :  { %v13131_v22 = vmax.f32 %v5777_v49, 0.0  ;;  %v5768_v54 = vmul.f32 %v13112_v28, %v5730_v56  ;;  %v5770_v10 = vmul.f32 %v13112_v28, %v5732_v44  ;;  %v5780_v34 = vadd.f32 %v13117_v57, %v5742_v61 }
 0x6c1   :  { %v5752_v2 = vmul.f32 %v13112_v28, %v5714_v45  ;;  %v5753_v60 = vmul.f32 %v13112_v28, %v5715_v6  ;;  %v5754_v55 = vmul.f32 %v13112_v28, %v5716_v58  ;;  %v5755_v48 = vmul.f32 %v13112_v28, %v5717_v43 }
 0x6c2   :  { %7387 = vrot.lane.b32.xlu0 %v13131_v22, %s8858_s6  ;;  %v5756_v26 = vmul.f32 %v13112_v28, %v5718_v16  ;;  %v5757_v53 = vmul.f32 %v13112_v28, %v5719_v14  ;;  %v5758_v23 = vmul.f32 %v13112_v28, %v5720_v7  ;;  %v13158_v36 = vmax.f32 %v5780_v34, 0.0 }
 0x6c3   :  { %v5759_v12 = vmul.f32 %v13112_v28, %v5721_v35  ;;  %v5760_v17 = vmul.f32 %v13112_v28, %v5722_v42  ;;  %v5761_v25 = vmul.f32 %v13112_v28, %v5723_v4  ;;  %v5762_v0 = vmul.f32 %v13112_v28, %v5724_v33 }
 0x6c4   :  { %v5763_v50 = vmul.f32 %v13112_v28, %v5725_v37  ;;  %v5764_v11 = vmul.f32 %v13112_v28, %v5726_v38  ;;  %7393 = vrot.lane.b32.xlu1 %v13158_v36, %s8858_s6  ;;  %v5779_v45 = vadd.f32 %v13117_v57, %v5741_v29  ;;  %v5782_v6 = vadd.f32 %v13117_v57, %v5744_v39 }
 0x6c5   :  { %v5766_v58 = vmul.f32 %v13112_v28, %v5728_v21  ;;  %v5781_v43 = vadd.f32 %v13117_v57, %v5743_v63  ;;  %v5783_v16 = vadd.f32 %v13117_v57, %v5745_v1  ;;  %v5784_v14 = vadd.f32 %v13117_v57, %v5746_v30 }
 0x6c6   :  { %v5785_v7 = vadd.f32 %v13117_v57, %v5747_v9  ;;  %v5786_v35 = vadd.f32 %v13117_v57, %v5748_v19  ;;  %v5787_v42 = vadd.f32 %v13117_v57, %v5749_v40  ;;  %v13178_v4 = vadd.f32 %v13117_v57, %v5765_v3 }
 0x6c7   :  { %v5788_v33 = vadd.f32 %v13117_v57, %v5750_v41  ;;  %v13182_v37 = vadd.f32 %v13117_v57, %v5767_v52  ;;  %v13185_v28 = vadd.f32 %v13117_v57, %v5768_v54  ;;  %v13188_v38 = vadd.f32 %v13117_v57, %v5770_v10 }
 0x6c8   :  { %v5789_v18 = vadd.f32 %v13117_v57, %v5751_v5  ;;  %v5790_v21 = vadd.f32 %v13117_v57, %v5752_v2  ;;  %v13192_v46 = vmax.f32 %v5779_v45, 0.0  ;;  %v13194_v56 = vmax.f32 %v5782_v6, 0.0  ;;  %v15934_v45 = vld [vmem:[#allocation11_spill] sm:$0xff] }
 0x6c9   :  { %v5791_v44 = vadd.f32 %v13117_v57, %v5753_v60  ;;  %v5792_v8 = vadd.f32 %v13117_v57, %v5754_v55  ;;  %v5793_v49 = vadd.f32 %v13117_v57, %v5755_v48  ;;  %v5794_v61 = vadd.f32 %v13117_v57, %v5756_v26 }
 0x6ca   :  { %v5795_v29 = vadd.f32 %v13117_v57, %v5757_v53  ;;  %v5796_v63 = vadd.f32 %v13117_v57, %v5758_v23  ;;  %v5797_v39 = vadd.f32 %v13117_v57, %v5759_v12  ;;  %7391 = vrot.lane.b32.xlu0 %v13192_v46, %s8858_s6  ;;  %7397 = vrot.lane.b32.xlu1 %v13194_v56, %s8858_s6  ;;  %v13223_v3 = vmax.f32 %v5781_v43, 0.0 }
 0x6cb   :  { %v5798_v1 = vadd.f32 %v13117_v57, %v5760_v17  ;;  %v13209_v30 = vadd.f32 %v13117_v57, %v5761_v25  ;;  %v13212_v9 = vadd.f32 %v13117_v57, %v5762_v0  ;;  %v13215_v19 = vadd.f32 %v13117_v57, %v5763_v50 }
 0x6cc   :  { %v13218_v40 = vadd.f32 %v13117_v57, %v5764_v11  ;;  %v13221_v41 = vadd.f32 %v13117_v57, %v5766_v58  ;;  %v13225_v52 = vmax.f32 %v5784_v14, 0.0  ;;  %v13227_v5 = vmax.f32 %v5783_v16, 0.0  ;;  %v15935_v58 = vld [vmem:[#allocation16_spill] sm:$0xff] }
 0x6cd   :  { %v13229_v54 = vmax.f32 %v5785_v7, 0.0  ;;  %v13231_v10 = vmax.f32 %v5786_v35, 0.0  ;;  %v13233_v34 = vmax.f32 %v5787_v42, 0.0  ;;  %v13235_v2 = vmax.f32 %v5788_v33, 0.0  ;;  %v15936_v33 = vld [vmem:[#allocation3_spill] sm:$0xff] }
 0x6ce   :  { %v13237_v60 = vmax.f32 %v5789_v18, 0.0  ;;  %v13239_v55 = vmax.f32 %v5790_v21, 0.0  ;;  %v13241_v57 = vmax.f32 %v5791_v44, 0.0  ;;  %7395 = vrot.lane.b32.xlu0 %v13223_v3, %s8858_s6  ;;  %7401 = vrot.lane.b32.xlu1 %v13225_v52, %s8858_s6  ;;  %v13247_v48 = vmax.f32 %v5792_v8, 0.0  ;;  %v15937_v8 = vld [vmem:[#allocation25_spill] sm:$0xff] }
 0x6cf   :  { %15930 = vst [vmem:[#allocation205_spill] sm:$0xff] %v13229_v54  ;;  %15931 = vst [vmem:[#allocation209_spill] sm:$0xff] %v13233_v34  ;;  %v5858_v26 = vrot.slane %v13125_v59, %v9732_v31  ;;  %v6018_v53 = vrot.slane %v13125_v59, %v9735_v32  ;;  %v6210_v23 = vrot.slane %v13125_v59, %v9748_v24  ;;  %v13255_v12 = vmax.f32 %v5793_v49, 0.0 }
 0x6d0   :  { %15932 = vst [vmem:[#allocation208_spill] sm:$0xff] %v13235_v2  ;;  %15933 = vst [vmem:[#allocation221_spill] sm:$0xff] %v13239_v55  ;;  %v6402_v17 = vrot.slane %v13125_v59, %v9756_v13  ;;  %v6594_v25 = vrot.slane %v13125_v59, %v9767_v51  ;;  %v6786_v0 = vrot.slane %v13125_v59, %v9777_v47  ;;  %v13263_v50 = vmax.f32 %v5794_v61, 0.0  ;;  %v15938_v61 = vld [vmem:[#allocation32_spill] sm:$0xff] }
 0x6d1   :  { %v13265_v11 = vmax.f32 %v5795_v29, 0.0  ;;  %v5980_v6 = vmul.f32 %v5858_v26, %v15934_v45  ;;  %v6140_v43 = vmul.f32 %v6018_v53, %v15935_v58  ;;  %v13269_v16 = vmax.f32 %v5796_v63, 0.0  ;;  %v15939_v63 = vld [vmem:[#allocation102_spill] sm:$0xff] }
 0x6d2   :  { %v13271_v14 = vmax.f32 %v5797_v39, 0.0  ;;  %7399 = vrot.lane.b32.xlu0 %v13227_v5, %s8858_s6  ;;  %7405 = vrot.lane.b32.xlu1 %v13231_v10, %s8858_s6  ;;  %v6978_v7 = vrot.slane %v13125_v59, %v9884_v27  ;;  %v7170_v35 = vrot.slane %v13125_v59, %v9809_v15  ;;  %v6332_v18 = vmul.f32 %v6210_v23, %v15936_v33  ;;  %v15940_v59 = vld [vmem:[#allocation9_spill] sm:$0xff] }
 0x6d3   :  { %v6172_v42 = vadd.f32 %v6140_v43, %v5980_v6  ;;  %v5854_v21 = vrot.slane %v13131_v22, %v9732_v31  ;;  %v6014_v44 = vrot.slane %v13131_v22, %v9735_v32  ;;  %v6524_v49 = vmul.f32 %v6402_v17, %v15937_v8  ;;  %v15941_v6 = vld [vmem:[#allocation59_spill] sm:$0xff]  ;;  %v15942_v17 = vld [vmem:[#allocation156_spill] sm:$0xff] }
 0x6d4   :  { %v6716_v29 = vmul.f32 %v6594_v25, %v15938_v61  ;;  %v6908_v39 = vmul.f32 %v6786_v0, %v15939_v63  ;;  %v6206_v26 = vrot.slane %v13131_v22, %v9748_v24  ;;  %v6398_v58 = vrot.slane %v13131_v22, %v9756_v13  ;;  %v15943_v0 = vld [vmem:[#allocation121_spill] sm:$0xff] }
 0x6d5   :  { %v6364_v53 = vadd.f32 %v6332_v18, %v6172_v42  ;;  %v5979_v45 = vmul.f32 %v5854_v21, %v15940_v59  ;;  %v6139_v23 = vmul.f32 %v6014_v44, %v15941_v6  ;;  %v13295_v43 = vmax.f32 %v5798_v1, 0.0  ;;  %v15944_v44 = vld [vmem:[#allocation19_spill] sm:$0xff] }
 0x6d6   :  { %7403 = vrot.lane.b32.xlu0 %v13229_v54, %s8858_s6  ;;  %7409 = vrot.lane.b32.xlu1 %v13235_v2, %s8858_s6  ;;  %v7100_v25 = vmul.f32 %v6978_v7, %v15942_v17  ;;  %v7292_v33 = vmul.f32 %v7170_v35, %v15943_v0  ;;  %v6590_v42 = vrot.slane %v13131_v22, %v9767_v51  ;;  %v13320_v6 = vmax.f32 %v13209_v30, 0.0  ;;  %v15947_v0 = vld [vmem:[#allocation61_spill] sm:$0xff] }
 0x6d7   :  { %v6556_v18 = vadd.f32 %v6524_v49, %v6364_v53  ;;  %v6171_v21 = vadd.f32 %v6139_v23, %v5979_v45  ;;  %v6331_v8 = vmul.f32 %v6206_v26, %v15944_v44  ;;  %v6782_v1 = vrot.slane %v13131_v22, %v9777_v47  ;;  %v15945_v53 = vld [vmem:[#allocation23_spill] sm:$0xff]  ;;  %v15946_v23 = vld [vmem:[#allocation4_spill] sm:$0xff] }
 0x6d8   :  { %v6974_v61 = vrot.slane %v13131_v22, %v9884_v27  ;;  %v5866_v63 = vrot.slane %v13158_v36, %v9732_v31  ;;  %v6026_v7 = vrot.slane %v13158_v36, %v9735_v32  ;;  %v6218_v35 = vrot.slane %v13158_v36, %v9748_v24 }
 0x6d9   :  { %v6748_v59 = vadd.f32 %v6716_v29, %v6556_v18  ;;  %v6363_v49 = vadd.f32 %v6331_v8, %v6171_v21  ;;  %v6523_v45 = vmul.f32 %v6398_v58, %v15945_v53  ;;  %v7166_v26 = vrot.slane %v13131_v22, %v9809_v15  ;;  %v15948_v21 = vld [vmem:[#allocation42_spill] sm:$0xff]  ;;  %v15949_v8 = vld [vmem:[#allocation36_spill] sm:$0xff] }
 0x6da   :  { %7407 = vrot.lane.b32.xlu0 %v13233_v34, %s8858_s6  ;;  %7413 = vrot.lane.b32.xlu1 %v13239_v55, %s8858_s6  ;;  %v5982_v17 = vmul.f32 %v5866_v63, %v15946_v23  ;;  %v6142_v44 = vmul.f32 %v6026_v7, %v15947_v0  ;;  %v6410_v29 = vrot.slane %v13158_v36, %v9756_v13  ;;  %v15951_v55 = vld [vmem:[#allocation29_spill] sm:$0xff]  ;;  %v15954_v23 = vld [vmem:[#allocation47_spill] sm:$0xff] }
 0x6db   :  { %v6940_v58 = vadd.f32 %v6908_v39, %v6748_v59  ;;  %v6555_v18 = vadd.f32 %v6523_v45, %v6363_v49  ;;  %v6715_v22 = vmul.f32 %v6590_v42, %v15948_v21  ;;  %v6602_v30 = vrot.slane %v13158_v36, %v9767_v51 }
 0x6dc   :  { %v6907_v53 = vmul.f32 %v6782_v1, %v15949_v8  ;;  %v7099_v34 = vmul.f32 %v6974_v61, %v15950_v20  ;;  %v6174_v2 = vadd.f32 %v6142_v44, %v5982_v17  ;;  %v6334_v54 = vmul.f32 %v6218_v35, %v15951_v55  ;;  %v15952_v20 = vld [vmem:[#allocation54_spill] sm:$0xff]  ;;  %v15958_v8 = vld [vmem:[#allocation21_spill] sm:$0xff] }
 0x6dd   :  { %v6747_v63 = vadd.f32 %v6715_v22, %v6555_v18  ;;  %v6794_v7 = vrot.slane %v13158_v36, %v9777_v47  ;;  %v6986_v39 = vrot.slane %v13158_v36, %v9884_v27  ;;  %v5862_v42 = vrot.slane %v13192_v46, %v9732_v31  ;;  %v15953_v61 = vld [vmem:[#allocation38_spill] sm:$0xff] }
 0x6de   :  { %v13343_v59 = vmax.f32 %v13212_v9, 0.0  ;;  %7411 = vrot.lane.b32.xlu0 %v13237_v60, %s8858_s6  ;;  %7417 = vrot.lane.b32.xlu1 %v13247_v48, %s8858_s6  ;;  %v7291_v55 = vmul.f32 %v7166_v26, %v15952_v20  ;;  %v6366_v1 = vadd.f32 %v6334_v54, %v6174_v2  ;;  %v6526_v35 = vmul.f32 %v6410_v29, %v15953_v61  ;;  %v15955_v44 = vld [vmem:[#allocation2_spill] sm:$0xff]  ;;  %v15957_v29 = vld [vmem:[#allocation159_spill] sm:$0xff] }
 0x6df   :  { %v7132_v49 = vadd.f32 %v7100_v25, %v6940_v58  ;;  %v6939_v45 = vadd.f32 %v6907_v53, %v6747_v63  ;;  %v6718_v17 = vmul.f32 %v6602_v30, %v15954_v23  ;;  %v7178_v0 = vrot.slane %v13158_v36, %v9809_v15  ;;  %v15956_v54 = vld [vmem:[#allocation58_spill] sm:$0xff] }
 0x6e0   :  { %v6558_v9 = vadd.f32 %v6526_v35, %v6366_v1  ;;  %v5981_v18 = vmul.f32 %v5862_v42, %v15955_v44  ;;  %v6022_v21 = vrot.slane %v13192_v46, %v9735_v32  ;;  %v6214_v22 = vrot.slane %v13192_v46, %v9748_v24  ;;  %v15960_v35 = vld [vmem:[#allocation27_spill] sm:$0xff]  ;;  %v15961_v23 = vld [vmem:[#allocation34_spill] sm:$0xff] }
 0x6e1   :  { %v7131_v26 = vadd.f32 %v7099_v34, %v6939_v45  ;;  %v6910_v2 = vmul.f32 %v6794_v7, %v15956_v54  ;;  %v7102_v25 = vmul.f32 %v6986_v39, %v15957_v29  ;;  %v6406_v58 = vrot.slane %v13192_v46, %v9756_v13  ;;  %v15959_v7 = vld [vmem:[#allocation123_spill] sm:$0xff] }
 0x6e2   :  { %v13364_v30 = vmax.f32 %v13215_v19, 0.0  ;;  %7415 = vrot.lane.b32.xlu0 %v13241_v57, %s8858_s6  ;;  %7421 = vrot.lane.b32.xlu1 %v13263_v50, %s8858_s6  ;;  %v6750_v36 = vadd.f32 %v6718_v17, %v6558_v9  ;;  %v6141_v53 = vmul.f32 %v6022_v21, %v15958_v8  ;;  %v6598_v34 = vrot.slane %v13192_v46, %v9767_v51  ;;  %v15963_v44 = vld [vmem:[#allocation43_spill] sm:$0xff] }
 0x6e3   :  { %v13373_v63 = vadd.f32 %v7292_v33, %v7132_v49  ;;  %v7294_v39 = vmul.f32 %v7178_v0, %v15959_v7  ;;  %v6790_v19 = vrot.slane %v13192_v46, %v9777_v47  ;;  %v6982_v42 = vrot.slane %v13192_v46, %v9884_v27 }
 0x6e4   :  { %v13380_v20 = vadd.f32 %v7291_v55, %v7131_v26  ;;  %v6942_v1 = vadd.f32 %v6910_v2, %v6750_v36  ;;  %v6173_v61 = vadd.f32 %v6141_v53, %v5981_v18  ;;  %v6333_v45 = vmul.f32 %v6214_v22, %v15960_v35  ;;  %v15964_v26 = vld [vmem:[#allocation6_spill] sm:$0xff]  ;;  %v15965_v2 = vld [vmem:[#allocation64_spill] sm:$0xff]  ;;  %v15967_v53 = vld [vmem:[#allocation45_spill] sm:$0xff] }
 0x6e5   :  { %v6525_v17 = vmul.f32 %v6406_v58, %v15961_v23  ;;  %v5874_v33 = vrot.slane %v13194_v56, %v9732_v31  ;;  %v6034_v49 = vrot.slane %v13194_v56, %v9735_v32  ;;  %v6226_v0 = vrot.slane %v13194_v56, %v9748_v24  ;;  %v15966_v36 = vld [vmem:[#allocation52_spill] sm:$0xff] }
 0x6e6   :  { %v13391_v9 = vmax.f32 %v13218_v40, 0.0  ;;  %7419 = vrot.lane.b32.xlu0 %v13255_v12, %s8858_s6  ;;  %7425 = vrot.lane.b32.xlu1 %v13269_v16, %s8858_s6  ;;  %v6365_v55 = vadd.f32 %v6333_v45, %v6173_v61  ;;  %v6717_v18 = vmul.f32 %v6598_v34, %v15963_v44  ;;  %v7174_v21 = vrot.slane %v13192_v46, %v9809_v15  ;;  %v15969_v45 = vld [vmem:[#allocation158_spill] sm:$0xff] }
 0x6e7   :  { %v7134_v22 = vadd.f32 %v7102_v25, %v6942_v1  ;;  %v5984_v54 = vmul.f32 %v5874_v33, %v15964_v26  ;;  %v6144_v29 = vmul.f32 %v6034_v49, %v15965_v2  ;;  %v6418_v40 = vrot.slane %v13194_v56, %v9756_v13 }
 0x6e8   :  { %15962 = vst [vmem:[#allocation219_spill] sm:$0xff] %v13391_v9  ;;  %v6557_v58 = vadd.f32 %v6525_v17, %v6365_v55  ;;  %v6909_v8 = vmul.f32 %v6790_v19, %v15966_v36  ;;  %v6336_v7 = vmul.f32 %v6226_v0, %v15967_v53  ;;  %v6610_v61 = vrot.slane %v13194_v56, %v9767_v51  ;;  %v15970_v17 = vld [vmem:[#allocation74_spill] sm:$0xff]  ;;  %v15971_v55 = vld [vmem:[#allocation56_spill] sm:$0xff] }
 0x6e9   :  { %v6176_v34 = vadd.f32 %v6144_v29, %v5984_v54  ;;  %v6802_v46 = vrot.slane %v13194_v56, %v9777_v47  ;;  %v6994_v25 = vrot.slane %v13194_v56, %v9884_v27  ;;  %v5870_v1 = vrot.slane %v13223_v3, %v9732_v31  ;;  %v15972_v54 = vld [vmem:[#allocation13_spill] sm:$0xff]  ;;  %v15975_v36 = vld [vmem:[#allocation138_spill] sm:$0xff] }
 0x6ea   :  { %v13415_v35 = vmax.f32 %v13178_v4, 0.0  ;;  %7423 = vrot.lane.b32.xlu0 %v13265_v11, %s8858_s6  ;;  %7429 = vrot.lane.b32.xlu1 %v13295_v43, %s8858_s6  ;;  %v6749_v19 = vadd.f32 %v6717_v18, %v6557_v58  ;;  %v7101_v23 = vmul.f32 %v6982_v42, %v15969_v45  ;;  %v7293_v33 = vmul.f32 %v7174_v21, %v15970_v17  ;;  %v15973_v58 = vld [vmem:[#allocation67_spill] sm:$0xff]  ;;  %v15978_v17 = vld [vmem:[#allocation41_spill] sm:$0xff] }
 0x6eb   :  { %v13423_v49 = vadd.f32 %v7294_v39, %v7134_v22  ;;  %v6368_v0 = vadd.f32 %v6336_v7, %v6176_v34  ;;  %v6528_v44 = vmul.f32 %v6418_v40, %v15971_v55  ;;  %v7186_v4 = vrot.slane %v13194_v56, %v9809_v15  ;;  %v15974_v39 = vld [vmem:[#allocation78_spill] sm:$0xff] }
 0x6ec   :  { %15968 = vst [vmem:[#allocation234_spill] sm:$0xff] %v13415_v35  ;;  %v6941_v26 = vadd.f32 %v6909_v8, %v6749_v19  ;;  %v5983_v2 = vmul.f32 %v5870_v1, %v15972_v54  ;;  %v6030_v29 = vrot.slane %v13223_v3, %v9735_v32  ;;  %v6222_v18 = vrot.slane %v13223_v3, %v9748_v24  ;;  %v15976_v56 = vld [vmem:[#allocation62_spill] sm:$0xff] }
 0x6ed   :  { %v6560_v42 = vadd.f32 %v6528_v44, %v6368_v0  ;;  %v6720_v21 = vmul.f32 %v6610_v61, %v15973_v58  ;;  %v6912_v22 = vmul.f32 %v6802_v46, %v15974_v39  ;;  %v7104_v53 = vmul.f32 %v6994_v25, %v15975_v36  ;;  %v15977_v46 = vld [vmem:[#allocation125_spill] sm:$0xff]  ;;  %v15982_v58 = vld [vmem:[#allocation72_spill] sm:$0xff]  ;;  %v15984_v36 = vld [vmem:[#allocation66_spill] sm:$0xff] }
 0x6ee   :  { %v13437_v40 = vmax.f32 %v13221_v41, 0.0  ;;  %7427 = vrot.lane.b32.xlu0 %v13271_v14, %s8858_s6  ;;  %7433 = vrot.lane.b32.xlu1 %v13343_v59, %s8858_s6  ;;  %v6143_v8 = vmul.f32 %v6030_v29, %v15976_v56  ;;  %v6414_v7 = vrot.slane %v13223_v3, %v9756_v13  ;;  %v6606_v61 = vrot.slane %v13223_v3, %v9767_v51  ;;  %v15983_v39 = vld [vmem:[#allocation8_spill] sm:$0xff] }
 0x6ef   :  { %v6752_v34 = vadd.f32 %v6720_v21, %v6560_v42  ;;  %v7296_v25 = vmul.f32 %v7186_v4, %v15977_v46  ;;  %v6798_v41 = vrot.slane %v13223_v3, %v9777_v47  ;;  %v6990_v1 = vrot.slane %v13223_v3, %v9884_v27  ;;  %v15985_v46 = vld [vmem:[#allocation130_spill] sm:$0xff] }
 0x6f0   :  { %v7133_v19 = vadd.f32 %v7101_v23, %v6941_v26  ;;  %v6175_v45 = vadd.f32 %v6143_v8, %v5983_v2  ;;  %v6335_v0 = vmul.f32 %v6222_v18, %v15978_v17  ;;  %v7182_v55 = vrot.slane %v13223_v3, %v9809_v15  ;;  %v15980_v23 = vld [vmem:[#allocation93_spill] sm:$0xff]  ;;  %v15981_v2 = vld [vmem:[#allocation63_spill] sm:$0xff] }
 0x6f1   :  { %v6944_v44 = vadd.f32 %v6912_v22, %v6752_v34  ;;  %v5882_v54 = vrot.slane %v13225_v52, %v9732_v31  ;;  %v6042_v4 = vrot.slane %v13225_v52, %v9735_v32  ;;  %v6234_v29 = vrot.slane %v13225_v52, %v9748_v24 }
 0x6f2   :  { %v13463_v42 = vmax.f32 %v13182_v37, 0.0  ;;  %7431 = vrot.lane.b32.xlu0 %v13320_v6, %s8858_s6  ;;  %7437 = vrot.lane.b32.xlu1 %v13391_v9, %s8858_s6  ;;  %v6367_v3 = vadd.f32 %v6335_v0, %v6175_v45  ;;  %v6527_v26 = vmul.f32 %v6414_v7, %v15980_v23  ;;  %v6719_v18 = vmul.f32 %v6606_v61, %v15981_v2  ;;  %v15986_v9 = vld [vmem:[#allocation94_spill] sm:$0xff]  ;;  %v15987_v23 = vld [vmem:[#allocation65_spill] sm:$0xff] }
 0x6f3   :  { %v6911_v21 = vmul.f32 %v6798_v41, %v15982_v58  ;;  %v5986_v22 = vmul.f32 %v5882_v54, %v15983_v39  ;;  %v6146_v56 = vmul.f32 %v6042_v4, %v15984_v36  ;;  %v6426_v37 = vrot.slane %v13225_v52, %v9756_v13  ;;  %v15990_v58 = vld [vmem:[#allocation87_spill] sm:$0xff] }
 0x6f4   :  { %15979 = vst [vmem:[#allocation232_spill] sm:$0xff] %v13463_v42  ;;  %v13476_v8 = vadd.f32 %v7293_v33, %v7133_v19  ;;  %v6559_v34 = vadd.f32 %v6527_v26, %v6367_v3  ;;  %v7103_v17 = vmul.f32 %v6990_v1, %v15985_v46  ;;  %v7295_v45 = vmul.f32 %v7182_v55, %v15986_v9  ;;  %v15989_v19 = vld [vmem:[#allocation76_spill] sm:$0xff] }
 0x6f5   :  { %v7136_v0 = vadd.f32 %v7104_v53, %v6944_v44  ;;  %v6178_v7 = vadd.f32 %v6146_v56, %v5986_v22  ;;  %v6338_v61 = vmul.f32 %v6234_v29, %v15987_v23  ;;  %v6618_v41 = vrot.slane %v13225_v52, %v9767_v51  ;;  %v15991_v22 = vld [vmem:[#allocation15_spill] sm:$0xff] }
 0x6f6   :  { %v13484_v54 = vmax.f32 %v13185_v28, 0.0  ;;  %7435 = vrot.lane.b32.xlu0 %v13364_v30, %s8858_s6  ;;  %7441 = vrot.lane.b32.xlu1 %v13437_v40, %s8858_s6  ;;  %v6751_v33 = vadd.f32 %v6719_v18, %v6559_v34  ;;  %v6810_v9 = vrot.slane %v13225_v52, %v9777_v47  ;;  %v7002_v53 = vrot.slane %v13225_v52, %v9884_v27 }
 0x6f7   :  { %v6370_v1 = vadd.f32 %v6338_v61, %v6178_v7  ;;  %v6530_v55 = vmul.f32 %v6426_v37, %v15989_v19  ;;  %v7194_v28 = vrot.slane %v13225_v52, %v9809_v15  ;;  %v5878_v44 = vrot.slane %v13227_v5, %v9732_v31  ;;  %v15994_v37 = vld [vmem:[#allocation169_spill] sm:$0xff]  ;;  %v15996_v7 = vld [vmem:[#allocation120_spill] sm:$0xff] }
 0x6f8   :  { %15988 = vst [vmem:[#allocation246_spill] sm:$0xff] %v13484_v54  ;;  %v6943_v4 = vadd.f32 %v6911_v21, %v6751_v33  ;;  %v6038_v29 = vrot.slane %v13227_v5, %v9735_v32  ;;  %v6230_v3 = vrot.slane %v13227_v5, %v9748_v24  ;;  %v6422_v26 = vrot.slane %v13227_v5, %v9756_v13  ;;  %v15993_v21 = vld [vmem:[#allocation98_spill] sm:$0xff] }
 0x6f9   :  { %v13505_v2 = vadd.f32 %v7296_v25, %v7136_v0  ;;  %v6562_v18 = vadd.f32 %v6530_v55, %v6370_v1  ;;  %v6722_v39 = vmul.f32 %v6618_v41, %v15990_v58  ;;  %v5985_v52 = vmul.f32 %v5878_v44, %v15991_v22  ;;  %v15995_v25 = vld [vmem:[#allocation49_spill] sm:$0xff]  ;;  %v15997_v1 = vld [vmem:[#allocation60_spill] sm:$0xff]  ;;  %v15998_v55 = vld [vmem:[#allocation95_spill] sm:$0xff] }
 0x6fa   :  { %v13510_v36 = vmax.f32 %v13188_v38, 0.0  ;;  %7439 = vrot.lane.b32.xlu0 %v13415_v35, %s8858_s6  ;;  %7445 = vrot.lane.b32.xlu1 %v13484_v54, %s8858_s6  ;;  %v6914_v56 = vmul.f32 %v6810_v9, %v15993_v21  ;;  %v7106_v34 = vmul.f32 %v7002_v53, %v15994_v37  ;;  %v6145_v46 = vmul.f32 %v6038_v29, %v15995_v25  ;;  %v16003_v21 = vld [vmem:[#allocation68_spill] sm:$0xff]  ;;  %v16043_v54 = vld [vmem:[#allocation142_spill] sm:$0xff] }
 0x6fb   :  { %v6754_v0 = vadd.f32 %v6722_v39, %v6562_v18  ;;  %v7298_v23 = vmul.f32 %v7194_v28, %v15996_v7  ;;  %v6614_v61 = vrot.slane %v13227_v5, %v9767_v51  ;;  %v6806_v38 = vrot.slane %v13227_v5, %v9777_v47  ;;  %v16001_v39 = vld [vmem:[#allocation92_spill] sm:$0xff] }
 0x6fc   :  { %15992 = vst [vmem:[#allocation244_spill] sm:$0xff] %v13510_v36  ;;  %v7135_v41 = vadd.f32 %v7103_v17, %v6943_v4  ;;  %v6177_v33 = vadd.f32 %v6145_v46, %v5985_v52  ;;  %v6337_v19 = vmul.f32 %v6230_v3, %v15997_v1  ;;  %v6529_v44 = vmul.f32 %v6422_v26, %v15998_v55  ;;  %v16000_v26 = vld [vmem:[#allocation83_spill] sm:$0xff]  ;;  %v16002_v52 = vld [vmem:[#allocation10_spill] sm:$0xff] }
 0x6fd   :  { %v6946_v9 = vadd.f32 %v6914_v56, %v6754_v0  ;;  %v5890_v53 = vrot.slane %v13231_v10, %v9732_v31  ;;  %v6050_v29 = vrot.slane %v13231_v10, %v9735_v32  ;;  %v6242_v28 = vrot.slane %v13231_v10, %v9748_v24 }
 0x6fe   :  { %v13533_v18 = vmax.f32 %v13122_v62, 0.0  ;;  %7443 = vrot.lane.b32.xlu0 %v13463_v42, %s8858_s6  ;;  %7449 = vrot.lane.b32.xlu1 %v13510_v36, %s8858_s6  ;;  %v6369_v17 = vadd.f32 %v6337_v19, %v6177_v33  ;;  %v6998_v4 = vrot.slane %v13227_v5, %v9884_v27  ;;  %v7190_v3 = vrot.slane %v13227_v5, %v9809_v15  ;;  %v16004_v33 = vld [vmem:[#allocation85_spill] sm:$0xff] }
 0x6ff   :  { %v6721_v58 = vmul.f32 %v6614_v61, %v16000_v26  ;;  %v6913_v22 = vmul.f32 %v6806_v38, %v16001_v39  ;;  %v5988_v62 = vmul.f32 %v5890_v53, %v16002_v52  ;;  %v6148_v56 = vmul.f32 %v6050_v29, %v16003_v21  ;;  %v16009_v52 = vld [vmem:[#allocation107_spill] sm:$0xff]  ;;  %v16010_v21 = vld [vmem:[#allocation118_spill] sm:$0xff]  ;;  %v16033_v42 = vld [vmem:[#allocation101_spill] sm:$0xff] }
 0x700   :  { %15999 = vst [vmem:[#allocation257_spill] sm:$0xff] %v13533_v18  ;;  %v13547_v37 = vadd.f32 %v7295_v45, %v7135_v41  ;;  %v7138_v25 = vadd.f32 %v7106_v34, %v6946_v9  ;;  %v6561_v46 = vadd.f32 %v6529_v44, %v6369_v17  ;;  %v6434_v0 = vrot.slane %v13231_v10, %v9756_v13  ;;  %v16005_v45 = vld [vmem:[#allocation162_spill] sm:$0xff]  ;;  %v16007_v9 = vld [vmem:[#allocation96_spill] sm:$0xff] }
 0x701   :  { %v6180_v7 = vadd.f32 %v6148_v56, %v5988_v62  ;;  %v6340_v1 = vmul.f32 %v6242_v28, %v16004_v33  ;;  %v6626_v5 = vrot.slane %v13231_v10, %v9767_v51  ;;  %v6818_v61 = vrot.slane %v13231_v10, %v9777_v47  ;;  %v16006_v34 = vld [vmem:[#allocation126_spill] sm:$0xff]  ;;  %v16008_v28 = vld [vmem:[#allocation205_spill] sm:$0xff] }
 0x702   :  { %7447 = vrot.lane.b32.xlu0 %v13533_v18, %s8858_s6  ;;  %v6753_v38 = vadd.f32 %v6721_v58, %v6561_v46  ;;  %v7105_v41 = vmul.f32 %v6998_v4, %v16005_v45  ;;  %v7297_v19 = vmul.f32 %v7190_v3, %v16006_v34  ;;  %v7010_v55 = vrot.slane %v13231_v10, %v9884_v27  ;;  %v16011_v46 = vld [vmem:[#allocation17_spill] sm:$0xff]  ;;  %v16014_v45 = vld [vmem:[#allocation132_spill] sm:$0xff] }
 0x703   :  { %v6372_v44 = vadd.f32 %v6340_v1, %v6180_v7  ;;  %v6532_v53 = vmul.f32 %v6434_v0, %v16007_v9  ;;  %v7202_v29 = vrot.slane %v13231_v10, %v9809_v15  ;;  %v5886_v17 = vrot.slane %v16008_v28, %v9732_v31  ;;  %v16012_v10 = vld [vmem:[#allocation178_spill] sm:$0xff]  ;;  %v16013_v33 = vld [vmem:[#allocation69_spill] sm:$0xff]  ;;  %v16022_v18 = vld [vmem:[#allocation124_spill] sm:$0xff] }
 0x704   :  { %v13567_v26 = vadd.f32 %v7298_v23, %v7138_v25  ;;  %v6945_v39 = vadd.f32 %v6913_v22, %v6753_v38  ;;  %v6046_v4 = vrot.slane %v16008_v28, %v9735_v32  ;;  %v6238_v3 = vrot.slane %v16008_v28, %v9748_v24 }
 0x705   :  { %v6564_v58 = vadd.f32 %v6532_v53, %v6372_v44  ;;  %v6724_v62 = vmul.f32 %v6626_v5, %v16009_v52  ;;  %v6916_v56 = vmul.f32 %v6818_v61, %v16010_v21  ;;  %v5987_v0 = vmul.f32 %v5886_v17, %v16011_v46  ;;  %v16015_v44 = vld [vmem:[#allocation81_spill] sm:$0xff]  ;;  %v16016_v53 = vld [vmem:[#allocation208_spill] sm:$0xff] }
 0x706   :  { %v7108_v7 = vmul.f32 %v7010_v55, %v16012_v10  ;;  %v6147_v1 = vmul.f32 %v6046_v4, %v16013_v33  ;;  %v6430_v23 = vrot.slane %v16008_v28, %v9756_v13  ;;  %v6622_v22 = vrot.slane %v16008_v28, %v9767_v51  ;;  %v16019_v46 = vld [vmem:[#allocation12_spill] sm:$0xff] }
 0x707   :  { %v7137_v25 = vadd.f32 %v7105_v41, %v6945_v39  ;;  %v6756_v38 = vadd.f32 %v6724_v62, %v6564_v58  ;;  %v7300_v34 = vmul.f32 %v7202_v29, %v16014_v45  ;;  %v6814_v5 = vrot.slane %v16008_v28, %v9777_v47  ;;  %v16017_v58 = vld [vmem:[#allocation97_spill] sm:$0xff]  ;;  %v16020_v33 = vld [vmem:[#allocation112_spill] sm:$0xff] }
 0x708   :  { %v6179_v61 = vadd.f32 %v6147_v1, %v5987_v0  ;;  %v6339_v9 = vmul.f32 %v6238_v3, %v16015_v44  ;;  %v7006_v55 = vrot.slane %v16008_v28, %v9884_v27  ;;  %v5898_v17 = vrot.slane %v16016_v53, %v9732_v31  ;;  %v16018_v3 = vld [vmem:[#allocation103_spill] sm:$0xff]  ;;  %v16021_v1 = vld [vmem:[#allocation70_spill] sm:$0xff] }
 0x709   :  { %v6948_v4 = vadd.f32 %v6916_v56, %v6756_v38  ;;  %v7198_v52 = vrot.slane %v16008_v28, %v9809_v15  ;;  %v6058_v41 = vrot.slane %v16016_v53, %v9735_v32  ;;  %v6250_v29 = vrot.slane %v16016_v53, %v9748_v24 }
 0x70a   :  { %v6371_v39 = vadd.f32 %v6339_v9, %v6179_v61  ;;  %v6531_v62 = vmul.f32 %v6430_v23, %v16017_v58  ;;  %v6723_v21 = vmul.f32 %v6622_v22, %v16018_v3  ;;  %v5990_v0 = vmul.f32 %v5898_v17, %v16019_v46  ;;  %v16023_v61 = vld [vmem:[#allocation129_spill] sm:$0xff] }
 0x70b   :  { %v13599_v10 = vadd.f32 %v7297_v19, %v7137_v25  ;;  %v6915_v56 = vmul.f32 %v6814_v5, %v16020_v33  ;;  %v6150_v38 = vmul.f32 %v6058_v41, %v16021_v1  ;;  %v6442_v28 = vrot.slane %v16016_v53, %v9756_v13  ;;  %v16024_v17 = vld [vmem:[#allocation105_spill] sm:$0xff]  ;;  %v16029_v1 = vld [vmem:[#allocation144_spill] sm:$0xff] }
 0x70c   :  { %v7140_v45 = vadd.f32 %v7108_v7, %v6948_v4  ;;  %v6563_v44 = vadd.f32 %v6531_v62, %v6371_v39  ;;  %v7107_v36 = vmul.f32 %v7006_v55, %v16022_v18  ;;  %v6634_v23 = vrot.slane %v16016_v53, %v9767_v51  ;;  %v16025_v18 = vld [vmem:[#allocation209_spill] sm:$0xff]  ;;  %v16026_v39 = vld [vmem:[#allocation99_spill] sm:$0xff] }
 0x70d   :  { %v7299_v22 = vmul.f32 %v7198_v52, %v16023_v61  ;;  %v6182_v9 = vadd.f32 %v6150_v38, %v5990_v0  ;;  %v6342_v19 = vmul.f32 %v6250_v29, %v16024_v17  ;;  %v6826_v25 = vrot.slane %v16016_v53, %v9777_v47  ;;  %v16028_v0 = vld [vmem:[#allocation18_spill] sm:$0xff] }
 0x70e   :  { %v6755_v5 = vadd.f32 %v6723_v21, %v6563_v44  ;;  %v7018_v41 = vrot.slane %v16016_v53, %v9884_v27  ;;  %v7210_v7 = vrot.slane %v16016_v53, %v9809_v15  ;;  %v5894_v55 = vrot.slane %v16025_v18, %v9732_v31  ;;  %v16027_v21 = vld [vmem:[#allocation127_spill] sm:$0xff]  ;;  %v16030_v44 = vld [vmem:[#allocation90_spill] sm:$0xff] }
 0x70f   :  { %v6374_v4 = vadd.f32 %v6342_v19, %v6182_v9  ;;  %v6534_v58 = vmul.f32 %v6442_v28, %v16026_v39  ;;  %v6054_v52 = vrot.slane %v16025_v18, %v9735_v32  ;;  %v6246_v29 = vrot.slane %v16025_v18, %v9748_v24  ;;  %v16031_v9 = vld [vmem:[#allocation190_spill] sm:$0xff] }
 0x710   :  { %v13623_v62 = vadd.f32 %v7300_v34, %v7140_v45  ;;  %v6947_v3 = vadd.f32 %v6915_v56, %v6755_v5  ;;  %v6726_v46 = vmul.f32 %v6634_v23, %v16027_v21  ;;  %v5989_v33 = vmul.f32 %v5894_v55, %v16028_v0  ;;  %v16032_v19 = vld [vmem:[#allocation26_spill] sm:$0xff]  ;;  %v16037_v0 = vld [vmem:[#allocation115_spill] sm:$0xff] }
 0x711   :  { %v6566_v53 = vadd.f32 %v6534_v58, %v6374_v4  ;;  %v6918_v38 = vmul.f32 %v6826_v25, %v16029_v1  ;;  %v6149_v61 = vmul.f32 %v6054_v52, %v16030_v44  ;;  %v6438_v28 = vrot.slane %v16025_v18, %v9756_v13  ;;  %v16036_v21 = vld [vmem:[#allocation14_spill] sm:$0xff] }
 0x712   :  { %v7110_v17 = vmul.f32 %v7018_v41, %v16031_v9  ;;  %v7302_v39 = vmul.f32 %v7210_v7, %v16032_v19  ;;  %v6341_v34 = vmul.f32 %v6246_v29, %v16033_v42  ;;  %v6630_v56 = vrot.slane %v16025_v18, %v9767_v51  ;;  %v16034_v41 = vld [vmem:[#allocation221_spill] sm:$0xff]  ;;  %v16039_v9 = vld [vmem:[#allocation136_spill] sm:$0xff] }
 0x713   :  { %v7139_v45 = vadd.f32 %v7107_v36, %v6947_v3  ;;  %v6758_v23 = vadd.f32 %v6726_v46, %v6566_v53  ;;  %v6181_v5 = vadd.f32 %v6149_v61, %v5989_v33  ;;  %v6822_v25 = vrot.slane %v16025_v18, %v9777_v47  ;;  %v16035_v36 = vld [vmem:[#allocation110_spill] sm:$0xff]  ;;  %v16040_v19 = vld [vmem:[#allocation180_spill] sm:$0xff] }
 0x714   :  { %v7014_v55 = vrot.slane %v16025_v18, %v9884_v27  ;;  %v7206_v4 = vrot.slane %v16025_v18, %v9809_v15  ;;  %v5906_v7 = vrot.slane %v16034_v41, %v9732_v31  ;;  %v6066_v42 = vrot.slane %v16034_v41, %v9735_v32 }
 0x715   :  { %v6950_v58 = vadd.f32 %v6918_v38, %v6758_v23  ;;  %v6373_v52 = vadd.f32 %v6341_v34, %v6181_v5  ;;  %v6533_v29 = vmul.f32 %v6438_v28, %v16035_v36  ;;  %v6258_v3 = vrot.slane %v16034_v41, %v9748_v24  ;;  %v16038_v38 = vld [vmem:[#allocation122_spill] sm:$0xff]  ;;  %v16041_v23 = vld [vmem:[#allocation161_spill] sm:$0xff]  ;;  %v16042_v36 = vld [vmem:[#allocation7_spill] sm:$0xff] }
 0x716   :  { %v5992_v46 = vmul.f32 %v5906_v7, %v16036_v21  ;;  %v6152_v33 = vmul.f32 %v6066_v42, %v16037_v0  ;;  %v6450_v18 = vrot.slane %v16034_v41, %v9756_v13  ;;  %v6642_v53 = vrot.slane %v16034_v41, %v9767_v51 }
 0x717   :  { %v13655_v1 = vadd.f32 %v7299_v22, %v7139_v45  ;;  %v6565_v44 = vadd.f32 %v6533_v29, %v6373_v52  ;;  %v6725_v61 = vmul.f32 %v6630_v56, %v16038_v38  ;;  %v6917_v28 = vmul.f32 %v6822_v25, %v16039_v9  ;;  %v16044_v52 = vld [vmem:[#allocation154_spill] sm:$0xff] }
 0x718   :  { %v7109_v34 = vmul.f32 %v7014_v55, %v16040_v19  ;;  %v7301_v5 = vmul.f32 %v7206_v4, %v16041_v23  ;;  %v6184_v7 = vadd.f32 %v6152_v33, %v5992_v46  ;;  %v6344_v42 = vmul.f32 %v6258_v3, %v16042_v36  ;;  %v16045_v3 = vld [vmem:[#allocation20_spill] sm:$0xff]  ;;  %v16046_v33 = vld [vmem:[#allocation71_spill] sm:$0xff]  ;;  %v16048_v23 = vld [vmem:[#allocation5_spill] sm:$0xff] }
 0x719   :  { %v7142_v21 = vadd.f32 %v7110_v17, %v6950_v58  ;;  %v6757_v0 = vadd.f32 %v6725_v61, %v6565_v44  ;;  %v6536_v35 = vmul.f32 %v6450_v18, %v16043_v54  ;;  %v6834_v22 = vrot.slane %v16034_v41, %v9777_v47  ;;  %v16047_v61 = vld [vmem:[#allocation106_spill] sm:$0xff]  ;;  %v16049_v36 = vld [vmem:[#allocation167_spill] sm:$0xff] }
 0x71a   :  { %v6376_v45 = vadd.f32 %v6344_v42, %v6184_v7  ;;  %v6728_v29 = vmul.f32 %v6642_v53, %v16044_v52  ;;  %v5902_v56 = vrot.slane %v13237_v60, %v9732_v31  ;;  %v6062_v25 = vrot.slane %v13237_v60, %v9735_v32  ;;  %v16051_v52 = vld [vmem:[#allocation134_spill] sm:$0xff] }
 0x71b   :  { %v6949_v55 = vadd.f32 %v6917_v28, %v6757_v0  ;;  %v7026_v4 = vrot.slane %v16034_v41, %v9884_v27  ;;  %v7218_v17 = vrot.slane %v16034_v41, %v9809_v15  ;;  %v6254_v54 = vrot.slane %v13237_v60, %v9748_v24  ;;  %v16050_v0 = vld [vmem:[#allocation135_spill] sm:$0xff] }
 0x71c   :  { %v6568_v58 = vadd.f32 %v6536_v35, %v6376_v45  ;;  %v5991_v46 = vmul.f32 %v5902_v56, %v16045_v3  ;;  %v6151_v18 = vmul.f32 %v6062_v25, %v16046_v33  ;;  %v6446_v53 = vrot.slane %v13237_v60, %v9756_v13  ;;  %v16052_v25 = vld [vmem:[#allocation150_spill] sm:$0xff]  ;;  %v16054_v33 = vld [vmem:[#allocation104_spill] sm:$0xff] }
 0x71d   :  { %v13680_v44 = vadd.f32 %v7302_v39, %v7142_v21  ;;  %v7141_v38 = vadd.f32 %v7109_v34, %v6949_v55  ;;  %v6920_v9 = vmul.f32 %v6834_v22, %v16047_v61  ;;  %v6638_v28 = vrot.slane %v13237_v60, %v9767_v51  ;;  %v16055_v61 = vld [vmem:[#allocation75_spill] sm:$0xff] }
 0x71e   :  { %v6760_v41 = vadd.f32 %v6728_v29, %v6568_v58  ;;  %v6183_v19 = vadd.f32 %v6151_v18, %v5991_v46  ;;  %v6343_v7 = vmul.f32 %v6254_v54, %v16048_v23  ;;  %v6830_v35 = vrot.slane %v13237_v60, %v9777_v47  ;;  %v16053_v54 = vld [vmem:[#allocation140_spill] sm:$0xff] }
 0x71f   :  { %v7112_v42 = vmul.f32 %v7026_v4, %v16049_v36  ;;  %v7304_v45 = vmul.f32 %v7218_v17, %v16050_v0  ;;  %v7022_v39 = vrot.slane %v13237_v60, %v9884_v27  ;;  %v5914_v34 = vrot.slane %v13247_v48, %v9732_v31  ;;  %v16057_v0 = vld [vmem:[#allocation152_spill] sm:$0xff] }
 0x720   :  { %v6952_v21 = vadd.f32 %v6920_v9, %v6760_v41  ;;  %v6375_v22 = vadd.f32 %v6343_v7, %v6183_v19  ;;  %v6535_v29 = vmul.f32 %v6446_v53, %v16051_v52  ;;  %v6074_v56 = vrot.slane %v13247_v48, %v9735_v32  ;;  %v16056_v41 = vld [vmem:[#allocation166_spill] sm:$0xff] }
 0x721   :  { %v6727_v55 = vmul.f32 %v6638_v28, %v16052_v25  ;;  %v5994_v58 = vmul.f32 %v5914_v34, %v16053_v54  ;;  %v6266_v4 = vrot.slane %v13247_v48, %v9748_v24  ;;  %v6458_v17 = vrot.slane %v13247_v48, %v9756_v13  ;;  %v16059_v25 = vld [vmem:[#allocation133_spill] sm:$0xff]  ;;  %v16060_v54 = vld [vmem:[#allocation131_spill] sm:$0xff] }
 0x722   :  { %v13703_v3 = vadd.f32 %v7301_v5, %v7141_v38  ;;  %v6567_v46 = vadd.f32 %v6535_v29, %v6375_v22  ;;  %v6919_v18 = vmul.f32 %v6830_v35, %v16054_v33  ;;  %v6154_v53 = vmul.f32 %v6074_v56, %v16055_v61  ;;  %v16058_v38 = vld [vmem:[#allocation164_spill] sm:$0xff]  ;;  %v16062_v33 = vld [vmem:[#allocation174_spill] sm:$0xff]  ;;  %v16063_v61 = vld [vmem:[#allocation73_spill] sm:$0xff] }
 0x723   :  { %v7144_v9 = vadd.f32 %v7112_v42, %v6952_v21  ;;  %v7111_v19 = vmul.f32 %v7022_v39, %v16056_v41  ;;  %v7214_v28 = vrot.slane %v13237_v60, %v9809_v15  ;;  %v6650_v23 = vrot.slane %v13247_v48, %v9767_v51 }
 0x724   :  { %v6759_v7 = vadd.f32 %v6727_v55, %v6567_v46  ;;  %v6186_v36 = vadd.f32 %v6154_v53, %v5994_v58  ;;  %v6346_v34 = vmul.f32 %v6266_v4, %v16057_v0  ;;  %v6842_v5 = vrot.slane %v13247_v48, %v9777_v47  ;;  %v16065_v0 = vld [vmem:[#allocation184_spill] sm:$0xff] }
 0x725   :  { %v6538_v35 = vmul.f32 %v6458_v17, %v16058_v38  ;;  %v7034_v42 = vrot.slane %v13247_v48, %v9884_v27  ;;  %v7226_v39 = vrot.slane %v13247_v48, %v9809_v15  ;;  %v5910_v60 = vrot.slane %v13241_v57, %v9732_v31  ;;  %v16061_v17 = vld [vmem:[#allocation46_spill] sm:$0xff] }
 0x726   :  { %v6951_v21 = vadd.f32 %v6919_v18, %v6759_v7  ;;  %v6378_v22 = vadd.f32 %v6346_v34, %v6186_v36  ;;  %v6070_v52 = vrot.slane %v13241_v57, %v9735_v32  ;;  %v6262_v29 = vrot.slane %v13241_v57, %v9748_v24  ;;  %v16064_v7 = vld [vmem:[#allocation217_spill] sm:$0xff] }
 0x727   :  { %v13726_v56 = vadd.f32 %v7304_v45, %v7144_v9  ;;  %v7303_v55 = vmul.f32 %v7214_v28, %v16059_v25  ;;  %v5993_v58 = vmul.f32 %v5910_v60, %v16060_v54  ;;  %v6454_v48 = vrot.slane %v13241_v57, %v9756_v13  ;;  %v16066_v60 = vld [vmem:[#allocation148_spill] sm:$0xff] }
 0x728   :  { %v6570_v4 = vadd.f32 %v6538_v35, %v6378_v22  ;;  %v6730_v46 = vmul.f32 %v6650_v23, %v16061_v17  ;;  %v6922_v18 = vmul.f32 %v6842_v5, %v16062_v33  ;;  %v6153_v53 = vmul.f32 %v6070_v52, %v16063_v61  ;;  %v16067_v35 = vld [vmem:[#allocation160_spill] sm:$0xff]  ;;  %v16070_v33 = vld [vmem:[#allocation171_spill] sm:$0xff] }
 0x729   :  { %v7143_v41 = vadd.f32 %v7111_v19, %v6951_v21  ;;  %v7114_v36 = vmul.f32 %v7034_v42, %v16064_v7  ;;  %v7306_v45 = vmul.f32 %v7226_v39, %v16065_v0  ;;  %v6646_v9 = vrot.slane %v13241_v57, %v9767_v51  ;;  %v16069_v17 = vld [vmem:[#allocation24_spill] sm:$0xff] }
 0x72a   :  { %v6762_v34 = vadd.f32 %v6730_v46, %v6570_v4  ;;  %v6185_v38 = vadd.f32 %v6153_v53, %v5993_v58  ;;  %v6345_v25 = vmul.f32 %v6262_v29, %v16066_v60  ;;  %v6838_v23 = vrot.slane %v13241_v57, %v9777_v47  ;;  %v16073_v60 = vld [vmem:[#allocation182_spill] sm:$0xff] }
 0x72b   :  { %v6537_v5 = vmul.f32 %v6454_v48, %v16067_v35  ;;  %v7030_v19 = vrot.slane %v13241_v57, %v9884_v27  ;;  %v7222_v42 = vrot.slane %v13241_v57, %v9809_v15  ;;  %v5922_v39 = vrot.slane %v13263_v50, %v9732_v31  ;;  %v16068_v48 = vld [vmem:[#allocation44_spill] sm:$0xff] }
 0x72c   :  { %v6954_v21 = vadd.f32 %v6922_v18, %v6762_v34  ;;  %v6377_v22 = vadd.f32 %v6345_v25, %v6185_v38  ;;  %v6082_v52 = vrot.slane %v13263_v50, %v9735_v32  ;;  %v6274_v29 = vrot.slane %v13263_v50, %v9748_v24  ;;  %v16071_v18 = vld [vmem:[#allocation163_spill] sm:$0xff] }
 0x72d   :  { %v7390_v28 = vpop.permute.xlu1 %7389  ;;  %v13755_v58 = vadd.f32 %v7303_v55, %v7143_v41  ;;  %v6729_v4 = vmul.f32 %v6646_v9, %v16068_v48  ;;  %v5996_v57 = vmul.f32 %v5922_v39, %v16069_v17  ;;  %v6921_v61 = vmul.f32 %v6838_v23, %v16070_v33  ;;  %v16072_v34 = vld [vmem:[#allocation203_spill] sm:$0xff] }
 0x72e   :  { %v7484_v54 = vsel %vm2829_vm1, %v13373_v63, %v7390_v28  ;;  %v6569_v46 = vadd.f32 %v6537_v5, %v6377_v22  ;;  %v6156_v53 = vmul.f32 %v6082_v52, %v16071_v18  ;;  %v6466_v7 = vrot.slane %v13263_v50, %v9756_v13  ;;  %v16074_v28 = vld [vmem:[#allocation128_spill] sm:$0xff]  ;;  %v16075_v22 = vld [vmem:[#allocation173_spill] sm:$0xff] }
 0x72f   :  { %v7146_v0 = vadd.f32 %v7114_v36, %v6954_v21  ;;  %v7113_v38 = vmul.f32 %v7030_v19, %v16072_v34  ;;  %v7305_v25 = vmul.f32 %v7222_v42, %v16073_v60  ;;  %v6658_v63 = vrot.slane %v13263_v50, %v9767_v51  ;;  %v16080_v60 = vld [vmem:[#allocation188_spill] sm:$0xff] }
 0x730   :  { %v6761_v41 = vadd.f32 %v6729_v4, %v6569_v46  ;;  %v6188_v9 = vadd.f32 %v6156_v53, %v5996_v57  ;;  %v6348_v35 = vmul.f32 %v6274_v29, %v16074_v28  ;;  %v6850_v23 = vrot.slane %v13263_v50, %v9777_v47  ;;  %v16077_v4 = vld [vmem:[#allocation22_spill] sm:$0xff]  ;;  %v16079_v53 = vld [vmem:[#allocation157_spill] sm:$0xff] }
 0x731   :  { %v7042_v36 = vrot.slane %v13263_v50, %v9884_v27  ;;  %v7234_v19 = vrot.slane %v13263_v50, %v9809_v15  ;;  %v5918_v42 = vrot.slane %v13255_v12, %v9732_v31  ;;  %v6540_v52 = vmul.f32 %v6466_v7, %v16075_v22 }
 0x732   :  { %v6953_v39 = vadd.f32 %v6921_v61, %v6761_v41  ;;  %v6380_v21 = vadd.f32 %v6348_v35, %v6188_v9  ;;  %v6078_v29 = vrot.slane %v13255_v12, %v9735_v32  ;;  %v6270_v50 = vrot.slane %v13255_v12, %v9748_v24  ;;  %v16078_v61 = vld [vmem:[#allocation109_spill] sm:$0xff] }
 0x733   :  { %v5995_v17 = vmul.f32 %v5918_v42, %v16077_v4  ;;  %v6462_v57 = vrot.slane %v13255_v12, %v9756_v13  ;;  %v13789_v46 = vadd.f32 %v7306_v45, %v7146_v0  ;;  %v6924_v18 = vmul.f32 %v6850_v23, %v16078_v61  ;;  %v16083_v0 = vld [vmem:[#allocation170_spill] sm:$0xff] }
 0x734   :  { %v7388_v55 = vpop.permute.xlu0 %7387  ;;  %v6572_v33 = vadd.f32 %v6540_v52, %v6380_v21  ;;  %v6155_v7 = vmul.f32 %v6078_v29, %v16079_v53  ;;  %v7145_v34 = vadd.f32 %v7113_v38, %v6953_v39  ;;  %v6654_v41 = vrot.slane %v13255_v12, %v9767_v51  ;;  %v16084_v29 = vld [vmem:[#allocation175_spill] sm:$0xff] }
 0x735   :  { %v7483_v5 = vsel %vm2829_vm1, %v13380_v20, %v7388_v55  ;;  %v16076_v20 = vld [vmem:[#allocation177_spill] sm:$0xff]  ;;  %v16081_v55 = vld [vmem:[#allocation139_spill] sm:$0xff]  ;;  %v6846_v45 = vrot.slane %v13255_v12, %v9777_v47  ;;  %v6539_v23 = vmul.f32 %v6462_v57, %v16083_v0  ;;  %v7038_v38 = vrot.slane %v13255_v12, %v9884_v27 }
 0x736   :  { %8564 = vmatprep.mubr.msk.f32.mxu0 %vm7515_vm2, %v7483_v5  ;;  %v6732_v48 = vmul.f32 %v6658_v63, %v16076_v20  ;;  %v7308_v63 = vmul.f32 %v7234_v19, %v16081_v55  ;;  %v7394_v9 = vpop.permute.xlu1 %7393  ;;  %v6187_v35 = vadd.f32 %v6155_v7, %v5995_v17  ;;  %v16082_v5 = vld [vmem:[#allocation165_spill] sm:$0xff]  ;;  %v5930_v19 = vrot.slane %v13269_v16, %v9732_v31  ;;  %v16088_v55 = vld [vmem:[#allocation186_spill] sm:$0xff] }
 0x737   :  { %8565 = vmatmul.mubr.msk.f32.vlgmr.msra.gmra.mrb[16].mxu0 %vm7515_vm2, %v7484_v54  ;;  %v7116_v54 = vmul.f32 %v7042_v36, %v16080_v60  ;;  %v6347_v42 = vmul.f32 %v6270_v50, %v16082_v5  ;;  %v7230_v36 = vrot.slane %v13255_v12, %v9809_v15  ;;  %v6090_v22 = vrot.slane %v13269_v16, %v9735_v32 }
 0x738   :  { %v6764_v28 = vadd.f32 %v6732_v48, %v6572_v33  ;;  %v6282_v52 = vrot.slane %v13269_v16, %v9748_v24  ;;  %v6731_v20 = vmul.f32 %v6654_v41, %v16084_v29  ;;  %v16085_v48 = vld [vmem:[#allocation172_spill] sm:$0xff]  ;;  %v6474_v17 = vrot.slane %v13269_v16, %v9756_v13 }
 0x739   :  { %v6379_v21 = vadd.f32 %v6347_v42, %v6187_v35  ;;  %v5998_v4 = vmul.f32 %v5930_v19, %v16085_v48  ;;  %v6666_v12 = vrot.slane %v13269_v16, %v9767_v51  ;;  %v13817_v50 = vadd.f32 %v7305_v25, %v7145_v34  ;;  %v16086_v33 = vld [vmem:[#allocation108_spill] sm:$0xff] }
 0x73a   :  { %v6956_v39 = vadd.f32 %v6924_v18, %v6764_v28  ;;  %v6923_v61 = vmul.f32 %v6846_v45, %v16086_v33  ;;  %v16087_v18 = vld [vmem:[#allocation79_spill] sm:$0xff]  ;;  %v7486_v7 = vsel %vm2829_vm1, %v13423_v49, %v7394_v9  ;;  %v7115_v41 = vmul.f32 %v7038_v38, %v16088_v55  ;;  %v16089_v28 = vld [vmem:[#allocation137_spill] sm:$0xff]  ;;  %v16090_v29 = vld [vmem:[#allocation176_spill] sm:$0xff] }
 0x73b   :  { %v6571_v57 = vadd.f32 %v6539_v23, %v6379_v21  ;;  %v6158_v53 = vmul.f32 %v6090_v22, %v16087_v18  ;;  %v7307_v35 = vmul.f32 %v7230_v36, %v16089_v28  ;;  %v6350_v25 = vmul.f32 %v6282_v52, %v16090_v29  ;;  %v16091_v23 = vld [vmem:[#allocation183_spill] sm:$0xff]  ;;  %v16092_v49 = vld [vmem:[#allocation50_spill] sm:$0xff] }
 0x73c   :  { %v7148_v60 = vadd.f32 %v7116_v54, %v6956_v39  ;;  %v7392_v5 = vpop.permute.xlu0 %7391  ;;  %v7398_v42 = vpop.permute.xlu1 %7397  ;;  %v6858_v34 = vrot.slane %v13269_v16, %v9777_v47  ;;  %v6542_v21 = vmul.f32 %v6474_v17, %v16091_v23  ;;  %v6734_v54 = vmul.f32 %v6666_v12, %v16092_v49 }
 0x73d   :  { %v6763_v0 = vadd.f32 %v6731_v20, %v6571_v57  ;;  %v6190_v19 = vadd.f32 %v6158_v53, %v5998_v4  ;;  %v7485_v45 = vsel %vm2829_vm1, %v13476_v8, %v7392_v5  ;;  %v7050_v9 = vrot.slane %v13269_v16, %v9884_v27  ;;  %v16093_v57 = vld [vmem:[#allocation195_spill] sm:$0xff] }
 0x73e   :  { %8567 = vmatprep.mubr.msk.f32.mxu0 %vm7515_vm2, %v7485_v45  ;;  %v7242_v39 = vrot.slane %v13269_v16, %v9809_v15  ;;  %v5926_v22 = vrot.slane %v13265_v11, %v9732_v31  ;;  %v7488_v8 = vsel %vm2829_vm1, %v13505_v2, %v7398_v42  ;;  %v13842_v52 = vadd.f32 %v7308_v63, %v7148_v60  ;;  %v16095_v2 = vld [vmem:[#allocation242_spill] sm:$0xff]  ;;  %v16097_v5 = vld [vmem:[#allocation211_spill] sm:$0xff] }
 0x73f   :  { %v6955_v38 = vadd.f32 %v6923_v61, %v6763_v0  ;;  %v6382_v36 = vadd.f32 %v6350_v25, %v6190_v19  ;;  %8568 = vmatmul.mubr.msk.f32.gmra.mrb[18].mxu0 %vm7515_vm2, %v7486_v7  ;;  %v6086_v20 = vrot.slane %v13265_v11, %v9735_v32  ;;  %v6278_v48 = vrot.slane %v13265_v11, %v9748_v24  ;;  %v16094_v61 = vld [vmem:[#allocation168_spill] sm:$0xff]  ;;  %v16096_v7 = vld [vmem:[#allocation77_spill] sm:$0xff]  ;;  %v16098_v25 = vld [vmem:[#allocation147_spill] sm:$0xff] }
 0x740   :  { %v7396_v4 = vpop.permute.xlu0 %7395  ;;  %v7402_v17 = vpop.permute.xlu1 %7401  ;;  %v6926_v33 = vmul.f32 %v6858_v34, %v16093_v57  ;;  %v5997_v18 = vmul.f32 %v5926_v22, %v16094_v61  ;;  %v7118_v63 = vmul.f32 %v7050_v9, %v16095_v2  ;;  %v6470_v55 = vrot.slane %v13265_v11, %v9756_v13  ;;  %v16103_v57 = vld [vmem:[#allocation192_spill] sm:$0xff] }
 0x741   :  { %v7147_v12 = vadd.f32 %v7115_v41, %v6955_v38  ;;  %v6574_v16 = vadd.f32 %v6542_v21, %v6382_v36  ;;  %v7487_v53 = vsel %vm2829_vm1, %v13547_v37, %v7396_v4  ;;  %v6157_v60 = vmul.f32 %v6086_v20, %v16096_v7  ;;  %v16099_v38 = vld [vmem:[#allocation181_spill] sm:$0xff]  ;;  %v16100_v20 = vld [vmem:[#allocation30_spill] sm:$0xff]  ;;  %v16101_v4 = vld [vmem:[#allocation31_spill] sm:$0xff] }
 0x742   :  { %8570 = vmatprep.mubr.msk.f32.mxu0 %vm7515_vm2, %v7487_v53  ;;  %v7310_v41 = vmul.f32 %v7242_v39, %v16097_v5  ;;  %v6662_v42 = vrot.slane %v13265_v11, %v9767_v51  ;;  %v6854_v0 = vrot.slane %v13265_v11, %v9777_v47  ;;  %v7490_v37 = vsel %vm2829_vm1, %v13567_v26, %v7402_v17  ;;  %v16105_v5 = vld [vmem:[#allocation230_spill] sm:$0xff] }
 0x743   :  { %v6766_v28 = vadd.f32 %v6734_v54, %v6574_v16  ;;  %8571 = vmatmul.mubr.msk.f32.gmra.mrb[20].mxu0 %vm7515_vm2, %v7488_v8  ;;  %v13865_v19 = vadd.f32 %v7307_v35, %v7147_v12  ;;  %v6189_v29 = vadd.f32 %v6157_v60, %v5997_v18  ;;  %v6349_v34 = vmul.f32 %v6278_v48, %v16098_v25 }
 0x744   :  { %v7400_v45 = vpop.permute.xlu0 %7399  ;;  %v7406_v23 = vpop.permute.xlu1 %7405  ;;  %v5938_v49 = vrot.slane %v13295_v43, %v9732_v31  ;;  %v6098_v54 = vrot.slane %v13295_v43, %v9735_v32  ;;  %v6290_v9 = vrot.slane %v13295_v43, %v9748_v24  ;;  %v6541_v36 = vmul.f32 %v6470_v55, %v16099_v38 }
 0x745   :  { %v6958_v21 = vadd.f32 %v6926_v33, %v6766_v28  ;;  %v7489_v26 = vsel %vm2829_vm1, %v13599_v10, %v7400_v45  ;;  %v6381_v35 = vadd.f32 %v6349_v34, %v6189_v29  ;;  %v7046_v39 = vrot.slane %v13265_v11, %v9884_v27  ;;  %v16102_v10 = vld [vmem:[#allocation48_spill] sm:$0xff]  ;;  %v16107_v34 = vld [vmem:[#allocation194_spill] sm:$0xff] }
 0x746   :  { %8573 = vmatprep.mubr.msk.f32.mxu0 %vm7515_vm2, %v7489_v26  ;;  %v7238_v8 = vrot.slane %v13265_v11, %v9809_v15  ;;  %v6000_v48 = vmul.f32 %v5938_v49, %v16100_v20  ;;  %v6160_v17 = vmul.f32 %v6098_v54, %v16101_v4  ;;  %v6733_v16 = vmul.f32 %v6662_v42, %v16102_v10  ;;  %v16111_v10 = vld [vmem:[#allocation179_spill] sm:$0xff] }
 0x747   :  { %v7150_v22 = vadd.f32 %v7118_v63, %v6958_v21  ;;  %8574 = vmatmul.mubr.msk.f32.gmra.mrb[22].mxu0 %vm7515_vm2, %v7490_v37  ;;  %v6573_v12 = vadd.f32 %v6541_v36, %v6381_v35  ;;  %v6925_v33 = vmul.f32 %v6854_v0, %v16103_v57  ;;  %v6482_v61 = vrot.slane %v13295_v43, %v9756_v13  ;;  %v16104_v63 = vld [vmem:[#allocation187_spill] sm:$0xff] }
 0x748   :  { %v7492_v18 = vsel %vm2829_vm1, %v13623_v62, %v7406_v23  ;;  %v7404_v53 = vpop.permute.xlu0 %7403  ;;  %v7410_v2 = vpop.permute.xlu1 %7409  ;;  %v6192_v11 = vadd.f32 %v6160_v17, %v6000_v48  ;;  %v6352_v7 = vmul.f32 %v6290_v9, %v16104_v63  ;;  %v6674_v60 = vrot.slane %v13295_v43, %v9767_v51  ;;  %v16106_v37 = vld [vmem:[#allocation207_spill] sm:$0xff]  ;;  %v16110_v17 = vld [vmem:[#allocation28_spill] sm:$0xff] }
 0x749   :  { %v7491_v55 = vsel %vm2829_vm1, %v13655_v1, %v7404_v53  ;;  %v6765_v28 = vadd.f32 %v6733_v16, %v6573_v12  ;;  %v7117_v42 = vmul.f32 %v7046_v39, %v16105_v5  ;;  %v6866_v0 = vrot.slane %v13295_v43, %v9777_v47  ;;  %v16108_v35 = vld [vmem:[#allocation199_spill] sm:$0xff] }
 0x74a   :  { %8576 = vmatprep.mubr.msk.f32.mxu0 %vm7515_vm2, %v7491_v55  ;;  %v13900_v62 = vadd.f32 %v7310_v41, %v7150_v22  ;;  %v7309_v29 = vmul.f32 %v7238_v8, %v16106_v37  ;;  %v6384_v25 = vadd.f32 %v6352_v7, %v6192_v11  ;;  %v6544_v45 = vmul.f32 %v6482_v61, %v16107_v34  ;;  %v16109_v22 = vld [vmem:[#allocation113_spill] sm:$0xff]  ;;  %v16112_v57 = vld [vmem:[#allocation215_spill] sm:$0xff] }
 0x74b   :  { %8577 = vmatmul.mubr.msk.f32.gmra.mrb[24].mxu0 %vm7515_vm2, %v7492_v18  ;;  %v6957_v23 = vadd.f32 %v6925_v33, %v6765_v28  ;;  %v7058_v1 = vrot.slane %v13295_v43, %v9884_v27  ;;  %v5934_v21 = vrot.slane %v13271_v14, %v9732_v31  ;;  %v6094_v49 = vrot.slane %v13271_v14, %v9735_v32  ;;  %v16113_v61 = vld [vmem:[#allocation185_spill] sm:$0xff]  ;;  %v16114_v55 = vld [vmem:[#allocation143_spill] sm:$0xff] }
 0x74c   :  { %v7494_v41 = vsel %vm2829_vm1, %v13680_v44, %v7410_v2  ;;  %v7408_v54 = vpop.permute.xlu0 %7407  ;;  %v7414_v9 = vpop.permute.xlu1 %7413  ;;  %v6576_v26 = vadd.f32 %v6544_v45, %v6384_v25  ;;  %v6736_v38 = vmul.f32 %v6674_v60, %v16108_v35  ;;  %v6286_v36 = vrot.slane %v13271_v14, %v9748_v24  ;;  %v16115_v34 = vld [vmem:[#allocation191_spill] sm:$0xff] }
 0x74d   :  { %v7493_v39 = vsel %vm2829_vm1, %v13703_v3, %v7408_v54  ;;  %v6928_v8 = vmul.f32 %v6866_v0, %v16109_v22  ;;  %v7250_v20 = vrot.slane %v13295_v43, %v9809_v15  ;;  %v6478_v48 = vrot.slane %v13271_v14, %v9756_v13  ;;  %v16120_v22 = vld [vmem:[#allocation141_spill] sm:$0xff] }
 0x74e   :  { %8579 = vmatprep.mubr.msk.f32.mxu0 %vm7515_vm2, %v7493_v39  ;;  %v7149_v44 = vadd.f32 %v7117_v42, %v6957_v23  ;;  %v6768_v4 = vadd.f32 %v6736_v38, %v6576_v26  ;;  %v5999_v12 = vmul.f32 %v5934_v21, %v16110_v17  ;;  %v6159_v16 = vmul.f32 %v6094_v49, %v16111_v10  ;;  %v16116_v23 = vld [vmem:[#allocation197_spill] sm:$0xff]  ;;  %v16118_v26 = vld [vmem:[#allocation111_spill] sm:$0xff] }
 0x74f   :  { %8580 = vmatmul.mubr.msk.f32.gmra.mrb[26].mxu0 %vm7515_vm2, %v7494_v41  ;;  %v7496_v3 = vsel %vm2829_vm1, %v13726_v56, %v7414_v9  ;;  %v7120_v33 = vmul.f32 %v7058_v1, %v16112_v57  ;;  %v6351_v43 = vmul.f32 %v6286_v36, %v16113_v61  ;;  %v6670_v18 = vrot.slane %v13271_v14, %v9767_v51  ;;  %v16119_v38 = vld [vmem:[#allocation213_spill] sm:$0xff] }
 0x750   :  { %v7412_v53 = vpop.permute.xlu0 %7411  ;;  %v7418_v2 = vpop.permute.xlu1 %7417  ;;  %v6960_v11 = vadd.f32 %v6928_v8, %v6768_v4  ;;  %v6191_v63 = vadd.f32 %v6159_v16, %v5999_v12  ;;  %v6862_v7 = vrot.slane %v13271_v14, %v9777_v47  ;;  %v7054_v60 = vrot.slane %v13271_v14, %v9884_v27  ;;  %v16122_v16 = vld [vmem:[#allocation198_spill] sm:$0xff] }
 0x751   :  { %v7495_v56 = vsel %vm2829_vm1, %v13755_v58, %v7412_v53  ;;  %v7312_v28 = vmul.f32 %v7250_v20, %v16114_v55  ;;  %v7246_v5 = vrot.slane %v13271_v14, %v9809_v15  ;;  %v5946_v42 = vrot.slane %v13343_v59, %v9732_v31  ;;  %v16117_v58 = vld [vmem:[#allocation193_spill] sm:$0xff]  ;;  %v16121_v20 = vld [vmem:[#allocation82_spill] sm:$0xff] }
 0x752   :  { %8582 = vmatprep.mubr.msk.f32.mxu0 %vm7515_vm2, %v7495_v56  ;;  %v7341_v0 = vadd.f32 %v7309_v29, %v7149_v44  ;;  %v7152_v37 = vadd.f32 %v7120_v33, %v6960_v11  ;;  %v6383_v25 = vadd.f32 %v6351_v43, %v6191_v63  ;;  %v6543_v45 = vmul.f32 %v6478_v48, %v16115_v34  ;;  %v16123_v63 = vld [vmem:[#allocation210_spill] sm:$0xff]  ;;  %v16124_v55 = vld [vmem:[#allocation53_spill] sm:$0xff] }
 0x753   :  { %8583 = vmatmul.mubr.msk.f32.gmra.mrb[28].mxu0 %vm7515_vm2, %v7496_v3  ;;  %v6735_v1 = vmul.f32 %v6670_v18, %v16116_v23  ;;  %v6002_v21 = vmul.f32 %v5946_v42, %v16117_v58  ;;  %v6106_v49 = vrot.slane %v13343_v59, %v9735_v32  ;;  %v6298_v14 = vrot.slane %v13343_v59, %v9748_v24 }
 0x754   :  { %v7498_v41 = vsel %vm2829_vm1, %v13789_v46, %v7418_v2  ;;  %v7416_v29 = vpop.permute.xlu0 %7415  ;;  %v7422_v54 = vpop.permute.xlu1 %7421  ;;  %v6575_v9 = vadd.f32 %v6543_v45, %v6383_v25  ;;  %v6927_v35 = vmul.f32 %v6862_v7, %v16118_v26  ;;  %v7119_v36 = vmul.f32 %v7054_v60, %v16119_v38  ;;  %v16127_v45 = vld [vmem:[#allocation224_spill] sm:$0xff] }
 0x755   :  { %v7497_v39 = vsel %vm2829_vm1, %v13817_v50, %v7416_v29  ;;  %v7311_v8 = vmul.f32 %v7246_v5, %v16120_v22  ;;  %v6162_v48 = vmul.f32 %v6106_v49, %v16121_v20  ;;  %v6490_v44 = vrot.slane %v13343_v59, %v9756_v13  ;;  %v16125_v5 = vld [vmem:[#allocation189_spill] sm:$0xff]  ;;  %v16130_v38 = vld [vmem:[#allocation204_spill] sm:$0xff] }
 0x756   :  { %8585 = vmatprep.mubr.msk.f32.mxu0 %vm7515_vm2, %v7497_v39  ;;  %v7344_v46 = vadd.f32 %v7312_v28, %v7152_v37  ;;  %v6767_v4 = vadd.f32 %v6735_v1, %v6575_v9  ;;  %v6682_v17 = vrot.slane %v13343_v59, %v9767_v51  ;;  %v6874_v12 = vrot.slane %v13343_v59, %v9777_v47  ;;  %v16126_v37 = vld [vmem:[#allocation80_spill] sm:$0xff] }
 0x757   :  { %8586 = vmatmul.mubr.msk.f32.gmra.mrb[30].mxu0 %vm7515_vm2, %v7498_v41  ;;  %v7500_v50 = vsel %vm2829_vm1, %v13842_v52, %v7422_v54  ;;  %v6194_v10 = vadd.f32 %v6162_v48, %v6002_v21  ;;  %v6354_v3 = vmul.f32 %v6298_v14, %v16122_v16  ;;  %v5942_v57 = vrot.slane %v13320_v6, %v9732_v31  ;;  %v16128_v21 = vld [vmem:[#allocation263_spill] sm:$0xff]  ;;  %v16129_v41 = vld [vmem:[#allocation196_spill] sm:$0xff] }
 0x758   :  { %v7420_v33 = vpop.permute.xlu0 %7419  ;;  %v7426_v61 = vpop.permute.xlu1 %7425  ;;  %v6959_v43 = vadd.f32 %v6927_v35, %v6767_v4  ;;  %v7066_v18 = vrot.slane %v13343_v59, %v9884_v27  ;;  %v6102_v53 = vrot.slane %v13320_v6, %v9735_v32  ;;  %v6294_v2 = vrot.slane %v13320_v6, %v9748_v24 }
 0x759   :  { %v7499_v52 = vsel %vm2829_vm1, %v13865_v19, %v7420_v33  ;;  %v6386_v11 = vadd.f32 %v6354_v3, %v6194_v10  ;;  %v6546_v7 = vmul.f32 %v6490_v44, %v16123_v63  ;;  %v6486_v60 = vrot.slane %v13320_v6, %v9756_v13  ;;  %v16132_v10 = vld [vmem:[#allocation51_spill] sm:$0xff] }
 0x75a   :  { %8588 = vmatprep.mubr.msk.f32.mxu0 %vm7515_vm2, %v7499_v52  ;;  %v7151_v56 = vadd.f32 %v7119_v36, %v6959_v43  ;;  %v6738_v28 = vmul.f32 %v6682_v17, %v16124_v55  ;;  %v6001_v42 = vmul.f32 %v5942_v57, %v16125_v5  ;;  %v6161_v25 = vmul.f32 %v6102_v53, %v16126_v37  ;;  %v16133_v57 = vld [vmem:[#allocation35_spill] sm:$0xff]  ;;  %v16139_v5 = vld [vmem:[#allocation214_spill] sm:$0xff] }
 0x75b   :  { %8589 = vmatmul.mubr.msk.f32.gmra.mrb[32].mxu0 %vm7515_vm2, %v7500_v50  ;;  %v7502_v19 = vsel %vm2829_vm1, %v13900_v62, %v7426_v61  ;;  %v6578_v34 = vadd.f32 %v6546_v7, %v6386_v11  ;;  %v6930_v23 = vmul.f32 %v6874_v12, %v16127_v45  ;;  %v7258_v1 = vrot.slane %v13343_v59, %v9809_v15  ;;  %v16134_v61 = vld [vmem:[#allocation37_spill] sm:$0xff]  ;;  %v16136_v11 = vld [vmem:[#allocation220_spill] sm:$0xff] }
 0x75c   :  { %v7424_v58 = vpop.permute.xlu0 %7423  ;;  %v7122_v49 = vmul.f32 %v7066_v18, %v16128_v21  ;;  %v6193_v14 = vadd.f32 %v6161_v25, %v6001_v42  ;;  %v6353_v29 = vmul.f32 %v6294_v2, %v16129_v41  ;;  %v6678_v54 = vrot.slane %v13320_v6, %v9767_v51  ;;  %v7430_v26 = vpop.permute.xlu1 %7429  ;;  %v16137_v7 = vld [vmem:[#allocation252_spill] sm:$0xff]  ;;  %v16140_v25 = vld [vmem:[#allocation223_spill] sm:$0xff] }
 0x75d   :  { %v7501_v9 = vsel %vm2829_vm1, %v7341_v0, %v7424_v58  ;;  %v7343_v35 = vadd.f32 %v7311_v8, %v7151_v56  ;;  %v6770_v62 = vadd.f32 %v6738_v28, %v6578_v34  ;;  %v6545_v36 = vmul.f32 %v6486_v60, %v16130_v38  ;;  %v16131_v8 = vld [vmem:[#allocation219_spill] sm:$0xff]  ;;  %v16138_v56 = vld [vmem:[#allocation233_spill] sm:$0xff]  ;;  %v16141_v58 = vld [vmem:[#allocation228_spill] sm:$0xff] }
 0x75e   :  { %8591 = vmatprep.mubr.msk.f32.mxu0 %vm7515_vm2, %v7501_v9  ;;  %v6385_v39 = vadd.f32 %v6353_v29, %v6193_v14  ;;  %v6870_v59 = vrot.slane %v13320_v6, %v9777_v47  ;;  %v7062_v22 = vrot.slane %v13320_v6, %v9884_v27  ;;  %v7254_v20 = vrot.slane %v13320_v6, %v9809_v15 }
 0x75f   :  { %8592 = vmatmul.mubr.msk.f32.gmra.mrb[34].mxu0 %vm7515_vm2, %v7502_v19  ;;  %v6962_v0 = vadd.f32 %v6930_v23, %v6770_v62  ;;  %v5954_v48 = vrot.slane %v16131_v8, %v9732_v31  ;;  %v6114_v44 = vrot.slane %v16131_v8, %v9735_v32  ;;  %v6306_v4 = vrot.slane %v16131_v8, %v9748_v24 }
 0x760   :  { %v7504_v17 = vsel %vm2829_vm1, %v7344_v46, %v7430_v26  ;;  %v7428_v12 = vpop.permute.xlu0 %7427  ;;  %v6577_v50 = vadd.f32 %v6545_v36, %v6385_v39  ;;  %v6737_v16 = vmul.f32 %v6678_v54, %v16132_v10  ;;  %v6498_v6 = vrot.slane %v16131_v8, %v9756_v13  ;;  %v16135_v46 = vld [vmem:[#allocation236_spill] sm:$0xff]  ;;  %v7434_v23 = vpop.permute.xlu1 %7433  ;;  %v16142_v54 = vld [vmem:[#allocation33_spill] sm:$0xff]  ;;  %v16143_v26 = vld [vmem:[#allocation202_spill] sm:$0xff] }
 0x761   :  { %v7503_v3 = vsel %vm2829_vm1, %v7343_v35, %v7428_v12  ;;  %v6004_v33 = vmul.f32 %v5954_v48, %v16133_v57  ;;  %v6164_v43 = vmul.f32 %v6114_v44, %v16134_v61  ;;  %v6690_v18 = vrot.slane %v16131_v8, %v9767_v51  ;;  %v16145_v12 = vld [vmem:[#allocation240_spill] sm:$0xff] }
 0x762   :  { %8594 = vmatprep.mubr.msk.f32.mxu0 %vm7515_vm2, %v7503_v3  ;;  %v7154_v53 = vadd.f32 %v7122_v49, %v6962_v0  ;;  %v7314_v2 = vmul.f32 %v7258_v1, %v16135_v46  ;;  %v6769_v52 = vadd.f32 %v6737_v16, %v6577_v50  ;;  %v6929_v63 = vmul.f32 %v6870_v59, %v16136_v11  ;;  %v16146_v10 = vld [vmem:[#allocation212_spill] sm:$0xff]  ;;  %v16148_v46 = vld [vmem:[#allocation226_spill] sm:$0xff] }
 0x763   :  { %8595 = vmatmul.mubr.msk.f32.gmra.mrb[36].mxu0 %vm7515_vm2, %v7504_v17  ;;  %v7121_v60 = vmul.f32 %v7062_v22, %v16137_v7  ;;  %v7313_v55 = vmul.f32 %v7254_v20, %v16138_v56  ;;  %v6196_v28 = vadd.f32 %v6164_v43, %v6004_v33  ;;  %v6356_v42 = vmul.f32 %v6306_v4, %v16139_v5  ;;  %v16144_v4 = vld [vmem:[#allocation116_spill] sm:$0xff] }
 0x764   :  { %v6961_v37 = vadd.f32 %v6929_v63, %v6769_v52  ;;  %v6548_v19 = vmul.f32 %v6498_v6, %v16140_v25  ;;  %v5950_v34 = vrot.slane %v13364_v30, %v9732_v31  ;;  %v6110_v45 = vrot.slane %v13364_v30, %v9735_v32  ;;  %v7432_v62 = vpop.permute.xlu0 %7431  ;;  %v16147_v6 = vld [vmem:[#allocation218_spill] sm:$0xff] }
 0x765   :  { %v6388_v1 = vadd.f32 %v6356_v42, %v6196_v28  ;;  %v6740_v21 = vmul.f32 %v6690_v18, %v16141_v58  ;;  %v6882_v49 = vrot.slane %v16131_v8, %v9777_v47  ;;  %v7074_v14 = vrot.slane %v16131_v8, %v9884_v27  ;;  %v16154_v58 = vld [vmem:[#allocation227_spill] sm:$0xff] }
 0x766   :  { %v7346_v41 = vadd.f32 %v7314_v2, %v7154_v53  ;;  %v7153_v29 = vadd.f32 %v7121_v60, %v6961_v37  ;;  %v6003_v9 = vmul.f32 %v5950_v34, %v16142_v54  ;;  %v6163_v35 = vmul.f32 %v6110_v45, %v16143_v26  ;;  %v16149_v60 = vld [vmem:[#allocation222_spill] sm:$0xff] }
 0x767   :  { %v6580_v38 = vadd.f32 %v6548_v19, %v6388_v1  ;;  %v7266_v36 = vrot.slane %v16131_v8, %v9809_v15  ;;  %v6302_v39 = vrot.slane %v13364_v30, %v9748_v24  ;;  %v6494_v59 = vrot.slane %v13364_v30, %v9756_v13  ;;  %v16151_v37 = vld [vmem:[#allocation146_spill] sm:$0xff] }
 0x768   :  { %v7506_v22 = vsel %vm2829_vm1, %v7346_v41, %v7434_v23  ;;  %v7345_v20 = vadd.f32 %v7313_v55, %v7153_v29  ;;  %v6195_v0 = vadd.f32 %v6163_v35, %v6003_v9  ;;  %v6686_v48 = vrot.slane %v13364_v30, %v9767_v51  ;;  %v16150_v55 = vld [vmem:[#allocation86_spill] sm:$0xff]  ;;  %v16156_v29 = vld [vmem:[#allocation235_spill] sm:$0xff] }
 0x769   :  { %v6772_v44 = vadd.f32 %v6740_v21, %v6580_v38  ;;  %v6932_v17 = vmul.f32 %v6882_v49, %v16144_v4  ;;  %v7124_v50 = vmul.f32 %v7074_v14, %v16145_v12  ;;  %v6355_v8 = vmul.f32 %v6302_v39, %v16146_v10  ;;  %v16152_v19 = vld [vmem:[#allocation114_spill] sm:$0xff]  ;;  %v16155_v14 = vld [vmem:[#allocation145_spill] sm:$0xff] }
 0x76a   :  { %v7505_v16 = vsel %vm2829_vm1, %v7345_v20, %v7432_v62  ;;  %v6547_v3 = vmul.f32 %v6494_v59, %v16147_v6  ;;  %v6878_v57 = vrot.slane %v13364_v30, %v9777_v47  ;;  %v7070_v33 = vrot.slane %v13364_v30, %v9884_v27  ;;  %v16157_v9 = vld [vmem:[#allocation234_spill] sm:$0xff]  ;;  %v7438_v20 = vpop.permute.xlu1 %7437  ;;  %v16161_v10 = vld [vmem:[#allocation249_spill] sm:$0xff]  ;;  %v7436_v6 = vpop.permute.xlu0 %7435 }
 0x76b   :  { %8597 = vmatprep.mubr.msk.f32.mxu0 %vm7515_vm2, %v7505_v16  ;;  %v6964_v61 = vadd.f32 %v6932_v17, %v6772_v44  ;;  %v6387_v43 = vadd.f32 %v6355_v8, %v6195_v0  ;;  %v5962_v18 = vrot.slane %v13437_v40, %v9732_v31  ;;  %v6122_v53 = vrot.slane %v13437_v40, %v9735_v32  ;;  %v16159_v0 = vld [vmem:[#allocation216_spill] sm:$0xff] }
 0x76c   :  { %8598 = vmatmul.mubr.msk.f32.gmra.mrb[38].mxu0 %vm7515_vm2, %v7506_v22  ;;  %v6739_v2 = vmul.f32 %v6686_v48, %v16148_v46  ;;  %v7262_v52 = vrot.slane %v13364_v30, %v9809_v15  ;;  %v6314_v11 = vrot.slane %v13437_v40, %v9748_v24  ;;  %v6506_v63 = vrot.slane %v13437_v40, %v9756_v13  ;;  %v16153_v30 = vld [vmem:[#allocation238_spill] sm:$0xff]  ;;  %v16160_v44 = vld [vmem:[#allocation84_spill] sm:$0xff] }
 0x76d   :  { %v6579_v7 = vadd.f32 %v6547_v3, %v6387_v43  ;;  %v6006_v56 = vmul.f32 %v5962_v18, %v16149_v60  ;;  %v6166_v28 = vmul.f32 %v6122_v53, %v16150_v55  ;;  %v6698_v5 = vrot.slane %v13437_v40, %v9767_v51 }
 0x76e   :  { %v7156_v42 = vadd.f32 %v7124_v50, %v6964_v61  ;;  %v7316_v25 = vmul.f32 %v7266_v36, %v16151_v37  ;;  %v6931_v34 = vmul.f32 %v6878_v57, %v16152_v19  ;;  %v7123_v45 = vmul.f32 %v7070_v33, %v16153_v30  ;;  %v16158_v36 = vld [vmem:[#allocation57_spill] sm:$0xff] }
 0x76f   :  { %v6771_v23 = vadd.f32 %v6739_v2, %v6579_v7  ;;  %v6198_v1 = vadd.f32 %v6166_v28, %v6006_v56  ;;  %v6358_v21 = vmul.f32 %v6314_v11, %v16154_v58  ;;  %v6890_v49 = vrot.slane %v13437_v40, %v9777_v47  ;;  %v16162_v33 = vld [vmem:[#allocation225_spill] sm:$0xff]  ;;  %v16163_v2 = vld [vmem:[#allocation272_spill] sm:$0xff]  ;;  %v16165_v28 = vld [vmem:[#allocation246_spill] sm:$0xff] }
 0x770   :  { %v7315_v41 = vmul.f32 %v7262_v52, %v16155_v14  ;;  %v6550_v54 = vmul.f32 %v6506_v63, %v16156_v29  ;;  %v5958_v26 = vrot.slane %v16157_v9, %v9732_v31  ;;  %v6118_v35 = vrot.slane %v16157_v9, %v9735_v32  ;;  %v16164_v63 = vld [vmem:[#allocation231_spill] sm:$0xff] }
 0x771   :  { %v6963_v62 = vadd.f32 %v6931_v34, %v6771_v23  ;;  %v6390_v38 = vadd.f32 %v6358_v21, %v6198_v1  ;;  %v6742_v39 = vmul.f32 %v6698_v5, %v16158_v36  ;;  %v7082_v59 = vrot.slane %v13437_v40, %v9884_v27  ;;  %v16168_v1 = vld [vmem:[#allocation88_spill] sm:$0xff] }
 0x772   :  { %v7348_v22 = vadd.f32 %v7316_v25, %v7156_v42  ;;  %v6005_v48 = vmul.f32 %v5958_v26, %v16159_v0  ;;  %v6165_v4 = vmul.f32 %v6118_v35, %v16160_v44  ;;  %v6310_v17 = vrot.slane %v16157_v9, %v9748_v24  ;;  %v16166_v25 = vld [vmem:[#allocation55_spill] sm:$0xff]  ;;  %v16174_v0 = vld [vmem:[#allocation232_spill] sm:$0xff] }
 0x773   :  { %v7155_v12 = vadd.f32 %v7123_v45, %v6963_v62  ;;  %v6582_v50 = vadd.f32 %v6550_v54, %v6390_v38  ;;  %v6934_v8 = vmul.f32 %v6890_v49, %v16161_v10  ;;  %v6502_v16 = vrot.slane %v16157_v9, %v9756_v13  ;;  %v16167_v45 = vld [vmem:[#allocation40_spill] sm:$0xff]  ;;  %v16170_v54 = vld [vmem:[#allocation259_spill] sm:$0xff] }
 0x774   :  { %v7274_v3 = vrot.slane %v13437_v40, %v9809_v15  ;;  %v6197_v57 = vadd.f32 %v6165_v4, %v6005_v48  ;;  %v6357_v61 = vmul.f32 %v6310_v17, %v16162_v33  ;;  %v6694_v43 = vrot.slane %v16157_v9, %v9767_v51  ;;  %v16175_v4 = vld [vmem:[#allocation248_spill] sm:$0xff]  ;;  %v7440_v33 = vpop.permute.xlu0 %7439 }
 0x775   :  { %v7508_v18 = vsel %vm2829_vm1, %v7348_v22, %v7438_v20  ;;  %v7347_v53 = vadd.f32 %v7315_v41, %v7155_v12  ;;  %v6774_v46 = vadd.f32 %v6742_v39, %v6582_v50  ;;  %v7126_v52 = vmul.f32 %v7082_v59, %v16163_v2  ;;  %v16169_v41 = vld [vmem:[#allocation245_spill] sm:$0xff]  ;;  %v16172_v39 = vld [vmem:[#allocation270_spill] sm:$0xff] }
 0x776   :  { %v6389_v11 = vadd.f32 %v6357_v61, %v6197_v57  ;;  %v6549_v7 = vmul.f32 %v6502_v16, %v16164_v63  ;;  %v6886_v60 = vrot.slane %v16157_v9, %v9777_v47  ;;  %v7078_v40 = vrot.slane %v16157_v9, %v9884_v27  ;;  %v16173_v22 = vld [vmem:[#allocation149_spill] sm:$0xff] }
 0x777   :  { %v7507_v56 = vsel %vm2829_vm1, %v7347_v53, %v7436_v6  ;;  %v6966_v55 = vadd.f32 %v6934_v8, %v6774_v46  ;;  %v5970_v5 = vrot.slane %v16165_v28, %v9732_v31  ;;  %v6130_v42 = vrot.slane %v16165_v28, %v9735_v32  ;;  %v7442_v8 = vpop.permute.xlu1 %7441  ;;  %v16176_v6 = vld [vmem:[#allocation39_spill] sm:$0xff]  ;;  %v16178_v53 = vld [vmem:[#allocation229_spill] sm:$0xff] }
 0x778   :  { %8600 = vmatprep.mubr.msk.f32.mxu0 %vm7515_vm2, %v7507_v56  ;;  %v6581_v37 = vadd.f32 %v6549_v7, %v6389_v11  ;;  %v6741_v19 = vmul.f32 %v6694_v43, %v16166_v25  ;;  %v7270_v34 = vrot.slane %v16157_v9, %v9809_v15  ;;  %v6322_v30 = vrot.slane %v16165_v28, %v9748_v24  ;;  %v16171_v9 = vld [vmem:[#allocation239_spill] sm:$0xff]  ;;  %v16177_v43 = vld [vmem:[#allocation254_spill] sm:$0xff]  ;;  %v16179_v56 = vld [vmem:[#allocation237_spill] sm:$0xff] }
 0x779   :  { %8601 = vmatmul.mubr.msk.f32.gmra.mrb[40].mxu0 %vm7515_vm2, %v7508_v18  ;;  %v6008_v23 = vmul.f32 %v5970_v5, %v16167_v45  ;;  %v6168_v58 = vmul.f32 %v6130_v42, %v16168_v1  ;;  %v6514_v21 = vrot.slane %v16165_v28, %v9756_v13  ;;  %v7158_v49 = vadd.f32 %v7126_v52, %v6966_v55  ;;  %v16180_v42 = vld [vmem:[#allocation119_spill] sm:$0xff] }
 0x77a   :  { %v6773_v14 = vadd.f32 %v6741_v19, %v6581_v37  ;;  %v6933_v29 = vmul.f32 %v6886_v60, %v16169_v41  ;;  %v7318_v26 = vmul.f32 %v7274_v3, %v16170_v54  ;;  %v6360_v62 = vmul.f32 %v6322_v30, %v16171_v9  ;;  %v16181_v30 = vld [vmem:[#allocation243_spill] sm:$0xff] }
 0x77b   :  { %v6200_v35 = vadd.f32 %v6168_v58, %v6008_v23  ;;  %v6706_v38 = vrot.slane %v16165_v28, %v9767_v51  ;;  %v7125_v59 = vmul.f32 %v7078_v40, %v16172_v39  ;;  %v7317_v20 = vmul.f32 %v7270_v34, %v16173_v22  ;;  %v16182_v23 = vld [vmem:[#allocation244_spill] sm:$0xff]  ;;  %v16184_v54 = vld [vmem:[#allocation247_spill] sm:$0xff]  ;;  %v16187_v39 = vld [vmem:[#allocation153_spill] sm:$0xff] }
 0x77c   :  { %v6965_v36 = vadd.f32 %v6933_v29, %v6773_v14  ;;  %v5966_v48 = vrot.slane %v16174_v0, %v9732_v31  ;;  %v6552_v17 = vmul.f32 %v6514_v21, %v16175_v4  ;;  %v6898_v12 = vrot.slane %v16165_v28, %v9777_v47  ;;  %v16188_v22 = vld [vmem:[#allocation117_spill] sm:$0xff] }
 0x77d   :  { %v6392_v44 = vadd.f32 %v6360_v62, %v6200_v35  ;;  %v6126_v50 = vrot.slane %v16174_v0, %v9735_v32  ;;  %v7350_v10 = vadd.f32 %v7318_v26, %v7158_v49  ;;  %v6318_v57 = vrot.slane %v16174_v0, %v9748_v24  ;;  %v16183_v49 = vld [vmem:[#allocation251_spill] sm:$0xff] }
 0x77e   :  { %v7157_v16 = vadd.f32 %v7125_v59, %v6965_v36  ;;  %v6007_v3 = vmul.f32 %v5966_v48, %v16176_v6  ;;  %v6744_v18 = vmul.f32 %v6706_v38, %v16177_v43  ;;  %v6510_v2 = vrot.slane %v16174_v0, %v9756_v13  ;;  %v16185_v35 = vld [vmem:[#allocation91_spill] sm:$0xff]  ;;  %v16186_v38 = vld [vmem:[#allocation273_spill] sm:$0xff]  ;;  %v16192_v43 = vld [vmem:[#allocation256_spill] sm:$0xff] }
 0x77f   :  { %v6584_v61 = vadd.f32 %v6552_v17, %v6392_v44  ;;  %v6167_v46 = vmul.f32 %v6126_v50, %v16178_v53  ;;  %v7090_v11 = vrot.slane %v16165_v28, %v9884_v27  ;;  %v6702_v63 = vrot.slane %v16174_v0, %v9767_v51  ;;  %v16189_v17 = vld [vmem:[#allocation253_spill] sm:$0xff]  ;;  %v16193_v53 = vld [vmem:[#allocation151_spill] sm:$0xff] }
 0x780   :  { %v7349_v52 = vadd.f32 %v7317_v20, %v7157_v16  ;;  %v7510_v7 = vsel %vm2829_vm1, %v7350_v10, %v7442_v8  ;;  %v6359_v55 = vmul.f32 %v6318_v57, %v16179_v56  ;;  %v6936_v37 = vmul.f32 %v6898_v12, %v16180_v42  ;;  %v16190_v8 = vld [vmem:[#allocation275_spill] sm:$0xff]  ;;  %v16191_v6 = vld [vmem:[#allocation257_spill] sm:$0xff]  ;;  %v7444_v42 = vpop.permute.xlu0 %7443 }
 0x781   :  { %v6776_v60 = vadd.f32 %v6744_v18, %v6584_v61  ;;  %v6199_v40 = vadd.f32 %v6167_v46, %v6007_v3  ;;  %v7282_v25 = vrot.slane %v16165_v28, %v9809_v15  ;;  %v6894_v19 = vrot.slane %v16174_v0, %v9777_v47 }
 0x782   :  { %v7509_v5 = vsel %vm2829_vm1, %v7349_v52, %v7440_v33  ;;  %v6551_v45 = vmul.f32 %v6510_v2, %v16181_v30  ;;  %v5978_v1 = vrot.slane %v16182_v23, %v9732_v31  ;;  %v6138_v58 = vrot.slane %v16182_v23, %v9735_v32  ;;  %v16194_v2 = vld [vmem:[#allocation241_spill] sm:$0xff] }
 0x783   :  { %8603 = vmatprep.mubr.msk.f32.mxu0 %vm7515_vm2, %v7509_v5  ;;  %v6391_v34 = vadd.f32 %v6359_v55, %v6199_v40  ;;  %v6968_v21 = vadd.f32 %v6936_v37, %v6776_v60  ;;  %v6743_v14 = vmul.f32 %v6702_v63, %v16183_v49  ;;  %v7086_v28 = vrot.slane %v16174_v0, %v9884_v27 }
 0x784   :  { %8604 = vmatmul.mubr.msk.f32.gmra.mrb[42].mxu0 %vm7515_vm2, %v7510_v7  ;;  %v6330_v41 = vrot.slane %v16182_v23, %v9748_v24  ;;  %v6010_v26 = vmul.f32 %v5978_v1, %v16184_v54  ;;  %v6170_v9 = vmul.f32 %v6138_v58, %v16185_v35  ;;  %v6522_v62 = vrot.slane %v16182_v23, %v9756_v13  ;;  %v16198_v1 = vld [vmem:[#allocation276_spill] sm:$0xff]  ;;  %v16200_v54 = vld [vmem:[#allocation266_spill] sm:$0xff] }
 0x785   :  { %v6583_v29 = vadd.f32 %v6551_v45, %v6391_v34  ;;  %v7128_v36 = vmul.f32 %v7090_v11, %v16186_v38  ;;  %v7320_v59 = vmul.f32 %v7282_v25, %v16187_v39  ;;  %v6935_v20 = vmul.f32 %v6894_v19, %v16188_v22  ;;  %v16195_v11 = vld [vmem:[#allocation89_spill] sm:$0xff]  ;;  %v16197_v25 = vld [vmem:[#allocation250_spill] sm:$0xff] }
 0x786   :  { %v7278_v48 = vrot.slane %v16174_v0, %v9809_v15  ;;  %v6202_v4 = vadd.f32 %v6170_v9, %v6010_v26  ;;  %v6362_v12 = vmul.f32 %v6330_v41, %v16189_v17  ;;  %v6714_v50 = vrot.slane %v16182_v23, %v9767_v51  ;;  %v16201_v9 = vld [vmem:[#allocation277_spill] sm:$0xff] }
 0x787   :  { %v6775_v44 = vadd.f32 %v6743_v14, %v6583_v29  ;;  %v7160_v10 = vadd.f32 %v7128_v36, %v6968_v21  ;;  %v7127_v16 = vmul.f32 %v7086_v28, %v16190_v8  ;;  %v5974_v3 = vrot.slane %v16191_v6, %v9732_v31  ;;  %v7446_v31 = vpop.permute.xlu1 %7445  ;;  %v16199_v14 = vld [vmem:[#allocation100_spill] sm:$0xff] }
 0x788   :  { %v6134_v57 = vrot.slane %v16191_v6, %v9735_v32  ;;  %v6394_v61 = vadd.f32 %v6362_v12, %v6202_v4  ;;  %v6554_v0 = vmul.f32 %v6522_v62, %v16192_v43  ;;  %v6906_v18 = vrot.slane %v16182_v23, %v9777_v47  ;;  %v16196_v32 = vld [vmem:[#allocation271_spill] sm:$0xff]  ;;  %v16204_v4 = vld [vmem:[#allocation269_spill] sm:$0xff] }
 0x789   :  { %v6967_v33 = vadd.f32 %v6935_v20, %v6775_v44  ;;  %v7319_v46 = vmul.f32 %v7278_v48, %v16193_v53  ;;  %v6009_v52 = vmul.f32 %v5974_v3, %v16194_v2  ;;  %v6326_v7 = vrot.slane %v16191_v6, %v9748_v24  ;;  %v16203_v48 = vld [vmem:[#allocation278_spill] sm:$0xff] }
 0x78a   :  { %v6169_v63 = vmul.f32 %v6134_v57, %v16195_v11  ;;  %v6586_v40 = vadd.f32 %v6554_v0, %v6394_v61  ;;  %v6746_v56 = vmul.f32 %v6714_v50, %v16196_v32  ;;  %v6518_v55 = vrot.slane %v16191_v6, %v9756_v13  ;;  %v16205_v50 = vld [vmem:[#allocation260_spill] sm:$0xff] }
 0x78b   :  { %v7159_v60 = vadd.f32 %v7127_v16, %v6967_v33  ;;  %v7352_v5 = vadd.f32 %v7320_v59, %v7160_v10  ;;  %v6361_v19 = vmul.f32 %v6326_v7, %v16197_v25  ;;  %v6710_v34 = vrot.slane %v16191_v6, %v9767_v51  ;;  %v7448_v16 = vpop.permute.xlu0 %7447 }
 0x78c   :  { %v6201_v37 = vadd.f32 %v6169_v63, %v6009_v52  ;;  %v6778_v45 = vadd.f32 %v6746_v56, %v6586_v40  ;;  %v6938_v24 = vmul.f32 %v6906_v18, %v16198_v1  ;;  %v7098_v58 = vrot.slane %v16182_v23, %v9884_v27 }
 0x78d   :  { %v7351_v30 = vadd.f32 %v7319_v46, %v7159_v60  ;;  %v7512_v21 = vsel %vm2829_vm1, %v7352_v5, %v7446_v31  ;;  %v6553_v13 = vmul.f32 %v6518_v55, %v16199_v14  ;;  %v6902_v28 = vrot.slane %v16191_v6, %v9777_v47  ;;  %v16202_v47 = vld [vmem:[#allocation274_spill] sm:$0xff] }
 0x78e   :  { %v6393_v49 = vadd.f32 %v6361_v19, %v6201_v37  ;;  %v6970_v29 = vadd.f32 %v6938_v24, %v6778_v45  ;;  %v6745_v26 = vmul.f32 %v6710_v34, %v16200_v54  ;;  %v7094_v35 = vrot.slane %v16191_v6, %v9884_v27  ;;  %v7450_v27 = vpop.permute.xlu1 %7449 }
 0x78f   :  { %v7511_v41 = vsel %vm2829_vm1, %v7351_v30, %v7444_v42  ;;  %v7130_v62 = vmul.f32 %v7098_v58, %v16201_v9  ;;  %v7290_v38 = vrot.slane %v16182_v23, %v9809_v15  ;;  %v6937_v39 = vmul.f32 %v6902_v28, %v16202_v47 }
 0x790   :  { %8606 = vmatprep.mubr.msk.f32.mxu0 %vm7515_vm2, %v7511_v41  ;;  %v6585_v51 = vadd.f32 %v6553_v13, %v6393_v49  ;;  %v7286_v59 = vrot.slane %v16191_v6, %v9809_v15  ;;  %v7129_v44 = vmul.f32 %v7094_v35, %v16203_v48 }
 0x791   :  { %8607 = vmatmul.mubr.msk.f32.gmra.mrb[44].mxu0 %vm7515_vm2, %v7512_v21  ;;  %v7162_v22 = vadd.f32 %v7130_v62, %v6970_v29  ;;  %v7322_v17 = vmul.f32 %v7290_v38, %v16204_v4 }
 0x792   :  { %v6777_v36 = vadd.f32 %v6745_v26, %v6585_v51  ;;  %v7321_v10 = vmul.f32 %v7286_v59, %v16205_v50 }
 0x793   :  { %v7354_v8 = vadd.f32 %v7322_v17, %v7162_v22 }
 0x794   :  { %v6969_v20 = vadd.f32 %v6937_v39, %v6777_v36 }
 0x795   :  { %v7514_v23 = vsel %vm2829_vm1, %v7354_v8, %v7450_v27 }
 0x796   :  { %v7161_v12 = vadd.f32 %v7129_v44, %v6969_v20 }
 0x798   :  { %v7353_v3 = vadd.f32 %v7321_v10, %v7161_v12 }
 0x79a   :  { %v7513_v57 = vsel %vm2829_vm1, %v7353_v3, %v7448_v16 }
 0x79b   :  { %8609 = vmatprep.mubr.msk.f32.mxu0 %vm7515_vm2, %v7513_v57 }
 0x79c   :  { %8610 = vmatmul.mubr.msk.f32.gmra.mrb[46].mxu0 %vm7515_vm2, %v7514_v23 }
 0x80a   :  { %v14230_v15 = vpop.f32.mrb[16].mxu0 }
 0x80b   :  { %v7838_v6 = vsel %vm2829_vm1, %v14230_v15, 0.0  ;;  %v7908_v33 = vmul.f32 %v14230_v15, %v14230_v15  ;;  %v14236_v61 = vpop.f32.mrb[17].mxu0 }
 0x80c   :  { %v7837_v43 = vsel %vm2829_vm1, %v14236_v61, 0.0  ;;  %v7907_v0 = vmul.f32 %v14236_v61, %v14236_v61 }
 0x80d   :  { %v7940_v18 = vsel %vm2829_vm1, %v7908_v33, 0.0  ;;  %v7839_v53 = vadd.f32 %v7838_v6, %v7837_v43 }
 0x80e   :  { %v7939_v46 = vsel %vm2829_vm1, %v7907_v0, 0.0 }
 0x80f   :  { %v7941_v2 = vadd.f32 %v7940_v18, %v7939_v46 }
 0x812   :  { %v14244_v52 = vpop.f32.mrb[18].mxu0 }
 0x813   :  { %v14246_v11 = vpop.f32.mrb[19].mxu0  ;;  %v7910_v63 = vmul.f32 %v14244_v52, %v14244_v52  ;;  %v7842_v40 = vsel %vm2829_vm1, %v14244_v52, 0.0 }
 0x814   :  { %v7840_v7 = vsel %vm2829_vm1, %v14246_v11, 0.0  ;;  %v7909_v31 = vmul.f32 %v14246_v11, %v14246_v11 }
 0x815   :  { %v7841_v60 = vadd.f32 %v7840_v7, %v7839_v53  ;;  %v7944_v37 = vsel %vm2829_vm1, %v7910_v63, 0.0 }
 0x816   :  { %v7942_v32 = vsel %vm2829_vm1, %v7909_v31, 0.0  ;;  %v14257_v56 = vpop.f32.mrb[20].mxu0 }
 0x817   :  { %v7943_v55 = vadd.f32 %v7942_v32, %v7941_v2  ;;  %v14259_v5 = vpop.f32.mrb[21].mxu0  ;;  %v7843_v42 = vadd.f32 %v7842_v40, %v7841_v60  ;;  %v7912_v25 = vmul.f32 %v14257_v56, %v14257_v56  ;;  %v7846_v1 = vsel %vm2829_vm1, %v14257_v56, 0.0 }
 0x818   :  { %v7844_v19 = vsel %vm2829_vm1, %v14259_v5, 0.0  ;;  %v7911_v34 = vmul.f32 %v14259_v5, %v14259_v5 }
 0x819   :  { %v7845_v30 = vadd.f32 %v7844_v19, %v7843_v42  ;;  %v7945_v45 = vadd.f32 %v7944_v37, %v7943_v55  ;;  %v7948_v13 = vsel %vm2829_vm1, %v7912_v25, 0.0 }
 0x81a   :  { %v7946_v24 = vsel %vm2829_vm1, %v7911_v34, 0.0  ;;  %v14271_v58 = vpop.f32.mrb[22].mxu0 }
 0x81b   :  { %v7947_v21 = vadd.f32 %v7946_v24, %v7945_v45  ;;  %v14273_v49 = vpop.f32.mrb[23].mxu0  ;;  %v7847_v14 = vadd.f32 %v7846_v1, %v7845_v30  ;;  %v7914_v28 = vmul.f32 %v14271_v58, %v14271_v58  ;;  %v7850_v26 = vsel %vm2829_vm1, %v14271_v58, 0.0 }
 0x81c   :  { %v7848_v41 = vsel %vm2829_vm1, %v14273_v49, 0.0  ;;  %v7913_v29 = vmul.f32 %v14273_v49, %v14273_v49 }
 0x81d   :  { %v7849_v51 = vadd.f32 %v7848_v41, %v7847_v14  ;;  %v7949_v54 = vadd.f32 %v7948_v13, %v7947_v21  ;;  %v7952_v47 = vsel %vm2829_vm1, %v7914_v28, 0.0 }
 0x81e   :  { %v7950_v35 = vsel %vm2829_vm1, %v7913_v29, 0.0  ;;  %v14285_v9 = vpop.f32.mrb[24].mxu0 }
 0x81f   :  { %v7951_v62 = vadd.f32 %v7950_v35, %v7949_v54  ;;  %v14287_v38 = vpop.f32.mrb[25].mxu0  ;;  %v7851_v36 = vadd.f32 %v7850_v26, %v7849_v51  ;;  %v7916_v39 = vmul.f32 %v14285_v9, %v14285_v9  ;;  %v7854_v44 = vsel %vm2829_vm1, %v14285_v9, 0.0 }
 0x820   :  { %v7852_v59 = vsel %vm2829_vm1, %v14287_v38, 0.0  ;;  %v7915_v22 = vmul.f32 %v14287_v38, %v14287_v38 }
 0x821   :  { %v7853_v20 = vadd.f32 %v7852_v59, %v7851_v36  ;;  %v7953_v48 = vadd.f32 %v7952_v47, %v7951_v62  ;;  %v7956_v10 = vsel %vm2829_vm1, %v7916_v39, 0.0 }
 0x822   :  { %v7954_v4 = vsel %vm2829_vm1, %v7915_v22, 0.0  ;;  %v14299_v17 = vpop.f32.mrb[26].mxu0 }
 0x823   :  { %v7955_v27 = vadd.f32 %v7954_v4, %v7953_v48  ;;  %v14301_v12 = vpop.f32.mrb[27].mxu0  ;;  %v7855_v50 = vadd.f32 %v7854_v44, %v7853_v20  ;;  %v7918_v8 = vmul.f32 %v14299_v17, %v14299_v17  ;;  %v7858_v6 = vsel %vm2829_vm1, %v14299_v17, 0.0 }
 0x824   :  { %v7856_v16 = vsel %vm2829_vm1, %v14301_v12, 0.0  ;;  %v7917_v3 = vmul.f32 %v14301_v12, %v14301_v12 }
 0x825   :  { %v7857_v23 = vadd.f32 %v7856_v16, %v7855_v50  ;;  %v7957_v57 = vadd.f32 %v7956_v10, %v7955_v27  ;;  %v7960_v46 = vsel %vm2829_vm1, %v7918_v8, 0.0 }
 0x826   :  { %v7958_v33 = vsel %vm2829_vm1, %v7917_v3, 0.0  ;;  %v14313_v43 = vpop.f32.mrb[28].mxu0 }
 0x827   :  { %v7959_v0 = vadd.f32 %v7958_v33, %v7957_v57  ;;  %v14315_v18 = vpop.f32.mrb[29].mxu0  ;;  %v7859_v53 = vadd.f32 %v7858_v6, %v7857_v23  ;;  %v7920_v2 = vmul.f32 %v14313_v43, %v14313_v43  ;;  %v7862_v40 = vsel %vm2829_vm1, %v14313_v43, 0.0 }
 0x828   :  { %v7860_v63 = vsel %vm2829_vm1, %v14315_v18, 0.0  ;;  %v7919_v7 = vmul.f32 %v14315_v18, %v14315_v18 }
 0x829   :  { %v7861_v31 = vadd.f32 %v7860_v63, %v7859_v53  ;;  %v7961_v60 = vadd.f32 %v7960_v46, %v7959_v0  ;;  %v7964_v19 = vsel %vm2829_vm1, %v7920_v2, 0.0 }
 0x82a   :  { %v7962_v32 = vsel %vm2829_vm1, %v7919_v7, 0.0  ;;  %v14327_v55 = vpop.f32.mrb[30].mxu0 }
 0x82b   :  { %v7963_v42 = vadd.f32 %v7962_v32, %v7961_v60  ;;  %v14329_v37 = vpop.f32.mrb[31].mxu0  ;;  %v7863_v25 = vadd.f32 %v7862_v40, %v7861_v31  ;;  %v7922_v34 = vmul.f32 %v14327_v55, %v14327_v55  ;;  %v7866_v21 = vsel %vm2829_vm1, %v14327_v55, 0.0 }
 0x82c   :  { %v7864_v30 = vsel %vm2829_vm1, %v14329_v37, 0.0  ;;  %v7921_v45 = vmul.f32 %v14329_v37, %v14329_v37 }
 0x82d   :  { %v7865_v1 = vadd.f32 %v7864_v30, %v7863_v25  ;;  %v7965_v24 = vadd.f32 %v7964_v19, %v7963_v42  ;;  %v7968_v51 = vsel %vm2829_vm1, %v7922_v34, 0.0 }
 0x82e   :  { %v7966_v14 = vsel %vm2829_vm1, %v7921_v45, 0.0  ;;  %v14341_v13 = vpop.f32.mrb[32].mxu0 }
 0x82f   :  { %v7967_v28 = vadd.f32 %v7966_v14, %v7965_v24  ;;  %v14343_v41 = vpop.f32.mrb[33].mxu0  ;;  %v7867_v29 = vadd.f32 %v7866_v21, %v7865_v1  ;;  %v7924_v54 = vmul.f32 %v14341_v13, %v14341_v13  ;;  %v7870_v47 = vsel %vm2829_vm1, %v14341_v13, 0.0 }
 0x830   :  { %v7868_v26 = vsel %vm2829_vm1, %v14343_v41, 0.0  ;;  %v7923_v35 = vmul.f32 %v14343_v41, %v14343_v41 }
 0x831   :  { %v7869_v62 = vadd.f32 %v7868_v26, %v7867_v29  ;;  %v7969_v36 = vadd.f32 %v7968_v51, %v7967_v28  ;;  %v7972_v44 = vsel %vm2829_vm1, %v7924_v54, 0.0 }
 0x832   :  { %v7970_v39 = vsel %vm2829_vm1, %v7923_v35, 0.0  ;;  %v14355_v59 = vpop.f32.mrb[34].mxu0 }
 0x833   :  { %v7971_v22 = vadd.f32 %v7970_v39, %v7969_v36  ;;  %v14357_v20 = vpop.f32.mrb[35].mxu0  ;;  %v7871_v48 = vadd.f32 %v7870_v47, %v7869_v62  ;;  %v7926_v4 = vmul.f32 %v14355_v59, %v14355_v59  ;;  %v7874_v16 = vsel %vm2829_vm1, %v14355_v59, 0.0 }
 0x834   :  { %v7872_v27 = vsel %vm2829_vm1, %v14357_v20, 0.0  ;;  %v7925_v50 = vmul.f32 %v14357_v20, %v14357_v20 }
 0x835   :  { %v7873_v10 = vadd.f32 %v7872_v27, %v7871_v48  ;;  %v7973_v8 = vadd.f32 %v7972_v44, %v7971_v22  ;;  %v7976_v0 = vsel %vm2829_vm1, %v7926_v4, 0.0 }
 0x836   :  { %v7974_v3 = vsel %vm2829_vm1, %v7925_v50, 0.0  ;;  %v14369_v23 = vpop.f32.mrb[36].mxu0 }
 0x837   :  { %v7975_v57 = vadd.f32 %v7974_v3, %v7973_v8  ;;  %v14371_v6 = vpop.f32.mrb[37].mxu0  ;;  %v7875_v33 = vadd.f32 %v7874_v16, %v7873_v10  ;;  %v7928_v53 = vmul.f32 %v14369_v23, %v14369_v23  ;;  %v7878_v31 = vsel %vm2829_vm1, %v14369_v23, 0.0 }
 0x838   :  { %v7876_v46 = vsel %vm2829_vm1, %v14371_v6, 0.0  ;;  %v7927_v2 = vmul.f32 %v14371_v6, %v14371_v6 }
 0x839   :  { %v7877_v63 = vadd.f32 %v7876_v46, %v7875_v33  ;;  %v7977_v7 = vadd.f32 %v7976_v0, %v7975_v57  ;;  %v7980_v42 = vsel %vm2829_vm1, %v7928_v53, 0.0 }
 0x83a   :  { %v7978_v60 = vsel %vm2829_vm1, %v7927_v2, 0.0 }
 0x83b   :  { %v7979_v40 = vadd.f32 %v7978_v60, %v7977_v7  ;;  %v7879_v32 = vadd.f32 %v7878_v31, %v7877_v63 }
 0x83d   :  { %v7981_v25 = vadd.f32 %v7980_v42, %v7979_v40 }
 0x83f   :  { %v14384_v19 = vpop.f32.mrb[38].mxu0 }
 0x840   :  { %v14386_v34 = vpop.f32.mrb[39].mxu0  ;;  %v7930_v30 = vmul.f32 %v14384_v19, %v14384_v19  ;;  %v7882_v21 = vsel %vm2829_vm1, %v14384_v19, 0.0 }
 0x841   :  { %v7880_v45 = vsel %vm2829_vm1, %v14386_v34, 0.0  ;;  %v7929_v1 = vmul.f32 %v14386_v34, %v14386_v34 }
 0x842   :  { %v7881_v24 = vadd.f32 %v7880_v45, %v7879_v32  ;;  %v7984_v51 = vsel %vm2829_vm1, %v7930_v30, 0.0 }
 0x843   :  { %v7982_v14 = vsel %vm2829_vm1, %v7929_v1, 0.0 }
 0x844   :  { %v7983_v28 = vadd.f32 %v7982_v14, %v7981_v25  ;;  %v7883_v29 = vadd.f32 %v7882_v21, %v7881_v24 }
 0x846   :  { %v7985_v54 = vadd.f32 %v7984_v51, %v7983_v28 }
 0x84c   :  { %v14398_v26 = vpop.f32.mrb[40].mxu0 }
 0x84d   :  { %v14400_v35 = vpop.f32.mrb[41].mxu0  ;;  %v7932_v62 = vmul.f32 %v14398_v26, %v14398_v26  ;;  %v7886_v22 = vsel %vm2829_vm1, %v14398_v26, 0.0 }
 0x84e   :  { %v7884_v36 = vsel %vm2829_vm1, %v14400_v35, 0.0  ;;  %v7931_v47 = vmul.f32 %v14400_v35, %v14400_v35 }
 0x84f   :  { %v7885_v39 = vadd.f32 %v7884_v36, %v7883_v29  ;;  %v7988_v27 = vsel %vm2829_vm1, %v7932_v62, 0.0 }
 0x850   :  { %v7986_v48 = vsel %vm2829_vm1, %v7931_v47, 0.0 }
 0x851   :  { %v7987_v44 = vadd.f32 %v7986_v48, %v7985_v54  ;;  %v7887_v4 = vadd.f32 %v7886_v22, %v7885_v39 }
 0x853   :  { %v7989_v50 = vadd.f32 %v7988_v27, %v7987_v44 }
 0x857   :  { %v14412_v10 = vpop.f32.mrb[42].mxu0 }
 0x858   :  { %v14414_v8 = vpop.f32.mrb[43].mxu0  ;;  %v7934_v16 = vmul.f32 %v14412_v10, %v14412_v10  ;;  %v7890_v0 = vsel %vm2829_vm1, %v14412_v10, 0.0 }
 0x859   :  { %v7888_v3 = vsel %vm2829_vm1, %v14414_v8, 0.0  ;;  %v7933_v57 = vmul.f32 %v14414_v8, %v14414_v8 }
 0x85a   :  { %v7889_v33 = vadd.f32 %v7888_v3, %v7887_v4  ;;  %v7992_v63 = vsel %vm2829_vm1, %v7934_v16, 0.0 }
 0x85b   :  { %v7990_v53 = vsel %vm2829_vm1, %v7933_v57, 0.0 }
 0x85c   :  { %v7991_v46 = vadd.f32 %v7990_v53, %v7989_v50  ;;  %v7891_v2 = vadd.f32 %v7890_v0, %v7889_v33 }
 0x85e   :  { %v7993_v7 = vadd.f32 %v7992_v63, %v7991_v46 }
 0x864   :  { %v14426_v31 = vpop.f32.mrb[44].mxu0 }
 0x865   :  { %v14428_v60 = vpop.f32.mrb[45].mxu0  ;;  %v7936_v40 = vmul.f32 %v14426_v31, %v14426_v31  ;;  %v7894_v30 = vsel %vm2829_vm1, %v14426_v31, 0.0 }
 0x866   :  { %v7892_v32 = vsel %vm2829_vm1, %v14428_v60, 0.0  ;;  %v7935_v42 = vmul.f32 %v14428_v60, %v14428_v60 }
 0x867   :  { %v7893_v25 = vadd.f32 %v7892_v32, %v7891_v2  ;;  %v7996_v21 = vsel %vm2829_vm1, %v7936_v40, 0.0 }
 0x868   :  { %v7994_v45 = vsel %vm2829_vm1, %v7935_v42, 0.0 }
 0x869   :  { %v7995_v1 = vadd.f32 %v7994_v45, %v7993_v7  ;;  %v7895_v24 = vadd.f32 %v7894_v30, %v7893_v25 }
 0x86b   :  { %v7997_v14 = vadd.f32 %v7996_v21, %v7995_v1 }
 0x86f   :  { %v14440_v28 = vpop.f32.mrb[46].mxu0 }
 0x870   :  { %v14442_v29 = vpop.f32.mrb[47].mxu0  ;;  %v7938_v51 = vmul.f32 %v14440_v28, %v14440_v28  ;;  %v7898_v47 = vsel %vm2829_vm1, %v14440_v28, 0.0 }
 0x871   :  { %v7896_v54 = vsel %vm2829_vm1, %v14442_v29, 0.0  ;;  %v7937_v62 = vmul.f32 %v14442_v29, %v14442_v29 }
 0x872   :  { %v7897_v36 = vadd.f32 %v7896_v54, %v7895_v24  ;;  %v8000_v44 = vsel %vm2829_vm1, %v7938_v51, 0.0 }
 0x873   :  { %v7998_v39 = vsel %vm2829_vm1, %v7937_v62, 0.0 }
 0x874   :  { %v7899_v22 = vadd.f32 %v7898_v47, %v7897_v36  ;;  %v7999_v48 = vadd.f32 %v7998_v39, %v7997_v14 }
 0x876   :  { %v7900_v4 = vrot.slane %v7899_v22, 4  ;;  %v8001_v27 = vadd.f32 %v8000_v44, %v7999_v48 }
 0x878   :  { %v7901_v50 = vadd.f32 %v7900_v4, %v7899_v22  ;;  %v8002_v16 = vrot.slane %v8001_v27, 4 }
 0x87a   :  { %v7902_v3 = vrot.slane %v7901_v50, 2  ;;  %v8003_v57 = vadd.f32 %v8002_v16, %v8001_v27 }
 0x87c   :  { %v7903_v33 = vadd.f32 %v7902_v3, %v7901_v50  ;;  %v8004_v0 = vrot.slane %v8003_v57, 2 }
 0x87e   :  { %v7904_v53 = vrot.slane %v7903_v33, 1  ;;  %v8005_v46 = vadd.f32 %v8004_v0, %v8003_v57 }
 0x880   :  { %v7905_v2 = vadd.f32 %v7904_v53, %v7903_v33  ;;  %v8006_v63 = vrot.slane %v8005_v46, 1  ;;  %v8322_v53 = vld [vmem:[%s14701_s9] ss:$0 sm:$0xff] }
 0x882   :  { %v14454_v7 = vmul.f32 0.00390625, %v7905_v2  ;;  %v8007_v40 = vadd.f32 %v8006_v63, %v8005_v46 }
 0x884   :  { %v8008_v32 = vmul.f32 0.00390625, %v8007_v40  ;;  %v8009_v42 = vmul.f32 %v14454_v7, %v14454_v7  ;;  %v8012_v25 = vsub.f32 %v14236_v61, %v14454_v7  ;;  %v8013_v30 = vsub.f32 %v14230_v15, %v14454_v7 }
 0x885   :  { %v8014_v45 = vsub.f32 %v14246_v11, %v14454_v7  ;;  %v8015_v1 = vsub.f32 %v14244_v52, %v14454_v7  ;;  %v8016_v24 = vsub.f32 %v14259_v5, %v14454_v7  ;;  %v8017_v21 = vsub.f32 %v14257_v56, %v14454_v7 }
 0x886   :  { %v8010_v14 = vsub.f32 %v8008_v32, %v8009_v42  ;;  %v8018_v51 = vsub.f32 %v14273_v49, %v14454_v7  ;;  %v8019_v61 = vsub.f32 %v14271_v58, %v14454_v7  ;;  %v8020_v15 = vsub.f32 %v14287_v38, %v14454_v7 }
 0x887   :  { %v8021_v11 = vsub.f32 %v14285_v9, %v14454_v7  ;;  %v8022_v52 = vsub.f32 %v14301_v12, %v14454_v7  ;;  %v8023_v5 = vsub.f32 %v14299_v17, %v14454_v7  ;;  %v8024_v56 = vsub.f32 %v14315_v18, %v14454_v7 }
 0x888   :  { %v8011_v54 = vmax.f32 %v8010_v14, 0.0  ;;  %v8025_v49 = vsub.f32 %v14313_v43, %v14454_v7  ;;  %v8026_v58 = vsub.f32 %v14329_v37, %v14454_v7  ;;  %v8027_v38 = vsub.f32 %v14327_v55, %v14454_v7 }
 0x889   :  { %v8028_v9 = vsub.f32 %v14343_v41, %v14454_v7  ;;  %v8029_v12 = vsub.f32 %v14341_v13, %v14454_v7  ;;  %v8030_v17 = vsub.f32 %v14357_v20, %v14454_v7  ;;  %v8031_v18 = vsub.f32 %v14355_v59, %v14454_v7 }
 0x88a   :  { %v8032_v43 = vsub.f32 %v14371_v6, %v14454_v7  ;;  %v8033_v37 = vsub.f32 %v14369_v23, %v14454_v7  ;;  %v8034_v55 = vsub.f32 %v14386_v34, %v14454_v7  ;;  %v8035_v41 = vsub.f32 %v14384_v19, %v14454_v7 }
 0x88b   :  { %v8036_v13 = vsub.f32 %v14400_v35, %v14454_v7  ;;  %v8037_v20 = vsub.f32 %v14398_v26, %v14454_v7  ;;  %v8038_v59 = vsub.f32 %v14414_v8, %v14454_v7  ;;  %v8039_v6 = vsub.f32 %v14412_v10, %v14454_v7 }
 0x88c   :  { %v8040_v23 = vsub.f32 %v14428_v60, %v14454_v7  ;;  %v8041_v34 = vsub.f32 %v14426_v31, %v14454_v7  ;;  %v8042_v19 = vsub.f32 %v14442_v29, %v14454_v7  ;;  %v8043_v35 = vsub.f32 %v14440_v28, %v14454_v7 }
 0x88d   :  { %v8044_v62 = vadd.f32 1e-05, %v8011_v54 }
 0x88f   :  { %8819 = vrsqrt.f32 %v8044_v62 }
 0x899   :  { %v8820_v26 = vpop.eup %8819 }
 0x89a   :  { %v8046_v36 = vmul.f32 %v8820_v26, %v8012_v25  ;;  %v8047_v8 = vmul.f32 %v8820_v26, %v8013_v30  ;;  %v8048_v47 = vmul.f32 %v8820_v26, %v8014_v45  ;;  %v8049_v39 = vmul.f32 %v8820_v26, %v8015_v1 }
 0x89b   :  { %v8050_v10 = vmul.f32 %v8820_v26, %v8016_v24  ;;  %v8051_v22 = vmul.f32 %v8820_v26, %v8017_v21  ;;  %v8052_v48 = vmul.f32 %v8820_v26, %v8018_v51  ;;  %v8053_v60 = vmul.f32 %v8820_v26, %v8019_v61 }
 0x89c   :  { %v8054_v44 = vmul.f32 %v8820_v26, %v8020_v15  ;;  %v8055_v4 = vmul.f32 %v8820_v26, %v8021_v11  ;;  %v8056_v31 = vmul.f32 %v8820_v26, %v8022_v52  ;;  %v8057_v27 = vmul.f32 %v8820_v26, %v8023_v5 }
 0x89d   :  { %v8058_v50 = vmul.f32 %v8820_v26, %v8024_v56  ;;  %v8059_v29 = vmul.f32 %v8820_v26, %v8025_v49  ;;  %v8060_v16 = vmul.f32 %v8820_v26, %v8026_v58  ;;  %v8061_v3 = vmul.f32 %v8820_v26, %v8027_v38 }
 0x89e   :  { %v8062_v28 = vmul.f32 %v8820_v26, %v8028_v9  ;;  %v8063_v57 = vmul.f32 %v8820_v26, %v8029_v12  ;;  %v8064_v33 = vmul.f32 %v8820_v26, %v8030_v17  ;;  %v8065_v0 = vmul.f32 %v8820_v26, %v8031_v18 }
 0x89f   :  { %v8066_v46 = vmul.f32 %v8820_v26, %v8032_v43  ;;  %v8067_v2 = vmul.f32 %v8820_v26, %v8033_v37  ;;  %v8068_v63 = vmul.f32 %v8820_v26, %v8034_v55  ;;  %v8069_v7 = vmul.f32 %v8820_v26, %v8035_v41  ;;  %v8323_v41 = vld [vmem:[%s14702_s10] ss:$0 sm:$0xff] }
 0x8a0   :  { %v8070_v40 = vmul.f32 %v8820_v26, %v8036_v13  ;;  %v8071_v32 = vmul.f32 %v8820_v26, %v8037_v20  ;;  %v8072_v42 = vmul.f32 %v8820_v26, %v8038_v59  ;;  %v8073_v25 = vmul.f32 %v8820_v26, %v8039_v6 }
 0x8a1   :  { %v8074_v30 = vmul.f32 %v8820_v26, %v8040_v23  ;;  %v8075_v45 = vmul.f32 %v8820_v26, %v8041_v34  ;;  %v8076_v1 = vmul.f32 %v8820_v26, %v8042_v19  ;;  %v8077_v24 = vmul.f32 %v8820_v26, %v8043_v35 }
 0x8a2   :  { %v8084_v21 = vmul.f32 %v8322_v53, %v8046_v36  ;;  %v8085_v14 = vmul.f32 %v8322_v53, %v8047_v8  ;;  %v8086_v51 = vmul.f32 %v8322_v53, %v8048_v47  ;;  %v8087_v61 = vmul.f32 %v8322_v53, %v8049_v39 }
 0x8a3   :  { %v8088_v15 = vmul.f32 %v8322_v53, %v8050_v10  ;;  %v8089_v11 = vmul.f32 %v8322_v53, %v8051_v22  ;;  %v8090_v52 = vmul.f32 %v8322_v53, %v8052_v48  ;;  %v8091_v5 = vmul.f32 %v8322_v53, %v8053_v60 }
 0x8a4   :  { %v8092_v56 = vmul.f32 %v8322_v53, %v8054_v44  ;;  %v8093_v54 = vmul.f32 %v8322_v53, %v8055_v4  ;;  %v8094_v49 = vmul.f32 %v8322_v53, %v8056_v31  ;;  %v8095_v58 = vmul.f32 %v8322_v53, %v8057_v27 }
 0x8a5   :  { %v8096_v38 = vmul.f32 %v8322_v53, %v8058_v50  ;;  %v8097_v9 = vmul.f32 %v8322_v53, %v8059_v29  ;;  %v8098_v12 = vmul.f32 %v8322_v53, %v8060_v16  ;;  %v8099_v17 = vmul.f32 %v8322_v53, %v8061_v3 }
 0x8a6   :  { %v8100_v18 = vmul.f32 %v8322_v53, %v8062_v28  ;;  %v8101_v43 = vmul.f32 %v8322_v53, %v8063_v57  ;;  %v8102_v37 = vmul.f32 %v8322_v53, %v8064_v33  ;;  %v8103_v55 = vmul.f32 %v8322_v53, %v8065_v0 }
 0x8a7   :  { %v8104_v13 = vmul.f32 %v8322_v53, %v8066_v46  ;;  %v8105_v20 = vmul.f32 %v8322_v53, %v8067_v2  ;;  %v8106_v59 = vmul.f32 %v8322_v53, %v8068_v63  ;;  %v8107_v6 = vmul.f32 %v8322_v53, %v8069_v7 }
 0x8a8   :  { %v8108_v23 = vmul.f32 %v8322_v53, %v8070_v40  ;;  %v8109_v34 = vmul.f32 %v8322_v53, %v8071_v32  ;;  %v8110_v19 = vmul.f32 %v8322_v53, %v8072_v42  ;;  %v8111_v35 = vmul.f32 %v8322_v53, %v8073_v25 }
 0x8a9   :  { %v8112_v62 = vmul.f32 %v8322_v53, %v8074_v30  ;;  %v8113_v26 = vmul.f32 %v8322_v53, %v8075_v45  ;;  %v8114_v36 = vmul.f32 %v8322_v53, %v8076_v1  ;;  %v8115_v8 = vmul.f32 %v8322_v53, %v8077_v24 }
 0x8aa   :  { %v8122_v47 = vadd.f32 %v8323_v41, %v8084_v21  ;;  %v8123_v39 = vadd.f32 %v8323_v41, %v8085_v14  ;;  %v8124_v10 = vadd.f32 %v8323_v41, %v8086_v51  ;;  %v8125_v22 = vadd.f32 %v8323_v41, %v8087_v61 }
 0x8ab   :  { %v8126_v48 = vadd.f32 %v8323_v41, %v8088_v15  ;;  %v8127_v60 = vadd.f32 %v8323_v41, %v8089_v11  ;;  %v8128_v44 = vadd.f32 %v8323_v41, %v8090_v52  ;;  %v8129_v4 = vadd.f32 %v8323_v41, %v8091_v5 }
 0x8ac   :  { %v8130_v31 = vadd.f32 %v8323_v41, %v8092_v56  ;;  %v8131_v27 = vadd.f32 %v8323_v41, %v8093_v54  ;;  %v8132_v50 = vadd.f32 %v8323_v41, %v8094_v49  ;;  %v8133_v29 = vadd.f32 %v8323_v41, %v8095_v58 }
 0x8ad   :  { %v8134_v16 = vadd.f32 %v8323_v41, %v8096_v38  ;;  %v8135_v3 = vadd.f32 %v8323_v41, %v8097_v9  ;;  %v8136_v28 = vadd.f32 %v8323_v41, %v8098_v12  ;;  %v8137_v57 = vadd.f32 %v8323_v41, %v8099_v17 }
 0x8ae   :  { %v8138_v33 = vadd.f32 %v8323_v41, %v8100_v18  ;;  %v8139_v0 = vadd.f32 %v8323_v41, %v8101_v43  ;;  %v8140_v46 = vadd.f32 %v8323_v41, %v8102_v37  ;;  %v8141_v53 = vadd.f32 %v8323_v41, %v8103_v55 }
 0x8af   :  { %v14528_v2 = vadd.f32 %v8323_v41, %v8104_v13  ;;  %v14530_v63 = vadd.f32 %v8323_v41, %v8105_v20  ;;  %v14532_v7 = vadd.f32 %v8323_v41, %v8106_v59  ;;  %v14534_v40 = vadd.f32 %v8323_v41, %v8107_v6 }
 0x8b0   :  { %v14536_v32 = vadd.f32 %v8323_v41, %v8108_v23  ;;  %v14538_v42 = vadd.f32 %v8323_v41, %v8109_v34  ;;  %v14540_v25 = vadd.f32 %v8323_v41, %v8110_v19  ;;  %v14542_v30 = vadd.f32 %v8323_v41, %v8111_v35 }
 0x8b1   :  { %v14544_v45 = vadd.f32 %v8323_v41, %v8112_v62  ;;  %v14546_v1 = vadd.f32 %v8323_v41, %v8113_v26  ;;  %v14548_v24 = vadd.f32 %v8323_v41, %v8114_v36  ;;  %v14550_v21 = vadd.f32 %v8323_v41, %v8115_v8 }
 0x8b2   :  { %v8154_v14 = vmax.f32 %v8122_v47, 0.0  ;;  %v8155_v51 = vmax.f32 %v8123_v39, 0.0  ;;  %v8156_v61 = vmax.f32 %v8124_v10, 0.0  ;;  %v8157_v15 = vmax.f32 %v8125_v22, 0.0 }
 0x8b3   :  { %v8158_v11 = vmax.f32 %v8126_v48, 0.0  ;;  %v8159_v52 = vmax.f32 %v8127_v60, 0.0  ;;  %v8160_v5 = vmax.f32 %v8128_v44, 0.0  ;;  %v8161_v56 = vmax.f32 %v8129_v4, 0.0 }
 0x8b4   :  { %v8162_v54 = vmax.f32 %v8130_v31, 0.0  ;;  %v8163_v49 = vmax.f32 %v8131_v27, 0.0  ;;  %v8164_v58 = vmax.f32 %v8132_v50, 0.0  ;;  %v8165_v38 = vmax.f32 %v8133_v29, 0.0  ;;  %8186 = vst.msk [vmem:[%s14703_s11] sm:$0xff] %vm2829_vm1, %v8154_v14  ;;  %8187 = vst.msk [vmem:[%s14703_s11 + $0x8] sm:$0xff] %vm2829_vm1, %v8155_v51 }
 0x8b5   :  { %8188 = vst.msk [vmem:[%s14703_s11 + $0x10] sm:$0xff] %vm2829_vm1, %v8156_v61  ;;  %8189 = vst.msk [vmem:[%s14703_s11 + $0x18] sm:$0xff] %vm2829_vm1, %v8157_v15  ;;  %v8166_v9 = vmax.f32 %v8134_v16, 0.0  ;;  %v8167_v12 = vmax.f32 %v8135_v3, 0.0  ;;  %v8168_v17 = vmax.f32 %v8136_v28, 0.0  ;;  %v8169_v18 = vmax.f32 %v8137_v57, 0.0 }
 0x8b6   :  { %8190 = vst.msk [vmem:[%s14703_s11 + $0x20] sm:$0xff] %vm2829_vm1, %v8158_v11  ;;  %8191 = vst.msk [vmem:[%s14703_s11 + $0x28] sm:$0xff] %vm2829_vm1, %v8159_v52  ;;  %v8170_v43 = vmax.f32 %v8138_v33, 0.0  ;;  %v8171_v37 = vmax.f32 %v8139_v0, 0.0  ;;  %v8172_v55 = vmax.f32 %v8140_v46, 0.0  ;;  %v8173_v41 = vmax.f32 %v8141_v53, 0.0 }
 0x8b7   :  { %8192 = vst.msk [vmem:[%s14703_s11 + $0x30] sm:$0xff] %vm2829_vm1, %v8160_v5  ;;  %8193 = vst.msk [vmem:[%s14703_s11 + $0x38] sm:$0xff] %vm2829_vm1, %v8161_v56  ;;  %v8174_v13 = vmax.f32 %v14528_v2, 0.0  ;;  %v8175_v20 = vmax.f32 %v14530_v63, 0.0  ;;  %v8176_v59 = vmax.f32 %v14532_v7, 0.0  ;;  %v8177_v6 = vmax.f32 %v14534_v40, 0.0 }
 0x8b8   :  { %8194 = vst.msk [vmem:[%s14703_s11 + $0x40] sm:$0xff] %vm2829_vm1, %v8162_v54  ;;  %8195 = vst.msk [vmem:[%s14703_s11 + $0x48] sm:$0xff] %vm2829_vm1, %v8163_v49  ;;  %v8178_v23 = vmax.f32 %v14536_v32, 0.0  ;;  %v8179_v34 = vmax.f32 %v14538_v42, 0.0  ;;  %v8180_v19 = vmax.f32 %v14540_v25, 0.0  ;;  %v8181_v35 = vmax.f32 %v14542_v30, 0.0 }
 0x8b9   :  { %8196 = vst.msk [vmem:[%s14703_s11 + $0x50] sm:$0xff] %vm2829_vm1, %v8164_v58  ;;  %8197 = vst.msk [vmem:[%s14703_s11 + $0x58] sm:$0xff] %vm2829_vm1, %v8165_v38  ;;  %v8182_v62 = vmax.f32 %v14544_v45, 0.0  ;;  %v8183_v26 = vmax.f32 %v14546_v1, 0.0  ;;  %v8184_v36 = vmax.f32 %v14548_v24, 0.0  ;;  %v8185_v8 = vmax.f32 %v14550_v21, 0.0 }
 0x8ba   :  { %8198 = vst.msk [vmem:[%s14703_s11 + $0x60] sm:$0xff] %vm2829_vm1, %v8166_v9  ;;  %8199 = vst.msk [vmem:[%s14703_s11 + $0x68] sm:$0xff] %vm2829_vm1, %v8167_v12 }
 0x8bb   :  { %8200 = vst.msk [vmem:[%s14703_s11 + $0x70] sm:$0xff] %vm2829_vm1, %v8168_v17  ;;  %8201 = vst.msk [vmem:[%s14703_s11 + $0x78] sm:$0xff] %vm2829_vm1, %v8169_v18 }
 0x8bc   :  { %8202 = vst.msk [vmem:[%s14703_s11 + $0x80] sm:$0xff] %vm2829_vm1, %v8170_v43  ;;  %8203 = vst.msk [vmem:[%s14703_s11 + $0x88] sm:$0xff] %vm2829_vm1, %v8171_v37 }
 0x8bd   :  { %8204 = vst.msk [vmem:[%s14703_s11 + $0x90] sm:$0xff] %vm2829_vm1, %v8172_v55  ;;  %8205 = vst.msk [vmem:[%s14703_s11 + $0x98] sm:$0xff] %vm2829_vm1, %v8173_v41 }
 0x8be   :  { %8206 = vst.msk [vmem:[%s14703_s11 + $0xa0] sm:$0xff] %vm2829_vm1, %v8174_v13  ;;  %8207 = vst.msk [vmem:[%s14703_s11 + $0xa8] sm:$0xff] %vm2829_vm1, %v8175_v20 }
 0x8bf   :  { %8208 = vst.msk [vmem:[%s14703_s11 + $0xb0] sm:$0xff] %vm2829_vm1, %v8176_v59  ;;  %8209 = vst.msk [vmem:[%s14703_s11 + $0xb8] sm:$0xff] %vm2829_vm1, %v8177_v6 }
 0x8c0   :  { %8210 = vst.msk [vmem:[%s14703_s11 + $0xc0] sm:$0xff] %vm2829_vm1, %v8178_v23  ;;  %8211 = vst.msk [vmem:[%s14703_s11 + $0xc8] sm:$0xff] %vm2829_vm1, %v8179_v34 }
 0x8c1   :  { %8212 = vst.msk [vmem:[%s14703_s11 + $0xd0] sm:$0xff] %vm2829_vm1, %v8180_v19  ;;  %8213 = vst.msk [vmem:[%s14703_s11 + $0xd8] sm:$0xff] %vm2829_vm1, %v8181_v35 }
 0x8c2   :  { %8214 = vst.msk [vmem:[%s14703_s11 + $0xe0] sm:$0xff] %vm2829_vm1, %v8182_v62  ;;  %8215 = vst.msk [vmem:[%s14703_s11 + $0xe8] sm:$0xff] %vm2829_vm1, %v8183_v26 }
 0x8c3   :  { %8216 = vst.msk [vmem:[%s14703_s11 + $0xf0] sm:$0xff] %vm2829_vm1, %v8184_v36  ;;  %8217 = vst.msk [vmem:[%s14703_s11 + $0xf8] sm:$0xff] %vm2829_vm1, %v8185_v8 }

</bundles_post_ra>
